<compile_context>
chip_gen: v7x
topology: tpu7x:2x2x1
jax: 0.10.0
libtpu: 0.0.40
codegen_flags: <defaults>
</compile_context>

<pallas_src>
import functools

import jax
import jax.numpy as jnp
from jax import lax
from jax.experimental import pallas as pl
from jax.experimental.pallas import tpu as pltpu


# ----------------------- Pallas kernels -----------------------

def _dot_nt(x, w):
    """x: (M, K) @ w: (Nout, K) -> (M, Nout); weight kept in torch layout
    (contraction on dim 1 of both operands => no HBM transpose of w)."""
    return lax.dot_general(
        x, w, dimension_numbers=(((1,), (1,)), ((), ())),
        preferred_element_type=jnp.float32)


def _linear_fused_kernel(x_ref, w_ref, b_ref, o_ref, *, relu):
    """Single K step: out = act(x @ w.T + b). No accumulator scratch."""
    r = _dot_nt(x_ref[...], w_ref[...]) + b_ref[...]
    if relu:
        r = jnp.maximum(r, 0.0)
    o_ref[...] = r.astype(o_ref.dtype)


def linear_fused(x, w, b, *, relu, tm=None):
    """x: (M, K), w: (Nout, K) [torch layout], b: (Nout,) -> (M, Nout) f32.
    Grid over M tiles, marked "parallel" so v7x can shard rows across its 2 TCs."""
    M, K = x.shape
    Nout, K2 = w.shape
    assert K == K2
    if tm is None:
        tm = 392 if (M % 392 == 0) else M
    assert M % tm == 0
    return pl.pallas_call(
        functools.partial(_linear_fused_kernel, relu=relu),
        out_shape=jax.ShapeDtypeStruct((M, Nout), jnp.float32),
        grid_spec=pltpu.PrefetchScalarGridSpec(
            num_scalar_prefetch=0,
            grid=(M // tm,),
            in_specs=[
                pl.BlockSpec((tm, K), lambda m: (m, 0)),
                pl.BlockSpec((Nout, K), lambda m: (0, 0)),
                pl.BlockSpec((1, Nout), lambda m: (0, 0)),
            ],
            out_specs=pl.BlockSpec((tm, Nout), lambda m: (m, 0)),
        ),
        compiler_params=pltpu.CompilerParams(
            dimension_semantics=("parallel",)),
    )(x, w, b.reshape(1, Nout))


def _linear_ktiled_kernel(x_ref, w_ref, b_ref, o_ref, acc_ref, *, relu):
    """K-tiled: grid = (Nout tiles [parallel], K tiles [arbitrary])."""
    k = pl.program_id(1)

    @pl.when(k == 0)
    def _():
        acc_ref[...] = jnp.zeros_like(acc_ref)

    acc_ref[...] += _dot_nt(x_ref[...], w_ref[...])

    @pl.when(k == pl.num_programs(1) - 1)
    def _():
        r = acc_ref[...] + b_ref[...]
        if relu:
            r = jnp.maximum(r, 0.0)
        o_ref[...] = r.astype(o_ref.dtype)


def linear_ktiled(x, w, b, *, relu, tn, tk):
    """x: (M, K), w: (Nout, K) [torch layout], b: (Nout,) -> (M, Nout) f32."""
    M, K = x.shape
    Nout, K2 = w.shape
    assert K == K2 and K % tk == 0 and Nout % tn == 0
    return pl.pallas_call(
        functools.partial(_linear_ktiled_kernel, relu=relu),
        out_shape=jax.ShapeDtypeStruct((M, Nout), jnp.float32),
        grid_spec=pltpu.PrefetchScalarGridSpec(
            num_scalar_prefetch=0,
            grid=(Nout // tn, K // tk),
            in_specs=[
                pl.BlockSpec((M, tk), lambda j, k: (0, k)),
                pl.BlockSpec((tn, tk), lambda j, k: (j, k)),
                pl.BlockSpec((1, tn), lambda j, k: (0, j)),
            ],
            out_specs=pl.BlockSpec((M, tn), lambda j, k: (0, j)),
            scratch_shapes=[pltpu.VMEM((M, tn), jnp.float32)],
        ),
        compiler_params=pltpu.CompilerParams(
            dimension_semantics=("parallel", "arbitrary")),
    )(x, w, b.reshape(1, Nout))


def _maxpool2x2_kernel(x_ref, o_ref, hmax_ref):
    """2x2 / stride-2 max pool on one NHWC image; reads the activation once."""
    x = x_ref[0]                                       # (28, 28, 128): h, w, c
    xh = x.reshape(14, 2, 28, 128)                     # split of leading dim (free)
    hmax_ref[...] = jnp.maximum(xh[:, 0], xh[:, 1])    # (14, 28, 128) h-pooled
    for j in range(14):                                # static unroll over w pairs
        o_ref[0, :, j, :] = jnp.maximum(hmax_ref[:, 2 * j, :],
                                        hmax_ref[:, 2 * j + 1, :])


def maxpool2x2_nhwc(x_nhwc):
    N, H, W, C = x_nhwc.shape
    assert (H, W, C) == (28, 28, 128)
    return pl.pallas_call(
        _maxpool2x2_kernel,
        out_shape=jax.ShapeDtypeStruct((N, 14, 14, C), jnp.float32),
        grid_spec=pltpu.PrefetchScalarGridSpec(
            num_scalar_prefetch=0,
            grid=(N,),
            in_specs=[pl.BlockSpec((1, H, W, C), lambda n: (n, 0, 0, 0))],
            out_specs=pl.BlockSpec((1, 14, 14, C), lambda n: (n, 0, 0, 0)),
            scratch_shapes=[pltpu.VMEM((14, 28, C), jnp.float32)],
        ),
        compiler_params=pltpu.CompilerParams(
            dimension_semantics=("parallel",)),
    )(x_nhwc)


# ----------------------- Model glue -----------------------

def _conv3x3_same_relu(x_nhwc, w_oihw, b, *, tm=392):
    """3x3 stride-1 'same' conv + bias + ReLU, channels-last activations.
    im2col columns are ordered (kh, kw, cin) so the torch (Cout,Cin,3,3) weight
    only needs a tiny reshape/permute; the matmul+bias+ReLU run in Pallas."""
    N, H, W, Cin = x_nhwc.shape
    Cout = w_oihw.shape[0]
    xp = jnp.pad(x_nhwc, ((0, 0), (1, 1), (1, 1), (0, 0)))
    # TODO(synk): move the 9-tap (kh,kw) accumulation inside the Pallas kernel
    # (element-offset BlockSpecs over the padded input) to avoid materializing
    # the 9x patch tensor; kept as a single slice+concat in XLA for robustness.
    pat = jnp.concatenate(
        [xp[:, kh:kh + H, kw:kw + W, :] for kh in range(3) for kw in range(3)],
        axis=-1)                                            # (N, H, W, 9*Cin)
    patches = pat.reshape(N * H * W, 9 * Cin)
    w2d = w_oihw.transpose(0, 2, 3, 1).reshape(Cout, 9 * Cin)  # (Cout, kh*kw*cin), tiny
    out = linear_fused(patches, w2d, b, relu=True, tm=tm)      # Pallas hot path
    return out.reshape(N, H, W, Cout)                          # stays channels-last


def model_forward(params, x):
    N = x.shape[0]
    # NCHW -> NHWC is a pure reshape here because Cin == 1.
    x_nhwc = x.reshape(N, 28, 28, 1)
    c1 = _conv3x3_same_relu(x_nhwc, params["w1"], params["b1"])   # (N, 28, 28, 64)
    c2 = _conv3x3_same_relu(c1, params["w2"], params["b2"])       # (N, 28, 28, 128)
    pooled = maxpool2x2_nhwc(c2)                                  # (N, 14, 14, 128)
    # Match torch x.view(-1, 14*14*128) on NCHW: small (c,h,w) reorder of the
    # ~100 KB/sample pooled activation (instead of transposing the 100 MB w3).
    flat = pooled.transpose(0, 3, 1, 2).reshape(N, 14 * 14 * 128)
    # dense1: Linear(25088, 1024) + ReLU (K-tiled, w3 kept in (out, in) layout).
    h = linear_ktiled(flat, params["w3"], params["b3"], relu=True, tn=512, tk=896)
    # TODO(synk): Dropout(p=0.5) implemented as inference-mode identity (no RNG mask).
    out = linear_fused(h, params["w4"], params["b4"], relu=False)
    return out                                                    # (N, 10)


def init_params(key):
    ks = jax.random.split(key, 8)
    return {
        # PyTorch layouts: Conv2d weight (Cout, Cin, 3, 3); Linear weight (out, in)
        "w1": 0.10 * jax.random.normal(ks[0], (64, 1, 3, 3), jnp.float32),
        "b1": 0.10 * jax.random.normal(ks[1], (64,), jnp.float32),
        "w2": 0.05 * jax.random.normal(ks[2], (128, 64, 3, 3), jnp.float32),
        "b2": 0.05 * jax.random.normal(ks[3], (128,), jnp.float32),
        "w3": 0.01 * jax.random.normal(ks[4], (1024, 14 * 14 * 128), jnp.float32),
        "b3": 0.01 * jax.random.normal(ks[5], (1024,), jnp.float32),
        "w4": 0.05 * jax.random.normal(ks[6], (10, 1024), jnp.float32),
        "b4": 0.05 * jax.random.normal(ks[7], (10,), jnp.float32),
    }


if __name__ == "__main__":
    key = jax.random.PRNGKey(0)
    pkey, xkey = jax.random.split(key)
    params = init_params(pkey)
    # MNIST-style input; 28x28 is required by the 14*14*128 flatten in forward.
    x = jax.random.normal(xkey, (2, 1, 28, 28), jnp.float32)

    out = jax.jit(model_forward)(params, x)
    out = jax.block_until_ready(out)
    assert out.shape == (2, 10) and out.dtype == jnp.float32
    assert bool(jnp.all(jnp.isfinite(out)))
    print("KERNEL_OK")
</pallas_src>

<mosaic_0001>
module attributes {stable_mosaic.version = 11 : i64} {
  func.func @_linear_fused_kernel(%arg0: i32, %arg1: memref<392x9xf32, #tpu.memory_space<vmem>>, %arg2: memref<64x9xf32, #tpu.memory_space<vmem>>, %arg3: memref<1x64xf32, #tpu.memory_space<vmem>>, %arg4: memref<392x64xf32, #tpu.memory_space<vmem>>) attributes {dimension_semantics = [#tpu.dimension_semantics<parallel>], iteration_bounds = array<i64: 4>, scalar_prefetch = 0 : i64, scratch_operands = 0 : i64, tpu.core_type = #tpu.core_type<tc>, window_params = [{transform_indices = @transform_0, window_bounds = array<i64: 392, 9>}, {pipeline_mode = #tpu.pipeline_mode<synchronous>, transform_indices = @transform_1, window_bounds = array<i64: 64, 9>}, {pipeline_mode = #tpu.pipeline_mode<synchronous>, transform_indices = @transform_2, window_bounds = array<i64: 1, 64>}, {transform_indices = @transform_3, window_bounds = array<i64: 392, 64>}]} {
    %c0 = arith.constant 0 : index
    %c0_0 = arith.constant 0 : index
    %0 = vector.load %arg1[%c0, %c0_0] : memref<392x9xf32, #tpu.memory_space<vmem>>, vector<392x9xf32>
    %c0_1 = arith.constant 0 : index
    %c0_2 = arith.constant 0 : index
    %1 = vector.load %arg2[%c0_1, %c0_2] : memref<64x9xf32, #tpu.memory_space<vmem>>, vector<64x9xf32>
    %cst = arith.constant dense<0.000000e+00> : vector<392x64xf32>
    %2 = tpu.matmul %0, %1, %cst {dimension_numbers = #tpu.dot_dimension_numbers<[1], [1], [0], [0], [0, 0, 1, 0], [], []>} : vector<392x9xf32>, vector<64x9xf32>, vector<392x64xf32> -> vector<392x64xf32>
    %c0_3 = arith.constant 0 : index
    %c0_4 = arith.constant 0 : index
    %3 = vector.load %arg3[%c0_3, %c0_4] : memref<1x64xf32, #tpu.memory_space<vmem>>, vector<1x64xf32>
    %4 = vector.broadcast %3 : vector<1x64xf32> to vector<392x64xf32>
    %5 = arith.addf %2, %4 : vector<392x64xf32>
    %cst_5 = arith.constant 0.000000e+00 : f32
    %6 = vector.broadcast %cst_5 : f32 to vector<392x64xf32>
    %7 = arith.maximumf %5, %6 : vector<392x64xf32>
    %c0_6 = arith.constant 0 : index
    %c0_7 = arith.constant 0 : index
    %8 = vector.load %arg4[%c0_6, %c0_7] : memref<392x64xf32, #tpu.memory_space<vmem>>, vector<392x64xf32>
    tpu.vector_store %arg4[%c0_6, %c0_7], %7 {strides = array<i32>} : memref<392x64xf32, #tpu.memory_space<vmem>>, vector<392x64xf32>,
    return
  }
  func.func @transform_0(%arg0: i32) -> (i32, i32) {
    %c0_i32 = arith.constant 0 : i32
    %c0_i32_0 = arith.constant 0 : i32
    return %arg0, %c0_i32 : i32, i32
  }
  func.func @transform_1(%arg0: i32) -> (i32, i32) {
    %c0_i32 = arith.constant 0 : i32
    %c0_i32_0 = arith.constant 0 : i32
    %c0_i32_1 = arith.constant 0 : i32
    return %c0_i32, %c0_i32_0 : i32, i32
  }
  func.func @transform_2(%arg0: i32) -> (i32, i32) {
    %c0_i32 = arith.constant 0 : i32
    %c0_i32_0 = arith.constant 0 : i32
    %c0_i32_1 = arith.constant 0 : i32
    return %c0_i32, %c0_i32_0 : i32, i32
  }
  func.func @transform_3(%arg0: i32) -> (i32, i32) {
    %c0_i32 = arith.constant 0 : i32
    %c0_i32_0 = arith.constant 0 : i32
    return %arg0, %c0_i32 : i32, i32
  }
}

module attributes {stable_mosaic.version = 11 : i64} {
  func.func @_linear_fused_kernel(%arg0: i32, %arg1: memref<392x576xf32, #tpu.memory_space<vmem>>, %arg2: memref<128x576xf32, #tpu.memory_space<vmem>>, %arg3: memref<1x128xf32, #tpu.memory_space<vmem>>, %arg4: memref<392x128xf32, #tpu.memory_space<vmem>>) attributes {dimension_semantics = [#tpu.dimension_semantics<parallel>], iteration_bounds = array<i64: 4>, scalar_prefetch = 0 : i64, scratch_operands = 0 : i64, tpu.core_type = #tpu.core_type<tc>, window_params = [{transform_indices = @transform_0, window_bounds = array<i64: 392, 576>}, {pipeline_mode = #tpu.pipeline_mode<synchronous>, transform_indices = @transform_1, window_bounds = array<i64: 128, 576>}, {pipeline_mode = #tpu.pipeline_mode<synchronous>, transform_indices = @transform_2, window_bounds = array<i64: 1, 128>}, {transform_indices = @transform_3, window_bounds = array<i64: 392, 128>}]} {
    %c0 = arith.constant 0 : index
    %c0_0 = arith.constant 0 : index
    %0 = vector.load %arg1[%c0, %c0_0] : memref<392x576xf32, #tpu.memory_space<vmem>>, vector<392x576xf32>
    %c0_1 = arith.constant 0 : index
    %c0_2 = arith.constant 0 : index
    %1 = vector.load %arg2[%c0_1, %c0_2] : memref<128x576xf32, #tpu.memory_space<vmem>>, vector<128x576xf32>
    %cst = arith.constant dense<0.000000e+00> : vector<392x128xf32>
    %2 = tpu.matmul %0, %1, %cst {dimension_numbers = #tpu.dot_dimension_numbers<[1], [1], [0], [0], [0, 0, 1, 0], [], []>} : vector<392x576xf32>, vector<128x576xf32>, vector<392x128xf32> -> vector<392x128xf32>
    %c0_3 = arith.constant 0 : index
    %c0_4 = arith.constant 0 : index
    %3 = vector.load %arg3[%c0_3, %c0_4] : memref<1x128xf32, #tpu.memory_space<vmem>>, vector<1x128xf32>
    %4 = vector.broadcast %3 : vector<1x128xf32> to vector<392x128xf32>
    %5 = arith.addf %2, %4 : vector<392x128xf32>
    %cst_5 = arith.constant 0.000000e+00 : f32
    %6 = vector.broadcast %cst_5 : f32 to vector<392x128xf32>
    %7 = arith.maximumf %5, %6 : vector<392x128xf32>
    %c0_6 = arith.constant 0 : index
    %c0_7 = arith.constant 0 : index
    %8 = vector.load %arg4[%c0_6, %c0_7] : memref<392x128xf32, #tpu.memory_space<vmem>>, vector<392x128xf32>
    tpu.vector_store %arg4[%c0_6, %c0_7], %7 {strides = array<i32>} : memref<392x128xf32, #tpu.memory_space<vmem>>, vector<392x128xf32>,
    return
  }
  func.func @transform_0(%arg0: i32) -> (i32, i32) {
    %c0_i32 = arith.constant 0 : i32
    %c0_i32_0 = arith.constant 0 : i32
    return %arg0, %c0_i32 : i32, i32
  }
  func.func @transform_1(%arg0: i32) -> (i32, i32) {
    %c0_i32 = arith.constant 0 : i32
    %c0_i32_0 = arith.constant 0 : i32
    %c0_i32_1 = arith.constant 0 : i32
    return %c0_i32, %c0_i32_0 : i32, i32
  }
  func.func @transform_2(%arg0: i32) -> (i32, i32) {
    %c0_i32 = arith.constant 0 : i32
    %c0_i32_0 = arith.constant 0 : i32
    %c0_i32_1 = arith.constant 0 : i32
    return %c0_i32, %c0_i32_0 : i32, i32
  }
  func.func @transform_3(%arg0: i32) -> (i32, i32) {
    %c0_i32 = arith.constant 0 : i32
    %c0_i32_0 = arith.constant 0 : i32
    return %arg0, %c0_i32 : i32, i32
  }
}

module attributes {stable_mosaic.version = 11 : i64} {
  func.func @_maxpool2x2_kernel(%arg0: i32, %arg1: memref<1x28x28x128xf32, #tpu.memory_space<vmem>>, %arg2: memref<1x14x14x128xf32, #tpu.memory_space<vmem>>, %arg3: memref<14x28x128xf32, #tpu.memory_space<vmem>>) attributes {dimension_semantics = [#tpu.dimension_semantics<parallel>], iteration_bounds = array<i64: 2>, scalar_prefetch = 0 : i64, scratch_operands = 1 : i64, tpu.core_type = #tpu.core_type<tc>, window_params = [{transform_indices = @transform_0, window_bounds = array<i64: 1, 28, 28, 128>}, {transform_indices = @transform_1, window_bounds = array<i64: 1, 14, 14, 128>}]} {
    %c0 = arith.constant 0 : index
    %c0_0 = arith.constant 0 : index
    %c0_1 = arith.constant 0 : index
    %c0_2 = arith.constant 0 : index
    %0 = vector.load %arg1[%c0, %c0_0, %c0_1, %c0_2] : memref<1x28x28x128xf32, #tpu.memory_space<vmem>>, vector<1x28x28x128xf32>
    %1 = vector.shape_cast %0 : vector<1x28x28x128xf32> to vector<28x28x128xf32>
    %2 = vector.shape_cast %1 : vector<28x28x128xf32> to vector<14x2x28x128xf32>
    %3 = vector.extract_strided_slice %2 {offsets = [0, 0, 0, 0], sizes = [14, 1, 28, 128], strides = [1, 1, 1, 1]} : vector<14x2x28x128xf32> to vector<14x1x28x128xf32>
    %4 = vector.shape_cast %3 : vector<14x1x28x128xf32> to vector<14x28x128xf32>
    %5 = vector.extract_strided_slice %2 {offsets = [0, 1, 0, 0], sizes = [14, 1, 28, 128], strides = [1, 1, 1, 1]} : vector<14x2x28x128xf32> to vector<14x1x28x128xf32>
    %6 = vector.shape_cast %5 : vector<14x1x28x128xf32> to vector<14x28x128xf32>
    %7 = arith.maximumf %4, %6 : vector<14x28x128xf32>
    %c0_3 = arith.constant 0 : index
    %c0_4 = arith.constant 0 : index
    %c0_5 = arith.constant 0 : index
    %8 = vector.load %arg3[%c0_3, %c0_4, %c0_5] : memref<14x28x128xf32, #tpu.memory_space<vmem>>, vector<14x28x128xf32>
    tpu.vector_store %arg3[%c0_3, %c0_4, %c0_5], %7 {strides = array<i32>} : memref<14x28x128xf32, #tpu.memory_space<vmem>>, vector<14x28x128xf32>,
    %c0_6 = arith.constant 0 : index
    %c0_7 = arith.constant 0 : index
    %c0_8 = arith.constant 0 : index
    %9 = vector.load %arg3[%c0_6, %c0_7, %c0_8] : memref<14x28x128xf32, #tpu.memory_space<vmem>>, vector<14x1x128xf32>
    %10 = vector.shape_cast %9 : vector<14x1x128xf32> to vector<14x128xf32>
    %c0_9 = arith.constant 0 : index
    %c1 = arith.constant 1 : index
    %c0_10 = arith.constant 0 : index
    %11 = vector.load %arg3[%c0_9, %c1, %c0_10] : memref<14x28x128xf32, #tpu.memory_space<vmem>>, vector<14x1x128xf32>
    %12 = vector.shape_cast %11 : vector<14x1x128xf32> to vector<14x128xf32>
    %13 = arith.maximumf %10, %12 : vector<14x128xf32>
    %c0_11 = arith.constant 0 : index
    %c0_12 = arith.constant 0 : index
    %c0_13 = arith.constant 0 : index
    %c0_14 = arith.constant 0 : index
    %14 = vector.load %arg2[%c0_11, %c0_12, %c0_13, %c0_14] : memref<1x14x14x128xf32, #tpu.memory_space<vmem>>, vector<1x14x1x128xf32>
    %15 = vector.shape_cast %14 : vector<1x14x1x128xf32> to vector<14x128xf32>
    %16 = vector.shape_cast %13 : vector<14x128xf32> to vector<1x14x1x128xf32>
    tpu.vector_store %arg2[%c0_11, %c0_12, %c0_13, %c0_14], %16 {strides = array<i32>} : memref<1x14x14x128xf32, #tpu.memory_space<vmem>>, vector<1x14x1x128xf32>,
    %c0_15 = arith.constant 0 : index
    %c2 = arith.constant 2 : index
    %c0_16 = arith.constant 0 : index
    %17 = vector.load %arg3[%c0_15, %c2, %c0_16] : memref<14x28x128xf32, #tpu.memory_space<vmem>>, vector<14x1x128xf32>
    %18 = vector.shape_cast %17 : vector<14x1x128xf32> to vector<14x128xf32>
    %c0_17 = arith.constant 0 : index
    %c3 = arith.constant 3 : index
    %c0_18 = arith.constant 0 : index
    %19 = vector.load %arg3[%c0_17, %c3, %c0_18] : memref<14x28x128xf32, #tpu.memory_space<vmem>>, vector<14x1x128xf32>
    %20 = vector.shape_cast %19 : vector<14x1x128xf32> to vector<14x128xf32>
    %21 = arith.maximumf %18, %20 : vector<14x128xf32>
    %c0_19 = arith.constant 0 : index
    %c0_20 = arith.constant 0 : index
    %c1_21 = arith.constant 1 : index
    %c0_22 = arith.constant 0 : index
    %22 = vector.load %arg2[%c0_19, %c0_20, %c1_21, %c0_22] : memref<1x14x14x128xf32, #tpu.memory_space<vmem>>, vector<1x14x1x128xf32>
    %23 = vector.shape_cast %22 : vector<1x14x1x128xf32> to vector<14x128xf32>
    %24 = vector.shape_cast %21 : vector<14x128xf32> to vector<1x14x1x128xf32>
    tpu.vector_store %arg2[%c0_19, %c0_20, %c1_21, %c0_22], %24 {strides = array<i32>} : memref<1x14x14x128xf32, #tpu.memory_space<vmem>>, vector<1x14x1x128xf32>,
    %c0_23 = arith.constant 0 : index
    %c4 = arith.constant 4 : index
    %c0_24 = arith.constant 0 : index
    %25 = vector.load %arg3[%c0_23, %c4, %c0_24] : memref<14x28x128xf32, #tpu.memory_space<vmem>>, vector<14x1x128xf32>
    %26 = vector.shape_cast %25 : vector<14x1x128xf32> to vector<14x128xf32>
    %c0_25 = arith.constant 0 : index
    %c5 = arith.constant 5 : index
    %c0_26 = arith.constant 0 : index
    %27 = vector.load %arg3[%c0_25, %c5, %c0_26] : memref<14x28x128xf32, #tpu.memory_space<vmem>>, vector<14x1x128xf32>
    %28 = vector.shape_cast %27 : vector<14x1x128xf32> to vector<14x128xf32>
    %29 = arith.maximumf %26, %28 : vector<14x128xf32>
    %c0_27 = arith.constant 0 : index
    %c0_28 = arith.constant 0 : index
    %c2_29 = arith.constant 2 : index
    %c0_30 = arith.constant 0 : index
    %30 = vector.load %arg2[%c0_27, %c0_28, %c2_29, %c0_30] : memref<1x14x14x128xf32, #tpu.memory_space<vmem>>, vector<1x14x1x128xf32>
    %31 = vector.shape_cast %30 : vector<1x14x1x128xf32> to vector<14x128xf32>
    %32 = vector.shape_cast %29 : vector<14x128xf32> to vector<1x14x1x128xf32>
    tpu.vector_store %arg2[%c0_27, %c0_28, %c2_29, %c0_30], %32 {strides = array<i32>} : memref<1x14x14x128xf32, #tpu.memory_space<vmem>>, vector<1x14x1x128xf32>,
    %c0_31 = arith.constant 0 : index
    %c6 = arith.constant 6 : index
    %c0_32 = arith.constant 0 : index
    %33 = vector.load %arg3[%c0_31, %c6, %c0_32] : memref<14x28x128xf32, #tpu.memory_space<vmem>>, vector<14x1x128xf32>
    %34 = vector.shape_cast %33 : vector<14x1x128xf32> to vector<14x128xf32>
    %c0_33 = arith.constant 0 : index
    %c7 = arith.constant 7 : index
    %c0_34 = arith.constant 0 : index
    %35 = vector.load %arg3[%c0_33, %c7, %c0_34] : memref<14x28x128xf32, #tpu.memory_space<vmem>>, vector<14x1x128xf32>
    %36 = vector.shape_cast %35 : vector<14x1x128xf32> to vector<14x128xf32>
    %37 = arith.maximumf %34, %36 : vector<14x128xf32>
    %c0_35 = arith.constant 0 : index
    %c0_36 = arith.constant 0 : index
    %c3_37 = arith.constant 3 : index
    %c0_38 = arith.constant 0 : index
    %38 = vector.load %arg2[%c0_35, %c0_36, %c3_37, %c0_38] : memref<1x14x14x128xf32, #tpu.memory_space<vmem>>, vector<1x14x1x128xf32>
    %39 = vector.shape_cast %38 : vector<1x14x1x128xf32> to vector<14x128xf32>
    %40 = vector.shape_cast %37 : vector<14x128xf32> to vector<1x14x1x128xf32>
    tpu.vector_store %arg2[%c0_35, %c0_36, %c3_37, %c0_38], %40 {strides = array<i32>} : memref<1x14x14x128xf32, #tpu.memory_space<vmem>>, vector<1x14x1x128xf32>,
    %c0_39 = arith.constant 0 : index
    %c8 = arith.constant 8 : index
    %c0_40 = arith.constant 0 : index
    %41 = vector.load %arg3[%c0_39, %c8, %c0_40] : memref<14x28x128xf32, #tpu.memory_space<vmem>>, vector<14x1x128xf32>
    %42 = vector.shape_cast %41 : vector<14x1x128xf32> to vector<14x128xf32>
    %c0_41 = arith.constant 0 : index
    %c9 = arith.constant 9 : index
    %c0_42 = arith.constant 0 : index
    %43 = vector.load %arg3[%c0_41, %c9, %c0_42] : memref<14x28x128xf32, #tpu.memory_space<vmem>>, vector<14x1x128xf32>
    %44 = vector.shape_cast %43 : vector<14x1x128xf32> to vector<14x128xf32>
    %45 = arith.maximumf %42, %44 : vector<14x128xf32>
    %c0_43 = arith.constant 0 : index
    %c0_44 = arith.constant 0 : index
    %c4_45 = arith.constant 4 : index
    %c0_46 = arith.constant 0 : index
    %46 = vector.load %arg2[%c0_43, %c0_44, %c4_45, %c0_46] : memref<1x14x14x128xf32, #tpu.memory_space<vmem>>, vector<1x14x1x128xf32>
    %47 = vector.shape_cast %46 : vector<1x14x1x128xf32> to vector<14x128xf32>
    %48 = vector.shape_cast %45 : vector<14x128xf32> to vector<1x14x1x128xf32>
    tpu.vector_store %arg2[%c0_43, %c0_44, %c4_45, %c0_46], %48 {strides = array<i32>} : memref<1x14x14x128xf32, #tpu.memory_space<vmem>>, vector<1x14x1x128xf32>,
    %c0_47 = arith.constant 0 : index
    %c10 = arith.constant 10 : index
    %c0_48 = arith.constant 0 : index
    %49 = vector.load %arg3[%c0_47, %c10, %c0_48] : memref<14x28x128xf32, #tpu.memory_space<vmem>>, vector<14x1x128xf32>
    %50 = vector.shape_cast %49 : vector<14x1x128xf32> to vector<14x128xf32>
    %c0_49 = arith.constant 0 : index
    %c11 = arith.constant 11 : index
    %c0_50 = arith.constant 0 : index
    %51 = vector.load %arg3[%c0_49, %c11, %c0_50] : memref<14x28x128xf32, #tpu.memory_space<vmem>>, vector<14x1x128xf32>
    %52 = vector.shape_cast %51 : vector<14x1x128xf32> to vector<14x128xf32>
    %53 = arith.maximumf %50, %52 : vector<14x128xf32>
    %c0_51 = arith.constant 0 : index
    %c0_52 = arith.constant 0 : index
    %c5_53 = arith.constant 5 : index
    %c0_54 = arith.constant 0 : index
    %54 = vector.load %arg2[%c0_51, %c0_52, %c5_53, %c0_54] : memref<1x14x14x128xf32, #tpu.memory_space<vmem>>, vector<1x14x1x128xf32>
    %55 = vector.shape_cast %54 : vector<1x14x1x128xf32> to vector<14x128xf32>
    %56 = vector.shape_cast %53 : vector<14x128xf32> to vector<1x14x1x128xf32>
    tpu.vector_store %arg2[%c0_51, %c0_52, %c5_53, %c0_54], %56 {strides = array<i32>} : memref<1x14x14x128xf32, #tpu.memory_space<vmem>>, vector<1x14x1x128xf32>,
    %c0_55 = arith.constant 0 : index
    %c12 = arith.constant 12 : index
    %c0_56 = arith.constant 0 : index
    %57 = vector.load %arg3[%c0_55, %c12, %c0_56] : memref<14x28x128xf32, #tpu.memory_space<vmem>>, vector<14x1x128xf32>
    %58 = vector.shape_cast %57 : vector<14x1x128xf32> to vector<14x128xf32>
    %c0_57 = arith.constant 0 : index
    %c13 = arith.constant 13 : index
    %c0_58 = arith.constant 0 : index
    %59 = vector.load %arg3[%c0_57, %c13, %c0_58] : memref<14x28x128xf32, #tpu.memory_space<vmem>>, vector<14x1x128xf32>
    %60 = vector.shape_cast %59 : vector<14x1x128xf32> to vector<14x128xf32>
    %61 = arith.maximumf %58, %60 : vector<14x128xf32>
    %c0_59 = arith.constant 0 : index
    %c0_60 = arith.constant 0 : index
    %c6_61 = arith.constant 6 : index
    %c0_62 = arith.constant 0 : index
    %62 = vector.load %arg2[%c0_59, %c0_60, %c6_61, %c0_62] : memref<1x14x14x128xf32, #tpu.memory_space<vmem>>, vector<1x14x1x128xf32>
    %63 = vector.shape_cast %62 : vector<1x14x1x128xf32> to vector<14x128xf32>
    %64 = vector.shape_cast %61 : vector<14x128xf32> to vector<1x14x1x128xf32>
    tpu.vector_store %arg2[%c0_59, %c0_60, %c6_61, %c0_62], %64 {strides = array<i32>} : memref<1x14x14x128xf32, #tpu.memory_space<vmem>>, vector<1x14x1x128xf32>,
    %c0_63 = arith.constant 0 : index
    %c14 = arith.constant 14 : index
    %c0_64 = arith.constant 0 : index
    %65 = vector.load %arg3[%c0_63, %c14, %c0_64] : memref<14x28x128xf32, #tpu.memory_space<vmem>>, vector<14x1x128xf32>
    %66 = vector.shape_cast %65 : vector<14x1x128xf32> to vector<14x128xf32>
    %c0_65 = arith.constant 0 : index
    %c15 = arith.constant 15 : index
    %c0_66 = arith.constant 0 : index
    %67 = vector.load %arg3[%c0_65, %c15, %c0_66] : memref<14x28x128xf32, #tpu.memory_space<vmem>>, vector<14x1x128xf32>
    %68 = vector.shape_cast %67 : vector<14x1x128xf32> to vector<14x128xf32>
    %69 = arith.maximumf %66, %68 : vector<14x128xf32>
    %c0_67 = arith.constant 0 : index
    %c0_68 = arith.constant 0 : index
    %c7_69 = arith.constant 7 : index
    %c0_70 = arith.constant 0 : index
    %70 = vector.load %arg2[%c0_67, %c0_68, %c7_69, %c0_70] : memref<1x14x14x128xf32, #tpu.memory_space<vmem>>, vector<1x14x1x128xf32>
    %71 = vector.shape_cast %70 : vector<1x14x1x128xf32> to vector<14x128xf32>
    %72 = vector.shape_cast %69 : vector<14x128xf32> to vector<1x14x1x128xf32>
    tpu.vector_store %arg2[%c0_67, %c0_68, %c7_69, %c0_70], %72 {strides = array<i32>} : memref<1x14x14x128xf32, #tpu.memory_space<vmem>>, vector<1x14x1x128xf32>,
    %c0_71 = arith.constant 0 : index
    %c16 = arith.constant 16 : index
    %c0_72 = arith.constant 0 : index
    %73 = vector.load %arg3[%c0_71, %c16, %c0_72] : memref<14x28x128xf32, #tpu.memory_space<vmem>>, vector<14x1x128xf32>
    %74 = vector.shape_cast %73 : vector<14x1x128xf32> to vector<14x128xf32>
    %c0_73 = arith.constant 0 : index
    %c17 = arith.constant 17 : index
    %c0_74 = arith.constant 0 : index
    %75 = vector.load %arg3[%c0_73, %c17, %c0_74] : memref<14x28x128xf32, #tpu.memory_space<vmem>>, vector<14x1x128xf32>
    %76 = vector.shape_cast %75 : vector<14x1x128xf32> to vector<14x128xf32>
    %77 = arith.maximumf %74, %76 : vector<14x128xf32>
    %c0_75 = arith.constant 0 : index
    %c0_76 = arith.constant 0 : index
    %c8_77 = arith.constant 8 : index
    %c0_78 = arith.constant 0 : index
    %78 = vector.load %arg2[%c0_75, %c0_76, %c8_77, %c0_78] : memref<1x14x14x128xf32, #tpu.memory_space<vmem>>, vector<1x14x1x128xf32>
    %79 = vector.shape_cast %78 : vector<1x14x1x128xf32> to vector<14x128xf32>
    %80 = vector.shape_cast %77 : vector<14x128xf32> to vector<1x14x1x128xf32>
    tpu.vector_store %arg2[%c0_75, %c0_76, %c8_77, %c0_78], %80 {strides = array<i32>} : memref<1x14x14x128xf32, #tpu.memory_space<vmem>>, vector<1x14x1x128xf32>,
    %c0_79 = arith.constant 0 : index
    %c18 = arith.constant 18 : index
    %c0_80 = arith.constant 0 : index
    %81 = vector.load %arg3[%c0_79, %c18, %c0_80] : memref<14x28x128xf32, #tpu.memory_space<vmem>>, vector<14x1x128xf32>
    %82 = vector.shape_cast %81 : vector<14x1x128xf32> to vector<14x128xf32>
    %c0_81 = arith.constant 0 : index
    %c19 = arith.constant 19 : index
    %c0_82 = arith.constant 0 : index
    %83 = vector.load %arg3[%c0_81, %c19, %c0_82] : memref<14x28x128xf32, #tpu.memory_space<vmem>>, vector<14x1x128xf32>
    %84 = vector.shape_cast %83 : vector<14x1x128xf32> to vector<14x128xf32>
    %85 = arith.maximumf %82, %84 : vector<14x128xf32>
    %c0_83 = arith.constant 0 : index
    %c0_84 = arith.constant 0 : index
    %c9_85 = arith.constant 9 : index
    %c0_86 = arith.constant 0 : index
    %86 = vector.load %arg2[%c0_83, %c0_84, %c9_85, %c0_86] : memref<1x14x14x128xf32, #tpu.memory_space<vmem>>, vector<1x14x1x128xf32>
    %87 = vector.shape_cast %86 : vector<1x14x1x128xf32> to vector<14x128xf32>
    %88 = vector.shape_cast %85 : vector<14x128xf32> to vector<1x14x1x128xf32>
    tpu.vector_store %arg2[%c0_83, %c0_84, %c9_85, %c0_86], %88 {strides = array<i32>} : memref<1x14x14x128xf32, #tpu.memory_space<vmem>>, vector<1x14x1x128xf32>,
    %c0_87 = arith.constant 0 : index
    %c20 = arith.constant 20 : index
    %c0_88 = arith.constant 0 : index
    %89 = vector.load %arg3[%c0_87, %c20, %c0_88] : memref<14x28x128xf32, #tpu.memory_space<vmem>>, vector<14x1x128xf32>
    %90 = vector.shape_cast %89 : vector<14x1x128xf32> to vector<14x128xf32>
    %c0_89 = arith.constant 0 : index
    %c21 = arith.constant 21 : index
    %c0_90 = arith.constant 0 : index
    %91 = vector.load %arg3[%c0_89, %c21, %c0_90] : memref<14x28x128xf32, #tpu.memory_space<vmem>>, vector<14x1x128xf32>
    %92 = vector.shape_cast %91 : vector<14x1x128xf32> to vector<14x128xf32>
    %93 = arith.maximumf %90, %92 : vector<14x128xf32>
    %c0_91 = arith.constant 0 : index
    %c0_92 = arith.constant 0 : index
    %c10_93 = arith.constant 10 : index
    %c0_94 = arith.constant 0 : index
    %94 = vector.load %arg2[%c0_91, %c0_92, %c10_93, %c0_94] : memref<1x14x14x128xf32, #tpu.memory_space<vmem>>, vector<1x14x1x128xf32>
    %95 = vector.shape_cast %94 : vector<1x14x1x128xf32> to vector<14x128xf32>
    %96 = vector.shape_cast %93 : vector<14x128xf32> to vector<1x14x1x128xf32>
    tpu.vector_store %arg2[%c0_91, %c0_92, %c10_93, %c0_94], %96 {strides = array<i32>} : memref<1x14x14x128xf32, #tpu.memory_space<vmem>>, vector<1x14x1x128xf32>,
    %c0_95 = arith.constant 0 : index
    %c22 = arith.constant 22 : index
    %c0_96 = arith.constant 0 : index
    %97 = vector.load %arg3[%c0_95, %c22, %c0_96] : memref<14x28x128xf32, #tpu.memory_space<vmem>>, vector<14x1x128xf32>
    %98 = vector.shape_cast %97 : vector<14x1x128xf32> to vector<14x128xf32>
    %c0_97 = arith.constant 0 : index
    %c23 = arith.constant 23 : index
    %c0_98 = arith.constant 0 : index
    %99 = vector.load %arg3[%c0_97, %c23, %c0_98] : memref<14x28x128xf32, #tpu.memory_space<vmem>>, vector<14x1x128xf32>
    %100 = vector.shape_cast %99 : vector<14x1x128xf32> to vector<14x128xf32>
    %101 = arith.maximumf %98, %100 : vector<14x128xf32>
    %c0_99 = arith.constant 0 : index
    %c0_100 = arith.constant 0 : index
    %c11_101 = arith.constant 11 : index
    %c0_102 = arith.constant 0 : index
    %102 = vector.load %arg2[%c0_99, %c0_100, %c11_101, %c0_102] : memref<1x14x14x128xf32, #tpu.memory_space<vmem>>, vector<1x14x1x128xf32>
    %103 = vector.shape_cast %102 : vector<1x14x1x128xf32> to vector<14x128xf32>
    %104 = vector.shape_cast %101 : vector<14x128xf32> to vector<1x14x1x128xf32>
    tpu.vector_store %arg2[%c0_99, %c0_100, %c11_101, %c0_102], %104 {strides = array<i32>} : memref<1x14x14x128xf32, #tpu.memory_space<vmem>>, vector<1x14x1x128xf32>,
    %c0_103 = arith.constant 0 : index
    %c24 = arith.constant 24 : index
    %c0_104 = arith.constant 0 : index
    %105 = vector.load %arg3[%c0_103, %c24, %c0_104] : memref<14x28x128xf32, #tpu.memory_space<vmem>>, vector<14x1x128xf32>
    %106 = vector.shape_cast %105 : vector<14x1x128xf32> to vector<14x128xf32>
    %c0_105 = arith.constant 0 : index
    %c25 = arith.constant 25 : index
    %c0_106 = arith.constant 0 : index
    %107 = vector.load %arg3[%c0_105, %c25, %c0_106] : memref<14x28x128xf32, #tpu.memory_space<vmem>>, vector<14x1x128xf32>
    %108 = vector.shape_cast %107 : vector<14x1x128xf32> to vector<14x128xf32>
    %109 = arith.maximumf %106, %108 : vector<14x128xf32>
    %c0_107 = arith.constant 0 : index
    %c0_108 = arith.constant 0 : index
    %c12_109 = arith.constant 12 : index
    %c0_110 = arith.constant 0 : index
    %110 = vector.load %arg2[%c0_107, %c0_108, %c12_109, %c0_110] : memref<1x14x14x128xf32, #tpu.memory_space<vmem>>, vector<1x14x1x128xf32>
    %111 = vector.shape_cast %110 : vector<1x14x1x128xf32> to vector<14x128xf32>
    %112 = vector.shape_cast %109 : vector<14x128xf32> to vector<1x14x1x128xf32>
    tpu.vector_store %arg2[%c0_107, %c0_108, %c12_109, %c0_110], %112 {strides = array<i32>} : memref<1x14x14x128xf32, #tpu.memory_space<vmem>>, vector<1x14x1x128xf32>,
    %c0_111 = arith.constant 0 : index
    %c26 = arith.constant 26 : index
    %c0_112 = arith.constant 0 : index
    %113 = vector.load %arg3[%c0_111, %c26, %c0_112] : memref<14x28x128xf32, #tpu.memory_space<vmem>>, vector<14x1x128xf32>
    %114 = vector.shape_cast %113 : vector<14x1x128xf32> to vector<14x128xf32>
    %c0_113 = arith.constant 0 : index
    %c27 = arith.constant 27 : index
    %c0_114 = arith.constant 0 : index
    %115 = vector.load %arg3[%c0_113, %c27, %c0_114] : memref<14x28x128xf32, #tpu.memory_space<vmem>>, vector<14x1x128xf32>
    %116 = vector.shape_cast %115 : vector<14x1x128xf32> to vector<14x128xf32>
    %117 = arith.maximumf %114, %116 : vector<14x128xf32>
    %c0_115 = arith.constant 0 : index
    %c0_116 = arith.constant 0 : index
    %c13_117 = arith.constant 13 : index
    %c0_118 = arith.constant 0 : index
    %118 = vector.load %arg2[%c0_115, %c0_116, %c13_117, %c0_118] : memref<1x14x14x128xf32, #tpu.memory_space<vmem>>, vector<1x14x1x128xf32>
    %119 = vector.shape_cast %118 : vector<1x14x1x128xf32> to vector<14x128xf32>
    %120 = vector.shape_cast %117 : vector<14x128xf32> to vector<1x14x1x128xf32>
    tpu.vector_store %arg2[%c0_115, %c0_116, %c13_117, %c0_118], %120 {strides = array<i32>} : memref<1x14x14x128xf32, #tpu.memory_space<vmem>>, vector<1x14x1x128xf32>,
    return
  }
  func.func @transform_0(%arg0: i32) -> (i32, i32, i32, i32) {
    %c0_i32 = arith.constant 0 : i32
    %c0_i32_0 = arith.constant 0 : i32
    %c0_i32_1 = arith.constant 0 : i32
    %c0_i32_2 = arith.constant 0 : i32
    return %arg0, %c0_i32, %c0_i32_0, %c0_i32_1 : i32, i32, i32, i32
  }
  func.func @transform_1(%arg0: i32) -> (i32, i32, i32, i32) {
    %c0_i32 = arith.constant 0 : i32
    %c0_i32_0 = arith.constant 0 : i32
    %c0_i32_1 = arith.constant 0 : i32
    %c0_i32_2 = arith.constant 0 : i32
    return %arg0, %c0_i32, %c0_i32_0, %c0_i32_1 : i32, i32, i32, i32
  }
}

module attributes {stable_mosaic.version = 11 : i64} {
  func.func @_linear_ktiled_kernel(%arg0: i32, %arg1: i32, %arg2: memref<2x896xf32, #tpu.memory_space<vmem>>, %arg3: memref<512x896xf32, #tpu.memory_space<vmem>>, %arg4: memref<1x512xf32, #tpu.memory_space<vmem>>, %arg5: memref<2x512xf32, #tpu.memory_space<vmem>>, %arg6: memref<2x512xf32, #tpu.memory_space<vmem>>) attributes {dimension_semantics = [#tpu.dimension_semantics<parallel>, #tpu.dimension_semantics<arbitrary>], iteration_bounds = array<i64: 2, 28>, scalar_prefetch = 0 : i64, scratch_operands = 1 : i64, tpu.core_type = #tpu.core_type<tc>, window_params = [{transform_indices = @transform_0, window_bounds = array<i64: 2, 896>}, {transform_indices = @transform_1, window_bounds = array<i64: 512, 896>}, {transform_indices = @transform_2, window_bounds = array<i64: 1, 512>}, {transform_indices = @transform_3, window_bounds = array<i64: 2, 512>}]} {
    %c0_i32 = arith.constant 0 : i32
    %0 = arith.cmpi eq, %arg1, %c0_i32 : i32
    %1 = arith.extui %0 : i1 to i32
    %c0_i32_0 = arith.constant 0 : i32
    %2 = arith.cmpi ne, %1, %c0_i32_0 : i32
    scf.if %2 {
      %cst_9 = arith.constant 0.000000e+00 : f32
      %12 = vector.broadcast %cst_9 : f32 to vector<2x512xf32>
      %c0_10 = arith.constant 0 : index
      %c0_11 = arith.constant 0 : index
      %13 = vector.load %arg6[%c0_10, %c0_11] : memref<2x512xf32, #tpu.memory_space<vmem>>, vector<2x512xf32>
      tpu.vector_store %arg6[%c0_10, %c0_11], %12 {strides = array<i32>} : memref<2x512xf32, #tpu.memory_space<vmem>>, vector<2x512xf32>,
    } else {
    }
    %c0 = arith.constant 0 : index
    %c0_1 = arith.constant 0 : index
    %3 = vector.load %arg6[%c0, %c0_1] : memref<2x512xf32, #tpu.memory_space<vmem>>, vector<2x512xf32>
    %c0_2 = arith.constant 0 : index
    %c0_3 = arith.constant 0 : index
    %4 = vector.load %arg2[%c0_2, %c0_3] : memref<2x896xf32, #tpu.memory_space<vmem>>, vector<2x896xf32>
    %c0_4 = arith.constant 0 : index
    %c0_5 = arith.constant 0 : index
    %5 = vector.load %arg3[%c0_4, %c0_5] : memref<512x896xf32, #tpu.memory_space<vmem>>, vector<512x896xf32>
    %cst = arith.constant dense<0.000000e+00> : vector<2x512xf32>
    %6 = tpu.matmul %4, %5, %cst {dimension_numbers = #tpu.dot_dimension_numbers<[1], [1], [0], [0], [0, 0, 1, 0], [], []>} : vector<2x896xf32>, vector<512x896xf32>, vector<2x512xf32> -> vector<2x512xf32>
    %7 = arith.addf %3, %6 : vector<2x512xf32>
    %c0_6 = arith.constant 0 : index
    %c0_7 = arith.constant 0 : index
    %8 = vector.load %arg6[%c0_6, %c0_7] : memref<2x512xf32, #tpu.memory_space<vmem>>, vector<2x512xf32>
    tpu.vector_store %arg6[%c0_6, %c0_7], %7 {strides = array<i32>} : memref<2x512xf32, #tpu.memory_space<vmem>>, vector<2x512xf32>,
    %c27_i32 = arith.constant 27 : i32
    %9 = arith.cmpi eq, %arg1, %c27_i32 : i32
    %10 = arith.extui %9 : i1 to i32
    %c0_i32_8 = arith.constant 0 : i32
    %11 = arith.cmpi ne, %10, %c0_i32_8 : i32
    scf.if %11 {
      %c0_9 = arith.constant 0 : index
      %c0_10 = arith.constant 0 : index
      %12 = vector.load %arg6[%c0_9, %c0_10] : memref<2x512xf32, #tpu.memory_space<vmem>>, vector<2x512xf32>
      %c0_11 = arith.constant 0 : index
      %c0_12 = arith.constant 0 : index
      %13 = vector.load %arg4[%c0_11, %c0_12] : memref<1x512xf32, #tpu.memory_space<vmem>>, vector<1x512xf32>
      %14 = vector.broadcast %13 : vector<1x512xf32> to vector<2x512xf32>
      %15 = arith.addf %12, %14 : vector<2x512xf32>
      %cst_13 = arith.constant 0.000000e+00 : f32
      %16 = vector.broadcast %cst_13 : f32 to vector<2x512xf32>
      %17 = arith.maximumf %15, %16 : vector<2x512xf32>
      %c0_14 = arith.constant 0 : index
      %c0_15 = arith.constant 0 : index
      %18 = vector.load %arg5[%c0_14, %c0_15] : memref<2x512xf32, #tpu.memory_space<vmem>>, vector<2x512xf32>
      tpu.vector_store %arg5[%c0_14, %c0_15], %17 {strides = array<i32>} : memref<2x512xf32, #tpu.memory_space<vmem>>, vector<2x512xf32>,
    } else {
    }
    return
  }
  func.func @transform_0(%arg0: i32, %arg1: i32) -> (i32, i32) {
    %c0_i32 = arith.constant 0 : i32
    %c0_i32_0 = arith.constant 0 : i32
    return %c0_i32, %arg1 : i32, i32
  }
  func.func @transform_1(%arg0: i32, %arg1: i32) -> (i32, i32) {
    %c0_i32 = arith.constant 0 : i32
    return %arg0, %arg1 : i32, i32
  }
  func.func @transform_2(%arg0: i32, %arg1: i32) -> (i32, i32) {
    %c0_i32 = arith.constant 0 : i32
    %c0_i32_0 = arith.constant 0 : i32
    return %c0_i32, %arg0 : i32, i32
  }
  func.func @transform_3(%arg0: i32, %arg1: i32) -> (i32, i32) {
    %c0_i32 = arith.constant 0 : i32
    %c0_i32_0 = arith.constant 0 : i32
    return %c0_i32, %arg0 : i32, i32
  }
}

module attributes {stable_mosaic.version = 11 : i64} {
  func.func @_linear_fused_kernel(%arg0: i32, %arg1: memref<2x1024xf32, #tpu.memory_space<vmem>>, %arg2: memref<10x1024xf32, #tpu.memory_space<vmem>>, %arg3: memref<1x10xf32, #tpu.memory_space<vmem>>, %arg4: memref<2x10xf32, #tpu.memory_space<vmem>>) attributes {dimension_semantics = [#tpu.dimension_semantics<parallel>], iteration_bounds = array<i64: 1>, scalar_prefetch = 0 : i64, scratch_operands = 0 : i64, tpu.core_type = #tpu.core_type<tc>, window_params = [{transform_indices = @transform_0, window_bounds = array<i64: 2, 1024>}, {pipeline_mode = #tpu.pipeline_mode<synchronous>, transform_indices = @transform_1, window_bounds = array<i64: 10, 1024>}, {pipeline_mode = #tpu.pipeline_mode<synchronous>, transform_indices = @transform_2, window_bounds = array<i64: 1, 10>}, {transform_indices = @transform_3, window_bounds = array<i64: 2, 10>}]} {
    %c0 = arith.constant 0 : index
    %c0_0 = arith.constant 0 : index
    %0 = vector.load %arg1[%c0, %c0_0] : memref<2x1024xf32, #tpu.memory_space<vmem>>, vector<2x1024xf32>
    %c0_1 = arith.constant 0 : index
    %c0_2 = arith.constant 0 : index
    %1 = vector.load %arg2[%c0_1, %c0_2] : memref<10x1024xf32, #tpu.memory_space<vmem>>, vector<10x1024xf32>
    %cst = arith.constant dense<0.000000e+00> : vector<2x10xf32>
    %2 = tpu.matmul %0, %1, %cst {dimension_numbers = #tpu.dot_dimension_numbers<[1], [1], [0], [0], [0, 0, 1, 0], [], []>} : vector<2x1024xf32>, vector<10x1024xf32>, vector<2x10xf32> -> vector<2x10xf32>
    %c0_3 = arith.constant 0 : index
    %c0_4 = arith.constant 0 : index
    %3 = vector.load %arg3[%c0_3, %c0_4] : memref<1x10xf32, #tpu.memory_space<vmem>>, vector<1x10xf32>
    %4 = vector.broadcast %3 : vector<1x10xf32> to vector<2x10xf32>
    %5 = arith.addf %2, %4 : vector<2x10xf32>
    %c0_5 = arith.constant 0 : index
    %c0_6 = arith.constant 0 : index
    %6 = vector.load %arg4[%c0_5, %c0_6] : memref<2x10xf32, #tpu.memory_space<vmem>>, vector<2x10xf32>
    tpu.vector_store %arg4[%c0_5, %c0_6], %5 {strides = array<i32>} : memref<2x10xf32, #tpu.memory_space<vmem>>, vector<2x10xf32>,
    return
  }
  func.func @transform_0(%arg0: i32) -> (i32, i32) {
    %c0_i32 = arith.constant 0 : i32
    %c0_i32_0 = arith.constant 0 : i32
    return %arg0, %c0_i32 : i32, i32
  }
  func.func @transform_1(%arg0: i32) -> (i32, i32) {
    %c0_i32 = arith.constant 0 : i32
    %c0_i32_0 = arith.constant 0 : i32
    %c0_i32_1 = arith.constant 0 : i32
    return %c0_i32, %c0_i32_0 : i32, i32
  }
  func.func @transform_2(%arg0: i32) -> (i32, i32) {
    %c0_i32 = arith.constant 0 : i32
    %c0_i32_0 = arith.constant 0 : i32
    %c0_i32_1 = arith.constant 0 : i32
    return %c0_i32, %c0_i32_0 : i32, i32
  }
  func.func @transform_3(%arg0: i32) -> (i32, i32) {
    %c0_i32 = arith.constant 0 : i32
    %c0_i32_0 = arith.constant 0 : i32
    return %arg0, %c0_i32 : i32, i32
  }
}

</mosaic_0001>

<bundles_post_ra>
// kernel: model_forward.5
= control target key start
LH: loop header
LB: loop body
LE: loop exit
PB: predicated region body
PF: predicated region fallthrough
CT: control target
= control target key end

     0   :  { %8 = vsyncpa [#allocation3], 0  ;;  %s1299_s12 = smov 0   ;;  %s1760_s0 = inlined_call_operand.vmem [shape: f32[1568,9], index: 0, kind: input, shape index: {}]   ;;  %s1761_s1 = inlined_call_operand.vmem [shape: f32[64,9], index: 1, kind: input, shape index: {}]   ;;  %s1762_s2 = inlined_call_operand.hbm [shape: f32[1,64], index: 2, kind: input, shape index: {}]   ;;  %s1763_s3 = inlined_call_operand.vmem [shape: f32[1568,64], index: 3, kind: output, shape index: {}]  }
   0x1 LB: > { %s900_s13 = sadd.s32 4294967295, %s1273_s12   ;;  %p902_p0 = scmp.ge.s32.totalorder %s1273_s12, 1  ;;  %s1273_s12 = sphi %s1299_s12, %s14_s12  }
   0x2   : > { %p113_p1 = scmp.lt.s32.totalorder %s1273_s12, 5  ;;  %p1313_p3 = scmp.eq.s32.totalorder %s900_s13, 0 }
   0x3   : > { %s1275_s16 = smov [#allocation2]   ;;  %s1235_s21 = scalar_lea.hbm %s1762_s2, 16 }
   0x4   : > { %p1307_p2 = pnand %p902_p0, %p113_p1  ;;  %s129_s17 = sshll.u32 %s1275_s16, 4  ;;  %s130_s17 = int_to_ptr.vmem [resolvable:$true] %s129_s17 }
   0x5   : > { %s1768_s15 = scalar_select %p1313_p3, 1, 0 }
   0x6   : > { %s1767_s14 = scalar_select %p1307_p2, 1, 0 }
   0x7   : > { %p1217_p4 = pneg %p1307_p2  ;;  %p1236_p6 = scmp.ne.s32.totalorder %s1762_s2, %s1235_s21 }
   0x8   : > { %p1242_p10 = scmp.lt.u32.totalorder %s1235_s21, %s1762_s2 }
   0x9   : > { %p1321_p5 = pnand %p1313_p3, %p1217_p4 }
   0xb   : > { %p1237_p7 = pneg %p1321_p5 }
   0xd   : > { %p1238_p8 = pnand %p1237_p7, %p1236_p6 }
   0xf   : > { %p1239_p9 = pneg %p1238_p8 }
  0x11   : > { %p1244_p11 = pnand %p1242_p10, %p1239_p9 }
  0x13   : > { %1247 = shalt.err (!%p1244_p11)
}
  0x14   : > { %s1248_s26 = scalar_lea.vmem %s130_s17, 16  ;;  %s1255_s27 = scalar_lea.vmem %s130_s17, 32 }
  0x15   : > { %p1249_p12 = scmp.ne.s32.totalorder %s130_s17, %s1248_s26  ;;  %p1256_p1 = scmp.lt.s32.totalorder %s130_s17, %s130_s17 }
  0x16   : > { %p1257_p4 = scmp.lt.s32.totalorder %s1255_s27, %s1248_s26 }
  0x17   : > { %p1251_p13 = pnand %p1249_p12, %p1237_p7 }
  0x18   : > { %p1258_p3 = por %p1257_p4, %p1256_p1 }
  0x19   : > { %p1252_p0 = pneg %p1251_p13 }
  0x1b   : > { %p1259_p2 = pnand %p1258_p3, %p1252_p0 }
  0x1d   : > { %1262 = shalt.err (!%p1259_p2)
}
  0x1e   : > { %1220 = dma.hbm_to_vmem [thread:$0]  (!%p1321_p5), %s1762_s2, 16, %s130_s17, [#allocation3]  }
  0x1f   : > { %p1770_p6 = scmp.ne.s32.totalorder %s1767_s14, 0 }
  0x20   : > { %p1771_p8 = scmp.ne.s32.totalorder (!%p1770_p6), %s1768_s15, 0 }
  0x21   : > { %151 = sbr.rel (%p1770_p6) target bundleno = 389 (0x185), region = 32 }
  0x28   : > { %1268 = dma.done.wait (%p1771_p8), [#allocation3], 16  }
  0x29   : > { %1270 = vsyncadd (%p1771_p8), [#allocation3], 4294967280  ;;  %v1276_v0 = vmov 0.0|0.0   ;;  %vm1277_vm0 = vmmov 0   ;;  %v1278_v1 = vmov 0.0   ;;  %vm251_vm1 = vcmask 72704  }
  0x2a   : > { %1189 = vmatprep.subr.bf16.mxu0 %v1276_v0  ;;  %1205 = vmatprep.subr.bf16.mxu1 %v1276_v0  ;;  %v236_v2 = vld [vmem:[%s1761_s1] sm:$0xff]  ;;  %v237_v3 = vld [vmem:[%s1761_s1 + $0x8] sm:$0xff]  ;;  %vm1359_vm2 = vmpackc.low %vm251_vm1, %vm251_vm1  ;;  %s175_s17 = smul.u32 49, %s900_s13  ;;  %vm782_vm3 = vcmask 523264  }
  0x2b   : > { %1042 = vmatprep.mubr.msk.f32.mxu0 %vm1277_vm0, %v1278_v1  ;;  %1117 = vmatprep.mubr.msk.f32.mxu1 %vm1277_vm0, %v1278_v1  ;;  %v1190_v5 = vpack.c.bf16 %v237_v3, %v236_v2  ;;  %v238_v6 = vld [vmem:[%s1761_s1 + $0x10] sm:$0xff]  ;;  %v239_v7 = vld [vmem:[%s1761_s1 + $0x18] sm:$0xff]  ;;  %v240_v9 = vld [vmem:[%s1761_s1 + $0x20] sm:$0xff] }
  0x2c   : > { %v1194_v8 = vpack.c.bf16 %v239_v7, %v238_v6  ;;  %v241_v10 = vld [vmem:[%s1761_s1 + $0x28] sm:$0xff]  ;;  %p176_p2 = scmp.lt.s32.totalorder %s175_s17, 195  ;;  %v242_v12 = vld [vmem:[%s1761_s1 + $0x30] sm:$0xff]  ;;  %v243_v13 = vld [vmem:[%s1761_s1 + $0x38] sm:$0xff] }
  0x2d   : > { %1192 = vmatpush3.bf16.xpose.msk.msra.mxu0 %vm1359_vm2, %v1190_v5  ;;  %1209 = vmatpush3.bf16.xpose.msk.msra.mxu1 %vm1359_vm2, %v1190_v5  ;;  %v1198_v11 = vpack.c.bf16 %v241_v10, %v240_v9  ;;  %v1202_v14 = vpack.c.bf16 %v243_v13, %v242_v12 }
  0x2e   : > { %1193 = vmatprep.subr.bf16.mxu0 %v1276_v0  ;;  %1206 = vmatprep.subr.bf16.mxu1 %v1276_v0  ;;  %s1775_s17 = smov (!%p176_p2, %s175_s17), 195 }
  0x2f   : > { %s907_s13 = sshll.u32 %s1775_s17, 3 }
  0x30   : > { %s1407_s24 = scalar_lea.vmem %s1760_s0, %s907_s13  ;;  %s1610_s27 = scalar_lea.vmem %s1763_s3, %s907_s13 }
  0x31   : > { %v187_v15 = vld [vmem:[%s1407_s24] sm:$0xff]  ;;  %v212_v16 = vld [vmem:[%s1407_s24 + $0xc8] sm:$0xff]  ;;  %v213_v18 = vld [vmem:[%s1407_s24 + $0xd0] sm:$0xff] }
  0x32   : > { %v188_v17 = vld [vmem:[%s1407_s24 + $0x8] sm:$0xff]  ;;  %v189_v19 = vld [vmem:[%s1407_s24 + $0x10] sm:$0xff]  ;;  %v214_v20 = vld [vmem:[%s1407_s24 + $0xd8] sm:$0xff] }
  0x33   : > { %v190_v21 = vld [vmem:[%s1407_s24 + $0x18] sm:$0xff]  ;;  %v215_v22 = vld [vmem:[%s1407_s24 + $0xe0] sm:$0xff]  ;;  %v216_v24 = vld [vmem:[%s1407_s24 + $0xe8] sm:$0xff] }
  0x34   : > { %v191_v23 = vld [vmem:[%s1407_s24 + $0x20] sm:$0xff]  ;;  %v192_v25 = vld [vmem:[%s1407_s24 + $0x28] sm:$0xff]  ;;  %v217_v26 = vld [vmem:[%s1407_s24 + $0xf0] sm:$0xff] }
  0x35   : > { %1196 = vmatpush3.bf16.xpose.msk.msra.mxu0 %vm1359_vm2, %v1194_v8  ;;  %1210 = vmatpush3.bf16.xpose.msk.msra.mxu1 %vm1359_vm2, %v1194_v8  ;;  %v193_v27 = vld [vmem:[%s1407_s24 + $0x30] sm:$0xff]  ;;  %v218_v28 = vld [vmem:[%s1407_s24 + $0xf8] sm:$0xff]  ;;  %v219_v30 = vld [vmem:[%s1407_s24 + $0x100] sm:$0xff] }
  0x36   : > { %1197 = vmatprep.subr.bf16.mxu0 %v1276_v0  ;;  %1207 = vmatprep.subr.bf16.mxu1 %v1276_v0  ;;  %v194_v29 = vld [vmem:[%s1407_s24 + $0x38] sm:$0xff]  ;;  %v195_v31 = vld [vmem:[%s1407_s24 + $0x40] sm:$0xff]  ;;  %v220_v32 = vld [vmem:[%s1407_s24 + $0x108] sm:$0xff] }
  0x37   : > { %v196_v33 = vld [vmem:[%s1407_s24 + $0x48] sm:$0xff]  ;;  %v221_v34 = vld [vmem:[%s1407_s24 + $0x110] sm:$0xff]  ;;  %v222_v36 = vld [vmem:[%s1407_s24 + $0x118] sm:$0xff] }
  0x38   : > { %v197_v35 = vld [vmem:[%s1407_s24 + $0x50] sm:$0xff]  ;;  %v198_v37 = vld [vmem:[%s1407_s24 + $0x58] sm:$0xff]  ;;  %v223_v38 = vld [vmem:[%s1407_s24 + $0x120] sm:$0xff] }
  0x39   : > { %v199_v39 = vld [vmem:[%s1407_s24 + $0x60] sm:$0xff]  ;;  %v224_v40 = vld [vmem:[%s1407_s24 + $0x128] sm:$0xff]  ;;  %v225_v42 = vld [vmem:[%s1407_s24 + $0x130] sm:$0xff] }
  0x3a   : > { %v200_v41 = vld [vmem:[%s1407_s24 + $0x68] sm:$0xff]  ;;  %v201_v43 = vld [vmem:[%s1407_s24 + $0x70] sm:$0xff]  ;;  %v226_v44 = vld [vmem:[%s1407_s24 + $0x138] sm:$0xff] }
  0x3b   : > { %v202_v45 = vld [vmem:[%s1407_s24 + $0x78] sm:$0xff]  ;;  %v227_v46 = vld [vmem:[%s1407_s24 + $0x140] sm:$0xff]  ;;  %v228_v48 = vld [vmem:[%s1407_s24 + $0x148] sm:$0xff] }
  0x3c   : > { %v203_v47 = vld [vmem:[%s1407_s24 + $0x80] sm:$0xff]  ;;  %v204_v49 = vld [vmem:[%s1407_s24 + $0x88] sm:$0xff]  ;;  %v229_v50 = vld [vmem:[%s1407_s24 + $0x150] sm:$0xff] }
  0x3d   : > { %1200 = vmatpush3.bf16.xpose.msk.msra.mxu0 %vm1359_vm2, %v1198_v11  ;;  %1211 = vmatpush3.bf16.xpose.msk.msra.mxu1 %vm1359_vm2, %v1198_v11  ;;  %v205_v51 = vld [vmem:[%s1407_s24 + $0x90] sm:$0xff]  ;;  %v230_v52 = vld [vmem:[%s1407_s24 + $0x158] sm:$0xff]  ;;  %v231_v54 = vld [vmem:[%s1407_s24 + $0x160] sm:$0xff] }
  0x3e   : > { %1201 = vmatprep.subr.bf16.mxu0 %v1276_v0  ;;  %1208 = vmatprep.subr.bf16.mxu1 %v1276_v0  ;;  %v206_v53 = vld [vmem:[%s1407_s24 + $0x98] sm:$0xff]  ;;  %v207_v55 = vld [vmem:[%s1407_s24 + $0xa0] sm:$0xff]  ;;  %v232_v56 = vld [vmem:[%s1407_s24 + $0x168] sm:$0xff] }
  0x3f   : > { %v208_v57 = vld [vmem:[%s1407_s24 + $0xa8] sm:$0xff]  ;;  %v233_v58 = vld [vmem:[%s1407_s24 + $0x170] sm:$0xff]  ;;  %v234_v60 = vld [vmem:[%s1407_s24 + $0x178] sm:$0xff] }
  0x40   : > { %v209_v59 = vld [vmem:[%s1407_s24 + $0xb0] sm:$0xff]  ;;  %v210_v61 = vld [vmem:[%s1407_s24 + $0xb8] sm:$0xff]  ;;  %v235_v62 = vld [vmem:[%s1407_s24 + $0x180] sm:$0xff] }
  0x41   : > { %v211_v63 = vld [vmem:[%s1407_s24 + $0xc0] sm:$0xff] }
  0x42   : > { %v1601_v0 = vld [vmem:[#allocation2] ss:$0 sm:$0xff] }
  0x45   : > { %1204 = vmatpush3.bf16.xpose.msk.msra.mxu0 %vm1359_vm2, %v1202_v14  ;;  %1212 = vmatpush3.bf16.xpose.msk.msra.mxu1 %vm1359_vm2, %v1202_v14 }
  0x4c   : > { %1043 = vmatmul.mubr.msk.f32.vlgmr.msra.gmra.mrb[0].mxu0 %vm251_vm1, %v187_v15  ;;  %1118 = vmatmul.mubr.msk.f32.vlgmr.msra.gmra.mrb[0].mxu1 %vm251_vm1, %v212_v16 }
  0x4d   : > { %1045 = vmatprep.mubr.msk.f32.mxu0 %vm1277_vm0, %v1278_v1  ;;  %1120 = vmatprep.mubr.msk.f32.mxu1 %vm1277_vm0, %v1278_v1 }
  0x50   : > { %1046 = vmatmul.mubr.msk.f32.gmra.mrb[2].mxu0 %vm251_vm1, %v188_v17  ;;  %1121 = vmatmul.mubr.msk.f32.gmra.mrb[2].mxu1 %vm251_vm1, %v213_v18 }
  0x51   : > { %1048 = vmatprep.mubr.msk.f32.mxu0 %vm1277_vm0, %v1278_v1  ;;  %1123 = vmatprep.mubr.msk.f32.mxu1 %vm1277_vm0, %v1278_v1 }
  0x54   : > { %1049 = vmatmul.mubr.msk.f32.gmra.mrb[4].mxu0 %vm251_vm1, %v189_v19  ;;  %1124 = vmatmul.mubr.msk.f32.gmra.mrb[4].mxu1 %vm251_vm1, %v214_v20 }
  0x55   : > { %1051 = vmatprep.mubr.msk.f32.mxu0 %vm1277_vm0, %v1278_v1  ;;  %1126 = vmatprep.mubr.msk.f32.mxu1 %vm1277_vm0, %v1278_v1 }
  0x58   : > { %1052 = vmatmul.mubr.msk.f32.gmra.mrb[6].mxu0 %vm251_vm1, %v190_v21  ;;  %1127 = vmatmul.mubr.msk.f32.gmra.mrb[6].mxu1 %vm251_vm1, %v215_v22 }
  0x59   : > { %1054 = vmatprep.mubr.msk.f32.mxu0 %vm1277_vm0, %v1278_v1  ;;  %1129 = vmatprep.mubr.msk.f32.mxu1 %vm1277_vm0, %v1278_v1 }
  0x5c   : > { %1055 = vmatmul.mubr.msk.f32.gmra.mrb[8].mxu0 %vm251_vm1, %v191_v23  ;;  %1130 = vmatmul.mubr.msk.f32.gmra.mrb[8].mxu1 %vm251_vm1, %v216_v24 }
  0x5d   : > { %1057 = vmatprep.mubr.msk.f32.mxu0 %vm1277_vm0, %v1278_v1  ;;  %1132 = vmatprep.mubr.msk.f32.mxu1 %vm1277_vm0, %v1278_v1 }
  0x60   : > { %1058 = vmatmul.mubr.msk.f32.gmra.mrb[10].mxu0 %vm251_vm1, %v192_v25  ;;  %1133 = vmatmul.mubr.msk.f32.gmra.mrb[10].mxu1 %vm251_vm1, %v217_v26 }
  0x61   : > { %1060 = vmatprep.mubr.msk.f32.mxu0 %vm1277_vm0, %v1278_v1  ;;  %1135 = vmatprep.mubr.msk.f32.mxu1 %vm1277_vm0, %v1278_v1 }
  0x64   : > { %1061 = vmatmul.mubr.msk.f32.gmra.mrb[12].mxu0 %vm251_vm1, %v193_v27  ;;  %1136 = vmatmul.mubr.msk.f32.gmra.mrb[12].mxu1 %vm251_vm1, %v218_v28 }
  0x65   : > { %1063 = vmatprep.mubr.msk.f32.mxu0 %vm1277_vm0, %v1278_v1  ;;  %1138 = vmatprep.mubr.msk.f32.mxu1 %vm1277_vm0, %v1278_v1 }
  0x68   : > { %1064 = vmatmul.mubr.msk.f32.gmra.mrb[14].mxu0 %vm251_vm1, %v194_v29  ;;  %1139 = vmatmul.mubr.msk.f32.gmra.mrb[14].mxu1 %vm251_vm1, %v219_v30 }
  0x69   : > { %1066 = vmatprep.mubr.msk.f32.mxu0 %vm1277_vm0, %v1278_v1  ;;  %1141 = vmatprep.mubr.msk.f32.mxu1 %vm1277_vm0, %v1278_v1 }
  0x6c   : > { %1067 = vmatmul.mubr.msk.f32.gmra.mrb[16].mxu0 %vm251_vm1, %v195_v31  ;;  %1142 = vmatmul.mubr.msk.f32.gmra.mrb[16].mxu1 %vm251_vm1, %v220_v32 }
  0x6d   : > { %1069 = vmatprep.mubr.msk.f32.mxu0 %vm1277_vm0, %v1278_v1  ;;  %1144 = vmatprep.mubr.msk.f32.mxu1 %vm1277_vm0, %v1278_v1 }
  0x70   : > { %1070 = vmatmul.mubr.msk.f32.gmra.mrb[18].mxu0 %vm251_vm1, %v196_v33  ;;  %1145 = vmatmul.mubr.msk.f32.gmra.mrb[18].mxu1 %vm251_vm1, %v221_v34 }
  0x71   : > { %1072 = vmatprep.mubr.msk.f32.mxu0 %vm1277_vm0, %v1278_v1  ;;  %1147 = vmatprep.mubr.msk.f32.mxu1 %vm1277_vm0, %v1278_v1 }
  0x74   : > { %1073 = vmatmul.mubr.msk.f32.gmra.mrb[20].mxu0 %vm251_vm1, %v197_v35  ;;  %1148 = vmatmul.mubr.msk.f32.gmra.mrb[20].mxu1 %vm251_vm1, %v222_v36 }
  0x75   : > { %1075 = vmatprep.mubr.msk.f32.mxu0 %vm1277_vm0, %v1278_v1  ;;  %1150 = vmatprep.mubr.msk.f32.mxu1 %vm1277_vm0, %v1278_v1 }
  0x78   : > { %1076 = vmatmul.mubr.msk.f32.gmra.mrb[22].mxu0 %vm251_vm1, %v198_v37  ;;  %1151 = vmatmul.mubr.msk.f32.gmra.mrb[22].mxu1 %vm251_vm1, %v223_v38 }
  0x79   : > { %1078 = vmatprep.mubr.msk.f32.mxu0 %vm1277_vm0, %v1278_v1  ;;  %1153 = vmatprep.mubr.msk.f32.mxu1 %vm1277_vm0, %v1278_v1 }
  0x7c   : > { %1079 = vmatmul.mubr.msk.f32.gmra.mrb[24].mxu0 %vm251_vm1, %v199_v39  ;;  %1154 = vmatmul.mubr.msk.f32.gmra.mrb[24].mxu1 %vm251_vm1, %v224_v40 }
  0x7d   : > { %1081 = vmatprep.mubr.msk.f32.mxu0 %vm1277_vm0, %v1278_v1  ;;  %1156 = vmatprep.mubr.msk.f32.mxu1 %vm1277_vm0, %v1278_v1 }
  0x80   : > { %1082 = vmatmul.mubr.msk.f32.gmra.mrb[26].mxu0 %vm251_vm1, %v200_v41  ;;  %1157 = vmatmul.mubr.msk.f32.gmra.mrb[26].mxu1 %vm251_vm1, %v225_v42 }
  0x81   : > { %1084 = vmatprep.mubr.msk.f32.mxu0 %vm1277_vm0, %v1278_v1  ;;  %1159 = vmatprep.mubr.msk.f32.mxu1 %vm1277_vm0, %v1278_v1 }
  0x84   : > { %1085 = vmatmul.mubr.msk.f32.gmra.mrb[28].mxu0 %vm251_vm1, %v201_v43  ;;  %1160 = vmatmul.mubr.msk.f32.gmra.mrb[28].mxu1 %vm251_vm1, %v226_v44 }
  0x85   : > { %1087 = vmatprep.mubr.msk.f32.mxu0 %vm1277_vm0, %v1278_v1  ;;  %1162 = vmatprep.mubr.msk.f32.mxu1 %vm1277_vm0, %v1278_v1 }
  0x88   : > { %1088 = vmatmul.mubr.msk.f32.gmra.mrb[30].mxu0 %vm251_vm1, %v202_v45  ;;  %1163 = vmatmul.mubr.msk.f32.gmra.mrb[30].mxu1 %vm251_vm1, %v227_v46 }
  0x89   : > { %1090 = vmatprep.mubr.msk.f32.mxu0 %vm1277_vm0, %v1278_v1  ;;  %1165 = vmatprep.mubr.msk.f32.mxu1 %vm1277_vm0, %v1278_v1 }
  0x8c   : > { %1091 = vmatmul.mubr.msk.f32.gmra.mrb[32].mxu0 %vm251_vm1, %v203_v47  ;;  %1166 = vmatmul.mubr.msk.f32.gmra.mrb[32].mxu1 %vm251_vm1, %v228_v48 }
  0x8d   : > { %1093 = vmatprep.mubr.msk.f32.mxu0 %vm1277_vm0, %v1278_v1  ;;  %1168 = vmatprep.mubr.msk.f32.mxu1 %vm1277_vm0, %v1278_v1 }
  0x90   : > { %1094 = vmatmul.mubr.msk.f32.gmra.mrb[34].mxu0 %vm251_vm1, %v204_v49  ;;  %1169 = vmatmul.mubr.msk.f32.gmra.mrb[34].mxu1 %vm251_vm1, %v229_v50 }
  0x91   : > { %1096 = vmatprep.mubr.msk.f32.mxu0 %vm1277_vm0, %v1278_v1  ;;  %1171 = vmatprep.mubr.msk.f32.mxu1 %vm1277_vm0, %v1278_v1 }
  0x94   : > { %1097 = vmatmul.mubr.msk.f32.gmra.mrb[36].mxu0 %vm251_vm1, %v205_v51  ;;  %1172 = vmatmul.mubr.msk.f32.gmra.mrb[36].mxu1 %vm251_vm1, %v230_v52 }
  0x95   : > { %1099 = vmatprep.mubr.msk.f32.mxu0 %vm1277_vm0, %v1278_v1  ;;  %1174 = vmatprep.mubr.msk.f32.mxu1 %vm1277_vm0, %v1278_v1 }
  0x98   : > { %1100 = vmatmul.mubr.msk.f32.gmra.mrb[38].mxu0 %vm251_vm1, %v206_v53  ;;  %1175 = vmatmul.mubr.msk.f32.gmra.mrb[38].mxu1 %vm251_vm1, %v231_v54 }
  0x99   : > { %1102 = vmatprep.mubr.msk.f32.mxu0 %vm1277_vm0, %v1278_v1  ;;  %1177 = vmatprep.mubr.msk.f32.mxu1 %vm1277_vm0, %v1278_v1 }
  0x9c   : > { %1103 = vmatmul.mubr.msk.f32.gmra.mrb[40].mxu0 %vm251_vm1, %v207_v55  ;;  %1178 = vmatmul.mubr.msk.f32.gmra.mrb[40].mxu1 %vm251_vm1, %v232_v56 }
  0x9d   : > { %1105 = vmatprep.mubr.msk.f32.mxu0 %vm1277_vm0, %v1278_v1  ;;  %1180 = vmatprep.mubr.msk.f32.mxu1 %vm1277_vm0, %v1278_v1 }
  0xa0   : > { %1106 = vmatmul.mubr.msk.f32.gmra.mrb[42].mxu0 %vm251_vm1, %v208_v57  ;;  %1181 = vmatmul.mubr.msk.f32.gmra.mrb[42].mxu1 %vm251_vm1, %v233_v58 }
  0xa1   : > { %1108 = vmatprep.mubr.msk.f32.mxu0 %vm1277_vm0, %v1278_v1  ;;  %1183 = vmatprep.mubr.msk.f32.mxu1 %vm1277_vm0, %v1278_v1 }
  0xa4   : > { %1109 = vmatmul.mubr.msk.f32.gmra.mrb[44].mxu0 %vm251_vm1, %v209_v59  ;;  %1184 = vmatmul.mubr.msk.f32.gmra.mrb[44].mxu1 %vm251_vm1, %v234_v60 }
  0xa5   : > { %1111 = vmatprep.mubr.msk.f32.mxu0 %vm1277_vm0, %v1278_v1  ;;  %1186 = vmatprep.mubr.msk.f32.mxu1 %vm1277_vm0, %v1278_v1 }
  0xa8   : > { %1112 = vmatmul.mubr.msk.f32.gmra.mrb[46].mxu0 %vm251_vm1, %v210_v61  ;;  %1187 = vmatmul.mubr.msk.f32.gmra.mrb[46].mxu1 %vm251_vm1, %v235_v62 }
  0xa9   : > { %1114 = vmatprep.mubr.msk.f32.mxu0 %vm1277_vm0, %v1278_v1 }
  0xac   : > { %1115 = vmatmul.mubr.msk.f32.gmra.mrb[48].mxu0 %vm251_vm1, %v211_v63 }
 0x11f   : > { %v489_v2 = vpop.f32.mrb[0].mxu0  ;;  %v614_v3 = vpop.f32.mrb[0].mxu1 }
 0x120   : > { %v490_v4 = vadd.f32 %v1601_v0, %v489_v2  ;;  %v1044_v5 = vpop.f32.mrb[1].mxu0  ;;  %v615_v6 = vadd.f32 %v1601_v0, %v614_v3  ;;  %v1119_v7 = vpop.f32.mrb[1].mxu1 }
 0x122   : > { %v733_v1 = vmax.f32 %v490_v4, 0.0  ;;  %v758_v8 = vmax.f32 %v615_v6, 0.0 }
 0x123   : > { %v494_v9 = vpop.f32.mrb[2].mxu0  ;;  %v619_v10 = vpop.f32.mrb[2].mxu1 }
 0x124   : > { %783 = vst.msk [vmem:[%s1610_s27] sm:$0xff] %vm782_vm3, %v733_v1  ;;  %808 = vst.msk [vmem:[%s1610_s27 + $0xc8] sm:$0xff] %vm782_vm3, %v758_v8  ;;  %v495_v11 = vadd.f32 %v1601_v0, %v494_v9  ;;  %v1047_v12 = vpop.f32.mrb[3].mxu0  ;;  %v620_v13 = vadd.f32 %v1601_v0, %v619_v10  ;;  %v1122_v14 = vpop.f32.mrb[3].mxu1 }
 0x126   : > { %v734_v15 = vmax.f32 %v495_v11, 0.0  ;;  %v759_v16 = vmax.f32 %v620_v13, 0.0 }
 0x127   : > { %v499_v17 = vpop.f32.mrb[4].mxu0  ;;  %v624_v18 = vpop.f32.mrb[4].mxu1 }
 0x128   : > { %784 = vst.msk [vmem:[%s1610_s27 + $0x8] sm:$0xff] %vm782_vm3, %v734_v15  ;;  %809 = vst.msk [vmem:[%s1610_s27 + $0xd0] sm:$0xff] %vm782_vm3, %v759_v16  ;;  %v500_v19 = vadd.f32 %v1601_v0, %v499_v17  ;;  %v1050_v20 = vpop.f32.mrb[5].mxu0  ;;  %v625_v21 = vadd.f32 %v1601_v0, %v624_v18  ;;  %v1125_v22 = vpop.f32.mrb[5].mxu1 }
 0x12a   : > { %v735_v23 = vmax.f32 %v500_v19, 0.0  ;;  %v760_v24 = vmax.f32 %v625_v21, 0.0 }
 0x12b   : > { %v504_v25 = vpop.f32.mrb[6].mxu0  ;;  %v629_v26 = vpop.f32.mrb[6].mxu1 }
 0x12c   : > { %785 = vst.msk [vmem:[%s1610_s27 + $0x10] sm:$0xff] %vm782_vm3, %v735_v23  ;;  %810 = vst.msk [vmem:[%s1610_s27 + $0xd8] sm:$0xff] %vm782_vm3, %v760_v24  ;;  %v505_v27 = vadd.f32 %v1601_v0, %v504_v25  ;;  %v1053_v28 = vpop.f32.mrb[7].mxu0  ;;  %v630_v29 = vadd.f32 %v1601_v0, %v629_v26  ;;  %v1128_v30 = vpop.f32.mrb[7].mxu1 }
 0x12e   : > { %v736_v31 = vmax.f32 %v505_v27, 0.0  ;;  %v761_v32 = vmax.f32 %v630_v29, 0.0 }
 0x12f   : > { %v509_v33 = vpop.f32.mrb[8].mxu0  ;;  %v634_v34 = vpop.f32.mrb[8].mxu1 }
 0x130   : > { %786 = vst.msk [vmem:[%s1610_s27 + $0x18] sm:$0xff] %vm782_vm3, %v736_v31  ;;  %811 = vst.msk [vmem:[%s1610_s27 + $0xe0] sm:$0xff] %vm782_vm3, %v761_v32  ;;  %v510_v35 = vadd.f32 %v1601_v0, %v509_v33  ;;  %v1056_v36 = vpop.f32.mrb[9].mxu0  ;;  %v635_v37 = vadd.f32 %v1601_v0, %v634_v34  ;;  %v1131_v38 = vpop.f32.mrb[9].mxu1 }
 0x132   : > { %v737_v39 = vmax.f32 %v510_v35, 0.0  ;;  %v762_v40 = vmax.f32 %v635_v37, 0.0 }
 0x133   : > { %v514_v41 = vpop.f32.mrb[10].mxu0  ;;  %v639_v42 = vpop.f32.mrb[10].mxu1 }
 0x134   : > { %787 = vst.msk [vmem:[%s1610_s27 + $0x20] sm:$0xff] %vm782_vm3, %v737_v39  ;;  %812 = vst.msk [vmem:[%s1610_s27 + $0xe8] sm:$0xff] %vm782_vm3, %v762_v40  ;;  %v515_v43 = vadd.f32 %v1601_v0, %v514_v41  ;;  %v1059_v44 = vpop.f32.mrb[11].mxu0  ;;  %v640_v45 = vadd.f32 %v1601_v0, %v639_v42  ;;  %v1134_v46 = vpop.f32.mrb[11].mxu1 }
 0x136   : > { %v738_v47 = vmax.f32 %v515_v43, 0.0  ;;  %v763_v48 = vmax.f32 %v640_v45, 0.0 }
 0x137   : > { %v519_v49 = vpop.f32.mrb[12].mxu0  ;;  %v644_v50 = vpop.f32.mrb[12].mxu1 }
 0x138   : > { %788 = vst.msk [vmem:[%s1610_s27 + $0x28] sm:$0xff] %vm782_vm3, %v738_v47  ;;  %813 = vst.msk [vmem:[%s1610_s27 + $0xf0] sm:$0xff] %vm782_vm3, %v763_v48  ;;  %v520_v51 = vadd.f32 %v1601_v0, %v519_v49  ;;  %v1062_v52 = vpop.f32.mrb[13].mxu0  ;;  %v645_v53 = vadd.f32 %v1601_v0, %v644_v50  ;;  %v1137_v54 = vpop.f32.mrb[13].mxu1 }
 0x13a   : > { %v739_v55 = vmax.f32 %v520_v51, 0.0  ;;  %v764_v56 = vmax.f32 %v645_v53, 0.0 }
 0x13b   : > { %v524_v57 = vpop.f32.mrb[14].mxu0  ;;  %v649_v58 = vpop.f32.mrb[14].mxu1 }
 0x13c   : > { %789 = vst.msk [vmem:[%s1610_s27 + $0x30] sm:$0xff] %vm782_vm3, %v739_v55  ;;  %814 = vst.msk [vmem:[%s1610_s27 + $0xf8] sm:$0xff] %vm782_vm3, %v764_v56  ;;  %v525_v59 = vadd.f32 %v1601_v0, %v524_v57  ;;  %v1065_v60 = vpop.f32.mrb[15].mxu0  ;;  %v650_v61 = vadd.f32 %v1601_v0, %v649_v58  ;;  %v1140_v62 = vpop.f32.mrb[15].mxu1 }
 0x13e   : > { %v740_v63 = vmax.f32 %v525_v59, 0.0  ;;  %v765_v2 = vmax.f32 %v650_v61, 0.0 }
 0x13f   : > { %v529_v3 = vpop.f32.mrb[16].mxu0  ;;  %v654_v4 = vpop.f32.mrb[16].mxu1 }
 0x140   : > { %790 = vst.msk [vmem:[%s1610_s27 + $0x38] sm:$0xff] %vm782_vm3, %v740_v63  ;;  %815 = vst.msk [vmem:[%s1610_s27 + $0x100] sm:$0xff] %vm782_vm3, %v765_v2  ;;  %v530_v5 = vadd.f32 %v1601_v0, %v529_v3  ;;  %v1068_v6 = vpop.f32.mrb[17].mxu0  ;;  %v655_v7 = vadd.f32 %v1601_v0, %v654_v4  ;;  %v1143_v1 = vpop.f32.mrb[17].mxu1 }
 0x142   : > { %v741_v8 = vmax.f32 %v530_v5, 0.0  ;;  %v766_v9 = vmax.f32 %v655_v7, 0.0 }
 0x143   : > { %v534_v10 = vpop.f32.mrb[18].mxu0  ;;  %v659_v11 = vpop.f32.mrb[18].mxu1 }
 0x144   : > { %791 = vst.msk [vmem:[%s1610_s27 + $0x40] sm:$0xff] %vm782_vm3, %v741_v8  ;;  %816 = vst.msk [vmem:[%s1610_s27 + $0x108] sm:$0xff] %vm782_vm3, %v766_v9  ;;  %v535_v12 = vadd.f32 %v1601_v0, %v534_v10  ;;  %v1071_v13 = vpop.f32.mrb[19].mxu0  ;;  %v660_v14 = vadd.f32 %v1601_v0, %v659_v11  ;;  %v1146_v15 = vpop.f32.mrb[19].mxu1 }
 0x146   : > { %v742_v16 = vmax.f32 %v535_v12, 0.0  ;;  %v767_v17 = vmax.f32 %v660_v14, 0.0 }
 0x147   : > { %v539_v18 = vpop.f32.mrb[20].mxu0  ;;  %v664_v19 = vpop.f32.mrb[20].mxu1 }
 0x148   : > { %792 = vst.msk [vmem:[%s1610_s27 + $0x48] sm:$0xff] %vm782_vm3, %v742_v16  ;;  %817 = vst.msk [vmem:[%s1610_s27 + $0x110] sm:$0xff] %vm782_vm3, %v767_v17  ;;  %v540_v20 = vadd.f32 %v1601_v0, %v539_v18  ;;  %v1074_v21 = vpop.f32.mrb[21].mxu0  ;;  %v665_v22 = vadd.f32 %v1601_v0, %v664_v19  ;;  %v1149_v23 = vpop.f32.mrb[21].mxu1 }
 0x14a   : > { %v743_v24 = vmax.f32 %v540_v20, 0.0  ;;  %v768_v25 = vmax.f32 %v665_v22, 0.0 }
 0x14b   : > { %v544_v26 = vpop.f32.mrb[22].mxu0  ;;  %v669_v27 = vpop.f32.mrb[22].mxu1 }
 0x14c   : > { %793 = vst.msk [vmem:[%s1610_s27 + $0x50] sm:$0xff] %vm782_vm3, %v743_v24  ;;  %818 = vst.msk [vmem:[%s1610_s27 + $0x118] sm:$0xff] %vm782_vm3, %v768_v25  ;;  %v545_v28 = vadd.f32 %v1601_v0, %v544_v26  ;;  %v1077_v29 = vpop.f32.mrb[23].mxu0  ;;  %v670_v30 = vadd.f32 %v1601_v0, %v669_v27  ;;  %v1152_v31 = vpop.f32.mrb[23].mxu1 }
 0x14e   : > { %v744_v32 = vmax.f32 %v545_v28, 0.0  ;;  %v769_v33 = vmax.f32 %v670_v30, 0.0 }
 0x14f   : > { %v549_v34 = vpop.f32.mrb[24].mxu0  ;;  %v674_v35 = vpop.f32.mrb[24].mxu1 }
 0x150   : > { %794 = vst.msk [vmem:[%s1610_s27 + $0x58] sm:$0xff] %vm782_vm3, %v744_v32  ;;  %819 = vst.msk [vmem:[%s1610_s27 + $0x120] sm:$0xff] %vm782_vm3, %v769_v33  ;;  %v550_v36 = vadd.f32 %v1601_v0, %v549_v34  ;;  %v1080_v37 = vpop.f32.mrb[25].mxu0  ;;  %v675_v38 = vadd.f32 %v1601_v0, %v674_v35  ;;  %v1155_v39 = vpop.f32.mrb[25].mxu1 }
 0x152   : > { %v745_v40 = vmax.f32 %v550_v36, 0.0  ;;  %v770_v41 = vmax.f32 %v675_v38, 0.0 }
 0x153   : > { %v554_v42 = vpop.f32.mrb[26].mxu0  ;;  %v679_v43 = vpop.f32.mrb[26].mxu1 }
 0x154   : > { %795 = vst.msk [vmem:[%s1610_s27 + $0x60] sm:$0xff] %vm782_vm3, %v745_v40  ;;  %820 = vst.msk [vmem:[%s1610_s27 + $0x128] sm:$0xff] %vm782_vm3, %v770_v41  ;;  %v555_v44 = vadd.f32 %v1601_v0, %v554_v42  ;;  %v1083_v45 = vpop.f32.mrb[27].mxu0  ;;  %v680_v46 = vadd.f32 %v1601_v0, %v679_v43  ;;  %v1158_v47 = vpop.f32.mrb[27].mxu1 }
 0x156   : > { %v746_v48 = vmax.f32 %v555_v44, 0.0  ;;  %v771_v49 = vmax.f32 %v680_v46, 0.0 }
 0x157   : > { %v559_v50 = vpop.f32.mrb[28].mxu0  ;;  %v684_v51 = vpop.f32.mrb[28].mxu1 }
 0x158   : > { %796 = vst.msk [vmem:[%s1610_s27 + $0x68] sm:$0xff] %vm782_vm3, %v746_v48  ;;  %821 = vst.msk [vmem:[%s1610_s27 + $0x130] sm:$0xff] %vm782_vm3, %v771_v49  ;;  %v560_v52 = vadd.f32 %v1601_v0, %v559_v50  ;;  %v1086_v53 = vpop.f32.mrb[29].mxu0  ;;  %v685_v54 = vadd.f32 %v1601_v0, %v684_v51  ;;  %v1161_v55 = vpop.f32.mrb[29].mxu1 }
 0x15a   : > { %v747_v56 = vmax.f32 %v560_v52, 0.0  ;;  %v772_v57 = vmax.f32 %v685_v54, 0.0 }
 0x15b   : > { %v564_v58 = vpop.f32.mrb[30].mxu0  ;;  %v689_v59 = vpop.f32.mrb[30].mxu1 }
 0x15c   : > { %797 = vst.msk [vmem:[%s1610_s27 + $0x70] sm:$0xff] %vm782_vm3, %v747_v56  ;;  %822 = vst.msk [vmem:[%s1610_s27 + $0x138] sm:$0xff] %vm782_vm3, %v772_v57  ;;  %v565_v60 = vadd.f32 %v1601_v0, %v564_v58  ;;  %v1089_v61 = vpop.f32.mrb[31].mxu0  ;;  %v690_v62 = vadd.f32 %v1601_v0, %v689_v59  ;;  %v1164_v63 = vpop.f32.mrb[31].mxu1 }
 0x15e   : > { %v748_v2 = vmax.f32 %v565_v60, 0.0  ;;  %v773_v3 = vmax.f32 %v690_v62, 0.0 }
 0x15f   : > { %v569_v4 = vpop.f32.mrb[32].mxu0  ;;  %v694_v5 = vpop.f32.mrb[32].mxu1 }
 0x160   : > { %798 = vst.msk [vmem:[%s1610_s27 + $0x78] sm:$0xff] %vm782_vm3, %v748_v2  ;;  %823 = vst.msk [vmem:[%s1610_s27 + $0x140] sm:$0xff] %vm782_vm3, %v773_v3  ;;  %v570_v6 = vadd.f32 %v1601_v0, %v569_v4  ;;  %v1092_v7 = vpop.f32.mrb[33].mxu0  ;;  %v695_v1 = vadd.f32 %v1601_v0, %v694_v5  ;;  %v1167_v8 = vpop.f32.mrb[33].mxu1 }
 0x162   : > { %v749_v9 = vmax.f32 %v570_v6, 0.0  ;;  %v774_v10 = vmax.f32 %v695_v1, 0.0 }
 0x163   : > { %v574_v11 = vpop.f32.mrb[34].mxu0  ;;  %v699_v12 = vpop.f32.mrb[34].mxu1 }
 0x164   : > { %799 = vst.msk [vmem:[%s1610_s27 + $0x80] sm:$0xff] %vm782_vm3, %v749_v9  ;;  %824 = vst.msk [vmem:[%s1610_s27 + $0x148] sm:$0xff] %vm782_vm3, %v774_v10  ;;  %v575_v13 = vadd.f32 %v1601_v0, %v574_v11  ;;  %v1095_v14 = vpop.f32.mrb[35].mxu0  ;;  %v700_v15 = vadd.f32 %v1601_v0, %v699_v12  ;;  %v1170_v16 = vpop.f32.mrb[35].mxu1 }
 0x166   : > { %v750_v17 = vmax.f32 %v575_v13, 0.0  ;;  %v775_v18 = vmax.f32 %v700_v15, 0.0 }
 0x167   : > { %v579_v19 = vpop.f32.mrb[36].mxu0  ;;  %v704_v20 = vpop.f32.mrb[36].mxu1 }
 0x168   : > { %800 = vst.msk [vmem:[%s1610_s27 + $0x88] sm:$0xff] %vm782_vm3, %v750_v17  ;;  %825 = vst.msk [vmem:[%s1610_s27 + $0x150] sm:$0xff] %vm782_vm3, %v775_v18  ;;  %v580_v21 = vadd.f32 %v1601_v0, %v579_v19  ;;  %v1098_v22 = vpop.f32.mrb[37].mxu0  ;;  %v705_v23 = vadd.f32 %v1601_v0, %v704_v20  ;;  %v1173_v24 = vpop.f32.mrb[37].mxu1 }
 0x16a   : > { %v751_v25 = vmax.f32 %v580_v21, 0.0  ;;  %v776_v26 = vmax.f32 %v705_v23, 0.0 }
 0x16b   : > { %v584_v27 = vpop.f32.mrb[38].mxu0  ;;  %v709_v28 = vpop.f32.mrb[38].mxu1 }
 0x16c   : > { %801 = vst.msk [vmem:[%s1610_s27 + $0x90] sm:$0xff] %vm782_vm3, %v751_v25  ;;  %826 = vst.msk [vmem:[%s1610_s27 + $0x158] sm:$0xff] %vm782_vm3, %v776_v26  ;;  %v585_v29 = vadd.f32 %v1601_v0, %v584_v27  ;;  %v1101_v30 = vpop.f32.mrb[39].mxu0  ;;  %v710_v31 = vadd.f32 %v1601_v0, %v709_v28  ;;  %v1176_v32 = vpop.f32.mrb[39].mxu1 }
 0x16e   : > { %v752_v33 = vmax.f32 %v585_v29, 0.0  ;;  %v777_v34 = vmax.f32 %v710_v31, 0.0 }
 0x16f   : > { %v589_v35 = vpop.f32.mrb[40].mxu0  ;;  %v714_v36 = vpop.f32.mrb[40].mxu1 }
 0x170   : > { %802 = vst.msk [vmem:[%s1610_s27 + $0x98] sm:$0xff] %vm782_vm3, %v752_v33  ;;  %827 = vst.msk [vmem:[%s1610_s27 + $0x160] sm:$0xff] %vm782_vm3, %v777_v34  ;;  %v590_v37 = vadd.f32 %v1601_v0, %v589_v35  ;;  %v1104_v38 = vpop.f32.mrb[41].mxu0  ;;  %v715_v39 = vadd.f32 %v1601_v0, %v714_v36  ;;  %v1179_v40 = vpop.f32.mrb[41].mxu1 }
 0x172   : > { %v753_v41 = vmax.f32 %v590_v37, 0.0  ;;  %v778_v42 = vmax.f32 %v715_v39, 0.0 }
 0x173   : > { %v594_v43 = vpop.f32.mrb[42].mxu0  ;;  %v719_v44 = vpop.f32.mrb[42].mxu1 }
 0x174   : > { %803 = vst.msk [vmem:[%s1610_s27 + $0xa0] sm:$0xff] %vm782_vm3, %v753_v41  ;;  %828 = vst.msk [vmem:[%s1610_s27 + $0x168] sm:$0xff] %vm782_vm3, %v778_v42  ;;  %v595_v45 = vadd.f32 %v1601_v0, %v594_v43  ;;  %v1107_v46 = vpop.f32.mrb[43].mxu0  ;;  %v720_v47 = vadd.f32 %v1601_v0, %v719_v44  ;;  %v1182_v48 = vpop.f32.mrb[43].mxu1 }
 0x176   : > { %v754_v49 = vmax.f32 %v595_v45, 0.0  ;;  %v779_v50 = vmax.f32 %v720_v47, 0.0 }
 0x177   : > { %v599_v51 = vpop.f32.mrb[44].mxu0  ;;  %v724_v52 = vpop.f32.mrb[44].mxu1 }
 0x178   : > { %804 = vst.msk [vmem:[%s1610_s27 + $0xa8] sm:$0xff] %vm782_vm3, %v754_v49  ;;  %829 = vst.msk [vmem:[%s1610_s27 + $0x170] sm:$0xff] %vm782_vm3, %v779_v50  ;;  %v600_v53 = vadd.f32 %v1601_v0, %v599_v51  ;;  %v1110_v54 = vpop.f32.mrb[45].mxu0  ;;  %v725_v55 = vadd.f32 %v1601_v0, %v724_v52  ;;  %v1185_v56 = vpop.f32.mrb[45].mxu1 }
 0x17a   : > { %v755_v57 = vmax.f32 %v600_v53, 0.0  ;;  %v780_v58 = vmax.f32 %v725_v55, 0.0 }
 0x17b   : > { %v604_v59 = vpop.f32.mrb[46].mxu0  ;;  %v729_v60 = vpop.f32.mrb[46].mxu1 }
 0x17c   : > { %805 = vst.msk [vmem:[%s1610_s27 + $0xb0] sm:$0xff] %vm782_vm3, %v755_v57  ;;  %830 = vst.msk [vmem:[%s1610_s27 + $0x178] sm:$0xff] %vm782_vm3, %v780_v58  ;;  %v605_v61 = vadd.f32 %v1601_v0, %v604_v59  ;;  %v1113_v62 = vpop.f32.mrb[47].mxu0  ;;  %v730_v63 = vadd.f32 %v1601_v0, %v729_v60  ;;  %v1188_v2 = vpop.f32.mrb[47].mxu1 }
 0x17e   : > { %v756_v3 = vmax.f32 %v605_v61, 0.0  ;;  %v781_v4 = vmax.f32 %v730_v63, 0.0 }
 0x17f   : > { %v609_v5 = vpop.f32.mrb[48].mxu0 }
 0x180   : > { %806 = vst.msk [vmem:[%s1610_s27 + $0xb8] sm:$0xff] %vm782_vm3, %v756_v3  ;;  %831 = vst.msk [vmem:[%s1610_s27 + $0x180] sm:$0xff] %vm782_vm3, %v781_v4  ;;  %v610_v6 = vadd.f32 %v1601_v0, %v609_v5  ;;  %v1116_v7 = vpop.f32.mrb[49].mxu0 }
 0x182   : > { %v757_v1 = vmax.f32 %v610_v6, 0.0 }
 0x184   : > { %807 = vst.msk [vmem:[%s1610_s27 + $0xc0] sm:$0xff] %vm782_vm3, %v757_v1 }
 0x185 PF: > { %s14_s12 = sadd.s32 1, %s1273_s12  }
 0x186   : > { %p11_p3 = scmp.ge.s32.totalorder %s14_s12, 6  }
 0x188   :  { %13 = sbr.rel (!%p11_p3) target bundleno = 1 (0x1), region = 67 }
 0x18f   :  { %854 = vsyncpa [#allocation3], 1 }
 0x190   :  { %856 = vsyncpa [#allocation3 + $0x1], 1 }

// kernel: model_forward.6
= control target key start
LH: loop header
LB: loop body
LE: loop exit
PB: predicated region body
PF: predicated region fallthrough
CT: control target
= control target key end

     0   :  { %s2459_s12 = smov 0   ;;  %s3388_s0 = inlined_call_operand.vmem [shape: f32[1568,576], index: 0, kind: input, shape index: {}]   ;;  %s3389_s1 = inlined_call_operand.vmem [shape: f32[128,576], index: 1, kind: input, shape index: {}]   ;;  %s3390_s2 = inlined_call_operand.vmem [shape: f32[1,128], index: 2, kind: input, shape index: {}]   ;;  %s3391_s3 = inlined_call_operand.vmem [shape: f32[1568,128], index: 3, kind: output, shape index: {}]  }
   0x1 LB: > { %s1789_s13 = sadd.s32 4294967295, %s2434_s12   ;;  %p1793_p0 = scmp.ge.s32.totalorder %s2434_s12, 1  ;;  %s2434_s12 = sphi %s2459_s12, %s13_s12  }
   0x2   : > { %p139_p1 = scmp.lt.s32.totalorder %s2434_s12, 5 }
   0x4   : > { %p140_p2 = pnand %p1793_p0, %p139_p1 }
   0x5   : > { %v423_v0 = vld [vmem:[%s3389_s1 + $0x8] sm:$0xff] (!%p140_p2)  ;;  %v428_v1 = vld [vmem:[%s3389_s1 + $0x30] sm:$0xff] (!%p140_p2)  ;;  %v425_v2 = vld [vmem:[%s3389_s1 + $0x18] sm:$0xff] (!%p140_p2)  ;;  %s164_s5 = smul.u32 (!%p140_p2), 49, %s1789_s13  ;;  %vm509_vm0 = vcmask (!%p140_p2), 523264   ;;  %vm2437_vm2 = vmmov (!%p140_p2), 0  }
   0x6   : > { %143 = sbr.rel (%p140_p2) target bundleno = 582 (0x246), region = 32  ;;  %v2108_v3 = vpack.c.bf16 (!%p140_p2), %v428_v1, %v423_v0  ;;  %v430_v4 = vld [vmem:[%s3389_s1 + $0x40] sm:$0xff] (!%p140_p2)  ;;  %v427_v6 = vld [vmem:[%s3389_s1 + $0x28] sm:$0xff] (!%p140_p2)  ;;  %v424_v9 = vld [vmem:[%s3389_s1 + $0x10] sm:$0xff] (!%p140_p2) }
   0x7   : > { %v422_v5 = vld [vmem:[%s3389_s1] sm:$0xff] (!%p140_p2)  ;;  %v2485_v7 = vpack.c.bf16 (!%p140_p2), %v430_v4, %v425_v2  ;;  %v429_v10 = vld [vmem:[%s3389_s1 + $0x38] sm:$0xff] (!%p140_p2)  ;;  %v435_v14 = vld [vmem:[%s3389_s1 + $0x68] sm:$0xff] (!%p140_p2)  ;;  %p165_p3 = scmp.lt.s32.totalorder (!%p140_p2), %s164_s5, 195 }
   0x8   : > { %v2110_v8 = vpack.c.bf16 (!%p140_p2), %v427_v6, %v422_v5  ;;  %v433_v11 = vld [vmem:[%s3389_s1 + $0x58] sm:$0xff] (!%p140_p2)  ;;  %2109 = vmatprep.subr.bf16.mxu1 (!%p140_p2), %v2108_v3  ;;  %v2496_v12 = vpack.c.bf16 (!%p140_p2), %v429_v10, %v424_v9  ;;  %v438_v13 = vld [vmem:[%s3389_s1 + $0x80] sm:$0xff] (!%p140_p2)  ;;  %v440_v15 = vld [vmem:[%s3389_s1 + $0x90] sm:$0xff] (!%p140_p2) }
   0x9   : > { %2141 = vmatprep.subr.bf16.mxu0 (!%p140_p2), %v2485_v7  ;;  %v2112_v16 = vpack.c.bf16 (!%p140_p2), %v438_v13, %v433_v11  ;;  %v2508_v17 = vpack.c.bf16 (!%p140_p2), %v440_v15, %v435_v14  ;;  %v432_v18 = vld [vmem:[%s3389_s1 + $0x50] sm:$0xff] (!%p140_p2)  ;;  %v437_v19 = vld [vmem:[%s3389_s1 + $0x78] sm:$0xff] (!%p140_p2)  ;;  %v434_v20 = vld [vmem:[%s3389_s1 + $0x60] sm:$0xff] (!%p140_p2) }
   0xa   : > { %2111 = vmatpush1.bf16.xpose.msra.mxu1 (!%p140_p2), %v2110_v8  ;;  %2143 = vmatpush1.bf16.xpose.msra.mxu0 (!%p140_p2), %v2496_v12  ;;  %v439_v21 = vld [vmem:[%s3389_s1 + $0x88] sm:$0xff] (!%p140_p2)  ;;  %v448_v23 = vld [vmem:[%s3389_s1 + $0xd0] sm:$0xff] (!%p140_p2)  ;;  %v445_v24 = vld [vmem:[%s3389_s1 + $0xb8] sm:$0xff] (!%p140_p2)  ;;  %v2114_v26 = vpack.c.bf16 (!%p140_p2), %v437_v19, %v432_v18 }
   0xb   : > { %2113 = vmatprep.subr.bf16.mxu1 (!%p140_p2), %v2112_v16  ;;  %2145 = vmatprep.subr.bf16.mxu0 (!%p140_p2), %v2508_v17  ;;  %v443_v22 = vld [vmem:[%s3389_s1 + $0xa8] sm:$0xff] (!%p140_p2)  ;;  %v450_v25 = vld [vmem:[%s3389_s1 + $0xe0] sm:$0xff] (!%p140_p2)  ;;  %v2536_v27 = vpack.c.bf16 (!%p140_p2), %v439_v21, %v434_v20  ;;  %v444_v32 = vld [vmem:[%s3389_s1 + $0xb0] sm:$0xff] (!%p140_p2) }
   0xc   : > { %v2116_v28 = vpack.c.bf16 (!%p140_p2), %v448_v23, %v443_v22  ;;  %v2538_v29 = vpack.c.bf16 (!%p140_p2), %v450_v25, %v445_v24  ;;  %v442_v30 = vld [vmem:[%s3389_s1 + $0xa0] sm:$0xff] (!%p140_p2)  ;;  %v447_v31 = vld [vmem:[%s3389_s1 + $0xc8] sm:$0xff] (!%p140_p2)  ;;  %v449_v33 = vld [vmem:[%s3389_s1 + $0xd8] sm:$0xff] (!%p140_p2) }
   0xd   : > { %s3395_s5 = smov (!%p165_p3, %s164_s5), 195  ;;  %v453_v34 = vld [vmem:[%s3389_s1 + $0xf8] sm:$0xff]  ;;  %v458_v35 = vld [vmem:[%s3389_s1 + $0x120] sm:$0xff]  ;;  %v455_v36 = vld [vmem:[%s3389_s1 + $0x108] sm:$0xff]  ;;  %v2118_v38 = vpack.c.bf16 %v447_v31, %v442_v30  ;;  %v2569_v39 = vpack.c.bf16 %v449_v33, %v444_v32 }
   0xe   : > { %s2416_s16 = smul.u32 40, %s3395_s5  ;;  %v460_v37 = vld [vmem:[%s3389_s1 + $0x130] sm:$0xff]  ;;  %v2120_v40 = vpack.c.bf16 %v458_v35, %v453_v34  ;;  %v457_v43 = vld [vmem:[%s3389_s1 + $0x118] sm:$0xff]  ;;  %v454_v44 = vld [vmem:[%s3389_s1 + $0x100] sm:$0xff] }
   0xf   : > { %v2571_v41 = vpack.c.bf16 %v460_v37, %v455_v36  ;;  %v452_v42 = vld [vmem:[%s3389_s1 + $0xf0] sm:$0xff]  ;;  %v459_v47 = vld [vmem:[%s3389_s1 + $0x128] sm:$0xff]  ;;  %v465_v50 = vld [vmem:[%s3389_s1 + $0x158] sm:$0xff] }
  0x10   : > { %s2576_s23 = scalar_lea.vmem %s3388_s0, %s2416_s16  ;;  %v463_v48 = vld [vmem:[%s3389_s1 + $0x148] sm:$0xff]  ;;  %v468_v49 = vld [vmem:[%s3389_s1 + $0x170] sm:$0xff]  ;;  %v470_v51 = vld [vmem:[%s3389_s1 + $0x180] sm:$0xff]  ;;  %v2122_v52 = vpack.c.bf16 %v457_v43, %v452_v42  ;;  %v2606_v53 = vpack.c.bf16 %v459_v47, %v454_v44 }
  0x11   : > { %v178_v45 = vld [vmem:[%s2576_s23 + $0x8] sm:$0xff]  ;;  %v180_v46 = vld [vmem:[%s2576_s23 + $0x18] sm:$0xff]  ;;  %v2124_v54 = vpack.c.bf16 %v468_v49, %v463_v48  ;;  %v2608_v55 = vpack.c.bf16 %v470_v51, %v465_v50  ;;  %v462_v56 = vld [vmem:[%s3389_s1 + $0x140] sm:$0xff] }
  0x12   : > { %2115 = vmatpush1.bf16.xpose.msra.mxu1 %v2114_v26  ;;  %2147 = vmatpush1.bf16.xpose.msra.mxu0 %v2536_v27  ;;  %v467_v57 = vld [vmem:[%s3389_s1 + $0x168] sm:$0xff]  ;;  %v464_v58 = vld [vmem:[%s3389_s1 + $0x150] sm:$0xff]  ;;  %v469_v59 = vld [vmem:[%s3389_s1 + $0x178] sm:$0xff] }
  0x13   : > { %2117 = vmatprep.subr.bf16.mxu1 %v2116_v28  ;;  %2149 = vmatprep.subr.bf16.mxu0 %v2538_v29  ;;  %v473_v60 = vld [vmem:[%s3389_s1 + $0x198] sm:$0xff]  ;;  %v478_v61 = vld [vmem:[%s3389_s1 + $0x1c0] sm:$0xff]  ;;  %v475_v62 = vld [vmem:[%s3389_s1 + $0x1a8] sm:$0xff]  ;;  %v2126_v0 = vpack.c.bf16 %v467_v57, %v462_v56  ;;  %v2636_v1 = vpack.c.bf16 %v469_v59, %v464_v58 }
  0x14   : > { %769 = vmatprep.mubr.f32.mxu1 %v178_v45  ;;  %1079 = vmatprep.mubr.f32.mxu0 %v180_v46  ;;  %v480_v63 = vld [vmem:[%s3389_s1 + $0x1d0] sm:$0xff]  ;;  %v2128_v2 = vpack.c.bf16 %v478_v61, %v473_v60  ;;  %v477_v5 = vld [vmem:[%s3389_s1 + $0x1b8] sm:$0xff]  ;;  %v474_v6 = vld [vmem:[%s3389_s1 + $0x1a0] sm:$0xff] }
  0x15   : > { %v2638_v3 = vpack.c.bf16 %v480_v63, %v475_v62  ;;  %v472_v4 = vld [vmem:[%s3389_s1 + $0x190] sm:$0xff]  ;;  %v479_v8 = vld [vmem:[%s3389_s1 + $0x1c8] sm:$0xff]  ;;  %v485_v11 = vld [vmem:[%s3389_s1 + $0x1f8] sm:$0xff] }
  0x16   : > { %v483_v9 = vld [vmem:[%s3389_s1 + $0x1e8] sm:$0xff]  ;;  %v488_v10 = vld [vmem:[%s3389_s1 + $0x210] sm:$0xff]  ;;  %v490_v13 = vld [vmem:[%s3389_s1 + $0x220] sm:$0xff]  ;;  %v2130_v14 = vpack.c.bf16 %v477_v5, %v472_v4  ;;  %v2666_v15 = vpack.c.bf16 %v479_v8, %v474_v6 }
  0x17   : > { %v2132_v16 = vpack.c.bf16 %v488_v10, %v483_v9  ;;  %v2668_v18 = vpack.c.bf16 %v490_v13, %v485_v11  ;;  %v482_v19 = vld [vmem:[%s3389_s1 + $0x1e0] sm:$0xff]  ;;  %v487_v20 = vld [vmem:[%s3389_s1 + $0x208] sm:$0xff]  ;;  %v484_v21 = vld [vmem:[%s3389_s1 + $0x1f0] sm:$0xff] }
  0x18   : > { %v489_v22 = vld [vmem:[%s3389_s1 + $0x218] sm:$0xff]  ;;  %v498_v24 = vld [vmem:[%s3389_s1 + $0x260] sm:$0xff]  ;;  %v495_v25 = vld [vmem:[%s3389_s1 + $0x248] sm:$0xff]  ;;  %v2134_v28 = vpack.c.bf16 %v487_v20, %v482_v19 }
  0x19   : > { %v493_v23 = vld [vmem:[%s3389_s1 + $0x238] sm:$0xff]  ;;  %v500_v26 = vld [vmem:[%s3389_s1 + $0x270] sm:$0xff]  ;;  %v2696_v30 = vpack.c.bf16 %v489_v22, %v484_v21  ;;  %v494_v35 = vld [vmem:[%s3389_s1 + $0x240] sm:$0xff] }
  0x1a   : > { %2119 = vmatpush1.bf16.xpose.msra.mxu1 %v2118_v38  ;;  %2151 = vmatpush1.bf16.xpose.msra.mxu0 %v2569_v39  ;;  %v2136_v31 = vpack.c.bf16 %v498_v24, %v493_v23  ;;  %v2698_v32 = vpack.c.bf16 %v500_v26, %v495_v25  ;;  %v492_v33 = vld [vmem:[%s3389_s1 + $0x230] sm:$0xff]  ;;  %v497_v34 = vld [vmem:[%s3389_s1 + $0x258] sm:$0xff]  ;;  %v499_v36 = vld [vmem:[%s3389_s1 + $0x268] sm:$0xff] }
  0x1b   : > { %2121 = vmatprep.subr.bf16.mxu1 %v2120_v40  ;;  %2153 = vmatprep.subr.bf16.mxu0 %v2571_v41  ;;  %v2138_v37 = vpack.c.bf16 %v497_v34, %v492_v33  ;;  %v2714_v38 = vpack.c.bf16 %v499_v36, %v494_v35  ;;  %v2436_v40 = vmov 0.0|0.0   ;;  %v426_v42 = vld [vmem:[%s3389_s1 + $0x20] sm:$0xff]  ;;  %v431_v43 = vld [vmem:[%s3389_s1 + $0x48] sm:$0xff]  ;;  %v179_v45 = vld [vmem:[%s2576_s23 + $0x10] sm:$0xff] }
  0x1c   : > { %v177_v44 = vld [vmem:[%s2576_s23] sm:$0xff]  ;;  %v2173_v46 = vpack.c.bf16 %v431_v43, %v426_v42  ;;  %v183_v47 = vld [vmem:[%s2576_s23 + $0x30] sm:$0xff]  ;;  %vm2730_vm1 = vmpackc.low %vm509_vm0, %vm509_vm0 }
  0x1d   : > { %v185_v48 = vld [vmem:[%s2576_s23 + $0x40] sm:$0xff]  ;;  %v182_v49 = vld [vmem:[%s2576_s23 + $0x28] sm:$0xff]  ;;  %v184_v50 = vld [vmem:[%s2576_s23 + $0x38] sm:$0xff] }
  0x1e   : > { %v188_v51 = vld [vmem:[%s2576_s23 + $0x58] sm:$0xff]  ;;  %v189_v57 = vld [vmem:[%s2576_s23 + $0x60] sm:$0xff]  ;;  %v195_v60 = vld [vmem:[%s2576_s23 + $0x90] sm:$0xff] }
  0x1f   : > { %v441_v56 = vld [vmem:[%s3389_s1 + $0x98] sm:$0xff]  ;;  %v193_v58 = vld [vmem:[%s2576_s23 + $0x80] sm:$0xff]  ;;  %v194_v62 = vld [vmem:[%s2576_s23 + $0x88] sm:$0xff] }
  0x20   : > { %v192_v61 = vld [vmem:[%s2576_s23 + $0x78] sm:$0xff]  ;;  %v197_v4 = vld [vmem:[%s2576_s23 + $0xa0] sm:$0xff]  ;;  %v199_v5 = vld [vmem:[%s2576_s23 + $0xb0] sm:$0xff] }
  0x21   : > { %v200_v63 = vld [vmem:[%s2576_s23 + $0xb8] sm:$0xff]  ;;  %v203_v6 = vld [vmem:[%s2576_s23 + $0xd0] sm:$0xff]  ;;  %v205_v9 = vld [vmem:[%s2576_s23 + $0xe0] sm:$0xff] }
  0x22   : > { %2123 = vmatpush1.bf16.xpose.msra.mxu1 %v2122_v52  ;;  %2155 = vmatpush1.bf16.xpose.msra.mxu0 %v2606_v53  ;;  %v190_v52 = vld [vmem:[%s2576_s23 + $0x68] sm:$0xff]  ;;  %v208_v11 = vld [vmem:[%s2576_s23 + $0xf8] sm:$0xff]  ;;  %v456_v13 = vld [vmem:[%s3389_s1 + $0x110] sm:$0xff] }
  0x23   : > { %2125 = vmatprep.subr.bf16.mxu1 %v2124_v54  ;;  %2157 = vmatprep.subr.bf16.mxu0 %v2608_v55  ;;  %v436_v54 = vld [vmem:[%s3389_s1 + $0x70] sm:$0xff]  ;;  %v202_v10 = vld [vmem:[%s2576_s23 + $0xc8] sm:$0xff]  ;;  %v209_v19 = vld [vmem:[%s2576_s23 + $0x100] sm:$0xff] }
  0x24   : > { %v2177_v59 = vpack.c.bf16 %v441_v56, %v436_v54  ;;  %v213_v20 = vld [vmem:[%s2576_s23 + $0x120] sm:$0xff]  ;;  %v215_v22 = vld [vmem:[%s2576_s23 + $0x130] sm:$0xff]  ;;  %v212_v23 = vld [vmem:[%s2576_s23 + $0x118] sm:$0xff] }
  0x25   : > { %v218_v24 = vld [vmem:[%s2576_s23 + $0x148] sm:$0xff]  ;;  %v466_v25 = vld [vmem:[%s3389_s1 + $0x160] sm:$0xff]  ;;  %v223_v33 = vld [vmem:[%s2576_s23 + $0x170] sm:$0xff] }
  0x26   : > { %v471_v26 = vld [vmem:[%s3389_s1 + $0x188] sm:$0xff]  ;;  %v225_v35 = vld [vmem:[%s2576_s23 + $0x180] sm:$0xff]  ;;  %v476_v42 = vld [vmem:[%s3389_s1 + $0x1b0] sm:$0xff] }
  0x27   : > { %v2189_v34 = vpack.c.bf16 %v471_v26, %v466_v25  ;;  %v222_v36 = vld [vmem:[%s2576_s23 + $0x168] sm:$0xff]  ;;  %v481_v43 = vld [vmem:[%s3389_s1 + $0x1d8] sm:$0xff]  ;;  %v237_v54 = vld [vmem:[%s2576_s23 + $0x1e0] sm:$0xff] }
  0x28   : > { %v239_v56 = vld [vmem:[%s2576_s23 + $0x1f0] sm:$0xff]  ;;  %v282_v25 = vld [vmem:[%s2576_s23 + $0x348] sm:$0xff]  ;;  %v284_v26 = vld [vmem:[%s2576_s23 + $0x358] sm:$0xff] }
  0x2a   : > { %2127 = vmatpush1.bf16.xpose.msra.mxu1 %v2126_v0  ;;  %2159 = vmatpush1.bf16.xpose.msra.mxu0 %v2636_v1  ;;  %v446_v0 = vld [vmem:[%s3389_s1 + $0xc0] sm:$0xff] }
  0x2b   : > { %2129 = vmatprep.subr.bf16.mxu1 %v2128_v2  ;;  %2161 = vmatprep.subr.bf16.mxu0 %v2638_v3  ;;  %v451_v2 = vld [vmem:[%s3389_s1 + $0xe8] sm:$0xff] }
  0x2c   : > { %v2181_v8 = vpack.c.bf16 %v451_v2, %v446_v0  ;;  %v255_v2 = vld [vmem:[%s2576_s23 + $0x270] sm:$0xff] }
  0x32   : > { %2131 = vmatpush1.bf16.xpose.msra.mxu1 %v2130_v14  ;;  %2163 = vmatpush1.bf16.xpose.msra.mxu0 %v2666_v15  ;;  %v461_v14 = vld [vmem:[%s3389_s1 + $0x138] sm:$0xff] }
  0x33   : > { %2133 = vmatprep.subr.bf16.mxu1 %v2132_v16  ;;  %2165 = vmatprep.subr.bf16.mxu0 %v2668_v18  ;;  %v207_v16 = vld [vmem:[%s2576_s23 + $0xf0] sm:$0xff]  ;;  %v2185_v21 = vpack.c.bf16 %v461_v14, %v456_v13  ;;  %v269_v13 = vld [vmem:[%s2576_s23 + $0x2e0] sm:$0xff] }
  0x34   : > { %v273_v14 = vld [vmem:[%s2576_s23 + $0x300] sm:$0xff] }
  0x3a   : > { %2135 = vmatpush1.bf16.xpose.msra.mxu1 %v2134_v28  ;;  %2167 = vmatpush1.bf16.xpose.msra.mxu0 %v2696_v30  ;;  %v217_v28 = vld [vmem:[%s2576_s23 + $0x140] sm:$0xff] }
  0x3b   : > { %2137 = vmatprep.subr.bf16.mxu1 %v2136_v31  ;;  %2169 = vmatprep.subr.bf16.mxu0 %v2698_v32  ;;  %v219_v31 = vld [vmem:[%s2576_s23 + $0x150] sm:$0xff] }
  0x42   : > { %2139 = vmatpush1.bf16.xpose.msra.mxu1 %v2138_v37  ;;  %2171 = vmatpush1.bf16.xpose.msra.mxu0 %v2714_v38  ;;  %v228_v37 = vld [vmem:[%s2576_s23 + $0x198] sm:$0xff] }
  0x43   : > { %2204 = vmatprep.subr.bf16.mxu1 %v2485_v7  ;;  %2172 = vmatprep.subr.bf16.mxu0 %v2436_v40  ;;  %v262_v7 = vld [vmem:[%s2576_s23 + $0x2a8] sm:$0xff] }
  0x49   : > { %770 = vmatmul.mubr.f32.vlgmr.msra.gmra.mrb[0].mxu1 %v177_v44  ;;  %1080 = vmatmul.mubr.f32.vlgmr.msra.gmra.mrb[0].mxu0 %v179_v45  ;;  %v227_v44 = vld [vmem:[%s2576_s23 + $0x190] sm:$0xff]  ;;  %v229_v45 = vld [vmem:[%s2576_s23 + $0x1a0] sm:$0xff] }
  0x4a   : > { %774 = vmatprep.mubr.f32.mxu1 %v183_v47  ;;  %2175 = vmatpush3.bf16.xpose.msk.msra.mxu0 %vm2730_vm1, %v2173_v46  ;;  %v233_v46 = vld [vmem:[%s2576_s23 + $0x1c0] sm:$0xff]  ;;  %v2193_v47 = vpack.c.bf16 %v481_v43, %v476_v42  ;;  %v300_v42 = vld [vmem:[%s2576_s23 + $0x3d8] sm:$0xff] }
  0x4b   : > { %2212 = vmatpush1.bf16.xpose.msra.mxu1 %v2496_v12  ;;  %1084 = vmatprep.mubr.f32.mxu0 %v185_v48  ;;  %v187_v12 = vld [vmem:[%s2576_s23 + $0x50] sm:$0xff]  ;;  %v297_v43 = vld [vmem:[%s2576_s23 + $0x3c0] sm:$0xff] }
  0x4c   : > { %2176 = vmatprep.subr.bf16.mxu0 %v2436_v40  ;;  %2205 = vmatprep.subr.bf16.mxu1 %v2508_v17  ;;  %v198_v17 = vld [vmem:[%s2576_s23 + $0xa8] sm:$0xff]  ;;  %v235_v48 = vld [vmem:[%s2576_s23 + $0x1d0] sm:$0xff] }
  0x4d   : > { %775 = vmatmul.mubr.f32.gmra.mrb[2].mxu1 %v182_v49  ;;  %1085 = vmatmul.mubr.f32.gmra.mrb[2].mxu0 %v184_v50  ;;  %v232_v49 = vld [vmem:[%s2576_s23 + $0x1b8] sm:$0xff]  ;;  %v238_v50 = vld [vmem:[%s2576_s23 + $0x1e8] sm:$0xff] }
  0x4e   : > { %779 = vmatprep.mubr.f32.mxu1 %v188_v51  ;;  %1089 = vmatprep.mubr.f32.mxu0 %v190_v52  ;;  %v486_v51 = vld [vmem:[%s3389_s1 + $0x200] sm:$0xff]  ;;  %v491_v52 = vld [vmem:[%s3389_s1 + $0x228] sm:$0xff] }
  0x51   : > { %780 = vmatmul.mubr.f32.gmra.mrb[4].mxu1 %v187_v12  ;;  %1090 = vmatmul.mubr.f32.gmra.mrb[4].mxu0 %v189_v57  ;;  %v243_v12 = vld [vmem:[%s2576_s23 + $0x210] sm:$0xff]  ;;  %v2197_v57 = vpack.c.bf16 %v491_v52, %v486_v51  ;;  %v312_v51 = vld [vmem:[%s2576_s23 + $0x438] sm:$0xff] }
  0x52   : > { %784 = vmatprep.mubr.f32.mxu1 %v193_v58  ;;  %1094 = vmatprep.mubr.f32.mxu0 %v195_v60  ;;  %v245_v58 = vld [vmem:[%s2576_s23 + $0x220] sm:$0xff]  ;;  %v248_v60 = vld [vmem:[%s2576_s23 + $0x238] sm:$0xff]  ;;  %v191_v52 = vld [vmem:[%s2576_s23 + $0x70] sm:$0xff] }
  0x53   : > { %2179 = vmatpush3.bf16.xpose.msk.msra.mxu0 %vm2730_vm1, %v2177_v59  ;;  %2213 = vmatpush1.bf16.xpose.msra.mxu1 %v2536_v27  ;;  %v204_v27 = vld [vmem:[%s2576_s23 + $0xd8] sm:$0xff]  ;;  %v242_v59 = vld [vmem:[%s2576_s23 + $0x208] sm:$0xff] }
  0x54   : > { %2180 = vmatprep.subr.bf16.mxu0 %v2436_v40  ;;  %2206 = vmatprep.subr.bf16.mxu1 %v2538_v29  ;;  %v210_v29 = vld [vmem:[%s2576_s23 + $0x108] sm:$0xff] }
  0x55   : > { %785 = vmatmul.mubr.f32.gmra.mrb[6].mxu1 %v192_v61  ;;  %1095 = vmatmul.mubr.f32.gmra.mrb[6].mxu0 %v194_v62  ;;  %v496_v61 = vld [vmem:[%s3389_s1 + $0x250] sm:$0xff]  ;;  %v501_v62 = vld [vmem:[%s3389_s1 + $0x278] sm:$0xff] }
  0x56   : > { %789 = vmatprep.mubr.f32.mxu1 %v198_v17  ;;  %1099 = vmatprep.mubr.f32.mxu0 %v200_v63  ;;  %v249_v17 = vld [vmem:[%s2576_s23 + $0x240] sm:$0xff]  ;;  %v2201_v0 = vpack.c.bf16 %v501_v62, %v496_v61  ;;  %v332_v62 = vld [vmem:[%s2576_s23 + $0x4d8] sm:$0xff] }
  0x57   : > { %v253_v63 = vld [vmem:[%s2576_s23 + $0x260] sm:$0xff] }
  0x58   : > { %v333_v61 = vld [vmem:[%s2576_s23 + $0x4e0] sm:$0xff] }
  0x59   : > { %790 = vmatmul.mubr.f32.gmra.mrb[8].mxu1 %v197_v4  ;;  %1100 = vmatmul.mubr.f32.gmra.mrb[8].mxu0 %v199_v5  ;;  %v254_v4 = vld [vmem:[%s2576_s23 + $0x268] sm:$0xff]  ;;  %v260_v5 = vld [vmem:[%s2576_s23 + $0x298] sm:$0xff] }
  0x5a   : > { %794 = vmatprep.mubr.f32.mxu1 %v203_v6  ;;  %1104 = vmatprep.mubr.f32.mxu0 %v205_v9  ;;  %v257_v6 = vld [vmem:[%s2576_s23 + $0x280] sm:$0xff]  ;;  %v263_v9 = vld [vmem:[%s2576_s23 + $0x2b0] sm:$0xff] }
  0x5b   : > { %2183 = vmatpush3.bf16.xpose.msk.msra.mxu0 %vm2730_vm1, %v2181_v8  ;;  %2214 = vmatpush1.bf16.xpose.msra.mxu1 %v2569_v39  ;;  %v214_v39 = vld [vmem:[%s2576_s23 + $0x128] sm:$0xff]  ;;  %v259_v8 = vld [vmem:[%s2576_s23 + $0x290] sm:$0xff] }
  0x5c   : > { %2184 = vmatprep.subr.bf16.mxu0 %v2436_v40  ;;  %2207 = vmatprep.subr.bf16.mxu1 %v2571_v41  ;;  %v220_v41 = vld [vmem:[%s2576_s23 + $0x158] sm:$0xff] }
  0x5d   : > { %795 = vmatmul.mubr.f32.gmra.mrb[10].mxu1 %v202_v10  ;;  %1105 = vmatmul.mubr.f32.gmra.mrb[10].mxu0 %v204_v27  ;;  %v265_v10 = vld [vmem:[%s2576_s23 + $0x2c0] sm:$0xff]  ;;  %v268_v27 = vld [vmem:[%s2576_s23 + $0x2d8] sm:$0xff] }
  0x5e   : > { %799 = vmatprep.mubr.f32.mxu1 %v208_v11  ;;  %1109 = vmatprep.mubr.f32.mxu0 %v210_v29  ;;  %v270_v11 = vld [vmem:[%s2576_s23 + $0x2e8] sm:$0xff]  ;;  %v267_v29 = vld [vmem:[%s2576_s23 + $0x2d0] sm:$0xff] }
  0x61   : > { %800 = vmatmul.mubr.f32.gmra.mrb[12].mxu1 %v207_v16  ;;  %1110 = vmatmul.mubr.f32.gmra.mrb[12].mxu0 %v209_v19  ;;  %v275_v16 = vld [vmem:[%s2576_s23 + $0x310] sm:$0xff]  ;;  %v272_v19 = vld [vmem:[%s2576_s23 + $0x2f8] sm:$0xff] }
  0x62   : > { %804 = vmatprep.mubr.f32.mxu1 %v213_v20  ;;  %1114 = vmatprep.mubr.f32.mxu0 %v215_v22  ;;  %v274_v20 = vld [vmem:[%s2576_s23 + $0x308] sm:$0xff]  ;;  %v280_v22 = vld [vmem:[%s2576_s23 + $0x338] sm:$0xff] }
  0x63   : > { %2187 = vmatpush3.bf16.xpose.msk.msra.mxu0 %vm2730_vm1, %v2185_v21  ;;  %2215 = vmatpush1.bf16.xpose.msra.mxu1 %v2606_v53  ;;  %v224_v53 = vld [vmem:[%s2576_s23 + $0x178] sm:$0xff]  ;;  %v278_v21 = vld [vmem:[%s2576_s23 + $0x328] sm:$0xff] }
  0x64   : > { %2188 = vmatprep.subr.bf16.mxu0 %v2436_v40  ;;  %2208 = vmatprep.subr.bf16.mxu1 %v2608_v55  ;;  %v230_v55 = vld [vmem:[%s2576_s23 + $0x1a8] sm:$0xff] }
  0x65   : > { %805 = vmatmul.mubr.f32.gmra.mrb[14].mxu1 %v212_v23  ;;  %1115 = vmatmul.mubr.f32.gmra.mrb[14].mxu0 %v214_v39  ;;  %v277_v23 = vld [vmem:[%s2576_s23 + $0x320] sm:$0xff]  ;;  %v279_v39 = vld [vmem:[%s2576_s23 + $0x330] sm:$0xff] }
  0x66   : > { %809 = vmatprep.mubr.f32.mxu1 %v218_v24  ;;  %1119 = vmatprep.mubr.f32.mxu0 %v220_v41  ;;  %v283_v24 = vld [vmem:[%s2576_s23 + $0x350] sm:$0xff]  ;;  %v285_v41 = vld [vmem:[%s2576_s23 + $0x360] sm:$0xff] }
  0x69   : > { %810 = vmatmul.mubr.f32.gmra.mrb[16].mxu1 %v217_v28  ;;  %1120 = vmatmul.mubr.f32.gmra.mrb[16].mxu0 %v219_v31  ;;  %v288_v28 = vld [vmem:[%s2576_s23 + $0x378] sm:$0xff]  ;;  %v290_v31 = vld [vmem:[%s2576_s23 + $0x388] sm:$0xff] }
  0x6a   : > { %814 = vmatprep.mubr.f32.mxu1 %v223_v33  ;;  %1124 = vmatprep.mubr.f32.mxu0 %v225_v35  ;;  %v287_v33 = vld [vmem:[%s2576_s23 + $0x370] sm:$0xff]  ;;  %v293_v35 = vld [vmem:[%s2576_s23 + $0x3a0] sm:$0xff] }
  0x6b   : > { %2191 = vmatpush3.bf16.xpose.msk.msra.mxu0 %vm2730_vm1, %v2189_v34  ;;  %2216 = vmatpush1.bf16.xpose.msra.mxu1 %v2636_v1  ;;  %v234_v1 = vld [vmem:[%s2576_s23 + $0x1c8] sm:$0xff]  ;;  %v289_v34 = vld [vmem:[%s2576_s23 + $0x380] sm:$0xff] }
  0x6c   : > { %2192 = vmatprep.subr.bf16.mxu0 %v2436_v40  ;;  %2209 = vmatprep.subr.bf16.mxu1 %v2638_v3  ;;  %v240_v3 = vld [vmem:[%s2576_s23 + $0x1f8] sm:$0xff] }
  0x6d   : > { %815 = vmatmul.mubr.f32.gmra.mrb[18].mxu1 %v222_v36  ;;  %1125 = vmatmul.mubr.f32.gmra.mrb[18].mxu0 %v224_v53  ;;  %v295_v36 = vld [vmem:[%s2576_s23 + $0x3b0] sm:$0xff]  ;;  %v292_v53 = vld [vmem:[%s2576_s23 + $0x398] sm:$0xff] }
  0x6e   : > { %819 = vmatprep.mubr.f32.mxu1 %v228_v37  ;;  %1129 = vmatprep.mubr.f32.mxu0 %v230_v55  ;;  %v294_v37 = vld [vmem:[%s2576_s23 + $0x3a8] sm:$0xff] }
  0x6f   : > { %v298_v55 = vld [vmem:[%s2576_s23 + $0x3c8] sm:$0xff] }
  0x71   : > { %820 = vmatmul.mubr.f32.gmra.mrb[20].mxu1 %v227_v44  ;;  %1130 = vmatmul.mubr.f32.gmra.mrb[20].mxu0 %v229_v45  ;;  %v299_v44 = vld [vmem:[%s2576_s23 + $0x3d0] sm:$0xff] }
  0x72   : > { %824 = vmatprep.mubr.f32.mxu1 %v233_v46  ;;  %1134 = vmatprep.mubr.f32.mxu0 %v235_v48  ;;  %v303_v45 = vld [vmem:[%s2576_s23 + $0x3f0] sm:$0xff]  ;;  %v302_v46 = vld [vmem:[%s2576_s23 + $0x3e8] sm:$0xff]  ;;  %v181_v48 = vld [vmem:[%s2576_s23 + $0x20] sm:$0xff] }
  0x73   : > { %2195 = vmatpush3.bf16.xpose.msk.msra.mxu0 %vm2730_vm1, %v2193_v47  ;;  %2217 = vmatpush1.bf16.xpose.msra.mxu1 %v2666_v15  ;;  %v244_v15 = vld [vmem:[%s2576_s23 + $0x218] sm:$0xff]  ;;  %v2438_v47 = vmov 0.0  }
  0x74   : > { %2196 = vmatprep.subr.bf16.mxu0 %v2436_v40  ;;  %2210 = vmatprep.subr.bf16.mxu1 %v2668_v18  ;;  %v250_v18 = vld [vmem:[%s2576_s23 + $0x248] sm:$0xff] }
  0x75   : > { %825 = vmatmul.mubr.f32.gmra.mrb[22].mxu1 %v232_v49  ;;  %1135 = vmatmul.mubr.f32.gmra.mrb[22].mxu0 %v234_v1  ;;  %v308_v49 = vld [vmem:[%s2576_s23 + $0x418] sm:$0xff]  ;;  %v307_v1 = vld [vmem:[%s2576_s23 + $0x410] sm:$0xff] }
  0x76   : > { %829 = vmatprep.mubr.f32.mxu1 %v238_v50  ;;  %1139 = vmatprep.mubr.f32.mxu0 %v240_v3  ;;  %v186_v50 = vld [vmem:[%s2576_s23 + $0x48] sm:$0xff]  ;;  %v313_v3 = vld [vmem:[%s2576_s23 + $0x440] sm:$0xff] }
  0x79   : > { %830 = vmatmul.mubr.f32.gmra.mrb[24].mxu1 %v237_v54  ;;  %1140 = vmatmul.mubr.f32.gmra.mrb[24].mxu0 %v239_v56  ;;  %v318_v54 = vld [vmem:[%s2576_s23 + $0x468] sm:$0xff]  ;;  %v317_v56 = vld [vmem:[%s2576_s23 + $0x460] sm:$0xff] }
  0x7a   : > { %834 = vmatprep.mubr.f32.mxu1 %v243_v12  ;;  %1144 = vmatprep.mubr.f32.mxu0 %v245_v58  ;;  %v196_v12 = vld [vmem:[%s2576_s23 + $0x98] sm:$0xff]  ;;  %v322_v58 = vld [vmem:[%s2576_s23 + $0x488] sm:$0xff] }
  0x7b   : > { %2199 = vmatpush3.bf16.xpose.msk.msra.mxu0 %vm2730_vm1, %v2197_v57  ;;  %2218 = vmatpush1.bf16.xpose.msra.mxu1 %v2696_v30  ;;  %v252_v30 = vld [vmem:[%s2576_s23 + $0x258] sm:$0xff]  ;;  %v323_v57 = vld [vmem:[%s2576_s23 + $0x490] sm:$0xff] }
  0x7c   : > { %2200 = vmatprep.subr.bf16.mxu0 %v2436_v40  ;;  %2211 = vmatprep.subr.bf16.mxu1 %v2698_v32  ;;  %v247_v40 = vld [vmem:[%s2576_s23 + $0x230] sm:$0xff]  ;;  %v258_v32 = vld [vmem:[%s2576_s23 + $0x288] sm:$0xff] }
  0x7d   : > { %835 = vmatmul.mubr.f32.gmra.mrb[26].mxu1 %v242_v59  ;;  %1145 = vmatmul.mubr.f32.gmra.mrb[26].mxu0 %v244_v15  ;;  %v201_v59 = vld [vmem:[%s2576_s23 + $0xc0] sm:$0xff]  ;;  %v328_v15 = vld [vmem:[%s2576_s23 + $0x4b8] sm:$0xff] }
  0x7e   : > { %839 = vmatprep.mubr.f32.mxu1 %v248_v60  ;;  %1149 = vmatprep.mubr.f32.mxu0 %v250_v18  ;;  %v327_v60 = vld [vmem:[%s2576_s23 + $0x4b0] sm:$0xff]  ;;  %v206_v18 = vld [vmem:[%s2576_s23 + $0xe8] sm:$0xff] }
  0x81   : > { %840 = vmatmul.mubr.f32.gmra.mrb[28].mxu1 %v247_v40  ;;  %1150 = vmatmul.mubr.f32.gmra.mrb[28].mxu0 %v249_v17  ;;  %v211_v40 = vld [vmem:[%s2576_s23 + $0x110] sm:$0xff]  ;;  %v338_v17 = vld [vmem:[%s2576_s23 + $0x508] sm:$0xff] }
  0x82   : > { %844 = vmatprep.mubr.f32.mxu1 %v253_v63  ;;  %1154 = vmatprep.mubr.f32.mxu0 %v255_v2  ;;  %v337_v63 = vld [vmem:[%s2576_s23 + $0x500] sm:$0xff]  ;;  %v343_v2 = vld [vmem:[%s2576_s23 + $0x530] sm:$0xff] }
  0x83   : > { %2203 = vmatpush3.bf16.xpose.msk.msra.mxu0 %vm2730_vm1, %v2201_v0  ;;  %2219 = vmatpush1.bf16.xpose.msra.mxu1 %v2714_v38  ;;  %v264_v38 = vld [vmem:[%s2576_s23 + $0x2b8] sm:$0xff] }
  0x84   : > { %v216_v0 = vld [vmem:[%s2576_s23 + $0x138] sm:$0xff] }
  0x85   : > { %845 = vmatmul.mubr.f32.gmra.mrb[30].mxu1 %v252_v30  ;;  %1155 = vmatmul.mubr.f32.gmra.mrb[30].mxu0 %v254_v4  ;;  %v342_v30 = vld [vmem:[%s2576_s23 + $0x528] sm:$0xff]  ;;  %v221_v4 = vld [vmem:[%s2576_s23 + $0x160] sm:$0xff] }
  0x86   : > { %849 = vmatprep.mubr.f32.mxu1 %v258_v32  ;;  %1159 = vmatprep.mubr.f32.mxu0 %v260_v5  ;;  %v348_v32 = vld [vmem:[%s2576_s23 + $0x558] sm:$0xff]  ;;  %v347_v5 = vld [vmem:[%s2576_s23 + $0x550] sm:$0xff] }
  0x89   : > { %850 = vmatmul.mubr.f32.gmra.mrb[32].mxu1 %v257_v6  ;;  %1160 = vmatmul.mubr.f32.gmra.mrb[32].mxu0 %v259_v8  ;;  %v226_v6 = vld [vmem:[%s2576_s23 + $0x188] sm:$0xff]  ;;  %v353_v8 = vld [vmem:[%s2576_s23 + $0x580] sm:$0xff] }
  0x8a   : > { %854 = vmatprep.mubr.f32.mxu1 %v263_v9  ;;  %1164 = vmatprep.mubr.f32.mxu0 %v265_v10  ;;  %v352_v9 = vld [vmem:[%s2576_s23 + $0x578] sm:$0xff]  ;;  %v231_v10 = vld [vmem:[%s2576_s23 + $0x1b0] sm:$0xff] }
  0x8d   : > { %855 = vmatmul.mubr.f32.gmra.mrb[34].mxu1 %v262_v7  ;;  %1165 = vmatmul.mubr.f32.gmra.mrb[34].mxu0 %v264_v38  ;;  %v358_v7 = vld [vmem:[%s2576_s23 + $0x5a8] sm:$0xff]  ;;  %v357_v38 = vld [vmem:[%s2576_s23 + $0x5a0] sm:$0xff] }
  0x8e   : > { %859 = vmatprep.mubr.f32.mxu1 %v268_v27  ;;  %1169 = vmatprep.mubr.f32.mxu0 %v270_v11  ;;  %v236_v27 = vld [vmem:[%s2576_s23 + $0x1d8] sm:$0xff]  ;;  %v363_v11 = vld [vmem:[%s2576_s23 + $0x5d0] sm:$0xff] }
  0x91   : > { %860 = vmatmul.mubr.f32.gmra.mrb[36].mxu1 %v267_v29  ;;  %1170 = vmatmul.mubr.f32.gmra.mrb[36].mxu0 %v269_v13  ;;  %v362_v29 = vld [vmem:[%s2576_s23 + $0x5c8] sm:$0xff]  ;;  %v241_v13 = vld [vmem:[%s2576_s23 + $0x200] sm:$0xff] }
  0x92   : > { %864 = vmatprep.mubr.f32.mxu1 %v273_v14  ;;  %1174 = vmatprep.mubr.f32.mxu0 %v275_v16  ;;  %v368_v14 = vld [vmem:[%s2576_s23 + $0x5f8] sm:$0xff]  ;;  %v367_v16 = vld [vmem:[%s2576_s23 + $0x5f0] sm:$0xff] }
  0x95   : > { %865 = vmatmul.mubr.f32.gmra.mrb[38].mxu1 %v272_v19  ;;  %1175 = vmatmul.mubr.f32.gmra.mrb[38].mxu0 %v274_v20  ;;  %v246_v19 = vld [vmem:[%s2576_s23 + $0x228] sm:$0xff]  ;;  %v373_v20 = vld [vmem:[%s2576_s23 + $0x620] sm:$0xff] }
  0x96   : > { %869 = vmatprep.mubr.f32.mxu1 %v278_v21  ;;  %1179 = vmatprep.mubr.f32.mxu0 %v280_v22  ;;  %v372_v21 = vld [vmem:[%s2576_s23 + $0x618] sm:$0xff]  ;;  %v251_v22 = vld [vmem:[%s2576_s23 + $0x250] sm:$0xff] }
  0x99   : > { %870 = vmatmul.mubr.f32.gmra.mrb[40].mxu1 %v277_v23  ;;  %1180 = vmatmul.mubr.f32.gmra.mrb[40].mxu0 %v279_v39  ;;  %v378_v23 = vld [vmem:[%s2576_s23 + $0x648] sm:$0xff]  ;;  %v377_v39 = vld [vmem:[%s2576_s23 + $0x640] sm:$0xff] }
  0x9a   : > { %874 = vmatprep.mubr.f32.mxu1 %v283_v24  ;;  %1184 = vmatprep.mubr.f32.mxu0 %v285_v41  ;;  %v256_v24 = vld [vmem:[%s2576_s23 + $0x278] sm:$0xff]  ;;  %v383_v41 = vld [vmem:[%s2576_s23 + $0x670] sm:$0xff] }
  0x9d   : > { %875 = vmatmul.mubr.f32.gmra.mrb[42].mxu1 %v282_v25  ;;  %1185 = vmatmul.mubr.f32.gmra.mrb[42].mxu0 %v284_v26  ;;  %v382_v25 = vld [vmem:[%s2576_s23 + $0x668] sm:$0xff]  ;;  %v261_v26 = vld [vmem:[%s2576_s23 + $0x2a0] sm:$0xff] }
  0x9e   : > { %879 = vmatprep.mubr.f32.mxu1 %v288_v28  ;;  %1189 = vmatprep.mubr.f32.mxu0 %v290_v31  ;;  %v388_v28 = vld [vmem:[%s2576_s23 + $0x698] sm:$0xff]  ;;  %v387_v31 = vld [vmem:[%s2576_s23 + $0x690] sm:$0xff] }
  0xa1   : > { %880 = vmatmul.mubr.f32.gmra.mrb[44].mxu1 %v287_v33  ;;  %1190 = vmatmul.mubr.f32.gmra.mrb[44].mxu0 %v289_v34  ;;  %v266_v33 = vld [vmem:[%s2576_s23 + $0x2c8] sm:$0xff]  ;;  %v393_v34 = vld [vmem:[%s2576_s23 + $0x6c0] sm:$0xff] }
  0xa2   : > { %884 = vmatprep.mubr.f32.mxu1 %v293_v35  ;;  %1194 = vmatprep.mubr.f32.mxu0 %v295_v36  ;;  %v392_v35 = vld [vmem:[%s2576_s23 + $0x6b8] sm:$0xff]  ;;  %v271_v36 = vld [vmem:[%s2576_s23 + $0x2f0] sm:$0xff] }
  0xa5   : > { %885 = vmatmul.mubr.f32.gmra.mrb[46].mxu1 %v292_v53  ;;  %1195 = vmatmul.mubr.f32.gmra.mrb[46].mxu0 %v294_v37  ;;  %v398_v53 = vld [vmem:[%s2576_s23 + $0x6e8] sm:$0xff]  ;;  %v397_v37 = vld [vmem:[%s2576_s23 + $0x6e0] sm:$0xff] }
  0xa6   : > { %889 = vmatprep.mubr.f32.mxu1 %v298_v55  ;;  %1199 = vmatprep.mubr.f32.mxu0 %v300_v42  ;;  %v276_v55 = vld [vmem:[%s2576_s23 + $0x318] sm:$0xff]  ;;  %v403_v42 = vld [vmem:[%s2576_s23 + $0x710] sm:$0xff] }
  0xa9   : > { %890 = vmatmul.mubr.f32.gmra.mrb[48].mxu1 %v297_v43  ;;  %1200 = vmatmul.mubr.f32.gmra.mrb[48].mxu0 %v299_v44  ;;  %v402_v43 = vld [vmem:[%s2576_s23 + $0x708] sm:$0xff]  ;;  %v281_v44 = vld [vmem:[%s2576_s23 + $0x340] sm:$0xff] }
  0xaa   : > { %894 = vmatprep.mubr.f32.mxu1 %v303_v45  ;;  %1961 = vmatprep.mubr.msk.f32.mxu0 %vm2437_vm2, %v2438_v47  ;;  %v408_v45 = vld [vmem:[%s2576_s23 + $0x738] sm:$0xff] }
  0xad   : > { %895 = vmatmul.mubr.f32.gmra.mrb[50].mxu1 %v302_v46  ;;  %1962 = vmatmul.mubr.msk.f32.vlgmr.msra.gmra.mrb[0].mxu0 %vm509_vm0, %v181_v48  ;;  %v407_v46 = vld [vmem:[%s2576_s23 + $0x730] sm:$0xff]  ;;  %v286_v48 = vld [vmem:[%s2576_s23 + $0x368] sm:$0xff] }
  0xae   : > { %899 = vmatprep.mubr.f32.mxu1 %v308_v49  ;;  %1964 = vmatprep.mubr.msk.f32.mxu0 %vm2437_vm2, %v2438_v47  ;;  %v413_v49 = vld [vmem:[%s2576_s23 + $0x760] sm:$0xff] }
  0xb1   : > { %900 = vmatmul.mubr.f32.gmra.mrb[52].mxu1 %v307_v1  ;;  %1965 = vmatmul.mubr.msk.f32.gmra.mrb[2].mxu0 %vm509_vm0, %v186_v50  ;;  %v412_v1 = vld [vmem:[%s2576_s23 + $0x758] sm:$0xff]  ;;  %v291_v50 = vld [vmem:[%s2576_s23 + $0x390] sm:$0xff] }
  0xb2   : > { %904 = vmatprep.mubr.f32.mxu1 %v313_v3  ;;  %1967 = vmatprep.mubr.msk.f32.mxu0 %vm2437_vm2, %v2438_v47  ;;  %v418_v3 = vld [vmem:[%s2576_s23 + $0x788] sm:$0xff] }
  0xb5   : > { %905 = vmatmul.mubr.f32.gmra.mrb[54].mxu1 %v312_v51  ;;  %1968 = vmatmul.mubr.msk.f32.gmra.mrb[4].mxu0 %vm509_vm0, %v191_v52  ;;  %v417_v51 = vld [vmem:[%s2576_s23 + $0x780] sm:$0xff]  ;;  %v296_v52 = vld [vmem:[%s2576_s23 + $0x3b8] sm:$0xff] }
  0xb6   : > { %909 = vmatprep.mubr.f32.mxu1 %v318_v54  ;;  %1970 = vmatprep.mubr.msk.f32.mxu0 %vm2437_vm2, %v2438_v47  ;;  %v305_v54 = vld [vmem:[%s2576_s23 + $0x400] sm:$0xff] }
  0xb9   : > { %910 = vmatmul.mubr.f32.gmra.mrb[56].mxu1 %v317_v56  ;;  %1971 = vmatmul.mubr.msk.f32.gmra.mrb[6].mxu0 %vm509_vm0, %v196_v12  ;;  %v304_v56 = vld [vmem:[%s2576_s23 + $0x3f8] sm:$0xff]  ;;  %v301_v12 = vld [vmem:[%s2576_s23 + $0x3e0] sm:$0xff] }
  0xba   : > { %914 = vmatprep.mubr.f32.mxu1 %v323_v57  ;;  %1973 = vmatprep.mubr.msk.f32.mxu0 %vm2437_vm2, %v2438_v47  ;;  %v310_v57 = vld [vmem:[%s2576_s23 + $0x428] sm:$0xff] }
  0xbd   : > { %915 = vmatmul.mubr.f32.gmra.mrb[58].mxu1 %v322_v58  ;;  %1974 = vmatmul.mubr.msk.f32.gmra.mrb[8].mxu0 %vm509_vm0, %v201_v59  ;;  %v309_v58 = vld [vmem:[%s2576_s23 + $0x420] sm:$0xff]  ;;  %v306_v59 = vld [vmem:[%s2576_s23 + $0x408] sm:$0xff] }
  0xbe   : > { %919 = vmatprep.mubr.f32.mxu1 %v328_v15  ;;  %1976 = vmatprep.mubr.msk.f32.mxu0 %vm2437_vm2, %v2438_v47  ;;  %v315_v15 = vld [vmem:[%s2576_s23 + $0x450] sm:$0xff] }
  0xc1   : > { %920 = vmatmul.mubr.f32.gmra.mrb[60].mxu1 %v327_v60  ;;  %1977 = vmatmul.mubr.msk.f32.gmra.mrb[10].mxu0 %vm509_vm0, %v206_v18  ;;  %v314_v60 = vld [vmem:[%s2576_s23 + $0x448] sm:$0xff]  ;;  %v311_v18 = vld [vmem:[%s2576_s23 + $0x430] sm:$0xff] }
  0xc2   : > { %924 = vmatprep.mubr.f32.mxu1 %v333_v61  ;;  %1979 = vmatprep.mubr.msk.f32.mxu0 %vm2437_vm2, %v2438_v47  ;;  %v320_v61 = vld [vmem:[%s2576_s23 + $0x478] sm:$0xff] }
  0xc5   : > { %925 = vmatmul.mubr.f32.gmra.mrb[62].mxu1 %v332_v62  ;;  %1980 = vmatmul.mubr.msk.f32.gmra.mrb[12].mxu0 %vm509_vm0, %v211_v40  ;;  %v319_v62 = vld [vmem:[%s2576_s23 + $0x470] sm:$0xff]  ;;  %v316_v40 = vld [vmem:[%s2576_s23 + $0x458] sm:$0xff] }
  0xc6   : > { %929 = vmatprep.mubr.f32.mxu1 %v338_v17  ;;  %1982 = vmatprep.mubr.msk.f32.mxu0 %vm2437_vm2, %v2438_v47  ;;  %v325_v17 = vld [vmem:[%s2576_s23 + $0x4a0] sm:$0xff] }
  0xc9   : > { %930 = vmatmul.mubr.f32.gmra.mrb[64].mxu1 %v337_v63  ;;  %1983 = vmatmul.mubr.msk.f32.gmra.mrb[14].mxu0 %vm509_vm0, %v216_v0  ;;  %v324_v63 = vld [vmem:[%s2576_s23 + $0x498] sm:$0xff]  ;;  %v321_v0 = vld [vmem:[%s2576_s23 + $0x480] sm:$0xff] }
  0xca   : > { %934 = vmatprep.mubr.f32.mxu1 %v343_v2  ;;  %1985 = vmatprep.mubr.msk.f32.mxu0 %vm2437_vm2, %v2438_v47  ;;  %v330_v2 = vld [vmem:[%s2576_s23 + $0x4c8] sm:$0xff] }
  0xcd   : > { %935 = vmatmul.mubr.f32.gmra.mrb[66].mxu1 %v342_v30  ;;  %1986 = vmatmul.mubr.msk.f32.gmra.mrb[16].mxu0 %vm509_vm0, %v221_v4 }
  0xce   : > { %939 = vmatprep.mubr.f32.mxu1 %v348_v32  ;;  %1988 = vmatprep.mubr.msk.f32.mxu0 %vm2437_vm2, %v2438_v47  ;;  %v329_v32 = vld [vmem:[%s2576_s23 + $0x4c0] sm:$0xff] }
  0xd1   : > { %940 = vmatmul.mubr.f32.gmra.mrb[68].mxu1 %v347_v5  ;;  %1989 = vmatmul.mubr.msk.f32.gmra.mrb[18].mxu0 %vm509_vm0, %v226_v6  ;;  %v326_v5 = vld [vmem:[%s2576_s23 + $0x4a8] sm:$0xff]  ;;  %v335_v6 = vld [vmem:[%s2576_s23 + $0x4f0] sm:$0xff] }
  0xd2   : > { %944 = vmatprep.mubr.f32.mxu1 %v353_v8  ;;  %1991 = vmatprep.mubr.msk.f32.mxu0 %vm2437_vm2, %v2438_v47 }
  0xd5   : > { %945 = vmatmul.mubr.f32.gmra.mrb[70].mxu1 %v352_v9  ;;  %1992 = vmatmul.mubr.msk.f32.gmra.mrb[20].mxu0 %vm509_vm0, %v231_v10  ;;  %v334_v10 = vld [vmem:[%s2576_s23 + $0x4e8] sm:$0xff] }
  0xd6   : > { %949 = vmatprep.mubr.f32.mxu1 %v358_v7  ;;  %1994 = vmatprep.mubr.msk.f32.mxu0 %vm2437_vm2, %v2438_v47  ;;  %v331_v7 = vld [vmem:[%s2576_s23 + $0x4d0] sm:$0xff] }
  0xd9   : > { %950 = vmatmul.mubr.f32.gmra.mrb[72].mxu1 %v357_v38  ;;  %1995 = vmatmul.mubr.msk.f32.gmra.mrb[22].mxu0 %vm509_vm0, %v236_v27  ;;  %v340_v38 = vld [vmem:[%s2576_s23 + $0x518] sm:$0xff] }
  0xda   : > { %954 = vmatprep.mubr.f32.mxu1 %v363_v11  ;;  %1997 = vmatprep.mubr.msk.f32.mxu0 %vm2437_vm2, %v2438_v47 }
  0xdd   : > { %955 = vmatmul.mubr.f32.gmra.mrb[74].mxu1 %v362_v29  ;;  %1998 = vmatmul.mubr.msk.f32.gmra.mrb[24].mxu0 %vm509_vm0, %v241_v13  ;;  %v339_v29 = vld [vmem:[%s2576_s23 + $0x510] sm:$0xff]  ;;  %v336_v13 = vld [vmem:[%s2576_s23 + $0x4f8] sm:$0xff] }
  0xde   : > { %959 = vmatprep.mubr.f32.mxu1 %v368_v14  ;;  %2000 = vmatprep.mubr.msk.f32.mxu0 %vm2437_vm2, %v2438_v47  ;;  %v345_v14 = vld [vmem:[%s2576_s23 + $0x540] sm:$0xff] }
  0xe1   : > { %960 = vmatmul.mubr.f32.gmra.mrb[76].mxu1 %v367_v16  ;;  %2001 = vmatmul.mubr.msk.f32.gmra.mrb[26].mxu0 %vm509_vm0, %v246_v19 }
  0xe2   : > { %964 = vmatprep.mubr.f32.mxu1 %v373_v20  ;;  %2003 = vmatprep.mubr.msk.f32.mxu0 %vm2437_vm2, %v2438_v47  ;;  %v344_v20 = vld [vmem:[%s2576_s23 + $0x538] sm:$0xff] }
  0xe5   : > { %965 = vmatmul.mubr.f32.gmra.mrb[78].mxu1 %v372_v21  ;;  %2004 = vmatmul.mubr.msk.f32.gmra.mrb[28].mxu0 %vm509_vm0, %v251_v22  ;;  %v341_v21 = vld [vmem:[%s2576_s23 + $0x520] sm:$0xff]  ;;  %v350_v22 = vld [vmem:[%s2576_s23 + $0x568] sm:$0xff] }
  0xe6   : > { %969 = vmatprep.mubr.f32.mxu1 %v378_v23  ;;  %2006 = vmatprep.mubr.msk.f32.mxu0 %vm2437_vm2, %v2438_v47 }
  0xe9   : > { %970 = vmatmul.mubr.f32.gmra.mrb[80].mxu1 %v377_v39  ;;  %2007 = vmatmul.mubr.msk.f32.gmra.mrb[30].mxu0 %vm509_vm0, %v256_v24  ;;  %v349_v24 = vld [vmem:[%s2576_s23 + $0x560] sm:$0xff] }
  0xea   : > { %974 = vmatprep.mubr.f32.mxu1 %v383_v41  ;;  %2009 = vmatprep.mubr.msk.f32.mxu0 %vm2437_vm2, %v2438_v47  ;;  %v346_v41 = vld [vmem:[%s2576_s23 + $0x548] sm:$0xff] }
  0xed   : > { %975 = vmatmul.mubr.f32.gmra.mrb[82].mxu1 %v382_v25  ;;  %2010 = vmatmul.mubr.msk.f32.gmra.mrb[32].mxu0 %vm509_vm0, %v261_v26  ;;  %v355_v25 = vld [vmem:[%s2576_s23 + $0x590] sm:$0xff] }
  0xee   : > { %979 = vmatprep.mubr.f32.mxu1 %v388_v28  ;;  %2012 = vmatprep.mubr.msk.f32.mxu0 %vm2437_vm2, %v2438_v47 }
  0xf1   : > { %980 = vmatmul.mubr.f32.gmra.mrb[84].mxu1 %v387_v31  ;;  %2013 = vmatmul.mubr.msk.f32.gmra.mrb[34].mxu0 %vm509_vm0, %v266_v33  ;;  %v354_v31 = vld [vmem:[%s2576_s23 + $0x588] sm:$0xff]  ;;  %v351_v33 = vld [vmem:[%s2576_s23 + $0x570] sm:$0xff] }
  0xf2   : > { %984 = vmatprep.mubr.f32.mxu1 %v393_v34  ;;  %2015 = vmatprep.mubr.msk.f32.mxu0 %vm2437_vm2, %v2438_v47  ;;  %v360_v34 = vld [vmem:[%s2576_s23 + $0x5b8] sm:$0xff] }
  0xf5   : > { %985 = vmatmul.mubr.f32.gmra.mrb[86].mxu1 %v392_v35  ;;  %2016 = vmatmul.mubr.msk.f32.gmra.mrb[36].mxu0 %vm509_vm0, %v271_v36 }
  0xf6   : > { %989 = vmatprep.mubr.f32.mxu1 %v398_v53  ;;  %2018 = vmatprep.mubr.msk.f32.mxu0 %vm2437_vm2, %v2438_v47  ;;  %v359_v53 = vld [vmem:[%s2576_s23 + $0x5b0] sm:$0xff] }
  0xf9   : > { %990 = vmatmul.mubr.f32.gmra.mrb[88].mxu1 %v397_v37  ;;  %2019 = vmatmul.mubr.msk.f32.gmra.mrb[38].mxu0 %vm509_vm0, %v276_v55  ;;  %v356_v37 = vld [vmem:[%s2576_s23 + $0x598] sm:$0xff]  ;;  %v365_v55 = vld [vmem:[%s2576_s23 + $0x5e0] sm:$0xff] }
  0xfa   : > { %994 = vmatprep.mubr.f32.mxu1 %v403_v42  ;;  %2021 = vmatprep.mubr.msk.f32.mxu0 %vm2437_vm2, %v2438_v47 }
  0xfd   : > { %995 = vmatmul.mubr.f32.gmra.mrb[90].mxu1 %v402_v43  ;;  %2022 = vmatmul.mubr.msk.f32.gmra.mrb[40].mxu0 %vm509_vm0, %v281_v44  ;;  %v364_v44 = vld [vmem:[%s2576_s23 + $0x5d8] sm:$0xff] }
  0xfe   : > { %999 = vmatprep.mubr.f32.mxu1 %v408_v45  ;;  %2024 = vmatprep.mubr.msk.f32.mxu0 %vm2437_vm2, %v2438_v47  ;;  %v361_v45 = vld [vmem:[%s2576_s23 + $0x5c0] sm:$0xff] }
 0x101   : > { %1000 = vmatmul.mubr.f32.gmra.mrb[92].mxu1 %v407_v46  ;;  %2025 = vmatmul.mubr.msk.f32.gmra.mrb[42].mxu0 %vm509_vm0, %v286_v48  ;;  %v370_v46 = vld [vmem:[%s2576_s23 + $0x608] sm:$0xff] }
 0x102   : > { %1004 = vmatprep.mubr.f32.mxu1 %v413_v49  ;;  %2027 = vmatprep.mubr.msk.f32.mxu0 %vm2437_vm2, %v2438_v47 }
 0x105   : > { %1005 = vmatmul.mubr.f32.gmra.mrb[94].mxu1 %v412_v1  ;;  %2028 = vmatmul.mubr.msk.f32.gmra.mrb[44].mxu0 %vm509_vm0, %v291_v50  ;;  %v369_v1 = vld [vmem:[%s2576_s23 + $0x600] sm:$0xff]  ;;  %v366_v50 = vld [vmem:[%s2576_s23 + $0x5e8] sm:$0xff] }
 0x106   : > { %1009 = vmatprep.mubr.f32.mxu1 %v418_v3  ;;  %2030 = vmatprep.mubr.msk.f32.mxu0 %vm2437_vm2, %v2438_v47  ;;  %v375_v3 = vld [vmem:[%s2576_s23 + $0x630] sm:$0xff] }
 0x109   : > { %1010 = vmatmul.mubr.f32.gmra.mrb[96].mxu1 %v417_v51  ;;  %2031 = vmatmul.mubr.msk.f32.gmra.mrb[46].mxu0 %vm509_vm0, %v296_v52 }
 0x10a   : > { %1204 = vmatprep.mubr.f32.mxu1 %v305_v54  ;;  %2033 = vmatprep.mubr.msk.f32.mxu0 %vm2437_vm2, %v2438_v47  ;;  %v374_v54 = vld [vmem:[%s2576_s23 + $0x628] sm:$0xff] }
 0x10d   : > { %1205 = vmatmul.mubr.f32.vlgmr.msra.gmra.mrb[50].mxu1 %v304_v56  ;;  %2034 = vmatmul.mubr.msk.f32.gmra.mrb[48].mxu0 %vm509_vm0, %v301_v12  ;;  %v371_v56 = vld [vmem:[%s2576_s23 + $0x610] sm:$0xff]  ;;  %v380_v12 = vld [vmem:[%s2576_s23 + $0x658] sm:$0xff] }
 0x10e   : > { %1209 = vmatprep.mubr.f32.mxu1 %v310_v57  ;;  %2036 = vmatprep.mubr.msk.f32.mxu0 %vm2437_vm2, %v2438_v47 }
 0x111   : > { %1210 = vmatmul.mubr.f32.gmra.mrb[52].mxu1 %v309_v58  ;;  %2037 = vmatmul.mubr.msk.f32.gmra.mrb[50].mxu0 %vm509_vm0, %v306_v59  ;;  %v379_v59 = vld [vmem:[%s2576_s23 + $0x650] sm:$0xff] }
 0x112   : > { %1214 = vmatprep.mubr.f32.mxu1 %v315_v15  ;;  %2039 = vmatprep.mubr.msk.f32.mxu0 %vm2437_vm2, %v2438_v47  ;;  %v376_v15 = vld [vmem:[%s2576_s23 + $0x638] sm:$0xff] }
 0x115   : > { %1215 = vmatmul.mubr.f32.gmra.mrb[54].mxu1 %v314_v60  ;;  %2040 = vmatmul.mubr.msk.f32.gmra.mrb[52].mxu0 %vm509_vm0, %v311_v18  ;;  %v385_v60 = vld [vmem:[%s2576_s23 + $0x680] sm:$0xff] }
 0x116   : > { %1219 = vmatprep.mubr.f32.mxu1 %v320_v61  ;;  %2042 = vmatprep.mubr.msk.f32.mxu0 %vm2437_vm2, %v2438_v47 }
 0x119   : > { %1220 = vmatmul.mubr.f32.gmra.mrb[56].mxu1 %v319_v62  ;;  %2043 = vmatmul.mubr.msk.f32.gmra.mrb[54].mxu0 %vm509_vm0, %v316_v40  ;;  %v384_v62 = vld [vmem:[%s2576_s23 + $0x678] sm:$0xff]  ;;  %v381_v40 = vld [vmem:[%s2576_s23 + $0x660] sm:$0xff] }
 0x11a   : > { %1224 = vmatprep.mubr.f32.mxu1 %v325_v17  ;;  %2045 = vmatprep.mubr.msk.f32.mxu0 %vm2437_vm2, %v2438_v47  ;;  %v390_v17 = vld [vmem:[%s2576_s23 + $0x6a8] sm:$0xff] }
 0x11c   : > { %v3083_v30 = vpop.f32.mrb[0].mxu1 }
 0x11d   : > { %1225 = vmatmul.mubr.f32.gmra.mrb[58].mxu1 %v324_v63  ;;  %v773_v4 = vpop.f32.mrb[1].mxu1  ;;  %2046 = vmatmul.mubr.msk.f32.gmra.mrb[56].mxu0 %vm509_vm0, %v321_v0 }
 0x11e   : > { %1229 = vmatprep.mubr.f32.mxu1 %v330_v2  ;;  %2048 = vmatprep.mubr.msk.f32.mxu0 %vm2437_vm2, %v2438_v47  ;;  %v389_v2 = vld [vmem:[%s2576_s23 + $0x6a0] sm:$0xff]  ;;  %v386_v4 = vld [vmem:[%s2576_s23 + $0x688] sm:$0xff] }
 0x120   : > { %v3091_v8 = vpop.f32.mrb[2].mxu1 }
 0x121   : > { %1230 = vmatmul.mubr.f32.gmra.mrb[60].mxu1 %v329_v32  ;;  %v778_v9 = vpop.f32.mrb[3].mxu1  ;;  %2049 = vmatmul.mubr.msk.f32.gmra.mrb[58].mxu0 %vm509_vm0, %v326_v5  ;;  %v395_v32 = vld [vmem:[%s2576_s23 + $0x6d0] sm:$0xff] }
 0x122   : > { %1234 = vmatprep.mubr.f32.mxu1 %v335_v6  ;;  %2051 = vmatprep.mubr.msk.f32.mxu0 %vm2437_vm2, %v2438_v47  ;;  %v394_v9 = vld [vmem:[%s2576_s23 + $0x6c8] sm:$0xff] }
 0x124   : > { %v3099_v27 = vpop.f32.mrb[4].mxu1 }
 0x125   : > { %1235 = vmatmul.mubr.f32.gmra.mrb[62].mxu1 %v334_v10  ;;  %v783_v11 = vpop.f32.mrb[5].mxu1  ;;  %2052 = vmatmul.mubr.msk.f32.gmra.mrb[60].mxu0 %vm509_vm0, %v331_v7  ;;  %v391_v10 = vld [vmem:[%s2576_s23 + $0x6b0] sm:$0xff]  ;;  %v400_v7 = vld [vmem:[%s2576_s23 + $0x6f8] sm:$0xff] }
 0x126   : > { %1239 = vmatprep.mubr.f32.mxu1 %v340_v38  ;;  %2054 = vmatprep.mubr.msk.f32.mxu0 %vm2437_vm2, %v2438_v47 }
 0x128   : > { %v3107_v16 = vpop.f32.mrb[6].mxu1 }
 0x129   : > { %1240 = vmatmul.mubr.f32.gmra.mrb[64].mxu1 %v339_v29  ;;  %v788_v19 = vpop.f32.mrb[7].mxu1  ;;  %2055 = vmatmul.mubr.msk.f32.gmra.mrb[62].mxu0 %vm509_vm0, %v336_v13  ;;  %v399_v29 = vld [vmem:[%s2576_s23 + $0x6f0] sm:$0xff]  ;;  %v396_v13 = vld [vmem:[%s2576_s23 + $0x6d8] sm:$0xff] }
 0x12a   : > { %1244 = vmatprep.mubr.f32.mxu1 %v345_v14  ;;  %2057 = vmatprep.mubr.msk.f32.mxu0 %vm2437_vm2, %v2438_v47  ;;  %v405_v14 = vld [vmem:[%s2576_s23 + $0x720] sm:$0xff] }
 0x12c   : > { %v3115_v23 = vpop.f32.mrb[8].mxu1 }
 0x12d   : > { %1245 = vmatmul.mubr.f32.gmra.mrb[66].mxu1 %v344_v20  ;;  %v793_v39 = vpop.f32.mrb[9].mxu1  ;;  %2058 = vmatmul.mubr.msk.f32.gmra.mrb[64].mxu0 %vm509_vm0, %v341_v21  ;;  %v404_v21 = vld [vmem:[%s2576_s23 + $0x718] sm:$0xff] }
 0x12e   : > { %1249 = vmatprep.mubr.f32.mxu1 %v350_v22  ;;  %2060 = vmatprep.mubr.msk.f32.mxu0 %vm2437_vm2, %v2438_v47  ;;  %v401_v22 = vld [vmem:[%s2576_s23 + $0x700] sm:$0xff]  ;;  %v410_v39 = vld [vmem:[%s2576_s23 + $0x748] sm:$0xff] }
 0x130   : > { %v3123_v26 = vpop.f32.mrb[10].mxu1 }
 0x131   : > { %1250 = vmatmul.mubr.f32.gmra.mrb[68].mxu1 %v349_v24  ;;  %v798_v28 = vpop.f32.mrb[11].mxu1  ;;  %2061 = vmatmul.mubr.msk.f32.gmra.mrb[66].mxu0 %vm509_vm0, %v346_v41 }
 0x132   : > { %1254 = vmatprep.mubr.f32.mxu1 %v355_v25  ;;  %2063 = vmatprep.mubr.msk.f32.mxu0 %vm2437_vm2, %v2438_v47  ;;  %v409_v25 = vld [vmem:[%s2576_s23 + $0x740] sm:$0xff]  ;;  %v406_v28 = vld [vmem:[%s2576_s23 + $0x728] sm:$0xff] }
 0x134   : > { %v3131_v35 = vpop.f32.mrb[12].mxu1 }
 0x135   : > { %1255 = vmatmul.mubr.f32.gmra.mrb[70].mxu1 %v354_v31  ;;  %v803_v36 = vpop.f32.mrb[13].mxu1  ;;  %2064 = vmatmul.mubr.msk.f32.gmra.mrb[68].mxu0 %vm509_vm0, %v351_v33  ;;  %v415_v31 = vld [vmem:[%s2576_s23 + $0x770] sm:$0xff] }
 0x136   : > { %1259 = vmatprep.mubr.f32.mxu1 %v360_v34  ;;  %2066 = vmatprep.mubr.msk.f32.mxu0 %vm2437_vm2, %v2438_v47  ;;  %v414_v36 = vld [vmem:[%s2576_s23 + $0x768] sm:$0xff] }
 0x138   : > { %v3139_v42 = vpop.f32.mrb[14].mxu1 }
 0x139   : > { %1260 = vmatmul.mubr.f32.gmra.mrb[72].mxu1 %v359_v53  ;;  %v808_v43 = vpop.f32.mrb[15].mxu1  ;;  %2067 = vmatmul.mubr.msk.f32.gmra.mrb[70].mxu0 %vm509_vm0, %v356_v37  ;;  %v411_v53 = vld [vmem:[%s2576_s23 + $0x750] sm:$0xff]  ;;  %v420_v37 = vld [vmem:[%s2576_s23 + $0x798] sm:$0xff] }
 0x13a   : > { %1264 = vmatprep.mubr.f32.mxu1 %v365_v55  ;;  %2069 = vmatprep.mubr.msk.f32.mxu0 %vm2437_vm2, %v2438_v47 }
 0x13c   : > { %v3147_v48 = vpop.f32.mrb[16].mxu1 }
 0x13d   : > { %1265 = vmatmul.mubr.f32.gmra.mrb[74].mxu1 %v364_v44  ;;  %v813_v49 = vpop.f32.mrb[17].mxu1  ;;  %2070 = vmatmul.mubr.msk.f32.gmra.mrb[72].mxu0 %vm509_vm0, %v361_v45  ;;  %v419_v44 = vld [vmem:[%s2576_s23 + $0x790] sm:$0xff]  ;;  %v416_v45 = vld [vmem:[%s2576_s23 + $0x778] sm:$0xff] }
 0x13e   : > { %1269 = vmatprep.mubr.f32.mxu1 %v370_v46  ;;  %2072 = vmatprep.mubr.msk.f32.mxu0 %vm2437_vm2, %v2438_v47 }
 0x140   : > { %v3155_v51 = vpop.f32.mrb[18].mxu1 }
 0x141   : > { %1270 = vmatmul.mubr.f32.gmra.mrb[76].mxu1 %v369_v1  ;;  %v818_v52 = vpop.f32.mrb[19].mxu1  ;;  %2073 = vmatmul.mubr.msk.f32.gmra.mrb[74].mxu0 %vm509_vm0, %v366_v50  ;;  %v421_v1 = vld [vmem:[%s2576_s23 + $0x7a0] sm:$0xff]  ;;  %s1795_s23 = sshll.u32 %s3395_s5, 3 }
 0x142   : > { %1274 = vmatprep.mubr.f32.mxu1 %v375_v3  ;;  %2075 = vmatprep.mubr.msk.f32.mxu0 %vm2437_vm2, %v2438_v47  ;;  %s3262_s10 = scalar_lea.vmem %s3391_s3, %s1795_s23 }
 0x144   : > { %v3163_v57 = vpop.f32.mrb[20].mxu1 }
 0x145   : > { %1275 = vmatmul.mubr.f32.gmra.mrb[78].mxu1 %v374_v54  ;;  %v823_v58 = vpop.f32.mrb[21].mxu1  ;;  %2076 = vmatmul.mubr.msk.f32.gmra.mrb[76].mxu0 %vm509_vm0, %v371_v56 }
 0x146   : > { %1279 = vmatprep.mubr.f32.mxu1 %v380_v12  ;;  %2078 = vmatprep.mubr.msk.f32.mxu0 %vm2437_vm2, %v2438_v47 }
 0x148   : > { %v3171_v18 = vpop.f32.mrb[22].mxu1 }
 0x149   : > { %1280 = vmatmul.mubr.f32.gmra.mrb[80].mxu1 %v379_v59  ;;  %v828_v61 = vpop.f32.mrb[23].mxu1  ;;  %2079 = vmatmul.mubr.msk.f32.gmra.mrb[78].mxu0 %vm509_vm0, %v376_v15 }
 0x14a   : > { %1284 = vmatprep.mubr.f32.mxu1 %v385_v60  ;;  %2081 = vmatprep.mubr.msk.f32.mxu0 %vm2437_vm2, %v2438_v47 }
 0x14c   : > { %v3179_v63 = vpop.f32.mrb[24].mxu1 }
 0x14d   : > { %1285 = vmatmul.mubr.f32.gmra.mrb[82].mxu1 %v384_v62  ;;  %v833_v0 = vpop.f32.mrb[25].mxu1  ;;  %2082 = vmatmul.mubr.msk.f32.gmra.mrb[80].mxu0 %vm509_vm0, %v381_v40 }
 0x14e   : > { %1289 = vmatprep.mubr.f32.mxu1 %v390_v17  ;;  %2084 = vmatprep.mubr.msk.f32.mxu0 %vm2437_vm2, %v2438_v47 }
 0x150   : > { %v3187_v5 = vpop.f32.mrb[26].mxu1 }
 0x151   : > { %1290 = vmatmul.mubr.f32.gmra.mrb[84].mxu1 %v389_v2  ;;  %v838_v6 = vpop.f32.mrb[27].mxu1  ;;  %2085 = vmatmul.mubr.msk.f32.gmra.mrb[82].mxu0 %vm509_vm0, %v386_v4 }
 0x152   : > { %1294 = vmatprep.mubr.f32.mxu1 %v395_v32  ;;  %2087 = vmatprep.mubr.msk.f32.mxu0 %vm2437_vm2, %v2438_v47 }
 0x154   : > { %v3195_v38 = vpop.f32.mrb[28].mxu1 }
 0x155   : > { %1295 = vmatmul.mubr.f32.gmra.mrb[86].mxu1 %v394_v9  ;;  %v843_v11 = vpop.f32.mrb[29].mxu1  ;;  %2088 = vmatmul.mubr.msk.f32.gmra.mrb[84].mxu0 %vm509_vm0, %v391_v10 }
 0x156   : > { %1299 = vmatprep.mubr.f32.mxu1 %v400_v7  ;;  %2090 = vmatprep.mubr.msk.f32.mxu0 %vm2437_vm2, %v2438_v47 }
 0x158   : > { %v3203_v19 = vpop.f32.mrb[30].mxu1 }
 0x159   : > { %1300 = vmatmul.mubr.f32.gmra.mrb[88].mxu1 %v399_v29  ;;  %v848_v20 = vpop.f32.mrb[31].mxu1  ;;  %2091 = vmatmul.mubr.msk.f32.gmra.mrb[86].mxu0 %vm509_vm0, %v396_v13 }
 0x15a   : > { %1304 = vmatprep.mubr.f32.mxu1 %v405_v14  ;;  %2093 = vmatprep.mubr.msk.f32.mxu0 %vm2437_vm2, %v2438_v47 }
 0x15c   : > { %v3211_v24 = vpop.f32.mrb[32].mxu1 }
 0x15d   : > { %1305 = vmatmul.mubr.f32.gmra.mrb[90].mxu1 %v404_v21  ;;  %v853_v41 = vpop.f32.mrb[33].mxu1  ;;  %2094 = vmatmul.mubr.msk.f32.gmra.mrb[88].mxu0 %vm509_vm0, %v401_v22 }
 0x15e   : > { %1309 = vmatprep.mubr.f32.mxu1 %v410_v39  ;;  %2096 = vmatprep.mubr.msk.f32.mxu0 %vm2437_vm2, %v2438_v47 }
 0x160   : > { %v3219_v33 = vpop.f32.mrb[34].mxu1 }
 0x161   : > { %1310 = vmatmul.mubr.f32.gmra.mrb[92].mxu1 %v409_v25  ;;  %v858_v34 = vpop.f32.mrb[35].mxu1  ;;  %2097 = vmatmul.mubr.msk.f32.gmra.mrb[90].mxu0 %vm509_vm0, %v406_v28 }
 0x162   : > { %1314 = vmatprep.mubr.f32.mxu1 %v415_v31  ;;  %2099 = vmatprep.mubr.msk.f32.mxu0 %vm2437_vm2, %v2438_v47 }
 0x164   : > { %v3227_v55 = vpop.f32.mrb[36].mxu1 }
 0x165   : > { %1315 = vmatmul.mubr.f32.gmra.mrb[94].mxu1 %v414_v36  ;;  %v863_v43 = vpop.f32.mrb[37].mxu1  ;;  %2100 = vmatmul.mubr.msk.f32.gmra.mrb[92].mxu0 %vm509_vm0, %v411_v53 }
 0x166   : > { %1319 = vmatprep.mubr.f32.mxu1 %v420_v37  ;;  %2102 = vmatprep.mubr.msk.f32.mxu0 %vm2437_vm2, %v2438_v47 }
 0x168   : > { %v3234_v46 = vpop.f32.mrb[38].mxu1 }
 0x169   : > { %1320 = vmatmul.mubr.f32.gmra.mrb[96].mxu1 %v419_v44  ;;  %v868_v49 = vpop.f32.mrb[39].mxu1  ;;  %2103 = vmatmul.mubr.msk.f32.gmra.mrb[94].mxu0 %vm509_vm0, %v416_v45 }
 0x16a   : > { %2105 = vmatprep.mubr.msk.f32.mxu0 %vm2437_vm2, %v2438_v47  ;;  %v3254_v47 = vld [vmem:[%s3390_s2] ss:$0 sm:$0xff] }
 0x16b   : > { %v772_v61 = vadd.f32 %v3254_v47, %v3083_v30  ;;  %v777_v0 = vadd.f32 %v3254_v47, %v3091_v8  ;;  %v782_v6 = vadd.f32 %v3254_v47, %v3099_v27  ;;  %v787_v29 = vadd.f32 %v3254_v47, %v3107_v16 }
 0x16c   : > { %v3240_v50 = vpop.f32.mrb[40].mxu1  ;;  %v792_v21 = vadd.f32 %v3254_v47, %v3115_v23  ;;  %v797_v25 = vadd.f32 %v3254_v47, %v3123_v26  ;;  %v802_v36 = vadd.f32 %v3254_v47, %v3131_v35  ;;  %v807_v44 = vadd.f32 %v3254_v47, %v3139_v42 }
 0x16d   : > { %v873_v3 = vpop.f32.mrb[41].mxu1  ;;  %2106 = vmatmul.mubr.msk.f32.gmra.mrb[96].mxu0 %vm509_vm0, %v421_v1 }
 0x16e   : > { %v812_v3 = vadd.f32 %v3254_v47, %v3147_v48 }
 0x170   : > { %v3243_v52 = vpop.f32.mrb[42].mxu1 }
 0x171   : > { %v878_v54 = vpop.f32.mrb[43].mxu1 }
 0x174   : > { %v3245_v56 = vpop.f32.mrb[44].mxu1 }
 0x175   : > { %v883_v12 = vpop.f32.mrb[45].mxu1 }
 0x178   : > { %v3247_v58 = vpop.f32.mrb[46].mxu1 }
 0x179   : > { %v888_v59 = vpop.f32.mrb[47].mxu1 }
 0x17c   : > { %v3249_v15 = vpop.f32.mrb[48].mxu1 }
 0x17d   : > { %v893_v60 = vpop.f32.mrb[49].mxu1 }
 0x17e   : > { %v817_v60 = vadd.f32 %v3254_v47, %v3155_v51 }
 0x180   : > { %v1391_v62 = vpop.f32.mrb[0].mxu0 }
 0x181   : > { %v2221_v40 = vadd.f32 %v1391_v62, %v772_v61  ;;  %v1963_v17 = vpop.f32.mrb[1].mxu0 }
 0x182   : > { %v822_v17 = vadd.f32 %v3254_v47, %v3163_v57 }
 0x183   : > { %v1635_v2 = vmax.f32 %v2221_v40, 0.0 }
 0x184   : > { %v1396_v4 = vpop.f32.mrb[2].mxu0 }
 0x185   : > { %1684 = vst [vmem:[%s3262_s10] sm:$0xff] %v1635_v2  ;;  %v2223_v32 = vadd.f32 %v1396_v4, %v777_v0  ;;  %v1966_v30 = vpop.f32.mrb[3].mxu0 }
 0x187   : > { %v1636_v9 = vmax.f32 %v2223_v32, 0.0  ;;  %v827_v32 = vadd.f32 %v3254_v47, %v3171_v18 }
 0x188   : > { %v1401_v10 = vpop.f32.mrb[4].mxu0 }
 0x189   : > { %1685 = vst [vmem:[%s3262_s10 + $0x8] sm:$0xff] %v1636_v9  ;;  %v2225_v7 = vadd.f32 %v1401_v10, %v782_v6  ;;  %v1969_v11 = vpop.f32.mrb[5].mxu0  ;;  %v832_v10 = vadd.f32 %v3254_v47, %v3179_v63 }
 0x18b   : > { %v1637_v13 = vmax.f32 %v2225_v7, 0.0 }
 0x18c   : > { %v1406_v8 = vpop.f32.mrb[6].mxu0 }
 0x18d   : > { %1686 = vst [vmem:[%s3262_s10 + $0x10] sm:$0xff] %v1637_v13  ;;  %v2227_v14 = vadd.f32 %v1406_v8, %v787_v29  ;;  %v1972_v20 = vpop.f32.mrb[7].mxu0  ;;  %v837_v13 = vadd.f32 %v3254_v47, %v3187_v5 }
 0x18f   : > { %v1638_v22 = vmax.f32 %v2227_v14, 0.0 }
 0x190   : > { %v1411_v27 = vpop.f32.mrb[8].mxu0 }
 0x191   : > { %1687 = vst [vmem:[%s3262_s10 + $0x18] sm:$0xff] %v1638_v22  ;;  %v2229_v39 = vadd.f32 %v1411_v27, %v792_v21  ;;  %v1975_v41 = vpop.f32.mrb[9].mxu0  ;;  %v842_v21 = vadd.f32 %v3254_v47, %v3195_v38 }
 0x192   : > { %v847_v41 = vadd.f32 %v3254_v47, %v3203_v19 }
 0x193   : > { %v1639_v28 = vmax.f32 %v2229_v39, 0.0 }
 0x194   : > { %v1416_v16 = vpop.f32.mrb[10].mxu0 }
 0x195   : > { %1688 = vst [vmem:[%s3262_s10 + $0x20] sm:$0xff] %v1639_v28  ;;  %v2231_v31 = vadd.f32 %v1416_v16, %v797_v25  ;;  %v1978_v34 = vpop.f32.mrb[11].mxu0 }
 0x197   : > { %v1640_v53 = vmax.f32 %v2231_v31, 0.0  ;;  %v852_v31 = vadd.f32 %v3254_v47, %v3211_v24 }
 0x198   : > { %v1421_v23 = vpop.f32.mrb[12].mxu0 }
 0x199   : > { %1689 = vst [vmem:[%s3262_s10 + $0x28] sm:$0xff] %v1640_v53  ;;  %v2233_v37 = vadd.f32 %v1421_v23, %v802_v36  ;;  %v1981_v43 = vpop.f32.mrb[13].mxu0  ;;  %v857_v23 = vadd.f32 %v3254_v47, %v3219_v33 }
 0x19b   : > { %v1641_v45 = vmax.f32 %v2233_v37, 0.0 }
 0x19c   : > { %v1426_v26 = vpop.f32.mrb[14].mxu0 }
 0x19d   : > { %1690 = vst [vmem:[%s3262_s10 + $0x30] sm:$0xff] %v1641_v45  ;;  %v2235_v49 = vadd.f32 %v1426_v26, %v807_v44  ;;  %v1984_v1 = vpop.f32.mrb[15].mxu0  ;;  %v862_v45 = vadd.f32 %v3254_v47, %v3227_v55 }
 0x19f   : > { %v1642_v54 = vmax.f32 %v2235_v49, 0.0 }
 0x1a0   : > { %v1431_v35 = vpop.f32.mrb[16].mxu0 }
 0x1a1   : > { %1691 = vst [vmem:[%s3262_s10 + $0x38] sm:$0xff] %v1642_v54  ;;  %v2237_v12 = vadd.f32 %v1431_v35, %v812_v3  ;;  %v1987_v59 = vpop.f32.mrb[17].mxu0  ;;  %v867_v3 = vadd.f32 %v3254_v47, %v3234_v46 }
 0x1a2   : > { %v872_v59 = vadd.f32 %v3254_v47, %v3240_v50 }
 0x1a3   : > { %v1643_v61 = vmax.f32 %v2237_v12, 0.0 }
 0x1a4   : > { %v1436_v42 = vpop.f32.mrb[18].mxu0 }
 0x1a5   : > { %1692 = vst [vmem:[%s3262_s10 + $0x40] sm:$0xff] %v1643_v61  ;;  %v2239_v62 = vadd.f32 %v1436_v42, %v817_v60  ;;  %v1990_v40 = vpop.f32.mrb[19].mxu0 }
 0x1a7   : > { %v1644_v0 = vmax.f32 %v2239_v62, 0.0  ;;  %v877_v62 = vadd.f32 %v3254_v47, %v3243_v52 }
 0x1a8   : > { %v1441_v48 = vpop.f32.mrb[20].mxu0 }
 0x1a9   : > { %1693 = vst [vmem:[%s3262_s10 + $0x48] sm:$0xff] %v1644_v0  ;;  %v2241_v2 = vadd.f32 %v1441_v48, %v822_v17  ;;  %v1993_v4 = vpop.f32.mrb[21].mxu0  ;;  %v882_v48 = vadd.f32 %v3254_v47, %v3245_v56 }
 0x1ab   : > { %v1645_v30 = vmax.f32 %v2241_v2, 0.0 }
 0x1ac   : > { %v1446_v51 = vpop.f32.mrb[22].mxu0 }
 0x1ad   : > { %1694 = vst [vmem:[%s3262_s10 + $0x50] sm:$0xff] %v1645_v30  ;;  %v2243_v6 = vadd.f32 %v1446_v51, %v827_v32  ;;  %v1996_v9 = vpop.f32.mrb[23].mxu0  ;;  %v887_v30 = vadd.f32 %v3254_v47, %v3247_v58 }
 0x1af   : > { %v1646_v7 = vmax.f32 %v2243_v6, 0.0 }
 0x1b0   : > { %v1451_v57 = vpop.f32.mrb[24].mxu0 }
 0x1b1   : > { %1695 = vst [vmem:[%s3262_s10 + $0x58] sm:$0xff] %v1646_v7  ;;  %v2245_v11 = vadd.f32 %v1451_v57, %v832_v10  ;;  %v1999_v29 = vpop.f32.mrb[25].mxu0  ;;  %v892_v10 = vadd.f32 %v3254_v47, %v3249_v15 }
 0x1b3   : > { %v1647_v8 = vmax.f32 %v2245_v11, 0.0 }
 0x1b4   : > { %v1456_v18 = vpop.f32.mrb[26].mxu0 }
 0x1b5   : > { %1696 = vst [vmem:[%s3262_s10 + $0x60] sm:$0xff] %v1647_v8  ;;  %v2247_v14 = vadd.f32 %v1456_v18, %v837_v13  ;;  %v2002_v20 = vpop.f32.mrb[27].mxu0 }
 0x1b7   : > { %v1648_v22 = vmax.f32 %v2247_v14, 0.0 }
 0x1b8   : > { %v1461_v63 = vpop.f32.mrb[28].mxu0 }
 0x1b9   : > { %1697 = vst [vmem:[%s3262_s10 + $0x68] sm:$0xff] %v1648_v22  ;;  %v2249_v27 = vadd.f32 %v1461_v63, %v842_v21  ;;  %v2005_v39 = vpop.f32.mrb[29].mxu0 }
 0x1bb   : > { %v1649_v25 = vmax.f32 %v2249_v27, 0.0 }
 0x1bc   : > { %v1466_v5 = vpop.f32.mrb[30].mxu0 }
 0x1bd   : > { %1698 = vst [vmem:[%s3262_s10 + $0x70] sm:$0xff] %v1649_v25  ;;  %v2251_v28 = vadd.f32 %v1466_v5, %v847_v41  ;;  %v2008_v16 = vpop.f32.mrb[31].mxu0 }
 0x1bf   : > { %v1650_v34 = vmax.f32 %v2251_v28, 0.0 }
 0x1c0   : > { %v1471_v38 = vpop.f32.mrb[32].mxu0 }
 0x1c1   : > { %1699 = vst [vmem:[%s3262_s10 + $0x78] sm:$0xff] %v1650_v34  ;;  %v2253_v36 = vadd.f32 %v1471_v38, %v852_v31  ;;  %v2011_v53 = vpop.f32.mrb[33].mxu0 }
 0x1c3   : > { %v1651_v37 = vmax.f32 %v2253_v36, 0.0 }
 0x1c4   : > { %v1476_v19 = vpop.f32.mrb[34].mxu0 }
 0x1c5   : > { %1700 = vst [vmem:[%s3262_s10 + $0x80] sm:$0xff] %v1651_v37  ;;  %v2255_v43 = vadd.f32 %v1476_v19, %v857_v23  ;;  %v2014_v44 = vpop.f32.mrb[35].mxu0 }
 0x1c7   : > { %v1652_v26 = vmax.f32 %v2255_v43, 0.0 }
 0x1c8   : > { %v1481_v24 = vpop.f32.mrb[36].mxu0 }
 0x1c9   : > { %1701 = vst [vmem:[%s3262_s10 + $0x88] sm:$0xff] %v1652_v26  ;;  %v2257_v49 = vadd.f32 %v1481_v24, %v862_v45  ;;  %v2017_v1 = vpop.f32.mrb[37].mxu0 }
 0x1cb   : > { %v1653_v54 = vmax.f32 %v2257_v49, 0.0 }
 0x1cc   : > { %v1486_v33 = vpop.f32.mrb[38].mxu0 }
 0x1cd   : > { %1702 = vst [vmem:[%s3262_s10 + $0x90] sm:$0xff] %v1653_v54  ;;  %v2259_v35 = vadd.f32 %v1486_v33, %v867_v3  ;;  %v2020_v12 = vpop.f32.mrb[39].mxu0 }
 0x1cf   : > { %v1654_v60 = vmax.f32 %v2259_v35, 0.0 }
 0x1d0   : > { %v1491_v55 = vpop.f32.mrb[40].mxu0 }
 0x1d1   : > { %1703 = vst [vmem:[%s3262_s10 + $0x98] sm:$0xff] %v1654_v60  ;;  %v2261_v61 = vadd.f32 %v1491_v55, %v872_v59  ;;  %v2023_v42 = vpop.f32.mrb[41].mxu0 }
 0x1d3   : > { %v1655_v40 = vmax.f32 %v2261_v61, 0.0 }
 0x1d4   : > { %v1496_v46 = vpop.f32.mrb[42].mxu0 }
 0x1d5   : > { %1704 = vst [vmem:[%s3262_s10 + $0xa0] sm:$0xff] %v1655_v40  ;;  %v2263_v17 = vadd.f32 %v1496_v46, %v877_v62  ;;  %v2026_v0 = vpop.f32.mrb[43].mxu0 }
 0x1d7   : > { %v1656_v2 = vmax.f32 %v2263_v17, 0.0 }
 0x1d8   : > { %v1501_v50 = vpop.f32.mrb[44].mxu0 }
 0x1d9   : > { %1705 = vst [vmem:[%s3262_s10 + $0xa8] sm:$0xff] %v1656_v2  ;;  %v2265_v4 = vadd.f32 %v1501_v50, %v882_v48  ;;  %v2029_v32 = vpop.f32.mrb[45].mxu0 }
 0x1db   : > { %v1657_v51 = vmax.f32 %v2265_v4, 0.0 }
 0x1dc   : > { %v1506_v6 = vpop.f32.mrb[46].mxu0 }
 0x1dd   : > { %1706 = vst [vmem:[%s3262_s10 + $0xb0] sm:$0xff] %v1657_v51  ;;  %v2267_v52 = vadd.f32 %v1506_v6, %v887_v30  ;;  %v2032_v9 = vpop.f32.mrb[47].mxu0 }
 0x1df   : > { %v1658_v7 = vmax.f32 %v2267_v52, 0.0 }
 0x1e0   : > { %v1206_v56 = vpop.f32.mrb[50].mxu1  ;;  %v1511_v57 = vpop.f32.mrb[48].mxu0 }
 0x1e1   : > { %v1208_v11 = vpop.f32.mrb[51].mxu1  ;;  %1707 = vst [vmem:[%s3262_s10 + $0xb8] sm:$0xff] %v1658_v7  ;;  %v2269_v29 = vadd.f32 %v1511_v57, %v892_v10  ;;  %v2035_v13 = vpop.f32.mrb[49].mxu0  ;;  %v2270_v8 = vadd.f32 %v3254_v47, %v1206_v56 }
 0x1e3   : > { %v1659_v58 = vmax.f32 %v2269_v29, 0.0 }
 0x1e4   : > { %v1211_v18 = vpop.f32.mrb[52].mxu1  ;;  %v1516_v14 = vpop.f32.mrb[50].mxu0 }
 0x1e5   : > { %v1213_v20 = vpop.f32.mrb[53].mxu1  ;;  %1708 = vst [vmem:[%s3262_s10 + $0xc0] sm:$0xff] %v1659_v58  ;;  %v2271_v21 = vadd.f32 %v2270_v8, %v1516_v14  ;;  %v2038_v22 = vpop.f32.mrb[51].mxu0  ;;  %v2272_v15 = vadd.f32 %v3254_v47, %v1211_v18 }
 0x1e7   : > { %v1660_v63 = vmax.f32 %v2271_v21, 0.0 }
 0x1e8   : > { %v1216_v27 = vpop.f32.mrb[54].mxu1  ;;  %v1521_v39 = vpop.f32.mrb[52].mxu0 }
 0x1e9   : > { %v1218_v41 = vpop.f32.mrb[55].mxu1  ;;  %1709 = vst [vmem:[%s3262_s10 + $0xc8] sm:$0xff] %v1660_v63  ;;  %v2273_v25 = vadd.f32 %v2272_v15, %v1521_v39  ;;  %v2041_v5 = vpop.f32.mrb[53].mxu0  ;;  %v2274_v28 = vadd.f32 %v3254_v47, %v1216_v27 }
 0x1eb   : > { %v1661_v16 = vmax.f32 %v2273_v25, 0.0 }
 0x1ec   : > { %v1221_v31 = vpop.f32.mrb[56].mxu1  ;;  %v1526_v34 = vpop.f32.mrb[54].mxu0 }
 0x1ed   : > { %v1223_v38 = vpop.f32.mrb[57].mxu1  ;;  %1710 = vst [vmem:[%s3262_s10 + $0xd0] sm:$0xff] %v1661_v16  ;;  %v2275_v36 = vadd.f32 %v2274_v28, %v1526_v34  ;;  %v2044_v53 = vpop.f32.mrb[55].mxu0  ;;  %v2276_v23 = vadd.f32 %v3254_v47, %v1221_v31 }
 0x1ef   : > { %v1662_v37 = vmax.f32 %v2275_v36, 0.0 }
 0x1f0   : > { %v1226_v19 = vpop.f32.mrb[58].mxu1  ;;  %v1531_v43 = vpop.f32.mrb[56].mxu0 }
 0x1f1   : > { %v1228_v44 = vpop.f32.mrb[59].mxu1  ;;  %1711 = vst [vmem:[%s3262_s10 + $0xd8] sm:$0xff] %v1662_v37  ;;  %v2277_v45 = vadd.f32 %v2276_v23, %v1531_v43  ;;  %v2047_v26 = vpop.f32.mrb[57].mxu0  ;;  %v2278_v24 = vadd.f32 %v3254_v47, %v1226_v19 }
 0x1f3   : > { %v1663_v49 = vmax.f32 %v2277_v45, 0.0 }
 0x1f4   : > { %v1231_v1 = vpop.f32.mrb[60].mxu1  ;;  %v1536_v3 = vpop.f32.mrb[58].mxu0 }
 0x1f5   : > { %v1233_v54 = vpop.f32.mrb[61].mxu1  ;;  %1712 = vst [vmem:[%s3262_s10 + $0xe0] sm:$0xff] %v1663_v49  ;;  %v2279_v33 = vadd.f32 %v2278_v24, %v1536_v3  ;;  %v2050_v35 = vpop.f32.mrb[59].mxu0  ;;  %v2280_v12 = vadd.f32 %v3254_v47, %v1231_v1 }
 0x1f7   : > { %v1664_v59 = vmax.f32 %v2279_v33, 0.0 }
 0x1f8   : > { %v1236_v60 = vpop.f32.mrb[62].mxu1  ;;  %v1541_v55 = vpop.f32.mrb[60].mxu0 }
 0x1f9   : > { %v1238_v61 = vpop.f32.mrb[63].mxu1  ;;  %1713 = vst [vmem:[%s3262_s10 + $0xe8] sm:$0xff] %v1664_v59  ;;  %v2281_v42 = vadd.f32 %v2280_v12, %v1541_v55  ;;  %v2053_v62 = vpop.f32.mrb[61].mxu0  ;;  %v2282_v40 = vadd.f32 %v3254_v47, %v1236_v60 }
 0x1fb   : > { %v1665_v46 = vmax.f32 %v2281_v42, 0.0 }
 0x1fc   : > { %v1241_v17 = vpop.f32.mrb[64].mxu1  ;;  %v1546_v0 = vpop.f32.mrb[62].mxu0 }
 0x1fd   : > { %v1243_v48 = vpop.f32.mrb[65].mxu1  ;;  %1714 = vst [vmem:[%s3262_s10 + $0xf0] sm:$0xff] %v1665_v46  ;;  %v2283_v2 = vadd.f32 %v2282_v40, %v1546_v0  ;;  %v2056_v50 = vpop.f32.mrb[63].mxu0  ;;  %v2284_v4 = vadd.f32 %v3254_v47, %v1241_v17 }
 0x1ff   : > { %v1666_v32 = vmax.f32 %v2283_v2, 0.0 }
 0x200   : > { %v1246_v30 = vpop.f32.mrb[66].mxu1  ;;  %v1551_v51 = vpop.f32.mrb[64].mxu0 }
 0x201   : > { %v1248_v6 = vpop.f32.mrb[67].mxu1  ;;  %1715 = vst [vmem:[%s3262_s10 + $0xf8] sm:$0xff] %v1666_v32  ;;  %v2285_v52 = vadd.f32 %v2284_v4, %v1551_v51  ;;  %v2059_v9 = vpop.f32.mrb[65].mxu0  ;;  %v2286_v10 = vadd.f32 %v3254_v47, %v1246_v30 }
 0x203   : > { %v1667_v7 = vmax.f32 %v2285_v52, 0.0 }
 0x204   : > { %v1251_v56 = vpop.f32.mrb[68].mxu1  ;;  %v1556_v57 = vpop.f32.mrb[66].mxu0 }
 0x205   : > { %v1253_v11 = vpop.f32.mrb[69].mxu1  ;;  %1716 = vst [vmem:[%s3262_s10 + $0x100] sm:$0xff] %v1667_v7  ;;  %v2287_v29 = vadd.f32 %v2286_v10, %v1556_v57  ;;  %v2062_v13 = vpop.f32.mrb[67].mxu0  ;;  %v2288_v8 = vadd.f32 %v3254_v47, %v1251_v56 }
 0x207   : > { %v1668_v58 = vmax.f32 %v2287_v29, 0.0 }
 0x208   : > { %v1256_v18 = vpop.f32.mrb[70].mxu1  ;;  %v1561_v14 = vpop.f32.mrb[68].mxu0 }
 0x209   : > { %v1258_v20 = vpop.f32.mrb[71].mxu1  ;;  %1717 = vst [vmem:[%s3262_s10 + $0x108] sm:$0xff] %v1668_v58  ;;  %v2289_v21 = vadd.f32 %v2288_v8, %v1561_v14  ;;  %v2065_v22 = vpop.f32.mrb[69].mxu0  ;;  %v2290_v15 = vadd.f32 %v3254_v47, %v1256_v18 }
 0x20b   : > { %v1669_v63 = vmax.f32 %v2289_v21, 0.0 }
 0x20c   : > { %v1261_v27 = vpop.f32.mrb[72].mxu1  ;;  %v1566_v39 = vpop.f32.mrb[70].mxu0 }
 0x20d   : > { %v1263_v41 = vpop.f32.mrb[73].mxu1  ;;  %1718 = vst [vmem:[%s3262_s10 + $0x110] sm:$0xff] %v1669_v63  ;;  %v2291_v25 = vadd.f32 %v2290_v15, %v1566_v39  ;;  %v2068_v5 = vpop.f32.mrb[71].mxu0  ;;  %v2292_v28 = vadd.f32 %v3254_v47, %v1261_v27 }
 0x20f   : > { %v1670_v16 = vmax.f32 %v2291_v25, 0.0 }
 0x210   : > { %v1266_v31 = vpop.f32.mrb[74].mxu1  ;;  %v1571_v34 = vpop.f32.mrb[72].mxu0 }
 0x211   : > { %v1268_v38 = vpop.f32.mrb[75].mxu1  ;;  %1719 = vst [vmem:[%s3262_s10 + $0x118] sm:$0xff] %v1670_v16  ;;  %v2293_v36 = vadd.f32 %v2292_v28, %v1571_v34  ;;  %v2071_v53 = vpop.f32.mrb[73].mxu0  ;;  %v2294_v23 = vadd.f32 %v3254_v47, %v1266_v31 }
 0x213   : > { %v1671_v37 = vmax.f32 %v2293_v36, 0.0 }
 0x214   : > { %v1271_v19 = vpop.f32.mrb[76].mxu1  ;;  %v1576_v43 = vpop.f32.mrb[74].mxu0 }
 0x215   : > { %v1273_v44 = vpop.f32.mrb[77].mxu1  ;;  %1720 = vst [vmem:[%s3262_s10 + $0x120] sm:$0xff] %v1671_v37  ;;  %v2295_v45 = vadd.f32 %v2294_v23, %v1576_v43  ;;  %v2074_v26 = vpop.f32.mrb[75].mxu0  ;;  %v2296_v24 = vadd.f32 %v3254_v47, %v1271_v19 }
 0x217   : > { %v1672_v49 = vmax.f32 %v2295_v45, 0.0 }
 0x218   : > { %v1276_v1 = vpop.f32.mrb[78].mxu1  ;;  %v1581_v3 = vpop.f32.mrb[76].mxu0 }
 0x219   : > { %v1278_v54 = vpop.f32.mrb[79].mxu1  ;;  %1721 = vst [vmem:[%s3262_s10 + $0x128] sm:$0xff] %v1672_v49  ;;  %v2297_v33 = vadd.f32 %v2296_v24, %v1581_v3  ;;  %v2077_v35 = vpop.f32.mrb[77].mxu0  ;;  %v2298_v12 = vadd.f32 %v3254_v47, %v1276_v1 }
 0x21b   : > { %v1673_v59 = vmax.f32 %v2297_v33, 0.0 }
 0x21c   : > { %v1281_v60 = vpop.f32.mrb[80].mxu1  ;;  %v1586_v55 = vpop.f32.mrb[78].mxu0 }
 0x21d   : > { %v1283_v61 = vpop.f32.mrb[81].mxu1  ;;  %1722 = vst [vmem:[%s3262_s10 + $0x130] sm:$0xff] %v1673_v59  ;;  %v2299_v42 = vadd.f32 %v2298_v12, %v1586_v55  ;;  %v2080_v62 = vpop.f32.mrb[79].mxu0  ;;  %v2300_v40 = vadd.f32 %v3254_v47, %v1281_v60 }
 0x21f   : > { %v1674_v46 = vmax.f32 %v2299_v42, 0.0 }
 0x220   : > { %v1286_v17 = vpop.f32.mrb[82].mxu1  ;;  %v1591_v0 = vpop.f32.mrb[80].mxu0 }
 0x221   : > { %v1288_v48 = vpop.f32.mrb[83].mxu1  ;;  %1723 = vst [vmem:[%s3262_s10 + $0x138] sm:$0xff] %v1674_v46  ;;  %v2301_v2 = vadd.f32 %v2300_v40, %v1591_v0  ;;  %v2083_v50 = vpop.f32.mrb[81].mxu0  ;;  %v2302_v4 = vadd.f32 %v3254_v47, %v1286_v17 }
 0x223   : > { %v1675_v32 = vmax.f32 %v2301_v2, 0.0 }
 0x224   : > { %v1291_v30 = vpop.f32.mrb[84].mxu1  ;;  %v1596_v51 = vpop.f32.mrb[82].mxu0 }
 0x225   : > { %v1293_v6 = vpop.f32.mrb[85].mxu1  ;;  %1724 = vst [vmem:[%s3262_s10 + $0x140] sm:$0xff] %v1675_v32  ;;  %v2303_v52 = vadd.f32 %v2302_v4, %v1596_v51  ;;  %v2086_v9 = vpop.f32.mrb[83].mxu0  ;;  %v2304_v10 = vadd.f32 %v3254_v47, %v1291_v30 }
 0x227   : > { %v1676_v7 = vmax.f32 %v2303_v52, 0.0 }
 0x228   : > { %v1296_v56 = vpop.f32.mrb[86].mxu1  ;;  %v1601_v57 = vpop.f32.mrb[84].mxu0 }
 0x229   : > { %v1298_v11 = vpop.f32.mrb[87].mxu1  ;;  %1725 = vst [vmem:[%s3262_s10 + $0x148] sm:$0xff] %v1676_v7  ;;  %v2305_v29 = vadd.f32 %v2304_v10, %v1601_v57  ;;  %v2089_v13 = vpop.f32.mrb[85].mxu0  ;;  %v2306_v8 = vadd.f32 %v3254_v47, %v1296_v56 }
 0x22b   : > { %v1677_v58 = vmax.f32 %v2305_v29, 0.0 }
 0x22c   : > { %v1301_v18 = vpop.f32.mrb[88].mxu1  ;;  %v1606_v14 = vpop.f32.mrb[86].mxu0 }
 0x22d   : > { %v1303_v20 = vpop.f32.mrb[89].mxu1  ;;  %1726 = vst [vmem:[%s3262_s10 + $0x150] sm:$0xff] %v1677_v58  ;;  %v2307_v21 = vadd.f32 %v2306_v8, %v1606_v14  ;;  %v2092_v22 = vpop.f32.mrb[87].mxu0  ;;  %v2308_v15 = vadd.f32 %v3254_v47, %v1301_v18 }
 0x22f   : > { %v1678_v63 = vmax.f32 %v2307_v21, 0.0 }
 0x230   : > { %v1306_v27 = vpop.f32.mrb[90].mxu1  ;;  %v1611_v39 = vpop.f32.mrb[88].mxu0 }
 0x231   : > { %v1308_v41 = vpop.f32.mrb[91].mxu1  ;;  %1727 = vst [vmem:[%s3262_s10 + $0x158] sm:$0xff] %v1678_v63  ;;  %v2309_v25 = vadd.f32 %v2308_v15, %v1611_v39  ;;  %v2095_v5 = vpop.f32.mrb[89].mxu0  ;;  %v2310_v28 = vadd.f32 %v3254_v47, %v1306_v27 }
 0x233   : > { %v1679_v16 = vmax.f32 %v2309_v25, 0.0 }
 0x234   : > { %v1311_v31 = vpop.f32.mrb[92].mxu1  ;;  %v1616_v34 = vpop.f32.mrb[90].mxu0 }
 0x235   : > { %v1313_v38 = vpop.f32.mrb[93].mxu1  ;;  %1728 = vst [vmem:[%s3262_s10 + $0x160] sm:$0xff] %v1679_v16  ;;  %v2311_v36 = vadd.f32 %v2310_v28, %v1616_v34  ;;  %v2098_v53 = vpop.f32.mrb[91].mxu0  ;;  %v2312_v23 = vadd.f32 %v3254_v47, %v1311_v31 }
 0x237   : > { %v1680_v37 = vmax.f32 %v2311_v36, 0.0 }
 0x238   : > { %v1316_v19 = vpop.f32.mrb[94].mxu1  ;;  %v1621_v43 = vpop.f32.mrb[92].mxu0 }
 0x239   : > { %v1318_v44 = vpop.f32.mrb[95].mxu1  ;;  %1729 = vst [vmem:[%s3262_s10 + $0x168] sm:$0xff] %v1680_v37  ;;  %v2313_v45 = vadd.f32 %v2312_v23, %v1621_v43  ;;  %v2101_v26 = vpop.f32.mrb[93].mxu0  ;;  %v2314_v24 = vadd.f32 %v3254_v47, %v1316_v19 }
 0x23b   : > { %v1681_v49 = vmax.f32 %v2313_v45, 0.0 }
 0x23c   : > { %v1321_v1 = vpop.f32.mrb[96].mxu1  ;;  %v1626_v3 = vpop.f32.mrb[94].mxu0 }
 0x23d   : > { %v1323_v54 = vpop.f32.mrb[97].mxu1  ;;  %1730 = vst [vmem:[%s3262_s10 + $0x170] sm:$0xff] %v1681_v49  ;;  %v2315_v33 = vadd.f32 %v2314_v24, %v1626_v3  ;;  %v2104_v35 = vpop.f32.mrb[95].mxu0  ;;  %v2316_v12 = vadd.f32 %v3254_v47, %v1321_v1 }
 0x23f   : > { %v1682_v59 = vmax.f32 %v2315_v33, 0.0 }
 0x240   : > { %v1631_v60 = vpop.f32.mrb[96].mxu0 }
 0x241   : > { %1731 = vst [vmem:[%s3262_s10 + $0x178] sm:$0xff] %v1682_v59  ;;  %v2317_v55 = vadd.f32 %v2316_v12, %v1631_v60  ;;  %v2107_v61 = vpop.f32.mrb[97].mxu0 }
 0x243   : > { %v1683_v42 = vmax.f32 %v2317_v55, 0.0 }
 0x245   : > { %1732 = vst [vmem:[%s3262_s10 + $0x180] sm:$0xff] %v1683_v42 }
 0x246 PF: > { %s13_s12 = sadd.s32 1, %s2434_s12  }
 0x247   : > { %p10_p4 = scmp.ge.s32.totalorder %s13_s12, 6  }
 0x249   :  { %12 = sbr.rel (!%p10_p4) target bundleno = 1 (0x1), region = 62 }

// kernel: model_forward.7
= control target key start
LH: loop header
LB: loop body
LE: loop exit
PB: predicated region body
PF: predicated region fallthrough
CT: control target
= control target key end

     0   :  { %s1217_s6 = smov 0   ;;  %s1550_s0 = inlined_call_operand.vmem [shape: f32[2,28,28,128], index: 0, kind: input, shape index: {}]   ;;  %s1551_s1 = inlined_call_operand.vmem [shape: f32[2,14,14,128], index: 1, kind: output, shape index: {}]  }
   0x1 LB: > { %s1180_s7 = sadd.s32 4294967295, %s1205_s6   ;;  %p1184_p0 = scmp.ge.s32.totalorder %s1205_s6, 1  ;;  %s1205_s6 = sphi %s1217_s6, %s11_s6  }
   0x2   : > { %p87_p1 = scmp.lt.s32.totalorder %s1205_s6, 3 }
   0x4   : > { %p88_p2 = pnand %p1184_p0, %p87_p1 }
   0x5   : > { %p107_p3 = scmp.lt.s32.totalorder (!%p88_p2), %s1180_s7, 1 }
   0x6   : > { %91 = sbr.rel (%p88_p2) target bundleno = 259 (0x103), region = 24 }
   0xd   : > { %s1553_s7 = smov (!%p107_p3, %s1180_s7), 1 }
   0xe   : > { %s1189_s8 = smul.u32 896, %s1553_s7 }
   0xf   : > { %s1190_s12 = smul.u32 224, %s1553_s7 }
  0x10   : > { %s1231_s11 = scalar_lea.vmem %s1550_s0, %s1189_s8 }
  0x11   : > { %v117_v0 = vld [vmem:[%s1231_s11] sm:$0xff]  ;;  %v118_v2 = vld [vmem:[%s1231_s11 + $0x8] sm:$0xff]  ;;  %v119_v5 = vld [vmem:[%s1231_s11 + $0x10] sm:$0xff]  ;;  %s1348_s15 = scalar_lea.vmem %s1551_s1, %s1190_s12 }
  0x12   : > { %v121_v1 = vld [vmem:[%s1231_s11 + $0x20] sm:$0xff]  ;;  %v122_v4 = vld [vmem:[%s1231_s11 + $0x28] sm:$0xff]  ;;  %v123_v6 = vld [vmem:[%s1231_s11 + $0x30] sm:$0xff] }
  0x13   : > { %v229_v3 = vmax.f32 %v117_v0, %v121_v1  ;;  %v230_v7 = vmax.f32 %v118_v2, %v122_v4  ;;  %v231_v8 = vmax.f32 %v119_v5, %v123_v6  ;;  %v120_v9 = vld [vmem:[%s1231_s11 + $0x18] sm:$0xf]  ;;  %v125_v11 = vld [vmem:[%s1231_s11 + $0x40] sm:$0xff]  ;;  %v126_v14 = vld [vmem:[%s1231_s11 + $0x48] sm:$0xff] }
  0x14   : > { %v124_v10 = vld [vmem:[%s1231_s11 + $0x38] sm:$0xf]  ;;  %v129_v13 = vld [vmem:[%s1231_s11 + $0x60] sm:$0xff]  ;;  %v130_v15 = vld [vmem:[%s1231_s11 + $0x68] sm:$0xff] }
  0x15   : > { %285 = vst [vmem:[#allocation2] sm:$0xff] %v229_v3  ;;  %v232_v12 = vmax.f32 %v120_v9, %v124_v10  ;;  %286 = vst [vmem:[#allocation2 + $0x8] sm:$0xff] %v230_v7  ;;  %v233_v16 = vmax.f32 %v125_v11, %v129_v13  ;;  %v234_v17 = vmax.f32 %v126_v14, %v130_v15  ;;  %v127_v18 = vld [vmem:[%s1231_s11 + $0x50] sm:$0xff]  ;;  %v128_v20 = vld [vmem:[%s1231_s11 + $0x58] sm:$0xf] }
  0x16   : > { %287 = vst [vmem:[#allocation2 + $0x10] sm:$0xff] %v231_v8  ;;  %v131_v19 = vld [vmem:[%s1231_s11 + $0x70] sm:$0xff]  ;;  %v132_v22 = vld [vmem:[%s1231_s11 + $0x78] sm:$0xf]  ;;  %v133_v23 = vld [vmem:[%s1231_s11 + $0x80] sm:$0xff] }
  0x17   : > { %288 = vst [vmem:[#allocation2 + $0x18] sm:$0xf] %v232_v12  ;;  %v235_v21 = vmax.f32 %v127_v18, %v131_v19  ;;  %v137_v24 = vld [vmem:[%s1231_s11 + $0xa0] sm:$0xff]  ;;  %289 = vst [vmem:[#allocation2 + $0x20] sm:$0xff] %v233_v16  ;;  %v236_v25 = vmax.f32 %v128_v20, %v132_v22  ;;  %v134_v27 = vld [vmem:[%s1231_s11 + $0x88] sm:$0xff] }
  0x18   : > { %290 = vst [vmem:[#allocation2 + $0x28] sm:$0xff] %v234_v17  ;;  %v237_v26 = vmax.f32 %v133_v23, %v137_v24  ;;  %v138_v28 = vld [vmem:[%s1231_s11 + $0xa8] sm:$0xff]  ;;  %v135_v29 = vld [vmem:[%s1231_s11 + $0x90] sm:$0xff]  ;;  %v136_v32 = vld [vmem:[%s1231_s11 + $0x98] sm:$0xf] }
  0x19   : > { %291 = vst [vmem:[#allocation2 + $0x30] sm:$0xff] %v235_v21  ;;  %v238_v30 = vmax.f32 %v134_v27, %v138_v28  ;;  %v139_v31 = vld [vmem:[%s1231_s11 + $0xb0] sm:$0xff]  ;;  %v140_v33 = vld [vmem:[%s1231_s11 + $0xb8] sm:$0xf]  ;;  %292 = vst [vmem:[#allocation2 + $0x38] sm:$0xf] %v236_v25 }
  0x1a   : > { %293 = vst [vmem:[#allocation2 + $0x40] sm:$0xff] %v237_v26  ;;  %v239_v34 = vmax.f32 %v135_v29, %v139_v31  ;;  %v240_v35 = vmax.f32 %v136_v32, %v140_v33  ;;  %v141_v36 = vld [vmem:[%s1231_s11 + $0xc0] sm:$0xff]  ;;  %v142_v38 = vld [vmem:[%s1231_s11 + $0xc8] sm:$0xff]  ;;  %v143_v41 = vld [vmem:[%s1231_s11 + $0xd0] sm:$0xff] }
  0x1b   : > { %v145_v37 = vld [vmem:[%s1231_s11 + $0xe0] sm:$0xff]  ;;  %294 = vst [vmem:[#allocation2 + $0x48] sm:$0xff] %v238_v30  ;;  %v146_v40 = vld [vmem:[%s1231_s11 + $0xe8] sm:$0xff]  ;;  %v147_v42 = vld [vmem:[%s1231_s11 + $0xf0] sm:$0xff] }
  0x1c   : > { %v241_v39 = vmax.f32 %v141_v36, %v145_v37  ;;  %295 = vst [vmem:[#allocation2 + $0x50] sm:$0xff] %v239_v34  ;;  %296 = vst [vmem:[#allocation2 + $0x58] sm:$0xf] %v240_v35  ;;  %v242_v43 = vmax.f32 %v142_v38, %v146_v40  ;;  %v243_v44 = vmax.f32 %v143_v41, %v147_v42  ;;  %v144_v45 = vld [vmem:[%s1231_s11 + $0xd8] sm:$0xf]  ;;  %v149_v47 = vld [vmem:[%s1231_s11 + $0x100] sm:$0xff] }
  0x1d   : > { %v148_v46 = vld [vmem:[%s1231_s11 + $0xf8] sm:$0xf]  ;;  %v153_v49 = vld [vmem:[%s1231_s11 + $0x120] sm:$0xff]  ;;  %v150_v50 = vld [vmem:[%s1231_s11 + $0x108] sm:$0xff] }
  0x1e   : > { %297 = vst [vmem:[#allocation2 + $0x60] sm:$0xff] %v241_v39  ;;  %v244_v48 = vmax.f32 %v144_v45, %v148_v46  ;;  %v154_v51 = vld [vmem:[%s1231_s11 + $0x128] sm:$0xff]  ;;  %298 = vst [vmem:[#allocation2 + $0x68] sm:$0xff] %v242_v43  ;;  %v245_v52 = vmax.f32 %v149_v47, %v153_v49  ;;  %v151_v54 = vld [vmem:[%s1231_s11 + $0x110] sm:$0xff] }
  0x1f   : > { %299 = vst [vmem:[#allocation2 + $0x70] sm:$0xff] %v243_v44  ;;  %v246_v53 = vmax.f32 %v150_v50, %v154_v51  ;;  %v155_v55 = vld [vmem:[%s1231_s11 + $0x130] sm:$0xff]  ;;  %v152_v56 = vld [vmem:[%s1231_s11 + $0x118] sm:$0xf]  ;;  %v157_v59 = vld [vmem:[%s1231_s11 + $0x140] sm:$0xff] }
  0x20   : > { %300 = vst [vmem:[#allocation2 + $0x78] sm:$0xf] %v244_v48  ;;  %v247_v57 = vmax.f32 %v151_v54, %v155_v55  ;;  %v156_v58 = vld [vmem:[%s1231_s11 + $0x138] sm:$0xf]  ;;  %v161_v60 = vld [vmem:[%s1231_s11 + $0x160] sm:$0xff]  ;;  %301 = vst [vmem:[#allocation2 + $0x80] sm:$0xff] %v245_v52 }
  0x21   : > { %302 = vst [vmem:[#allocation2 + $0x88] sm:$0xff] %v246_v53  ;;  %v248_v61 = vmax.f32 %v152_v56, %v156_v58  ;;  %v249_v62 = vmax.f32 %v157_v59, %v161_v60  ;;  %v158_v63 = vld [vmem:[%s1231_s11 + $0x148] sm:$0xff]  ;;  %v159_v1 = vld [vmem:[%s1231_s11 + $0x150] sm:$0xff]  ;;  %v160_v4 = vld [vmem:[%s1231_s11 + $0x158] sm:$0xf] }
  0x22   : > { %v162_v0 = vld [vmem:[%s1231_s11 + $0x168] sm:$0xff]  ;;  %303 = vst [vmem:[#allocation2 + $0x90] sm:$0xff] %v247_v57  ;;  %v163_v3 = vld [vmem:[%s1231_s11 + $0x170] sm:$0xff]  ;;  %v164_v5 = vld [vmem:[%s1231_s11 + $0x178] sm:$0xf] }
  0x23   : > { %v250_v2 = vmax.f32 %v158_v63, %v162_v0  ;;  %304 = vst [vmem:[#allocation2 + $0x98] sm:$0xf] %v248_v61  ;;  %305 = vst [vmem:[#allocation2 + $0xa0] sm:$0xff] %v249_v62  ;;  %v251_v6 = vmax.f32 %v159_v1, %v163_v3  ;;  %v252_v7 = vmax.f32 %v160_v4, %v164_v5  ;;  %v165_v8 = vld [vmem:[%s1231_s11 + $0x180] sm:$0xff]  ;;  %v166_v10 = vld [vmem:[%s1231_s11 + $0x188] sm:$0xff] }
  0x24   : > { %v169_v9 = vld [vmem:[%s1231_s11 + $0x1a0] sm:$0xff]  ;;  %v170_v12 = vld [vmem:[%s1231_s11 + $0x1a8] sm:$0xff]  ;;  %v167_v13 = vld [vmem:[%s1231_s11 + $0x190] sm:$0xff] }
  0x25   : > { %306 = vst [vmem:[#allocation2 + $0xa8] sm:$0xff] %v250_v2  ;;  %v253_v11 = vmax.f32 %v165_v8, %v169_v9  ;;  %v171_v14 = vld [vmem:[%s1231_s11 + $0x1b0] sm:$0xff]  ;;  %307 = vst [vmem:[#allocation2 + $0xb0] sm:$0xff] %v251_v6  ;;  %v254_v15 = vmax.f32 %v166_v10, %v170_v12  ;;  %v168_v17 = vld [vmem:[%s1231_s11 + $0x198] sm:$0xf] }
  0x26   : > { %308 = vst [vmem:[#allocation2 + $0xb8] sm:$0xf] %v252_v7  ;;  %v255_v16 = vmax.f32 %v167_v13, %v171_v14  ;;  %v172_v18 = vld [vmem:[%s1231_s11 + $0x1b8] sm:$0xf]  ;;  %v173_v19 = vld [vmem:[%s1231_s11 + $0x1c0] sm:$0xff]  ;;  %v174_v22 = vld [vmem:[%s1231_s11 + $0x1c8] sm:$0xff] }
  0x27   : > { %309 = vst [vmem:[#allocation2 + $0xc0] sm:$0xff] %v253_v11  ;;  %v256_v20 = vmax.f32 %v168_v17, %v172_v18  ;;  %v177_v21 = vld [vmem:[%s1231_s11 + $0x1e0] sm:$0xff]  ;;  %v178_v23 = vld [vmem:[%s1231_s11 + $0x1e8] sm:$0xff]  ;;  %310 = vst [vmem:[#allocation2 + $0xc8] sm:$0xff] %v254_v15 }
  0x28   : > { %311 = vst [vmem:[#allocation2 + $0xd0] sm:$0xff] %v255_v16  ;;  %v257_v24 = vmax.f32 %v173_v19, %v177_v21  ;;  %v258_v25 = vmax.f32 %v174_v22, %v178_v23  ;;  %v175_v26 = vld [vmem:[%s1231_s11 + $0x1d0] sm:$0xff]  ;;  %v176_v28 = vld [vmem:[%s1231_s11 + $0x1d8] sm:$0xf]  ;;  %v181_v31 = vld [vmem:[%s1231_s11 + $0x200] sm:$0xff] }
  0x29   : > { %v179_v27 = vld [vmem:[%s1231_s11 + $0x1f0] sm:$0xff]  ;;  %312 = vst [vmem:[#allocation2 + $0xd8] sm:$0xf] %v256_v20  ;;  %v180_v30 = vld [vmem:[%s1231_s11 + $0x1f8] sm:$0xf]  ;;  %v185_v32 = vld [vmem:[%s1231_s11 + $0x220] sm:$0xff] }
  0x2a   : > { %v259_v29 = vmax.f32 %v175_v26, %v179_v27  ;;  %313 = vst [vmem:[#allocation2 + $0xe0] sm:$0xff] %v257_v24  ;;  %314 = vst [vmem:[#allocation2 + $0xe8] sm:$0xff] %v258_v25  ;;  %v260_v33 = vmax.f32 %v176_v28, %v180_v30  ;;  %v261_v34 = vmax.f32 %v181_v31, %v185_v32  ;;  %v182_v35 = vld [vmem:[%s1231_s11 + $0x208] sm:$0xff]  ;;  %v183_v37 = vld [vmem:[%s1231_s11 + $0x210] sm:$0xff] }
  0x2b   : > { %v186_v36 = vld [vmem:[%s1231_s11 + $0x228] sm:$0xff]  ;;  %v187_v39 = vld [vmem:[%s1231_s11 + $0x230] sm:$0xff]  ;;  %v184_v40 = vld [vmem:[%s1231_s11 + $0x218] sm:$0xf] }
  0x2c   : > { %315 = vst [vmem:[#allocation2 + $0xf0] sm:$0xff] %v259_v29  ;;  %v262_v38 = vmax.f32 %v182_v35, %v186_v36  ;;  %v188_v41 = vld [vmem:[%s1231_s11 + $0x238] sm:$0xf]  ;;  %316 = vst [vmem:[#allocation2 + $0xf8] sm:$0xf] %v260_v33  ;;  %v263_v42 = vmax.f32 %v183_v37, %v187_v39  ;;  %v189_v44 = vld [vmem:[%s1231_s11 + $0x240] sm:$0xff] }
  0x2d   : > { %317 = vst [vmem:[#allocation2 + $0x100] sm:$0xff] %v261_v34  ;;  %v264_v43 = vmax.f32 %v184_v40, %v188_v41  ;;  %v193_v45 = vld [vmem:[%s1231_s11 + $0x260] sm:$0xff]  ;;  %v190_v46 = vld [vmem:[%s1231_s11 + $0x248] sm:$0xff]  ;;  %v191_v49 = vld [vmem:[%s1231_s11 + $0x250] sm:$0xff] }
  0x2e   : > { %318 = vst [vmem:[#allocation2 + $0x108] sm:$0xff] %v262_v38  ;;  %v265_v47 = vmax.f32 %v189_v44, %v193_v45  ;;  %v194_v48 = vld [vmem:[%s1231_s11 + $0x268] sm:$0xff]  ;;  %v195_v50 = vld [vmem:[%s1231_s11 + $0x270] sm:$0xff]  ;;  %319 = vst [vmem:[#allocation2 + $0x110] sm:$0xff] %v263_v42 }
  0x2f   : > { %320 = vst [vmem:[#allocation2 + $0x118] sm:$0xf] %v264_v43  ;;  %v266_v51 = vmax.f32 %v190_v46, %v194_v48  ;;  %v267_v52 = vmax.f32 %v191_v49, %v195_v50  ;;  %v192_v53 = vld [vmem:[%s1231_s11 + $0x258] sm:$0xf]  ;;  %v197_v55 = vld [vmem:[%s1231_s11 + $0x280] sm:$0xff]  ;;  %v198_v58 = vld [vmem:[%s1231_s11 + $0x288] sm:$0xff] }
  0x30   : > { %v196_v54 = vld [vmem:[%s1231_s11 + $0x278] sm:$0xf]  ;;  %321 = vst [vmem:[#allocation2 + $0x120] sm:$0xff] %v265_v47  ;;  %v201_v57 = vld [vmem:[%s1231_s11 + $0x2a0] sm:$0xff]  ;;  %v202_v59 = vld [vmem:[%s1231_s11 + $0x2a8] sm:$0xff] }
  0x31   : > { %v268_v56 = vmax.f32 %v192_v53, %v196_v54  ;;  %322 = vst [vmem:[#allocation2 + $0x128] sm:$0xff] %v266_v51  ;;  %323 = vst [vmem:[#allocation2 + $0x130] sm:$0xff] %v267_v52  ;;  %v269_v60 = vmax.f32 %v197_v55, %v201_v57  ;;  %v270_v61 = vmax.f32 %v198_v58, %v202_v59  ;;  %v199_v62 = vld [vmem:[%s1231_s11 + $0x290] sm:$0xff]  ;;  %v200_v0 = vld [vmem:[%s1231_s11 + $0x298] sm:$0xf] }
  0x32   : > { %v203_v63 = vld [vmem:[%s1231_s11 + $0x2b0] sm:$0xff]  ;;  %v204_v2 = vld [vmem:[%s1231_s11 + $0x2b8] sm:$0xf]  ;;  %v205_v3 = vld [vmem:[%s1231_s11 + $0x2c0] sm:$0xff] }
  0x33   : > { %324 = vst [vmem:[#allocation2 + $0x138] sm:$0xf] %v268_v56  ;;  %v271_v1 = vmax.f32 %v199_v62, %v203_v63  ;;  %v209_v4 = vld [vmem:[%s1231_s11 + $0x2e0] sm:$0xff]  ;;  %325 = vst [vmem:[#allocation2 + $0x140] sm:$0xff] %v269_v60  ;;  %v272_v5 = vmax.f32 %v200_v0, %v204_v2  ;;  %v206_v7 = vld [vmem:[%s1231_s11 + $0x2c8] sm:$0xff] }
  0x34   : > { %326 = vst [vmem:[#allocation2 + $0x148] sm:$0xff] %v270_v61  ;;  %v273_v6 = vmax.f32 %v205_v3, %v209_v4  ;;  %v210_v8 = vld [vmem:[%s1231_s11 + $0x2e8] sm:$0xff]  ;;  %v207_v9 = vld [vmem:[%s1231_s11 + $0x2d0] sm:$0xff]  ;;  %v208_v12 = vld [vmem:[%s1231_s11 + $0x2d8] sm:$0xf] }
  0x35   : > { %327 = vst [vmem:[#allocation2 + $0x150] sm:$0xff] %v271_v1  ;;  %v274_v10 = vmax.f32 %v206_v7, %v210_v8  ;;  %v211_v11 = vld [vmem:[%s1231_s11 + $0x2f0] sm:$0xff]  ;;  %v212_v13 = vld [vmem:[%s1231_s11 + $0x2f8] sm:$0xf]  ;;  %328 = vst [vmem:[#allocation2 + $0x158] sm:$0xf] %v272_v5 }
  0x36   : > { %329 = vst [vmem:[#allocation2 + $0x160] sm:$0xff] %v273_v6  ;;  %v275_v14 = vmax.f32 %v207_v9, %v211_v11  ;;  %v276_v15 = vmax.f32 %v208_v12, %v212_v13  ;;  %v213_v16 = vld [vmem:[%s1231_s11 + $0x300] sm:$0xff]  ;;  %v214_v18 = vld [vmem:[%s1231_s11 + $0x308] sm:$0xff]  ;;  %v215_v21 = vld [vmem:[%s1231_s11 + $0x310] sm:$0xff] }
  0x37   : > { %v217_v17 = vld [vmem:[%s1231_s11 + $0x320] sm:$0xff]  ;;  %330 = vst [vmem:[#allocation2 + $0x168] sm:$0xff] %v274_v10  ;;  %v218_v20 = vld [vmem:[%s1231_s11 + $0x328] sm:$0xff]  ;;  %v219_v22 = vld [vmem:[%s1231_s11 + $0x330] sm:$0xff] }
  0x38   : > { %v277_v19 = vmax.f32 %v213_v16, %v217_v17  ;;  %331 = vst [vmem:[#allocation2 + $0x170] sm:$0xff] %v275_v14  ;;  %332 = vst [vmem:[#allocation2 + $0x178] sm:$0xf] %v276_v15  ;;  %v278_v23 = vmax.f32 %v214_v18, %v218_v20  ;;  %v279_v24 = vmax.f32 %v215_v21, %v219_v22  ;;  %v216_v25 = vld [vmem:[%s1231_s11 + $0x318] sm:$0xf]  ;;  %v221_v27 = vld [vmem:[%s1231_s11 + $0x340] sm:$0xff] }
  0x39   : > { %v220_v26 = vld [vmem:[%s1231_s11 + $0x338] sm:$0xf]  ;;  %v225_v29 = vld [vmem:[%s1231_s11 + $0x360] sm:$0xff]  ;;  %v222_v30 = vld [vmem:[%s1231_s11 + $0x348] sm:$0xff] }
  0x3a   : > { %333 = vst [vmem:[#allocation2 + $0x180] sm:$0xff] %v277_v19  ;;  %v280_v28 = vmax.f32 %v216_v25, %v220_v26  ;;  %v226_v31 = vld [vmem:[%s1231_s11 + $0x368] sm:$0xff]  ;;  %334 = vst [vmem:[#allocation2 + $0x188] sm:$0xff] %v278_v23  ;;  %v281_v32 = vmax.f32 %v221_v27, %v225_v29  ;;  %v223_v34 = vld [vmem:[%s1231_s11 + $0x350] sm:$0xff] }
  0x3b   : > { %335 = vst [vmem:[#allocation2 + $0x190] sm:$0xff] %v279_v24  ;;  %v282_v33 = vmax.f32 %v222_v30, %v226_v31  ;;  %v227_v35 = vld [vmem:[%s1231_s11 + $0x370] sm:$0xff]  ;;  %v224_v36 = vld [vmem:[%s1231_s11 + $0x358] sm:$0xf]  ;;  %v341_v39 = vld [vmem:[#allocation2] sm:$0x1] }
  0x3c   : > { %336 = vst [vmem:[#allocation2 + $0x198] sm:$0xf] %v280_v28  ;;  %v283_v37 = vmax.f32 %v223_v34, %v227_v35  ;;  %v228_v38 = vld [vmem:[%s1231_s11 + $0x378] sm:$0xf]  ;;  %v355_v40 = vld [vmem:[#allocation2 + $0x1] sm:$0x1] }
  0x3d   : > { %337 = vst [vmem:[#allocation2 + $0x1a0] sm:$0xff] %v281_v32  ;;  %338 = vst [vmem:[#allocation2 + $0x1a8] sm:$0xff] %v282_v33  ;;  %v284_v41 = vmax.f32 %v224_v36, %v228_v38  ;;  %v369_v42 = vmax.f32 %v341_v39, %v355_v40  ;;  %v342_v43 = vld [vmem:[#allocation2 + $0x20] sm:$0x1]  ;;  %v356_v44 = vld [vmem:[#allocation2 + $0x21] sm:$0x1] }
  0x3e   : > { %v343_v45 = vld [vmem:[#allocation2 + $0x40] sm:$0x1]  ;;  %339 = vst [vmem:[#allocation2 + $0x1b0] sm:$0xff] %v283_v37  ;;  %v370_v46 = vmax.f32 %v342_v43, %v356_v44  ;;  %v357_v47 = vld [vmem:[#allocation2 + $0x41] sm:$0x1] }
  0x3f   : > { %v344_v48 = vld [vmem:[#allocation2 + $0x60] sm:$0x1]  ;;  %v358_v49 = vld [vmem:[#allocation2 + $0x61] sm:$0x1]  ;;  %340 = vst [vmem:[#allocation2 + $0x1b8] sm:$0xf] %v284_v41  ;;  %v371_v50 = vmax.f32 %v343_v45, %v357_v47 }
  0x40   : > { %383 = vst [vmem:[%s1348_s15] sm:$0x1] %v369_v42  ;;  %v372_v51 = vmax.f32 %v344_v48, %v358_v49  ;;  %v345_v52 = vld [vmem:[#allocation2 + $0x80] sm:$0x1]  ;;  %v359_v53 = vld [vmem:[#allocation2 + $0x81] sm:$0x1] }
  0x41   : > { %v346_v54 = vld [vmem:[#allocation2 + $0xa0] sm:$0x1]  ;;  %384 = vst [vmem:[%s1348_s15 + $0x10] sm:$0x1] %v370_v46  ;;  %v373_v55 = vmax.f32 %v345_v52, %v359_v53  ;;  %v360_v56 = vld [vmem:[#allocation2 + $0xa1] sm:$0x1] }
  0x42   : > { %v347_v57 = vld [vmem:[#allocation2 + $0xc0] sm:$0x1]  ;;  %v361_v58 = vld [vmem:[#allocation2 + $0xc1] sm:$0x1]  ;;  %385 = vst [vmem:[%s1348_s15 + $0x20] sm:$0x1] %v371_v50  ;;  %v374_v59 = vmax.f32 %v346_v54, %v360_v56 }
  0x43   : > { %386 = vst [vmem:[%s1348_s15 + $0x30] sm:$0x1] %v372_v51  ;;  %v375_v60 = vmax.f32 %v347_v57, %v361_v58  ;;  %v348_v61 = vld [vmem:[#allocation2 + $0xe0] sm:$0x1]  ;;  %v362_v62 = vld [vmem:[#allocation2 + $0xe1] sm:$0x1] }
  0x44   : > { %v349_v63 = vld [vmem:[#allocation2 + $0x100] sm:$0x1]  ;;  %387 = vst [vmem:[%s1348_s15 + $0x40] sm:$0x1] %v373_v55  ;;  %v376_v0 = vmax.f32 %v348_v61, %v362_v62  ;;  %v363_v1 = vld [vmem:[#allocation2 + $0x101] sm:$0x1] }
  0x45   : > { %v350_v2 = vld [vmem:[#allocation2 + $0x120] sm:$0x1]  ;;  %v364_v3 = vld [vmem:[#allocation2 + $0x121] sm:$0x1]  ;;  %388 = vst [vmem:[%s1348_s15 + $0x50] sm:$0x1] %v374_v59  ;;  %v377_v4 = vmax.f32 %v349_v63, %v363_v1 }
  0x46   : > { %389 = vst [vmem:[%s1348_s15 + $0x60] sm:$0x1] %v375_v60  ;;  %v378_v5 = vmax.f32 %v350_v2, %v364_v3  ;;  %v351_v6 = vld [vmem:[#allocation2 + $0x140] sm:$0x1]  ;;  %v365_v7 = vld [vmem:[#allocation2 + $0x141] sm:$0x1] }
  0x47   : > { %v352_v8 = vld [vmem:[#allocation2 + $0x160] sm:$0x1]  ;;  %390 = vst [vmem:[%s1348_s15 + $0x70] sm:$0x1] %v376_v0  ;;  %v379_v9 = vmax.f32 %v351_v6, %v365_v7  ;;  %v366_v10 = vld [vmem:[#allocation2 + $0x161] sm:$0x1] }
  0x48   : > { %v353_v11 = vld [vmem:[#allocation2 + $0x180] sm:$0x1]  ;;  %v367_v12 = vld [vmem:[#allocation2 + $0x181] sm:$0x1]  ;;  %391 = vst [vmem:[%s1348_s15 + $0x80] sm:$0x1] %v377_v4  ;;  %v380_v13 = vmax.f32 %v352_v8, %v366_v10 }
  0x49   : > { %392 = vst [vmem:[%s1348_s15 + $0x90] sm:$0x1] %v378_v5  ;;  %v381_v14 = vmax.f32 %v353_v11, %v367_v12  ;;  %v354_v15 = vld [vmem:[#allocation2 + $0x1a0] sm:$0x1]  ;;  %v368_v16 = vld [vmem:[#allocation2 + $0x1a1] sm:$0x1] }
  0x4a   : > { %v397_v17 = vld [vmem:[#allocation2 + $0x2] sm:$0x1]  ;;  %393 = vst [vmem:[%s1348_s15 + $0xa0] sm:$0x1] %v379_v9  ;;  %v382_v18 = vmax.f32 %v354_v15, %v368_v16  ;;  %v411_v19 = vld [vmem:[#allocation2 + $0x3] sm:$0x1] }
  0x4b   : > { %v398_v20 = vld [vmem:[#allocation2 + $0x22] sm:$0x1]  ;;  %v412_v21 = vld [vmem:[#allocation2 + $0x23] sm:$0x1]  ;;  %394 = vst [vmem:[%s1348_s15 + $0xb0] sm:$0x1] %v380_v13  ;;  %v425_v22 = vmax.f32 %v397_v17, %v411_v19 }
  0x4c   : > { %395 = vst [vmem:[%s1348_s15 + $0xc0] sm:$0x1] %v381_v14  ;;  %v426_v23 = vmax.f32 %v398_v20, %v412_v21  ;;  %v399_v24 = vld [vmem:[#allocation2 + $0x42] sm:$0x1]  ;;  %v413_v25 = vld [vmem:[#allocation2 + $0x43] sm:$0x1] }
  0x4d   : > { %v400_v26 = vld [vmem:[#allocation2 + $0x62] sm:$0x1]  ;;  %396 = vst [vmem:[%s1348_s15 + $0xd0] sm:$0x1] %v382_v18  ;;  %v427_v27 = vmax.f32 %v399_v24, %v413_v25  ;;  %v414_v28 = vld [vmem:[#allocation2 + $0x63] sm:$0x1] }
  0x4e   : > { %v401_v29 = vld [vmem:[#allocation2 + $0x82] sm:$0x1]  ;;  %v415_v30 = vld [vmem:[#allocation2 + $0x83] sm:$0x1]  ;;  %439 = vst [vmem:[%s1348_s15 + $0x1] sm:$0x1] %v425_v22  ;;  %v428_v31 = vmax.f32 %v400_v26, %v414_v28 }
  0x4f   : > { %440 = vst [vmem:[%s1348_s15 + $0x11] sm:$0x1] %v426_v23  ;;  %v429_v32 = vmax.f32 %v401_v29, %v415_v30  ;;  %v402_v33 = vld [vmem:[#allocation2 + $0xa2] sm:$0x1]  ;;  %v416_v34 = vld [vmem:[#allocation2 + $0xa3] sm:$0x1] }
  0x50   : > { %v403_v35 = vld [vmem:[#allocation2 + $0xc2] sm:$0x1]  ;;  %441 = vst [vmem:[%s1348_s15 + $0x21] sm:$0x1] %v427_v27  ;;  %v430_v36 = vmax.f32 %v402_v33, %v416_v34  ;;  %v417_v37 = vld [vmem:[#allocation2 + $0xc3] sm:$0x1] }
  0x51   : > { %v404_v38 = vld [vmem:[#allocation2 + $0xe2] sm:$0x1]  ;;  %v418_v39 = vld [vmem:[#allocation2 + $0xe3] sm:$0x1]  ;;  %442 = vst [vmem:[%s1348_s15 + $0x31] sm:$0x1] %v428_v31  ;;  %v431_v40 = vmax.f32 %v403_v35, %v417_v37 }
  0x52   : > { %443 = vst [vmem:[%s1348_s15 + $0x41] sm:$0x1] %v429_v32  ;;  %v432_v41 = vmax.f32 %v404_v38, %v418_v39  ;;  %v405_v42 = vld [vmem:[#allocation2 + $0x102] sm:$0x1]  ;;  %v419_v43 = vld [vmem:[#allocation2 + $0x103] sm:$0x1] }
  0x53   : > { %v406_v44 = vld [vmem:[#allocation2 + $0x122] sm:$0x1]  ;;  %444 = vst [vmem:[%s1348_s15 + $0x51] sm:$0x1] %v430_v36  ;;  %v433_v45 = vmax.f32 %v405_v42, %v419_v43  ;;  %v420_v46 = vld [vmem:[#allocation2 + $0x123] sm:$0x1] }
  0x54   : > { %v407_v47 = vld [vmem:[#allocation2 + $0x142] sm:$0x1]  ;;  %v421_v48 = vld [vmem:[#allocation2 + $0x143] sm:$0x1]  ;;  %445 = vst [vmem:[%s1348_s15 + $0x61] sm:$0x1] %v431_v40  ;;  %v434_v49 = vmax.f32 %v406_v44, %v420_v46 }
  0x55   : > { %446 = vst [vmem:[%s1348_s15 + $0x71] sm:$0x1] %v432_v41  ;;  %v435_v50 = vmax.f32 %v407_v47, %v421_v48  ;;  %v408_v51 = vld [vmem:[#allocation2 + $0x162] sm:$0x1]  ;;  %v422_v52 = vld [vmem:[#allocation2 + $0x163] sm:$0x1] }
  0x56   : > { %v409_v53 = vld [vmem:[#allocation2 + $0x182] sm:$0x1]  ;;  %447 = vst [vmem:[%s1348_s15 + $0x81] sm:$0x1] %v433_v45  ;;  %v436_v54 = vmax.f32 %v408_v51, %v422_v52  ;;  %v423_v55 = vld [vmem:[#allocation2 + $0x183] sm:$0x1] }
  0x57   : > { %v410_v56 = vld [vmem:[#allocation2 + $0x1a2] sm:$0x1]  ;;  %v424_v57 = vld [vmem:[#allocation2 + $0x1a3] sm:$0x1]  ;;  %448 = vst [vmem:[%s1348_s15 + $0x91] sm:$0x1] %v434_v49  ;;  %v437_v58 = vmax.f32 %v409_v53, %v423_v55 }
  0x58   : > { %449 = vst [vmem:[%s1348_s15 + $0xa1] sm:$0x1] %v435_v50  ;;  %v438_v59 = vmax.f32 %v410_v56, %v424_v57  ;;  %v453_v60 = vld [vmem:[#allocation2 + $0x4] sm:$0x1]  ;;  %v467_v61 = vld [vmem:[#allocation2 + $0x5] sm:$0x1] }
  0x59   : > { %v454_v62 = vld [vmem:[#allocation2 + $0x24] sm:$0x1]  ;;  %450 = vst [vmem:[%s1348_s15 + $0xb1] sm:$0x1] %v436_v54  ;;  %v481_v63 = vmax.f32 %v453_v60, %v467_v61  ;;  %v468_v0 = vld [vmem:[#allocation2 + $0x25] sm:$0x1] }
  0x5a   : > { %v455_v1 = vld [vmem:[#allocation2 + $0x44] sm:$0x1]  ;;  %v469_v2 = vld [vmem:[#allocation2 + $0x45] sm:$0x1]  ;;  %451 = vst [vmem:[%s1348_s15 + $0xc1] sm:$0x1] %v437_v58  ;;  %v482_v3 = vmax.f32 %v454_v62, %v468_v0 }
  0x5b   : > { %452 = vst [vmem:[%s1348_s15 + $0xd1] sm:$0x1] %v438_v59  ;;  %v483_v4 = vmax.f32 %v455_v1, %v469_v2  ;;  %v456_v5 = vld [vmem:[#allocation2 + $0x64] sm:$0x1]  ;;  %v470_v6 = vld [vmem:[#allocation2 + $0x65] sm:$0x1] }
  0x5c   : > { %v457_v7 = vld [vmem:[#allocation2 + $0x84] sm:$0x1]  ;;  %495 = vst [vmem:[%s1348_s15 + $0x2] sm:$0x1] %v481_v63  ;;  %v484_v8 = vmax.f32 %v456_v5, %v470_v6  ;;  %v471_v9 = vld [vmem:[#allocation2 + $0x85] sm:$0x1] }
  0x5d   : > { %v458_v10 = vld [vmem:[#allocation2 + $0xa4] sm:$0x1]  ;;  %v472_v11 = vld [vmem:[#allocation2 + $0xa5] sm:$0x1]  ;;  %496 = vst [vmem:[%s1348_s15 + $0x12] sm:$0x1] %v482_v3  ;;  %v485_v12 = vmax.f32 %v457_v7, %v471_v9 }
  0x5e   : > { %497 = vst [vmem:[%s1348_s15 + $0x22] sm:$0x1] %v483_v4  ;;  %v486_v13 = vmax.f32 %v458_v10, %v472_v11  ;;  %v459_v14 = vld [vmem:[#allocation2 + $0xc4] sm:$0x1]  ;;  %v473_v15 = vld [vmem:[#allocation2 + $0xc5] sm:$0x1] }
  0x5f   : > { %v460_v16 = vld [vmem:[#allocation2 + $0xe4] sm:$0x1]  ;;  %498 = vst [vmem:[%s1348_s15 + $0x32] sm:$0x1] %v484_v8  ;;  %v487_v17 = vmax.f32 %v459_v14, %v473_v15  ;;  %v474_v18 = vld [vmem:[#allocation2 + $0xe5] sm:$0x1] }
  0x60   : > { %v461_v19 = vld [vmem:[#allocation2 + $0x104] sm:$0x1]  ;;  %v475_v20 = vld [vmem:[#allocation2 + $0x105] sm:$0x1]  ;;  %499 = vst [vmem:[%s1348_s15 + $0x42] sm:$0x1] %v485_v12  ;;  %v488_v21 = vmax.f32 %v460_v16, %v474_v18 }
  0x61   : > { %500 = vst [vmem:[%s1348_s15 + $0x52] sm:$0x1] %v486_v13  ;;  %v489_v22 = vmax.f32 %v461_v19, %v475_v20  ;;  %v462_v23 = vld [vmem:[#allocation2 + $0x124] sm:$0x1]  ;;  %v476_v24 = vld [vmem:[#allocation2 + $0x125] sm:$0x1] }
  0x62   : > { %v463_v25 = vld [vmem:[#allocation2 + $0x144] sm:$0x1]  ;;  %501 = vst [vmem:[%s1348_s15 + $0x62] sm:$0x1] %v487_v17  ;;  %v490_v26 = vmax.f32 %v462_v23, %v476_v24  ;;  %v477_v27 = vld [vmem:[#allocation2 + $0x145] sm:$0x1] }
  0x63   : > { %v464_v28 = vld [vmem:[#allocation2 + $0x164] sm:$0x1]  ;;  %v478_v29 = vld [vmem:[#allocation2 + $0x165] sm:$0x1]  ;;  %502 = vst [vmem:[%s1348_s15 + $0x72] sm:$0x1] %v488_v21  ;;  %v491_v30 = vmax.f32 %v463_v25, %v477_v27 }
  0x64   : > { %503 = vst [vmem:[%s1348_s15 + $0x82] sm:$0x1] %v489_v22  ;;  %v492_v31 = vmax.f32 %v464_v28, %v478_v29  ;;  %v465_v32 = vld [vmem:[#allocation2 + $0x184] sm:$0x1]  ;;  %v479_v33 = vld [vmem:[#allocation2 + $0x185] sm:$0x1] }
  0x65   : > { %v466_v34 = vld [vmem:[#allocation2 + $0x1a4] sm:$0x1]  ;;  %504 = vst [vmem:[%s1348_s15 + $0x92] sm:$0x1] %v490_v26  ;;  %v493_v35 = vmax.f32 %v465_v32, %v479_v33  ;;  %v480_v36 = vld [vmem:[#allocation2 + $0x1a5] sm:$0x1] }
  0x66   : > { %v509_v37 = vld [vmem:[#allocation2 + $0x6] sm:$0x1]  ;;  %v523_v38 = vld [vmem:[#allocation2 + $0x7] sm:$0x1]  ;;  %505 = vst [vmem:[%s1348_s15 + $0xa2] sm:$0x1] %v491_v30  ;;  %v494_v39 = vmax.f32 %v466_v34, %v480_v36 }
  0x67   : > { %506 = vst [vmem:[%s1348_s15 + $0xb2] sm:$0x1] %v492_v31  ;;  %v537_v40 = vmax.f32 %v509_v37, %v523_v38  ;;  %v510_v41 = vld [vmem:[#allocation2 + $0x26] sm:$0x1]  ;;  %v524_v42 = vld [vmem:[#allocation2 + $0x27] sm:$0x1] }
  0x68   : > { %v511_v43 = vld [vmem:[#allocation2 + $0x46] sm:$0x1]  ;;  %507 = vst [vmem:[%s1348_s15 + $0xc2] sm:$0x1] %v493_v35  ;;  %v538_v44 = vmax.f32 %v510_v41, %v524_v42  ;;  %v525_v45 = vld [vmem:[#allocation2 + $0x47] sm:$0x1] }
  0x69   : > { %v512_v46 = vld [vmem:[#allocation2 + $0x66] sm:$0x1]  ;;  %v526_v47 = vld [vmem:[#allocation2 + $0x67] sm:$0x1]  ;;  %508 = vst [vmem:[%s1348_s15 + $0xd2] sm:$0x1] %v494_v39  ;;  %v539_v48 = vmax.f32 %v511_v43, %v525_v45 }
  0x6a   : > { %551 = vst [vmem:[%s1348_s15 + $0x3] sm:$0x1] %v537_v40  ;;  %v540_v49 = vmax.f32 %v512_v46, %v526_v47  ;;  %v513_v50 = vld [vmem:[#allocation2 + $0x86] sm:$0x1]  ;;  %v527_v51 = vld [vmem:[#allocation2 + $0x87] sm:$0x1] }
  0x6b   : > { %v514_v52 = vld [vmem:[#allocation2 + $0xa6] sm:$0x1]  ;;  %552 = vst [vmem:[%s1348_s15 + $0x13] sm:$0x1] %v538_v44  ;;  %v541_v53 = vmax.f32 %v513_v50, %v527_v51  ;;  %v528_v54 = vld [vmem:[#allocation2 + $0xa7] sm:$0x1] }
  0x6c   : > { %v515_v55 = vld [vmem:[#allocation2 + $0xc6] sm:$0x1]  ;;  %v529_v56 = vld [vmem:[#allocation2 + $0xc7] sm:$0x1]  ;;  %553 = vst [vmem:[%s1348_s15 + $0x23] sm:$0x1] %v539_v48  ;;  %v542_v57 = vmax.f32 %v514_v52, %v528_v54 }
  0x6d   : > { %554 = vst [vmem:[%s1348_s15 + $0x33] sm:$0x1] %v540_v49  ;;  %v543_v58 = vmax.f32 %v515_v55, %v529_v56  ;;  %v516_v59 = vld [vmem:[#allocation2 + $0xe6] sm:$0x1]  ;;  %v530_v60 = vld [vmem:[#allocation2 + $0xe7] sm:$0x1] }
  0x6e   : > { %v517_v61 = vld [vmem:[#allocation2 + $0x106] sm:$0x1]  ;;  %555 = vst [vmem:[%s1348_s15 + $0x43] sm:$0x1] %v541_v53  ;;  %v544_v62 = vmax.f32 %v516_v59, %v530_v60  ;;  %v531_v63 = vld [vmem:[#allocation2 + $0x107] sm:$0x1] }
  0x6f   : > { %v518_v0 = vld [vmem:[#allocation2 + $0x126] sm:$0x1]  ;;  %v532_v1 = vld [vmem:[#allocation2 + $0x127] sm:$0x1]  ;;  %556 = vst [vmem:[%s1348_s15 + $0x53] sm:$0x1] %v542_v57  ;;  %v545_v2 = vmax.f32 %v517_v61, %v531_v63 }
  0x70   : > { %557 = vst [vmem:[%s1348_s15 + $0x63] sm:$0x1] %v543_v58  ;;  %v546_v3 = vmax.f32 %v518_v0, %v532_v1  ;;  %v519_v4 = vld [vmem:[#allocation2 + $0x146] sm:$0x1]  ;;  %v533_v5 = vld [vmem:[#allocation2 + $0x147] sm:$0x1] }
  0x71   : > { %v520_v6 = vld [vmem:[#allocation2 + $0x166] sm:$0x1]  ;;  %558 = vst [vmem:[%s1348_s15 + $0x73] sm:$0x1] %v544_v62  ;;  %v547_v7 = vmax.f32 %v519_v4, %v533_v5  ;;  %v534_v8 = vld [vmem:[#allocation2 + $0x167] sm:$0x1] }
  0x72   : > { %v521_v9 = vld [vmem:[#allocation2 + $0x186] sm:$0x1]  ;;  %v535_v10 = vld [vmem:[#allocation2 + $0x187] sm:$0x1]  ;;  %559 = vst [vmem:[%s1348_s15 + $0x83] sm:$0x1] %v545_v2  ;;  %v548_v11 = vmax.f32 %v520_v6, %v534_v8 }
  0x73   : > { %560 = vst [vmem:[%s1348_s15 + $0x93] sm:$0x1] %v546_v3  ;;  %v549_v12 = vmax.f32 %v521_v9, %v535_v10  ;;  %v522_v13 = vld [vmem:[#allocation2 + $0x1a6] sm:$0x1]  ;;  %v536_v14 = vld [vmem:[#allocation2 + $0x1a7] sm:$0x1] }
  0x74   : > { %v565_v15 = vld [vmem:[#allocation2 + $0x8] sm:$0x1]  ;;  %561 = vst [vmem:[%s1348_s15 + $0xa3] sm:$0x1] %v547_v7  ;;  %v550_v16 = vmax.f32 %v522_v13, %v536_v14  ;;  %v579_v17 = vld [vmem:[#allocation2 + $0x9] sm:$0x1] }
  0x75   : > { %v566_v18 = vld [vmem:[#allocation2 + $0x28] sm:$0x1]  ;;  %v580_v19 = vld [vmem:[#allocation2 + $0x29] sm:$0x1]  ;;  %562 = vst [vmem:[%s1348_s15 + $0xb3] sm:$0x1] %v548_v11  ;;  %v593_v20 = vmax.f32 %v565_v15, %v579_v17 }
  0x76   : > { %563 = vst [vmem:[%s1348_s15 + $0xc3] sm:$0x1] %v549_v12  ;;  %v594_v21 = vmax.f32 %v566_v18, %v580_v19  ;;  %v567_v22 = vld [vmem:[#allocation2 + $0x48] sm:$0x1]  ;;  %v581_v23 = vld [vmem:[#allocation2 + $0x49] sm:$0x1] }
  0x77   : > { %v568_v24 = vld [vmem:[#allocation2 + $0x68] sm:$0x1]  ;;  %564 = vst [vmem:[%s1348_s15 + $0xd3] sm:$0x1] %v550_v16  ;;  %v595_v25 = vmax.f32 %v567_v22, %v581_v23  ;;  %v582_v26 = vld [vmem:[#allocation2 + $0x69] sm:$0x1] }
  0x78   : > { %v569_v27 = vld [vmem:[#allocation2 + $0x88] sm:$0x1]  ;;  %v583_v28 = vld [vmem:[#allocation2 + $0x89] sm:$0x1]  ;;  %607 = vst [vmem:[%s1348_s15 + $0x4] sm:$0x1] %v593_v20  ;;  %v596_v29 = vmax.f32 %v568_v24, %v582_v26 }
  0x79   : > { %608 = vst [vmem:[%s1348_s15 + $0x14] sm:$0x1] %v594_v21  ;;  %v597_v30 = vmax.f32 %v569_v27, %v583_v28  ;;  %v570_v31 = vld [vmem:[#allocation2 + $0xa8] sm:$0x1]  ;;  %v584_v32 = vld [vmem:[#allocation2 + $0xa9] sm:$0x1] }
  0x7a   : > { %v571_v33 = vld [vmem:[#allocation2 + $0xc8] sm:$0x1]  ;;  %609 = vst [vmem:[%s1348_s15 + $0x24] sm:$0x1] %v595_v25  ;;  %v598_v34 = vmax.f32 %v570_v31, %v584_v32  ;;  %v585_v35 = vld [vmem:[#allocation2 + $0xc9] sm:$0x1] }
  0x7b   : > { %v572_v36 = vld [vmem:[#allocation2 + $0xe8] sm:$0x1]  ;;  %v586_v37 = vld [vmem:[#allocation2 + $0xe9] sm:$0x1]  ;;  %610 = vst [vmem:[%s1348_s15 + $0x34] sm:$0x1] %v596_v29  ;;  %v599_v38 = vmax.f32 %v571_v33, %v585_v35 }
  0x7c   : > { %611 = vst [vmem:[%s1348_s15 + $0x44] sm:$0x1] %v597_v30  ;;  %v600_v39 = vmax.f32 %v572_v36, %v586_v37  ;;  %v573_v40 = vld [vmem:[#allocation2 + $0x108] sm:$0x1]  ;;  %v587_v41 = vld [vmem:[#allocation2 + $0x109] sm:$0x1] }
  0x7d   : > { %v574_v42 = vld [vmem:[#allocation2 + $0x128] sm:$0x1]  ;;  %612 = vst [vmem:[%s1348_s15 + $0x54] sm:$0x1] %v598_v34  ;;  %v601_v43 = vmax.f32 %v573_v40, %v587_v41  ;;  %v588_v44 = vld [vmem:[#allocation2 + $0x129] sm:$0x1] }
  0x7e   : > { %v575_v45 = vld [vmem:[#allocation2 + $0x148] sm:$0x1]  ;;  %v589_v46 = vld [vmem:[#allocation2 + $0x149] sm:$0x1]  ;;  %613 = vst [vmem:[%s1348_s15 + $0x64] sm:$0x1] %v599_v38  ;;  %v602_v47 = vmax.f32 %v574_v42, %v588_v44 }
  0x7f   : > { %614 = vst [vmem:[%s1348_s15 + $0x74] sm:$0x1] %v600_v39  ;;  %v603_v48 = vmax.f32 %v575_v45, %v589_v46  ;;  %v576_v49 = vld [vmem:[#allocation2 + $0x168] sm:$0x1]  ;;  %v590_v50 = vld [vmem:[#allocation2 + $0x169] sm:$0x1] }
  0x80   : > { %v577_v51 = vld [vmem:[#allocation2 + $0x188] sm:$0x1]  ;;  %615 = vst [vmem:[%s1348_s15 + $0x84] sm:$0x1] %v601_v43  ;;  %v604_v52 = vmax.f32 %v576_v49, %v590_v50  ;;  %v591_v53 = vld [vmem:[#allocation2 + $0x189] sm:$0x1] }
  0x81   : > { %v578_v54 = vld [vmem:[#allocation2 + $0x1a8] sm:$0x1]  ;;  %v592_v55 = vld [vmem:[#allocation2 + $0x1a9] sm:$0x1]  ;;  %616 = vst [vmem:[%s1348_s15 + $0x94] sm:$0x1] %v602_v47  ;;  %v605_v56 = vmax.f32 %v577_v51, %v591_v53 }
  0x82   : > { %617 = vst [vmem:[%s1348_s15 + $0xa4] sm:$0x1] %v603_v48  ;;  %v606_v57 = vmax.f32 %v578_v54, %v592_v55  ;;  %v621_v58 = vld [vmem:[#allocation2 + $0xa] sm:$0x1]  ;;  %v635_v59 = vld [vmem:[#allocation2 + $0xb] sm:$0x1] }
  0x83   : > { %v622_v60 = vld [vmem:[#allocation2 + $0x2a] sm:$0x1]  ;;  %618 = vst [vmem:[%s1348_s15 + $0xb4] sm:$0x1] %v604_v52  ;;  %v649_v61 = vmax.f32 %v621_v58, %v635_v59  ;;  %v636_v62 = vld [vmem:[#allocation2 + $0x2b] sm:$0x1] }
  0x84   : > { %v623_v63 = vld [vmem:[#allocation2 + $0x4a] sm:$0x1]  ;;  %v637_v0 = vld [vmem:[#allocation2 + $0x4b] sm:$0x1]  ;;  %619 = vst [vmem:[%s1348_s15 + $0xc4] sm:$0x1] %v605_v56  ;;  %v650_v1 = vmax.f32 %v622_v60, %v636_v62 }
  0x85   : > { %620 = vst [vmem:[%s1348_s15 + $0xd4] sm:$0x1] %v606_v57  ;;  %v651_v2 = vmax.f32 %v623_v63, %v637_v0  ;;  %v624_v3 = vld [vmem:[#allocation2 + $0x6a] sm:$0x1]  ;;  %v638_v4 = vld [vmem:[#allocation2 + $0x6b] sm:$0x1] }
  0x86   : > { %v625_v5 = vld [vmem:[#allocation2 + $0x8a] sm:$0x1]  ;;  %663 = vst [vmem:[%s1348_s15 + $0x5] sm:$0x1] %v649_v61  ;;  %v652_v6 = vmax.f32 %v624_v3, %v638_v4  ;;  %v639_v7 = vld [vmem:[#allocation2 + $0x8b] sm:$0x1] }
  0x87   : > { %v626_v8 = vld [vmem:[#allocation2 + $0xaa] sm:$0x1]  ;;  %v640_v9 = vld [vmem:[#allocation2 + $0xab] sm:$0x1]  ;;  %664 = vst [vmem:[%s1348_s15 + $0x15] sm:$0x1] %v650_v1  ;;  %v653_v10 = vmax.f32 %v625_v5, %v639_v7 }
  0x88   : > { %665 = vst [vmem:[%s1348_s15 + $0x25] sm:$0x1] %v651_v2  ;;  %v654_v11 = vmax.f32 %v626_v8, %v640_v9  ;;  %v627_v12 = vld [vmem:[#allocation2 + $0xca] sm:$0x1]  ;;  %v641_v13 = vld [vmem:[#allocation2 + $0xcb] sm:$0x1] }
  0x89   : > { %v628_v14 = vld [vmem:[#allocation2 + $0xea] sm:$0x1]  ;;  %666 = vst [vmem:[%s1348_s15 + $0x35] sm:$0x1] %v652_v6  ;;  %v655_v15 = vmax.f32 %v627_v12, %v641_v13  ;;  %v642_v16 = vld [vmem:[#allocation2 + $0xeb] sm:$0x1] }
  0x8a   : > { %v629_v17 = vld [vmem:[#allocation2 + $0x10a] sm:$0x1]  ;;  %v643_v18 = vld [vmem:[#allocation2 + $0x10b] sm:$0x1]  ;;  %667 = vst [vmem:[%s1348_s15 + $0x45] sm:$0x1] %v653_v10  ;;  %v656_v19 = vmax.f32 %v628_v14, %v642_v16 }
  0x8b   : > { %668 = vst [vmem:[%s1348_s15 + $0x55] sm:$0x1] %v654_v11  ;;  %v657_v20 = vmax.f32 %v629_v17, %v643_v18  ;;  %v630_v21 = vld [vmem:[#allocation2 + $0x12a] sm:$0x1]  ;;  %v644_v22 = vld [vmem:[#allocation2 + $0x12b] sm:$0x1] }
  0x8c   : > { %v631_v23 = vld [vmem:[#allocation2 + $0x14a] sm:$0x1]  ;;  %669 = vst [vmem:[%s1348_s15 + $0x65] sm:$0x1] %v655_v15  ;;  %v658_v24 = vmax.f32 %v630_v21, %v644_v22  ;;  %v645_v25 = vld [vmem:[#allocation2 + $0x14b] sm:$0x1] }
  0x8d   : > { %v632_v26 = vld [vmem:[#allocation2 + $0x16a] sm:$0x1]  ;;  %v646_v27 = vld [vmem:[#allocation2 + $0x16b] sm:$0x1]  ;;  %670 = vst [vmem:[%s1348_s15 + $0x75] sm:$0x1] %v656_v19  ;;  %v659_v28 = vmax.f32 %v631_v23, %v645_v25 }
  0x8e   : > { %671 = vst [vmem:[%s1348_s15 + $0x85] sm:$0x1] %v657_v20  ;;  %v660_v29 = vmax.f32 %v632_v26, %v646_v27  ;;  %v633_v30 = vld [vmem:[#allocation2 + $0x18a] sm:$0x1]  ;;  %v647_v31 = vld [vmem:[#allocation2 + $0x18b] sm:$0x1] }
  0x8f   : > { %v634_v32 = vld [vmem:[#allocation2 + $0x1aa] sm:$0x1]  ;;  %672 = vst [vmem:[%s1348_s15 + $0x95] sm:$0x1] %v658_v24  ;;  %v661_v33 = vmax.f32 %v633_v30, %v647_v31  ;;  %v648_v34 = vld [vmem:[#allocation2 + $0x1ab] sm:$0x1] }
  0x90   : > { %v677_v35 = vld [vmem:[#allocation2 + $0xc] sm:$0x1]  ;;  %v691_v36 = vld [vmem:[#allocation2 + $0xd] sm:$0x1]  ;;  %673 = vst [vmem:[%s1348_s15 + $0xa5] sm:$0x1] %v659_v28  ;;  %v662_v37 = vmax.f32 %v634_v32, %v648_v34 }
  0x91   : > { %674 = vst [vmem:[%s1348_s15 + $0xb5] sm:$0x1] %v660_v29  ;;  %v705_v38 = vmax.f32 %v677_v35, %v691_v36  ;;  %v678_v39 = vld [vmem:[#allocation2 + $0x2c] sm:$0x1]  ;;  %v692_v40 = vld [vmem:[#allocation2 + $0x2d] sm:$0x1] }
  0x92   : > { %v679_v41 = vld [vmem:[#allocation2 + $0x4c] sm:$0x1]  ;;  %675 = vst [vmem:[%s1348_s15 + $0xc5] sm:$0x1] %v661_v33  ;;  %v706_v42 = vmax.f32 %v678_v39, %v692_v40  ;;  %v693_v43 = vld [vmem:[#allocation2 + $0x4d] sm:$0x1] }
  0x93   : > { %v680_v44 = vld [vmem:[#allocation2 + $0x6c] sm:$0x1]  ;;  %v694_v45 = vld [vmem:[#allocation2 + $0x6d] sm:$0x1]  ;;  %676 = vst [vmem:[%s1348_s15 + $0xd5] sm:$0x1] %v662_v37  ;;  %v707_v46 = vmax.f32 %v679_v41, %v693_v43 }
  0x94   : > { %719 = vst [vmem:[%s1348_s15 + $0x6] sm:$0x1] %v705_v38  ;;  %v708_v47 = vmax.f32 %v680_v44, %v694_v45  ;;  %v681_v48 = vld [vmem:[#allocation2 + $0x8c] sm:$0x1]  ;;  %v695_v49 = vld [vmem:[#allocation2 + $0x8d] sm:$0x1] }
  0x95   : > { %v682_v50 = vld [vmem:[#allocation2 + $0xac] sm:$0x1]  ;;  %720 = vst [vmem:[%s1348_s15 + $0x16] sm:$0x1] %v706_v42  ;;  %v709_v51 = vmax.f32 %v681_v48, %v695_v49  ;;  %v696_v52 = vld [vmem:[#allocation2 + $0xad] sm:$0x1] }
  0x96   : > { %v683_v53 = vld [vmem:[#allocation2 + $0xcc] sm:$0x1]  ;;  %v697_v54 = vld [vmem:[#allocation2 + $0xcd] sm:$0x1]  ;;  %721 = vst [vmem:[%s1348_s15 + $0x26] sm:$0x1] %v707_v46  ;;  %v710_v55 = vmax.f32 %v682_v50, %v696_v52 }
  0x97   : > { %722 = vst [vmem:[%s1348_s15 + $0x36] sm:$0x1] %v708_v47  ;;  %v711_v56 = vmax.f32 %v683_v53, %v697_v54  ;;  %v684_v57 = vld [vmem:[#allocation2 + $0xec] sm:$0x1]  ;;  %v698_v58 = vld [vmem:[#allocation2 + $0xed] sm:$0x1] }
  0x98   : > { %v685_v59 = vld [vmem:[#allocation2 + $0x10c] sm:$0x1]  ;;  %723 = vst [vmem:[%s1348_s15 + $0x46] sm:$0x1] %v709_v51  ;;  %v712_v60 = vmax.f32 %v684_v57, %v698_v58  ;;  %v699_v61 = vld [vmem:[#allocation2 + $0x10d] sm:$0x1] }
  0x99   : > { %v686_v62 = vld [vmem:[#allocation2 + $0x12c] sm:$0x1]  ;;  %v700_v63 = vld [vmem:[#allocation2 + $0x12d] sm:$0x1]  ;;  %724 = vst [vmem:[%s1348_s15 + $0x56] sm:$0x1] %v710_v55  ;;  %v713_v0 = vmax.f32 %v685_v59, %v699_v61 }
  0x9a   : > { %725 = vst [vmem:[%s1348_s15 + $0x66] sm:$0x1] %v711_v56  ;;  %v714_v1 = vmax.f32 %v686_v62, %v700_v63  ;;  %v687_v2 = vld [vmem:[#allocation2 + $0x14c] sm:$0x1]  ;;  %v701_v3 = vld [vmem:[#allocation2 + $0x14d] sm:$0x1] }
  0x9b   : > { %v688_v4 = vld [vmem:[#allocation2 + $0x16c] sm:$0x1]  ;;  %726 = vst [vmem:[%s1348_s15 + $0x76] sm:$0x1] %v712_v60  ;;  %v715_v5 = vmax.f32 %v687_v2, %v701_v3  ;;  %v702_v6 = vld [vmem:[#allocation2 + $0x16d] sm:$0x1] }
  0x9c   : > { %v689_v7 = vld [vmem:[#allocation2 + $0x18c] sm:$0x1]  ;;  %v703_v8 = vld [vmem:[#allocation2 + $0x18d] sm:$0x1]  ;;  %727 = vst [vmem:[%s1348_s15 + $0x86] sm:$0x1] %v713_v0  ;;  %v716_v9 = vmax.f32 %v688_v4, %v702_v6 }
  0x9d   : > { %728 = vst [vmem:[%s1348_s15 + $0x96] sm:$0x1] %v714_v1  ;;  %v717_v10 = vmax.f32 %v689_v7, %v703_v8  ;;  %v690_v11 = vld [vmem:[#allocation2 + $0x1ac] sm:$0x1]  ;;  %v704_v12 = vld [vmem:[#allocation2 + $0x1ad] sm:$0x1] }
  0x9e   : > { %v733_v13 = vld [vmem:[#allocation2 + $0xe] sm:$0x1]  ;;  %729 = vst [vmem:[%s1348_s15 + $0xa6] sm:$0x1] %v715_v5  ;;  %v718_v14 = vmax.f32 %v690_v11, %v704_v12  ;;  %v747_v15 = vld [vmem:[#allocation2 + $0xf] sm:$0x1] }
  0x9f   : > { %v734_v16 = vld [vmem:[#allocation2 + $0x2e] sm:$0x1]  ;;  %v748_v17 = vld [vmem:[#allocation2 + $0x2f] sm:$0x1]  ;;  %730 = vst [vmem:[%s1348_s15 + $0xb6] sm:$0x1] %v716_v9  ;;  %v761_v18 = vmax.f32 %v733_v13, %v747_v15 }
  0xa0   : > { %731 = vst [vmem:[%s1348_s15 + $0xc6] sm:$0x1] %v717_v10  ;;  %v762_v19 = vmax.f32 %v734_v16, %v748_v17  ;;  %v735_v20 = vld [vmem:[#allocation2 + $0x4e] sm:$0x1]  ;;  %v749_v21 = vld [vmem:[#allocation2 + $0x4f] sm:$0x1] }
  0xa1   : > { %v736_v22 = vld [vmem:[#allocation2 + $0x6e] sm:$0x1]  ;;  %732 = vst [vmem:[%s1348_s15 + $0xd6] sm:$0x1] %v718_v14  ;;  %v763_v23 = vmax.f32 %v735_v20, %v749_v21  ;;  %v750_v24 = vld [vmem:[#allocation2 + $0x6f] sm:$0x1] }
  0xa2   : > { %v737_v25 = vld [vmem:[#allocation2 + $0x8e] sm:$0x1]  ;;  %v751_v26 = vld [vmem:[#allocation2 + $0x8f] sm:$0x1]  ;;  %775 = vst [vmem:[%s1348_s15 + $0x7] sm:$0x1] %v761_v18  ;;  %v764_v27 = vmax.f32 %v736_v22, %v750_v24 }
  0xa3   : > { %776 = vst [vmem:[%s1348_s15 + $0x17] sm:$0x1] %v762_v19  ;;  %v765_v28 = vmax.f32 %v737_v25, %v751_v26  ;;  %v738_v29 = vld [vmem:[#allocation2 + $0xae] sm:$0x1]  ;;  %v752_v30 = vld [vmem:[#allocation2 + $0xaf] sm:$0x1] }
  0xa4   : > { %v739_v31 = vld [vmem:[#allocation2 + $0xce] sm:$0x1]  ;;  %777 = vst [vmem:[%s1348_s15 + $0x27] sm:$0x1] %v763_v23  ;;  %v766_v32 = vmax.f32 %v738_v29, %v752_v30  ;;  %v753_v33 = vld [vmem:[#allocation2 + $0xcf] sm:$0x1] }
  0xa5   : > { %v740_v34 = vld [vmem:[#allocation2 + $0xee] sm:$0x1]  ;;  %v754_v35 = vld [vmem:[#allocation2 + $0xef] sm:$0x1]  ;;  %778 = vst [vmem:[%s1348_s15 + $0x37] sm:$0x1] %v764_v27  ;;  %v767_v36 = vmax.f32 %v739_v31, %v753_v33 }
  0xa6   : > { %779 = vst [vmem:[%s1348_s15 + $0x47] sm:$0x1] %v765_v28  ;;  %v768_v37 = vmax.f32 %v740_v34, %v754_v35  ;;  %v741_v38 = vld [vmem:[#allocation2 + $0x10e] sm:$0x1]  ;;  %v755_v39 = vld [vmem:[#allocation2 + $0x10f] sm:$0x1] }
  0xa7   : > { %v742_v40 = vld [vmem:[#allocation2 + $0x12e] sm:$0x1]  ;;  %780 = vst [vmem:[%s1348_s15 + $0x57] sm:$0x1] %v766_v32  ;;  %v769_v41 = vmax.f32 %v741_v38, %v755_v39  ;;  %v756_v42 = vld [vmem:[#allocation2 + $0x12f] sm:$0x1] }
  0xa8   : > { %v743_v43 = vld [vmem:[#allocation2 + $0x14e] sm:$0x1]  ;;  %v757_v44 = vld [vmem:[#allocation2 + $0x14f] sm:$0x1]  ;;  %781 = vst [vmem:[%s1348_s15 + $0x67] sm:$0x1] %v767_v36  ;;  %v770_v45 = vmax.f32 %v742_v40, %v756_v42 }
  0xa9   : > { %782 = vst [vmem:[%s1348_s15 + $0x77] sm:$0x1] %v768_v37  ;;  %v771_v46 = vmax.f32 %v743_v43, %v757_v44  ;;  %v744_v47 = vld [vmem:[#allocation2 + $0x16e] sm:$0x1]  ;;  %v758_v48 = vld [vmem:[#allocation2 + $0x16f] sm:$0x1] }
  0xaa   : > { %v745_v49 = vld [vmem:[#allocation2 + $0x18e] sm:$0x1]  ;;  %783 = vst [vmem:[%s1348_s15 + $0x87] sm:$0x1] %v769_v41  ;;  %v772_v50 = vmax.f32 %v744_v47, %v758_v48  ;;  %v759_v51 = vld [vmem:[#allocation2 + $0x18f] sm:$0x1] }
  0xab   : > { %v746_v52 = vld [vmem:[#allocation2 + $0x1ae] sm:$0x1]  ;;  %v760_v53 = vld [vmem:[#allocation2 + $0x1af] sm:$0x1]  ;;  %784 = vst [vmem:[%s1348_s15 + $0x97] sm:$0x1] %v770_v45  ;;  %v773_v54 = vmax.f32 %v745_v49, %v759_v51 }
  0xac   : > { %785 = vst [vmem:[%s1348_s15 + $0xa7] sm:$0x1] %v771_v46  ;;  %v774_v55 = vmax.f32 %v746_v52, %v760_v53  ;;  %v789_v56 = vld [vmem:[#allocation2 + $0x10] sm:$0x1]  ;;  %v803_v57 = vld [vmem:[#allocation2 + $0x11] sm:$0x1] }
  0xad   : > { %v790_v58 = vld [vmem:[#allocation2 + $0x30] sm:$0x1]  ;;  %786 = vst [vmem:[%s1348_s15 + $0xb7] sm:$0x1] %v772_v50  ;;  %v817_v59 = vmax.f32 %v789_v56, %v803_v57  ;;  %v804_v60 = vld [vmem:[#allocation2 + $0x31] sm:$0x1] }
  0xae   : > { %v791_v61 = vld [vmem:[#allocation2 + $0x50] sm:$0x1]  ;;  %v805_v62 = vld [vmem:[#allocation2 + $0x51] sm:$0x1]  ;;  %787 = vst [vmem:[%s1348_s15 + $0xc7] sm:$0x1] %v773_v54  ;;  %v818_v63 = vmax.f32 %v790_v58, %v804_v60 }
  0xaf   : > { %788 = vst [vmem:[%s1348_s15 + $0xd7] sm:$0x1] %v774_v55  ;;  %v819_v0 = vmax.f32 %v791_v61, %v805_v62  ;;  %v792_v1 = vld [vmem:[#allocation2 + $0x70] sm:$0x1]  ;;  %v806_v2 = vld [vmem:[#allocation2 + $0x71] sm:$0x1] }
  0xb0   : > { %v793_v3 = vld [vmem:[#allocation2 + $0x90] sm:$0x1]  ;;  %831 = vst [vmem:[%s1348_s15 + $0x8] sm:$0x1] %v817_v59  ;;  %v820_v4 = vmax.f32 %v792_v1, %v806_v2  ;;  %v807_v5 = vld [vmem:[#allocation2 + $0x91] sm:$0x1] }
  0xb1   : > { %v794_v6 = vld [vmem:[#allocation2 + $0xb0] sm:$0x1]  ;;  %v808_v7 = vld [vmem:[#allocation2 + $0xb1] sm:$0x1]  ;;  %832 = vst [vmem:[%s1348_s15 + $0x18] sm:$0x1] %v818_v63  ;;  %v821_v8 = vmax.f32 %v793_v3, %v807_v5 }
  0xb2   : > { %833 = vst [vmem:[%s1348_s15 + $0x28] sm:$0x1] %v819_v0  ;;  %v822_v9 = vmax.f32 %v794_v6, %v808_v7  ;;  %v795_v10 = vld [vmem:[#allocation2 + $0xd0] sm:$0x1]  ;;  %v809_v11 = vld [vmem:[#allocation2 + $0xd1] sm:$0x1] }
  0xb3   : > { %v796_v12 = vld [vmem:[#allocation2 + $0xf0] sm:$0x1]  ;;  %834 = vst [vmem:[%s1348_s15 + $0x38] sm:$0x1] %v820_v4  ;;  %v823_v13 = vmax.f32 %v795_v10, %v809_v11  ;;  %v810_v14 = vld [vmem:[#allocation2 + $0xf1] sm:$0x1] }
  0xb4   : > { %v797_v15 = vld [vmem:[#allocation2 + $0x110] sm:$0x1]  ;;  %v811_v16 = vld [vmem:[#allocation2 + $0x111] sm:$0x1]  ;;  %835 = vst [vmem:[%s1348_s15 + $0x48] sm:$0x1] %v821_v8  ;;  %v824_v17 = vmax.f32 %v796_v12, %v810_v14 }
  0xb5   : > { %836 = vst [vmem:[%s1348_s15 + $0x58] sm:$0x1] %v822_v9  ;;  %v825_v18 = vmax.f32 %v797_v15, %v811_v16  ;;  %v798_v19 = vld [vmem:[#allocation2 + $0x130] sm:$0x1]  ;;  %v812_v20 = vld [vmem:[#allocation2 + $0x131] sm:$0x1] }
  0xb6   : > { %v799_v21 = vld [vmem:[#allocation2 + $0x150] sm:$0x1]  ;;  %837 = vst [vmem:[%s1348_s15 + $0x68] sm:$0x1] %v823_v13  ;;  %v826_v22 = vmax.f32 %v798_v19, %v812_v20  ;;  %v813_v23 = vld [vmem:[#allocation2 + $0x151] sm:$0x1] }
  0xb7   : > { %v800_v24 = vld [vmem:[#allocation2 + $0x170] sm:$0x1]  ;;  %v814_v25 = vld [vmem:[#allocation2 + $0x171] sm:$0x1]  ;;  %838 = vst [vmem:[%s1348_s15 + $0x78] sm:$0x1] %v824_v17  ;;  %v827_v26 = vmax.f32 %v799_v21, %v813_v23 }
  0xb8   : > { %839 = vst [vmem:[%s1348_s15 + $0x88] sm:$0x1] %v825_v18  ;;  %v828_v27 = vmax.f32 %v800_v24, %v814_v25  ;;  %v801_v28 = vld [vmem:[#allocation2 + $0x190] sm:$0x1]  ;;  %v815_v29 = vld [vmem:[#allocation2 + $0x191] sm:$0x1] }
  0xb9   : > { %v802_v30 = vld [vmem:[#allocation2 + $0x1b0] sm:$0x1]  ;;  %840 = vst [vmem:[%s1348_s15 + $0x98] sm:$0x1] %v826_v22  ;;  %v829_v31 = vmax.f32 %v801_v28, %v815_v29  ;;  %v816_v32 = vld [vmem:[#allocation2 + $0x1b1] sm:$0x1] }
  0xba   : > { %v845_v33 = vld [vmem:[#allocation2 + $0x12] sm:$0x1]  ;;  %v859_v34 = vld [vmem:[#allocation2 + $0x13] sm:$0x1]  ;;  %841 = vst [vmem:[%s1348_s15 + $0xa8] sm:$0x1] %v827_v26  ;;  %v830_v35 = vmax.f32 %v802_v30, %v816_v32 }
  0xbb   : > { %842 = vst [vmem:[%s1348_s15 + $0xb8] sm:$0x1] %v828_v27  ;;  %v873_v36 = vmax.f32 %v845_v33, %v859_v34  ;;  %v846_v37 = vld [vmem:[#allocation2 + $0x32] sm:$0x1]  ;;  %v860_v38 = vld [vmem:[#allocation2 + $0x33] sm:$0x1] }
  0xbc   : > { %v847_v39 = vld [vmem:[#allocation2 + $0x52] sm:$0x1]  ;;  %843 = vst [vmem:[%s1348_s15 + $0xc8] sm:$0x1] %v829_v31  ;;  %v874_v40 = vmax.f32 %v846_v37, %v860_v38  ;;  %v861_v41 = vld [vmem:[#allocation2 + $0x53] sm:$0x1] }
  0xbd   : > { %v848_v42 = vld [vmem:[#allocation2 + $0x72] sm:$0x1]  ;;  %v862_v43 = vld [vmem:[#allocation2 + $0x73] sm:$0x1]  ;;  %844 = vst [vmem:[%s1348_s15 + $0xd8] sm:$0x1] %v830_v35  ;;  %v875_v44 = vmax.f32 %v847_v39, %v861_v41 }
  0xbe   : > { %887 = vst [vmem:[%s1348_s15 + $0x9] sm:$0x1] %v873_v36  ;;  %v876_v45 = vmax.f32 %v848_v42, %v862_v43  ;;  %v849_v46 = vld [vmem:[#allocation2 + $0x92] sm:$0x1]  ;;  %v863_v47 = vld [vmem:[#allocation2 + $0x93] sm:$0x1] }
  0xbf   : > { %v850_v48 = vld [vmem:[#allocation2 + $0xb2] sm:$0x1]  ;;  %888 = vst [vmem:[%s1348_s15 + $0x19] sm:$0x1] %v874_v40  ;;  %v877_v49 = vmax.f32 %v849_v46, %v863_v47  ;;  %v864_v50 = vld [vmem:[#allocation2 + $0xb3] sm:$0x1] }
  0xc0   : > { %v851_v51 = vld [vmem:[#allocation2 + $0xd2] sm:$0x1]  ;;  %v865_v52 = vld [vmem:[#allocation2 + $0xd3] sm:$0x1]  ;;  %889 = vst [vmem:[%s1348_s15 + $0x29] sm:$0x1] %v875_v44  ;;  %v878_v53 = vmax.f32 %v850_v48, %v864_v50 }
  0xc1   : > { %890 = vst [vmem:[%s1348_s15 + $0x39] sm:$0x1] %v876_v45  ;;  %v879_v54 = vmax.f32 %v851_v51, %v865_v52  ;;  %v852_v55 = vld [vmem:[#allocation2 + $0xf2] sm:$0x1]  ;;  %v866_v56 = vld [vmem:[#allocation2 + $0xf3] sm:$0x1] }
  0xc2   : > { %v853_v57 = vld [vmem:[#allocation2 + $0x112] sm:$0x1]  ;;  %891 = vst [vmem:[%s1348_s15 + $0x49] sm:$0x1] %v877_v49  ;;  %v880_v58 = vmax.f32 %v852_v55, %v866_v56  ;;  %v867_v59 = vld [vmem:[#allocation2 + $0x113] sm:$0x1] }
  0xc3   : > { %v854_v60 = vld [vmem:[#allocation2 + $0x132] sm:$0x1]  ;;  %v868_v61 = vld [vmem:[#allocation2 + $0x133] sm:$0x1]  ;;  %892 = vst [vmem:[%s1348_s15 + $0x59] sm:$0x1] %v878_v53  ;;  %v881_v62 = vmax.f32 %v853_v57, %v867_v59 }
  0xc4   : > { %893 = vst [vmem:[%s1348_s15 + $0x69] sm:$0x1] %v879_v54  ;;  %v882_v63 = vmax.f32 %v854_v60, %v868_v61  ;;  %v855_v0 = vld [vmem:[#allocation2 + $0x152] sm:$0x1]  ;;  %v869_v1 = vld [vmem:[#allocation2 + $0x153] sm:$0x1] }
  0xc5   : > { %v856_v2 = vld [vmem:[#allocation2 + $0x172] sm:$0x1]  ;;  %894 = vst [vmem:[%s1348_s15 + $0x79] sm:$0x1] %v880_v58  ;;  %v883_v3 = vmax.f32 %v855_v0, %v869_v1  ;;  %v870_v4 = vld [vmem:[#allocation2 + $0x173] sm:$0x1] }
  0xc6   : > { %v857_v5 = vld [vmem:[#allocation2 + $0x192] sm:$0x1]  ;;  %v871_v6 = vld [vmem:[#allocation2 + $0x193] sm:$0x1]  ;;  %895 = vst [vmem:[%s1348_s15 + $0x89] sm:$0x1] %v881_v62  ;;  %v884_v7 = vmax.f32 %v856_v2, %v870_v4 }
  0xc7   : > { %896 = vst [vmem:[%s1348_s15 + $0x99] sm:$0x1] %v882_v63  ;;  %v885_v8 = vmax.f32 %v857_v5, %v871_v6  ;;  %v858_v9 = vld [vmem:[#allocation2 + $0x1b2] sm:$0x1]  ;;  %v872_v10 = vld [vmem:[#allocation2 + $0x1b3] sm:$0x1] }
  0xc8   : > { %v901_v11 = vld [vmem:[#allocation2 + $0x14] sm:$0x1]  ;;  %897 = vst [vmem:[%s1348_s15 + $0xa9] sm:$0x1] %v883_v3  ;;  %v886_v12 = vmax.f32 %v858_v9, %v872_v10  ;;  %v915_v13 = vld [vmem:[#allocation2 + $0x15] sm:$0x1] }
  0xc9   : > { %v902_v14 = vld [vmem:[#allocation2 + $0x34] sm:$0x1]  ;;  %v916_v15 = vld [vmem:[#allocation2 + $0x35] sm:$0x1]  ;;  %898 = vst [vmem:[%s1348_s15 + $0xb9] sm:$0x1] %v884_v7  ;;  %v929_v16 = vmax.f32 %v901_v11, %v915_v13 }
  0xca   : > { %899 = vst [vmem:[%s1348_s15 + $0xc9] sm:$0x1] %v885_v8  ;;  %v930_v17 = vmax.f32 %v902_v14, %v916_v15  ;;  %v903_v18 = vld [vmem:[#allocation2 + $0x54] sm:$0x1]  ;;  %v917_v19 = vld [vmem:[#allocation2 + $0x55] sm:$0x1] }
  0xcb   : > { %v904_v20 = vld [vmem:[#allocation2 + $0x74] sm:$0x1]  ;;  %900 = vst [vmem:[%s1348_s15 + $0xd9] sm:$0x1] %v886_v12  ;;  %v931_v21 = vmax.f32 %v903_v18, %v917_v19  ;;  %v918_v22 = vld [vmem:[#allocation2 + $0x75] sm:$0x1] }
  0xcc   : > { %v905_v23 = vld [vmem:[#allocation2 + $0x94] sm:$0x1]  ;;  %v919_v24 = vld [vmem:[#allocation2 + $0x95] sm:$0x1]  ;;  %943 = vst [vmem:[%s1348_s15 + $0xa] sm:$0x1] %v929_v16  ;;  %v932_v25 = vmax.f32 %v904_v20, %v918_v22 }
  0xcd   : > { %944 = vst [vmem:[%s1348_s15 + $0x1a] sm:$0x1] %v930_v17  ;;  %v933_v26 = vmax.f32 %v905_v23, %v919_v24  ;;  %v906_v27 = vld [vmem:[#allocation2 + $0xb4] sm:$0x1]  ;;  %v920_v28 = vld [vmem:[#allocation2 + $0xb5] sm:$0x1] }
  0xce   : > { %v907_v29 = vld [vmem:[#allocation2 + $0xd4] sm:$0x1]  ;;  %945 = vst [vmem:[%s1348_s15 + $0x2a] sm:$0x1] %v931_v21  ;;  %v934_v30 = vmax.f32 %v906_v27, %v920_v28  ;;  %v921_v31 = vld [vmem:[#allocation2 + $0xd5] sm:$0x1] }
  0xcf   : > { %v908_v32 = vld [vmem:[#allocation2 + $0xf4] sm:$0x1]  ;;  %v922_v33 = vld [vmem:[#allocation2 + $0xf5] sm:$0x1]  ;;  %946 = vst [vmem:[%s1348_s15 + $0x3a] sm:$0x1] %v932_v25  ;;  %v935_v34 = vmax.f32 %v907_v29, %v921_v31 }
  0xd0   : > { %947 = vst [vmem:[%s1348_s15 + $0x4a] sm:$0x1] %v933_v26  ;;  %v936_v35 = vmax.f32 %v908_v32, %v922_v33  ;;  %v909_v36 = vld [vmem:[#allocation2 + $0x114] sm:$0x1]  ;;  %v923_v37 = vld [vmem:[#allocation2 + $0x115] sm:$0x1] }
  0xd1   : > { %v910_v38 = vld [vmem:[#allocation2 + $0x134] sm:$0x1]  ;;  %948 = vst [vmem:[%s1348_s15 + $0x5a] sm:$0x1] %v934_v30  ;;  %v937_v39 = vmax.f32 %v909_v36, %v923_v37  ;;  %v924_v40 = vld [vmem:[#allocation2 + $0x135] sm:$0x1] }
  0xd2   : > { %v911_v41 = vld [vmem:[#allocation2 + $0x154] sm:$0x1]  ;;  %v925_v42 = vld [vmem:[#allocation2 + $0x155] sm:$0x1]  ;;  %949 = vst [vmem:[%s1348_s15 + $0x6a] sm:$0x1] %v935_v34  ;;  %v938_v43 = vmax.f32 %v910_v38, %v924_v40 }
  0xd3   : > { %950 = vst [vmem:[%s1348_s15 + $0x7a] sm:$0x1] %v936_v35  ;;  %v939_v44 = vmax.f32 %v911_v41, %v925_v42  ;;  %v912_v45 = vld [vmem:[#allocation2 + $0x174] sm:$0x1]  ;;  %v926_v46 = vld [vmem:[#allocation2 + $0x175] sm:$0x1] }
  0xd4   : > { %v913_v47 = vld [vmem:[#allocation2 + $0x194] sm:$0x1]  ;;  %951 = vst [vmem:[%s1348_s15 + $0x8a] sm:$0x1] %v937_v39  ;;  %v940_v48 = vmax.f32 %v912_v45, %v926_v46  ;;  %v927_v49 = vld [vmem:[#allocation2 + $0x195] sm:$0x1] }
  0xd5   : > { %v914_v50 = vld [vmem:[#allocation2 + $0x1b4] sm:$0x1]  ;;  %v928_v51 = vld [vmem:[#allocation2 + $0x1b5] sm:$0x1]  ;;  %952 = vst [vmem:[%s1348_s15 + $0x9a] sm:$0x1] %v938_v43  ;;  %v941_v52 = vmax.f32 %v913_v47, %v927_v49 }
  0xd6   : > { %953 = vst [vmem:[%s1348_s15 + $0xaa] sm:$0x1] %v939_v44  ;;  %v942_v53 = vmax.f32 %v914_v50, %v928_v51  ;;  %v957_v54 = vld [vmem:[#allocation2 + $0x16] sm:$0x1]  ;;  %v971_v55 = vld [vmem:[#allocation2 + $0x17] sm:$0x1] }
  0xd7   : > { %v958_v56 = vld [vmem:[#allocation2 + $0x36] sm:$0x1]  ;;  %954 = vst [vmem:[%s1348_s15 + $0xba] sm:$0x1] %v940_v48  ;;  %v985_v57 = vmax.f32 %v957_v54, %v971_v55  ;;  %v972_v58 = vld [vmem:[#allocation2 + $0x37] sm:$0x1] }
  0xd8   : > { %v959_v59 = vld [vmem:[#allocation2 + $0x56] sm:$0x1]  ;;  %v973_v60 = vld [vmem:[#allocation2 + $0x57] sm:$0x1]  ;;  %955 = vst [vmem:[%s1348_s15 + $0xca] sm:$0x1] %v941_v52  ;;  %v986_v61 = vmax.f32 %v958_v56, %v972_v58 }
  0xd9   : > { %956 = vst [vmem:[%s1348_s15 + $0xda] sm:$0x1] %v942_v53  ;;  %v987_v62 = vmax.f32 %v959_v59, %v973_v60  ;;  %v960_v63 = vld [vmem:[#allocation2 + $0x76] sm:$0x1]  ;;  %v974_v0 = vld [vmem:[#allocation2 + $0x77] sm:$0x1] }
  0xda   : > { %v961_v1 = vld [vmem:[#allocation2 + $0x96] sm:$0x1]  ;;  %999 = vst [vmem:[%s1348_s15 + $0xb] sm:$0x1] %v985_v57  ;;  %v988_v2 = vmax.f32 %v960_v63, %v974_v0  ;;  %v975_v3 = vld [vmem:[#allocation2 + $0x97] sm:$0x1] }
  0xdb   : > { %v962_v4 = vld [vmem:[#allocation2 + $0xb6] sm:$0x1]  ;;  %v976_v5 = vld [vmem:[#allocation2 + $0xb7] sm:$0x1]  ;;  %1000 = vst [vmem:[%s1348_s15 + $0x1b] sm:$0x1] %v986_v61  ;;  %v989_v6 = vmax.f32 %v961_v1, %v975_v3 }
  0xdc   : > { %1001 = vst [vmem:[%s1348_s15 + $0x2b] sm:$0x1] %v987_v62  ;;  %v990_v7 = vmax.f32 %v962_v4, %v976_v5  ;;  %v963_v8 = vld [vmem:[#allocation2 + $0xd6] sm:$0x1]  ;;  %v977_v9 = vld [vmem:[#allocation2 + $0xd7] sm:$0x1] }
  0xdd   : > { %v964_v10 = vld [vmem:[#allocation2 + $0xf6] sm:$0x1]  ;;  %1002 = vst [vmem:[%s1348_s15 + $0x3b] sm:$0x1] %v988_v2  ;;  %v991_v11 = vmax.f32 %v963_v8, %v977_v9  ;;  %v978_v12 = vld [vmem:[#allocation2 + $0xf7] sm:$0x1] }
  0xde   : > { %v965_v13 = vld [vmem:[#allocation2 + $0x116] sm:$0x1]  ;;  %v979_v14 = vld [vmem:[#allocation2 + $0x117] sm:$0x1]  ;;  %1003 = vst [vmem:[%s1348_s15 + $0x4b] sm:$0x1] %v989_v6  ;;  %v992_v15 = vmax.f32 %v964_v10, %v978_v12 }
  0xdf   : > { %1004 = vst [vmem:[%s1348_s15 + $0x5b] sm:$0x1] %v990_v7  ;;  %v993_v16 = vmax.f32 %v965_v13, %v979_v14  ;;  %v966_v17 = vld [vmem:[#allocation2 + $0x136] sm:$0x1]  ;;  %v980_v18 = vld [vmem:[#allocation2 + $0x137] sm:$0x1] }
  0xe0   : > { %v967_v19 = vld [vmem:[#allocation2 + $0x156] sm:$0x1]  ;;  %1005 = vst [vmem:[%s1348_s15 + $0x6b] sm:$0x1] %v991_v11  ;;  %v994_v20 = vmax.f32 %v966_v17, %v980_v18  ;;  %v981_v21 = vld [vmem:[#allocation2 + $0x157] sm:$0x1] }
  0xe1   : > { %v968_v22 = vld [vmem:[#allocation2 + $0x176] sm:$0x1]  ;;  %v982_v23 = vld [vmem:[#allocation2 + $0x177] sm:$0x1]  ;;  %1006 = vst [vmem:[%s1348_s15 + $0x7b] sm:$0x1] %v992_v15  ;;  %v995_v24 = vmax.f32 %v967_v19, %v981_v21 }
  0xe2   : > { %1007 = vst [vmem:[%s1348_s15 + $0x8b] sm:$0x1] %v993_v16  ;;  %v996_v25 = vmax.f32 %v968_v22, %v982_v23  ;;  %v969_v26 = vld [vmem:[#allocation2 + $0x196] sm:$0x1]  ;;  %v983_v27 = vld [vmem:[#allocation2 + $0x197] sm:$0x1] }
  0xe3   : > { %v970_v28 = vld [vmem:[#allocation2 + $0x1b6] sm:$0x1]  ;;  %1008 = vst [vmem:[%s1348_s15 + $0x9b] sm:$0x1] %v994_v20  ;;  %v997_v29 = vmax.f32 %v969_v26, %v983_v27  ;;  %v984_v30 = vld [vmem:[#allocation2 + $0x1b7] sm:$0x1] }
  0xe4   : > { %v1013_v31 = vld [vmem:[#allocation2 + $0x18] sm:$0x1]  ;;  %v1027_v32 = vld [vmem:[#allocation2 + $0x19] sm:$0x1]  ;;  %1009 = vst [vmem:[%s1348_s15 + $0xab] sm:$0x1] %v995_v24  ;;  %v998_v33 = vmax.f32 %v970_v28, %v984_v30 }
  0xe5   : > { %1010 = vst [vmem:[%s1348_s15 + $0xbb] sm:$0x1] %v996_v25  ;;  %v1041_v34 = vmax.f32 %v1013_v31, %v1027_v32  ;;  %v1014_v35 = vld [vmem:[#allocation2 + $0x38] sm:$0x1]  ;;  %v1028_v36 = vld [vmem:[#allocation2 + $0x39] sm:$0x1] }
  0xe6   : > { %v1015_v37 = vld [vmem:[#allocation2 + $0x58] sm:$0x1]  ;;  %1011 = vst [vmem:[%s1348_s15 + $0xcb] sm:$0x1] %v997_v29  ;;  %v1042_v38 = vmax.f32 %v1014_v35, %v1028_v36  ;;  %v1029_v39 = vld [vmem:[#allocation2 + $0x59] sm:$0x1] }
  0xe7   : > { %v1016_v40 = vld [vmem:[#allocation2 + $0x78] sm:$0x1]  ;;  %v1030_v41 = vld [vmem:[#allocation2 + $0x79] sm:$0x1]  ;;  %1012 = vst [vmem:[%s1348_s15 + $0xdb] sm:$0x1] %v998_v33  ;;  %v1043_v42 = vmax.f32 %v1015_v37, %v1029_v39 }
  0xe8   : > { %1055 = vst [vmem:[%s1348_s15 + $0xc] sm:$0x1] %v1041_v34  ;;  %v1044_v43 = vmax.f32 %v1016_v40, %v1030_v41  ;;  %v1017_v44 = vld [vmem:[#allocation2 + $0x98] sm:$0x1]  ;;  %v1031_v45 = vld [vmem:[#allocation2 + $0x99] sm:$0x1] }
  0xe9   : > { %v1018_v46 = vld [vmem:[#allocation2 + $0xb8] sm:$0x1]  ;;  %1056 = vst [vmem:[%s1348_s15 + $0x1c] sm:$0x1] %v1042_v38  ;;  %v1045_v47 = vmax.f32 %v1017_v44, %v1031_v45  ;;  %v1032_v48 = vld [vmem:[#allocation2 + $0xb9] sm:$0x1] }
  0xea   : > { %v1019_v49 = vld [vmem:[#allocation2 + $0xd8] sm:$0x1]  ;;  %v1033_v50 = vld [vmem:[#allocation2 + $0xd9] sm:$0x1]  ;;  %1057 = vst [vmem:[%s1348_s15 + $0x2c] sm:$0x1] %v1043_v42  ;;  %v1046_v51 = vmax.f32 %v1018_v46, %v1032_v48 }
  0xeb   : > { %1058 = vst [vmem:[%s1348_s15 + $0x3c] sm:$0x1] %v1044_v43  ;;  %v1047_v52 = vmax.f32 %v1019_v49, %v1033_v50  ;;  %v1020_v53 = vld [vmem:[#allocation2 + $0xf8] sm:$0x1]  ;;  %v1034_v54 = vld [vmem:[#allocation2 + $0xf9] sm:$0x1] }
  0xec   : > { %v1021_v55 = vld [vmem:[#allocation2 + $0x118] sm:$0x1]  ;;  %1059 = vst [vmem:[%s1348_s15 + $0x4c] sm:$0x1] %v1045_v47  ;;  %v1048_v56 = vmax.f32 %v1020_v53, %v1034_v54  ;;  %v1035_v57 = vld [vmem:[#allocation2 + $0x119] sm:$0x1] }
  0xed   : > { %v1022_v58 = vld [vmem:[#allocation2 + $0x138] sm:$0x1]  ;;  %v1036_v59 = vld [vmem:[#allocation2 + $0x139] sm:$0x1]  ;;  %1060 = vst [vmem:[%s1348_s15 + $0x5c] sm:$0x1] %v1046_v51  ;;  %v1049_v60 = vmax.f32 %v1021_v55, %v1035_v57 }
  0xee   : > { %1061 = vst [vmem:[%s1348_s15 + $0x6c] sm:$0x1] %v1047_v52  ;;  %v1050_v61 = vmax.f32 %v1022_v58, %v1036_v59  ;;  %v1023_v62 = vld [vmem:[#allocation2 + $0x158] sm:$0x1]  ;;  %v1037_v63 = vld [vmem:[#allocation2 + $0x159] sm:$0x1] }
  0xef   : > { %v1024_v0 = vld [vmem:[#allocation2 + $0x178] sm:$0x1]  ;;  %1062 = vst [vmem:[%s1348_s15 + $0x7c] sm:$0x1] %v1048_v56  ;;  %v1051_v1 = vmax.f32 %v1023_v62, %v1037_v63  ;;  %v1038_v2 = vld [vmem:[#allocation2 + $0x179] sm:$0x1] }
  0xf0   : > { %v1025_v3 = vld [vmem:[#allocation2 + $0x198] sm:$0x1]  ;;  %v1039_v4 = vld [vmem:[#allocation2 + $0x199] sm:$0x1]  ;;  %1063 = vst [vmem:[%s1348_s15 + $0x8c] sm:$0x1] %v1049_v60  ;;  %v1052_v5 = vmax.f32 %v1024_v0, %v1038_v2 }
  0xf1   : > { %1064 = vst [vmem:[%s1348_s15 + $0x9c] sm:$0x1] %v1050_v61  ;;  %v1053_v6 = vmax.f32 %v1025_v3, %v1039_v4  ;;  %v1026_v7 = vld [vmem:[#allocation2 + $0x1b8] sm:$0x1]  ;;  %v1040_v8 = vld [vmem:[#allocation2 + $0x1b9] sm:$0x1] }
  0xf2   : > { %v1069_v9 = vld [vmem:[#allocation2 + $0x1a] sm:$0x1]  ;;  %1065 = vst [vmem:[%s1348_s15 + $0xac] sm:$0x1] %v1051_v1  ;;  %v1054_v10 = vmax.f32 %v1026_v7, %v1040_v8  ;;  %v1083_v11 = vld [vmem:[#allocation2 + $0x1b] sm:$0x1] }
  0xf3   : > { %v1070_v12 = vld [vmem:[#allocation2 + $0x3a] sm:$0x1]  ;;  %v1084_v13 = vld [vmem:[#allocation2 + $0x3b] sm:$0x1]  ;;  %1066 = vst [vmem:[%s1348_s15 + $0xbc] sm:$0x1] %v1052_v5  ;;  %v1097_v14 = vmax.f32 %v1069_v9, %v1083_v11 }
  0xf4   : > { %1067 = vst [vmem:[%s1348_s15 + $0xcc] sm:$0x1] %v1053_v6  ;;  %v1098_v15 = vmax.f32 %v1070_v12, %v1084_v13  ;;  %v1071_v16 = vld [vmem:[#allocation2 + $0x5a] sm:$0x1]  ;;  %v1085_v17 = vld [vmem:[#allocation2 + $0x5b] sm:$0x1] }
  0xf5   : > { %v1072_v18 = vld [vmem:[#allocation2 + $0x7a] sm:$0x1]  ;;  %1068 = vst [vmem:[%s1348_s15 + $0xdc] sm:$0x1] %v1054_v10  ;;  %v1099_v19 = vmax.f32 %v1071_v16, %v1085_v17  ;;  %v1086_v20 = vld [vmem:[#allocation2 + $0x7b] sm:$0x1] }
  0xf6   : > { %v1073_v21 = vld [vmem:[#allocation2 + $0x9a] sm:$0x1]  ;;  %v1087_v22 = vld [vmem:[#allocation2 + $0x9b] sm:$0x1]  ;;  %1111 = vst [vmem:[%s1348_s15 + $0xd] sm:$0x1] %v1097_v14  ;;  %v1100_v23 = vmax.f32 %v1072_v18, %v1086_v20 }
  0xf7   : > { %1112 = vst [vmem:[%s1348_s15 + $0x1d] sm:$0x1] %v1098_v15  ;;  %v1101_v24 = vmax.f32 %v1073_v21, %v1087_v22  ;;  %v1074_v25 = vld [vmem:[#allocation2 + $0xba] sm:$0x1]  ;;  %v1088_v26 = vld [vmem:[#allocation2 + $0xbb] sm:$0x1] }
  0xf8   : > { %v1075_v27 = vld [vmem:[#allocation2 + $0xda] sm:$0x1]  ;;  %1113 = vst [vmem:[%s1348_s15 + $0x2d] sm:$0x1] %v1099_v19  ;;  %v1102_v28 = vmax.f32 %v1074_v25, %v1088_v26  ;;  %v1089_v29 = vld [vmem:[#allocation2 + $0xdb] sm:$0x1] }
  0xf9   : > { %v1076_v30 = vld [vmem:[#allocation2 + $0xfa] sm:$0x1]  ;;  %v1090_v31 = vld [vmem:[#allocation2 + $0xfb] sm:$0x1]  ;;  %1114 = vst [vmem:[%s1348_s15 + $0x3d] sm:$0x1] %v1100_v23  ;;  %v1103_v32 = vmax.f32 %v1075_v27, %v1089_v29 }
  0xfa   : > { %1115 = vst [vmem:[%s1348_s15 + $0x4d] sm:$0x1] %v1101_v24  ;;  %v1104_v33 = vmax.f32 %v1076_v30, %v1090_v31  ;;  %v1077_v34 = vld [vmem:[#allocation2 + $0x11a] sm:$0x1]  ;;  %v1091_v35 = vld [vmem:[#allocation2 + $0x11b] sm:$0x1] }
  0xfb   : > { %v1078_v36 = vld [vmem:[#allocation2 + $0x13a] sm:$0x1]  ;;  %1116 = vst [vmem:[%s1348_s15 + $0x5d] sm:$0x1] %v1102_v28  ;;  %v1105_v37 = vmax.f32 %v1077_v34, %v1091_v35  ;;  %v1092_v38 = vld [vmem:[#allocation2 + $0x13b] sm:$0x1] }
  0xfc   : > { %v1079_v39 = vld [vmem:[#allocation2 + $0x15a] sm:$0x1]  ;;  %v1093_v40 = vld [vmem:[#allocation2 + $0x15b] sm:$0x1]  ;;  %1117 = vst [vmem:[%s1348_s15 + $0x6d] sm:$0x1] %v1103_v32  ;;  %v1106_v41 = vmax.f32 %v1078_v36, %v1092_v38 }
  0xfd   : > { %1118 = vst [vmem:[%s1348_s15 + $0x7d] sm:$0x1] %v1104_v33  ;;  %v1107_v42 = vmax.f32 %v1079_v39, %v1093_v40  ;;  %v1080_v43 = vld [vmem:[#allocation2 + $0x17a] sm:$0x1]  ;;  %v1094_v44 = vld [vmem:[#allocation2 + $0x17b] sm:$0x1] }
  0xfe   : > { %v1081_v45 = vld [vmem:[#allocation2 + $0x19a] sm:$0x1]  ;;  %1119 = vst [vmem:[%s1348_s15 + $0x8d] sm:$0x1] %v1105_v37  ;;  %v1108_v46 = vmax.f32 %v1080_v43, %v1094_v44  ;;  %v1095_v47 = vld [vmem:[#allocation2 + $0x19b] sm:$0x1] }
  0xff   : > { %v1082_v48 = vld [vmem:[#allocation2 + $0x1ba] sm:$0x1]  ;;  %v1096_v49 = vld [vmem:[#allocation2 + $0x1bb] sm:$0x1]  ;;  %1120 = vst [vmem:[%s1348_s15 + $0x9d] sm:$0x1] %v1106_v41  ;;  %v1109_v50 = vmax.f32 %v1081_v45, %v1095_v47 }
 0x100   : > { %1121 = vst [vmem:[%s1348_s15 + $0xad] sm:$0x1] %v1107_v42  ;;  %v1110_v51 = vmax.f32 %v1082_v48, %v1096_v49  ;;  %1122 = vst [vmem:[%s1348_s15 + $0xbd] sm:$0x1] %v1108_v46 }
 0x101   : > { %1123 = vst [vmem:[%s1348_s15 + $0xcd] sm:$0x1] %v1109_v50 }
 0x102   : > { %1124 = vst [vmem:[%s1348_s15 + $0xdd] sm:$0x1] %v1110_v51 }
 0x103 PF: > { %s11_s6 = sadd.s32 1, %s1205_s6  }
 0x104   : > { %p8_p4 = scmp.ge.s32.totalorder %s11_s6, 4  }
 0x106   :  { %10 = sbr.rel (!%p8_p4) target bundleno = 1 (0x1), region = 54 }

// kernel: model_forward.8
= control target key start
LH: loop header
LB: loop body
LE: loop exit
PB: predicated region body
PF: predicated region fallthrough
CT: control target
= control target key end

     0   :  { %8 = vsyncpa [#allocation4], 0  ;;  %s2904_s0 = inlined_call_operand.vmem [shape: f32[2,25088], index: 0, kind: input, shape index: {}]   ;;  %s2905_s1 = inlined_call_operand.hbm [shape: f32[1024,25088], index: 1, kind: input, shape index: {}]   ;;  %s2906_s2 = inlined_call_operand.vmem [shape: f32[1,1024], index: 2, kind: input, shape index: {}]   ;;  %s2907_s3 = inlined_call_operand.vmem [shape: f32[2,1024], index: 3, kind: output, shape index: {}]  }
   0x1   :  { %10 = vsyncpa [#allocation4 + $0x1], 0  ;;  %s2238_s12 = smov 0   ;;  %s2240_s13 = smov 0  }
   0x2   :  { %s2242_s14 = smov 0   ;;  %s2244_s15 = smov 0  }
   0x3   :  { %s2246_s16 = smov 0   ;;  %s2248_s17 = smov 0  }
   0x4   :  { %s2250_s18 = smov 0   ;;  %s2252_s19 = smov 0  }
   0x5 LB: > { %s1489_s20 = sadd.s32 4294967295, %s2210_s19   ;;  %s25_s21 = sadd.s32 1, %s2202_s17  ;;  %s2210_s19 = sphi %s2252_s19, %s16_s19   ;;  %s2206_s18 = sphi %s2250_s18, %s2916_s18   ;;  %s2202_s17 = sphi %s2248_s17, %s2915_s17   ;;  %s2198_s16 = sphi %s2246_s16, %s2914_s16   ;;  %s2194_s15 = sphi %s2244_s15, %s2913_s15   ;;  %s2190_s14 = sphi %s2242_s14, %s2912_s14   ;;  %s2186_s13 = sphi %s2240_s13, %s2911_s13   ;;  %s2182_s12 = sphi %s2238_s12, %s2910_s12  }
   0x6   : > { %p26_p0 = scmp.ge.s32.totalorder %s25_s21, 28  ;;  %s28_s22 = sadd.s32 1, %s2206_s18 }
   0x7   : > { %s63_s23 = sadd.s32 1, %s2190_s14  ;;  %p70_p1 = scmp.ne.s32.totalorder %s2190_s14, %s2186_s13 }
   0x8   : > { %s2918_s21 = smov (%p26_p0, %s25_s21), 0  ;;  %s2920_s22 = smov (!%p26_p0, %s28_s22), %s2206_s18 }
   0x9   : > { %s59_s24 = ssub.s32 %s2202_s17, %s2918_s21  ;;  %p71_p2 = scmp.eq.s32.totalorder %s2210_s19, 0 }
   0xa   : > { %p30_p3 = scmp.ge.s32.totalorder %s2920_s22, 2  ;;  %p76_p4 = scmp.ne.s32.totalorder %s2186_s13, %s2182_s12 }
   0xb   : > { %p72_p5 = por %p71_p2, %p70_p1  ;;  %p77_p6 = scmp.eq.s32.totalorder %s1489_s20, 0 }
   0xc   : > { %s2922_s22 = smov (%p30_p3, %s2920_s22), 0  ;;  %p2042_p8 = scmp.lt.s32.totalorder %s2210_s19, 56 }
   0xd   : > { %p2291_p7 = por %p77_p6, %p76_p4  ;;  %s58_s26 = ssub.s32 %s2206_s18, %s2922_s22 }
   0xe   : > { %s60_s27 = sor.u32 %s59_s24, %s58_s26  ;;  %s161_s28 = sand.u32 1, %s2190_s14  }
   0xf   : > { %p61_p9 = scmp.eq.s32.totalorder %s60_s27, 0  ;;  %s2033_s29 = smul.u32 3584, %s161_s28 }
  0x10   : > { %p2299_p10 = pnand %p2042_p8, %p72_p5  ;;  %s167_s5 = smul.u32 7, %s2202_s17 }
  0x11   : > { %s2304_s4 = scalar_select %p61_p9, %s2190_s14, %s63_s23  }
  0x12   : > { %s2034_s6 = smul.u32 12544, %s2206_s18  ;;  %s165_s7 = scalar_lea.vmem [#allocation3], %s2033_s29 }
  0x13   : > { %s175_s8 = sshll.u32 %s165_s7, 4  ;;  %s2315_s24 = scalar_lea.sflag [#allocation4], %s161_s28  ;;  %s2308_s8 = int_to_ptr.vmem [resolvable:$true] %s175_s8 }
  0x14   : > { %s172_s9 = sadd.s32 %s2034_s6, %s167_s5  ;;  %p2116_p12 = pneg %p2299_p10 }
  0x15   : > { %s1495_s10 = sshll.u32 %s172_s9, 7  ;;  %s2119_s29 = scalar_lea.hbm %s2905_s1, 3211264 }
  0x16   : > { %s2313_s20 = scalar_lea.hbm %s2905_s1, %s1495_s10 }
  0x17   : > { %s2114_s23 = scalar_lea.hbm %s2313_s20, 57344  ;;  %p2120_p1 = scmp.lt.u32.totalorder %s2313_s20, %s2905_s1 }
  0x18   : > { %p2115_p11 = scmp.ne.s32.totalorder %s2313_s20, %s2114_s23  ;;  %p2121_p2 = scmp.lt.u32.totalorder %s2119_s29, %s2114_s23 }
  0x19   : > { %p2123_p4 = scmp.lt.u32.totalorder %s2114_s23, %s2313_s20 }
  0x1a   : > { %p2117_p13 = pnand %p2116_p12, %p2115_p11  ;;  %p2122_p3 = por %p2121_p2, %p2120_p1 }
  0x1c   : > { %p2118_p0 = pneg %p2117_p13  ;;  %p2124_p5 = por %p2123_p4, %p2122_p3 }
  0x1e   : > { %p2125_p6 = pnand %p2124_p5, %p2118_p0 }
  0x20   : > { %2128 = shalt.err (!%p2125_p6)
}
  0x21   : > { %s2129_s28 = scalar_lea.vmem %s2308_s8, 57344  ;;  %s2212_s7 = smov [#allocation3]  }
  0x22   : > { %p2130_p8 = scmp.ne.s32.totalorder %s2308_s8, %s2129_s28  ;;  %s2134_s9 = sshll.u32 %s2212_s7, 4  ;;  %s2135_s9 = int_to_ptr.vmem [resolvable:$false] %s2134_s9 }
  0x23   : > { %s2136_s10 = scalar_lea.vmem %s2135_s9, 114688  ;;  %p2137_p13 = scmp.lt.s32.totalorder %s2308_s8, %s2135_s9 }
  0x24   : > { %p2132_p9 = pnand %p2130_p8, %p2116_p12  ;;  %p2138_p1 = scmp.lt.s32.totalorder %s2136_s10, %s2129_s28 }
  0x26   : > { %p2133_p11 = pneg %p2132_p9  ;;  %p2139_p2 = por %p2138_p1, %p2137_p13 }
  0x28   : > { %p2140_p3 = pnand %p2139_p2, %p2133_p11 }
  0x2a   : > { %2143 = shalt.err (!%p2140_p3)
}
  0x2b   : > { %s2213_s11 = smov 25088   ;;  %s2214_s12 = smov 896  }
  0x2c   : > { %s2215_s23 = smov 56   ;;  %p1496_p12 = scmp.ge.s32.totalorder %s2210_s19, 1 }
  0x2d   : > { %2041 = dma.hbm_to_vmem [thread:$0]  (!%p2299_p10), %s2313_s20, 57344, %s2308_s8, %s2315_s24, %s2213_s11, %s2214_s12, %s2215_s23  }
  0x2e   : > { %p191_p0 = scmp.lt.s32.totalorder %s2210_s19, 57 }
  0x30   : > { %p192_p4 = pnand %p1496_p12, %p191_p0 }
  0x31   : > { %s197_s26 = sand.u32 (!%p192_p4), 1, %s2186_s13  }
  0x32   : > { %195 = sbr.rel (%p192_p4) target bundleno = 755 (0x2f3), region = 32  ;;  %s198_s29 = scalar_lea.sflag (!%p192_p4), [#allocation4], %s197_s26 }
  0x33   : > { %s2035_s27 = smul.u32 (!%p192_p4), 3584, %s197_s26 }
  0x35   : > { %s2346_s5 = scalar_lea.vmem (!%p192_p4), [#allocation3], %s2035_s27 }
  0x39   : > { %2177 = dma.done.wait (%p2291_p7), %s198_s29, 57344  }
  0x3a   : > { %2179 = vsyncadd (%p2291_p7), %s198_s29, 4294909952  ;;  %s233_s30 = smul.u32 7, %s2194_s15  ;;  %s1498_s8 = sshll.u32 %s2198_s16, 2 }
  0x3b   : > { %p242_p10 = scmp.lt.s32.totalorder %s1498_s8, 7  ;;  %p1501_p7 = scmp.ne.s32.totalorder %s2194_s15, 0 }
  0x3c   : > { %p234_p5 = scmp.lt.s32.totalorder %s233_s30, 195  ;;  %v2216_v0 = vmov (!%p1501_p7), 0.0  }
  0x3d   : > { %s2924_s8 = smov (!%p242_p10, %s1498_s8), 7  ;;  %255 = sbr.rel (%p1501_p7) target bundleno = 68 (0x44), region = 40 }
  0x3e   : > { %s2926_s30 = smov (!%p234_p5, %s233_s30), 195  ;;  %s244_s6 = scalar_lea.vmem %s2906_s2, %s2924_s8  ;;  %256 = vst [vmem:[#allocation2] sm:$0xff] (!%p1501_p7), %v2216_v0 }
  0x3f   : > { %s1500_s28 = sshll.u32 %s2924_s8, 1  ;;  %s1497_s7 = sshll.u32 %s2926_s30, 1 }
  0x40   : > { %s2364_s10 = scalar_lea.vmem %s2907_s3, %s1500_s28  ;;  %s2369_s12 = scalar_lea.vmem %s2904_s0, %s1497_s7 }
  0x44 PF: > { %v261_v1 = vld [vmem:[%s2346_s5 + $0x8] sm:$0xff]  ;;  %v268_v2 = vld [vmem:[%s2346_s5 + $0x40] sm:$0xff]  ;;  %v267_v7 = vld [vmem:[%s2346_s5 + $0x38] sm:$0xff]  ;;  %v2217_v63 = vmov 1983009808   ;;  %p1502_p6 = scmp.ne.s32.totalorder %s2194_s15, 27 }
  0x45   : > { %v485_v3 = vld [vmem:[%s2346_s5 + $0x708] sm:$0xff]  ;;  %v1573_v4 = vpack.c.bf16 %v268_v2, %v261_v1  ;;  %v492_v5 = vld [vmem:[%s2346_s5 + $0x740] sm:$0xff]  ;;  %v491_v11 = vld [vmem:[%s2346_s5 + $0x738] sm:$0xff]  ;;  %v712_v0 = vunpack.c.l.s4 %v2217_v63  ;;  %v714_v1 = vlaneseq }
  0x46   : > { %v260_v6 = vld [vmem:[%s2346_s5] sm:$0xff]  ;;  %v1797_v8 = vpack.c.bf16 %v492_v5, %v485_v3  ;;  %v275_v12 = vld [vmem:[%s2346_s5 + $0x78] sm:$0xff]  ;;  %v282_v14 = vld [vmem:[%s2346_s5 + $0xb0] sm:$0xff] }
  0x47   : > { %v1575_v9 = vpack.c.bf16 %v267_v7, %v260_v6  ;;  %v484_v10 = vld [vmem:[%s2346_s5 + $0x700] sm:$0xff]  ;;  %1574 = vmatprep.subr.bf16.mxu0 %v1573_v4  ;;  %v499_v15 = vld [vmem:[%s2346_s5 + $0x778] sm:$0xff]  ;;  %v506_v16 = vld [vmem:[%s2346_s5 + $0x7b0] sm:$0xff]  ;;  %v1577_v17 = vpack.c.bf16 %v282_v14, %v275_v12  ;;  %v713_v6 = vunpack.c.0.s8 %v712_v0  ;;  %v2416_v7 = vshrl.u32 %v714_v1, 7 }
  0x48   : > { %v1799_v13 = vpack.c.bf16 %v491_v11, %v484_v10  ;;  %1798 = vmatprep.subr.bf16.mxu1 %v1797_v8  ;;  %v1801_v18 = vpack.c.bf16 %v506_v16, %v499_v15  ;;  %v274_v19 = vld [vmem:[%s2346_s5 + $0x70] sm:$0xff]  ;;  %v281_v20 = vld [vmem:[%s2346_s5 + $0xa8] sm:$0xff]  ;;  %v296_v24 = vld [vmem:[%s2346_s5 + $0x120] sm:$0xff] }
  0x49   : > { %1576 = vmatpush1.bf16.xpose.msra.mxu0 %v1575_v9  ;;  %v498_v21 = vld [vmem:[%s2346_s5 + $0x770] sm:$0xff]  ;;  %v505_v22 = vld [vmem:[%s2346_s5 + $0x7a8] sm:$0xff]  ;;  %v520_v26 = vld [vmem:[%s2346_s5 + $0x820] sm:$0xff]  ;;  %v1579_v27 = vpack.c.bf16 %v281_v20, %v274_v19  ;;  %v2427_v16 = vsub.s32 %v713_v6, %v2416_v7 }
  0x4a   : > { %1800 = vmatpush1.bf16.xpose.msra.mxu1 %v1799_v13  ;;  %1578 = vmatprep.subr.bf16.mxu0 %v1577_v17  ;;  %v289_v23 = vld [vmem:[%s2346_s5 + $0xe8] sm:$0xff]  ;;  %v1803_v28 = vpack.c.bf16 %v505_v22, %v498_v21  ;;  %v288_v31 = vld [vmem:[%s2346_s5 + $0xe0] sm:$0xff]  ;;  %v295_v32 = vld [vmem:[%s2346_s5 + $0x118] sm:$0xff] }
  0x4b   : > { %1802 = vmatprep.subr.bf16.mxu1 %v1801_v18  ;;  %v513_v25 = vld [vmem:[%s2346_s5 + $0x7e8] sm:$0xff]  ;;  %v1581_v29 = vpack.c.bf16 %v296_v24, %v289_v23  ;;  %v512_v33 = vld [vmem:[%s2346_s5 + $0x7e0] sm:$0xff]  ;;  %v519_v34 = vld [vmem:[%s2346_s5 + $0x818] sm:$0xff]  ;;  %v1583_v39 = vpack.c.bf16 %v295_v32, %v288_v31 }
  0x4c   : > { %v1805_v30 = vpack.c.bf16 %v520_v26, %v513_v25  ;;  %v303_v35 = vld [vmem:[%s2346_s5 + $0x158] sm:$0xff]  ;;  %v310_v36 = vld [vmem:[%s2346_s5 + $0x190] sm:$0xff]  ;;  %v1807_v40 = vpack.c.bf16 %v519_v34, %v512_v33  ;;  %v309_v44 = vld [vmem:[%s2346_s5 + $0x188] sm:$0xff] }
  0x4d   : > { %v527_v37 = vld [vmem:[%s2346_s5 + $0x858] sm:$0xff]  ;;  %v534_v38 = vld [vmem:[%s2346_s5 + $0x890] sm:$0xff]  ;;  %v1585_v41 = vpack.c.bf16 %v310_v36, %v303_v35  ;;  %v533_v46 = vld [vmem:[%s2346_s5 + $0x888] sm:$0xff] }
  0x4e   : > { %v1809_v42 = vpack.c.bf16 %v534_v38, %v527_v37  ;;  %v302_v43 = vld [vmem:[%s2346_s5 + $0x150] sm:$0xff]  ;;  %v317_v47 = vld [vmem:[%s2346_s5 + $0x1c8] sm:$0xff]  ;;  %v324_v48 = vld [vmem:[%s2346_s5 + $0x200] sm:$0xff] }
  0x4f   : > { %v526_v45 = vld [vmem:[%s2346_s5 + $0x850] sm:$0xff]  ;;  %v541_v49 = vld [vmem:[%s2346_s5 + $0x8c8] sm:$0xff]  ;;  %v548_v50 = vld [vmem:[%s2346_s5 + $0x900] sm:$0xff]  ;;  %v1587_v51 = vpack.c.bf16 %v309_v44, %v302_v43  ;;  %v1589_v53 = vpack.c.bf16 %v324_v48, %v317_v47 }
  0x50   : > { %v1811_v52 = vpack.c.bf16 %v533_v46, %v526_v45  ;;  %v1813_v54 = vpack.c.bf16 %v548_v50, %v541_v49  ;;  %v316_v55 = vld [vmem:[%s2346_s5 + $0x1c0] sm:$0xff]  ;;  %v323_v56 = vld [vmem:[%s2346_s5 + $0x1f8] sm:$0xff]  ;;  %v338_v60 = vld [vmem:[%s2346_s5 + $0x270] sm:$0xff] }
  0x51   : > { %1580 = vmatpush1.bf16.xpose.msra.mxu0 %v1579_v27  ;;  %v540_v57 = vld [vmem:[%s2346_s5 + $0x8c0] sm:$0xff]  ;;  %v547_v58 = vld [vmem:[%s2346_s5 + $0x8f8] sm:$0xff]  ;;  %v562_v62 = vld [vmem:[%s2346_s5 + $0x970] sm:$0xff]  ;;  %v1591_v2 = vpack.c.bf16 %v323_v56, %v316_v55 }
  0x52   : > { %1804 = vmatpush1.bf16.xpose.msra.mxu1 %v1803_v28  ;;  %1582 = vmatprep.subr.bf16.mxu0 %v1581_v29  ;;  %v331_v59 = vld [vmem:[%s2346_s5 + $0x238] sm:$0xff]  ;;  %v1815_v3 = vpack.c.bf16 %v547_v58, %v540_v57  ;;  %v330_v8 = vld [vmem:[%s2346_s5 + $0x230] sm:$0xff]  ;;  %v337_v9 = vld [vmem:[%s2346_s5 + $0x268] sm:$0xff] }
  0x53   : > { %1806 = vmatprep.subr.bf16.mxu1 %v1805_v30  ;;  %v555_v61 = vld [vmem:[%s2346_s5 + $0x938] sm:$0xff]  ;;  %v1593_v4 = vpack.c.bf16 %v338_v60, %v331_v59  ;;  %v554_v10 = vld [vmem:[%s2346_s5 + $0x930] sm:$0xff]  ;;  %v561_v11 = vld [vmem:[%s2346_s5 + $0x968] sm:$0xff]  ;;  %v1595_v17 = vpack.c.bf16 %v337_v9, %v330_v8 }
  0x54   : > { %v1817_v5 = vpack.c.bf16 %v562_v62, %v555_v61  ;;  %v345_v12 = vld [vmem:[%s2346_s5 + $0x2a8] sm:$0xff]  ;;  %v352_v13 = vld [vmem:[%s2346_s5 + $0x2e0] sm:$0xff]  ;;  %v1819_v18 = vpack.c.bf16 %v561_v11, %v554_v10  ;;  %v2430_v21 = vld [vmem:[%s2369_s12] sm:$0xff] }
  0x55   : > { %v569_v14 = vld [vmem:[%s2346_s5 + $0x9a8] sm:$0xff]  ;;  %v576_v15 = vld [vmem:[%s2346_s5 + $0x9e0] sm:$0xff]  ;;  %v1597_v19 = vpack.c.bf16 %v352_v13, %v345_v12  ;;  %v2434_v22 = vrot.slane %v2430_v21, %v2427_v16  ;;  %v351_v24 = vld [vmem:[%s2346_s5 + $0x2d8] sm:$0xff] }
  0x56   : > { %v1821_v20 = vpack.c.bf16 %v576_v15, %v569_v14  ;;  %v344_v23 = vld [vmem:[%s2346_s5 + $0x2a0] sm:$0xff]  ;;  %v575_v27 = vld [vmem:[%s2346_s5 + $0x9d8] sm:$0xff]  ;;  %v366_v29 = vld [vmem:[%s2346_s5 + $0x350] sm:$0xff] }
  0x57   : > { %v568_v25 = vld [vmem:[%s2346_s5 + $0x9a0] sm:$0xff]  ;;  %v725_v26 = vcombine.high %v2434_v22, %v2434_v22  ;;  %v359_v28 = vld [vmem:[%s2346_s5 + $0x318] sm:$0xff]  ;;  %v590_v31 = vld [vmem:[%s2346_s5 + $0xa50] sm:$0xff]  ;;  %v1599_v32 = vpack.c.bf16 %v351_v24, %v344_v23 }
  0x58   : > { %v583_v30 = vld [vmem:[%s2346_s5 + $0xa18] sm:$0xff]  ;;  %v1823_v33 = vpack.c.bf16 %v575_v27, %v568_v25  ;;  %v1601_v34 = vpack.c.bf16 %v366_v29, %v359_v28  ;;  %v358_v36 = vld [vmem:[%s2346_s5 + $0x310] sm:$0xff]  ;;  %v365_v37 = vld [vmem:[%s2346_s5 + $0x348] sm:$0xff] }
  0x59   : > { %1584 = vmatpush1.bf16.xpose.msra.mxu0 %v1583_v39  ;;  %814 = vmatprep.mubr.f32.mxu0 %v725_v26  ;;  %v1825_v35 = vpack.c.bf16 %v590_v31, %v583_v30  ;;  %v582_v38 = vld [vmem:[%s2346_s5 + $0xa10] sm:$0xff]  ;;  %v589_v39 = vld [vmem:[%s2346_s5 + $0xa48] sm:$0xff]  ;;  %v604_v43 = vld [vmem:[%s2346_s5 + $0xac0] sm:$0xff]  ;;  %v1603_v44 = vpack.c.bf16 %v365_v37, %v358_v36 }
  0x5a   : > { %1808 = vmatpush1.bf16.xpose.msra.mxu1 %v1807_v40  ;;  %1586 = vmatprep.subr.bf16.mxu0 %v1585_v41  ;;  %v373_v40 = vld [vmem:[%s2346_s5 + $0x388] sm:$0xff]  ;;  %v380_v41 = vld [vmem:[%s2346_s5 + $0x3c0] sm:$0xff]  ;;  %v1827_v45 = vpack.c.bf16 %v589_v39, %v582_v38  ;;  %v379_v49 = vld [vmem:[%s2346_s5 + $0x3b8] sm:$0xff] }
  0x5b   : > { %1810 = vmatprep.subr.bf16.mxu1 %v1809_v42  ;;  %1098 = vmatprep.mubr.f32.mxu1 %v725_v26  ;;  %v597_v42 = vld [vmem:[%s2346_s5 + $0xa88] sm:$0xff]  ;;  %v1605_v46 = vpack.c.bf16 %v380_v41, %v373_v40  ;;  %v372_v48 = vld [vmem:[%s2346_s5 + $0x380] sm:$0xff]  ;;  %v618_v55 = vld [vmem:[%s2346_s5 + $0xb30] sm:$0xff] }
  0x5c   : > { %v1829_v47 = vpack.c.bf16 %v604_v43, %v597_v42  ;;  %v596_v50 = vld [vmem:[%s2346_s5 + $0xa80] sm:$0xff]  ;;  %v1607_v56 = vpack.c.bf16 %v379_v49, %v372_v48  ;;  %v386_v60 = vld [vmem:[%s2346_s5 + $0x3f0] sm:$0xff]  ;;  %v393_v61 = vld [vmem:[%s2346_s5 + $0x428] sm:$0xff] }
  0x5d   : > { %v610_v62 = vld [vmem:[%s2346_s5 + $0xaf0] sm:$0xff]  ;;  %v617_v63 = vld [vmem:[%s2346_s5 + $0xb28] sm:$0xff]  ;;  %v408_v1 = vld [vmem:[%s2346_s5 + $0x4a0] sm:$0xff] }
  0x5e   : > { %v401_v0 = vld [vmem:[%s2346_s5 + $0x468] sm:$0xff]  ;;  %v400_v9 = vld [vmem:[%s2346_s5 + $0x460] sm:$0xff]  ;;  %v407_v10 = vld [vmem:[%s2346_s5 + $0x498] sm:$0xff] }
  0x5f   : > { %v1613_v6 = vpack.c.bf16 %v408_v1, %v401_v0  ;;  %v624_v11 = vld [vmem:[%s2346_s5 + $0xb60] sm:$0xff]  ;;  %v631_v12 = vld [vmem:[%s2346_s5 + $0xb98] sm:$0xff]  ;;  %v422_v14 = vld [vmem:[%s2346_s5 + $0x510] sm:$0xff] }
  0x60   : > { %v415_v13 = vld [vmem:[%s2346_s5 + $0x4d8] sm:$0xff]  ;;  %v414_v24 = vld [vmem:[%s2346_s5 + $0x4d0] sm:$0xff]  ;;  %v421_v25 = vld [vmem:[%s2346_s5 + $0x508] sm:$0xff] }
  0x61   : > { %1588 = vmatpush1.bf16.xpose.msra.mxu0 %v1587_v51  ;;  %v603_v51 = vld [vmem:[%s2346_s5 + $0xab8] sm:$0xff]  ;;  %v638_v26 = vld [vmem:[%s2346_s5 + $0xbd0] sm:$0xff]  ;;  %v645_v27 = vld [vmem:[%s2346_s5 + $0xc08] sm:$0xff] }
  0x62   : > { %1812 = vmatpush1.bf16.xpose.msra.mxu1 %v1811_v52  ;;  %1590 = vmatprep.subr.bf16.mxu0 %v1589_v53  ;;  %v387_v52 = vld [vmem:[%s2346_s5 + $0x3f8] sm:$0xff]  ;;  %v394_v53 = vld [vmem:[%s2346_s5 + $0x430] sm:$0xff]  ;;  %v1831_v57 = vpack.c.bf16 %v603_v51, %v596_v50  ;;  %v429_v28 = vld [vmem:[%s2346_s5 + $0x548] sm:$0xff] }
  0x63   : > { %1814 = vmatprep.subr.bf16.mxu1 %v1813_v54  ;;  %v611_v54 = vld [vmem:[%s2346_s5 + $0xaf8] sm:$0xff]  ;;  %v1609_v58 = vpack.c.bf16 %v394_v53, %v387_v52  ;;  %v436_v29 = vld [vmem:[%s2346_s5 + $0x580] sm:$0xff]  ;;  %v653_v30 = vld [vmem:[%s2346_s5 + $0xc48] sm:$0xff] }
  0x64   : > { %v1833_v59 = vpack.c.bf16 %v618_v55, %v611_v54  ;;  %v639_v15 = vld [vmem:[%s2346_s5 + $0xbd8] sm:$0xff]  ;;  %v660_v31 = vld [vmem:[%s2346_s5 + $0xc80] sm:$0xff]  ;;  %v450_v41 = vld [vmem:[%s2346_s5 + $0x5f0] sm:$0xff] }
  0x65   : > { %v428_v36 = vld [vmem:[%s2346_s5 + $0x540] sm:$0xff]  ;;  %v435_v37 = vld [vmem:[%s2346_s5 + $0x578] sm:$0xff]  ;;  %v674_v43 = vld [vmem:[%s2346_s5 + $0xcf0] sm:$0xff] }
  0x66   : > { %v652_v38 = vld [vmem:[%s2346_s5 + $0xc40] sm:$0xff]  ;;  %v659_v39 = vld [vmem:[%s2346_s5 + $0xc78] sm:$0xff]  ;;  %v442_v48 = vld [vmem:[%s2346_s5 + $0x5b0] sm:$0xff] }
  0x67   : > { %v443_v40 = vld [vmem:[%s2346_s5 + $0x5b8] sm:$0xff]  ;;  %v449_v49 = vld [vmem:[%s2346_s5 + $0x5e8] sm:$0xff]  ;;  %v666_v50 = vld [vmem:[%s2346_s5 + $0xcb0] sm:$0xff] }
  0x68   : > { %v667_v42 = vld [vmem:[%s2346_s5 + $0xcb8] sm:$0xff]  ;;  %v673_v51 = vld [vmem:[%s2346_s5 + $0xce8] sm:$0xff]  ;;  %v464_v53 = vld [vmem:[%s2346_s5 + $0x660] sm:$0xff] }
  0x69   : > { %1592 = vmatpush1.bf16.xpose.msra.mxu0 %v1591_v2  ;;  %v625_v2 = vld [vmem:[%s2346_s5 + $0xb68] sm:$0xff]  ;;  %v688_v55 = vld [vmem:[%s2346_s5 + $0xd60] sm:$0xff]  ;;  %v471_v0 = vld [vmem:[%s2346_s5 + $0x698] sm:$0xff] }
  0x6a   : > { %1816 = vmatpush1.bf16.xpose.msra.mxu1 %v1815_v3  ;;  %1594 = vmatprep.subr.bf16.mxu0 %v1593_v4  ;;  %v632_v3 = vld [vmem:[%s2346_s5 + $0xba0] sm:$0xff]  ;;  %v1611_v4 = vpack.c.bf16 %v393_v61, %v386_v60  ;;  %v457_v52 = vld [vmem:[%s2346_s5 + $0x628] sm:$0xff]  ;;  %v463_v61 = vld [vmem:[%s2346_s5 + $0x658] sm:$0xff] }
  0x6b   : > { %1818 = vmatprep.subr.bf16.mxu1 %v1817_v5  ;;  %v1835_v5 = vpack.c.bf16 %v617_v63, %v610_v62  ;;  %v1837_v8 = vpack.c.bf16 %v632_v3, %v625_v2  ;;  %v681_v54 = vld [vmem:[%s2346_s5 + $0xd28] sm:$0xff]  ;;  %v456_v60 = vld [vmem:[%s2346_s5 + $0x620] sm:$0xff]  ;;  %v687_v63 = vld [vmem:[%s2346_s5 + $0xd58] sm:$0xff] }
  0x6c   : > { %v680_v62 = vld [vmem:[%s2346_s5 + $0xd20] sm:$0xff]  ;;  %v478_v1 = vld [vmem:[%s2346_s5 + $0x6d0] sm:$0xff]  ;;  %v695_v2 = vld [vmem:[%s2346_s5 + $0xd98] sm:$0xff] }
  0x6d   : > { %v702_v3 = vld [vmem:[%s2346_s5 + $0xdd0] sm:$0xff] }
  0x71   : > { %1596 = vmatpush1.bf16.xpose.msra.mxu0 %v1595_v17  ;;  %v646_v17 = vld [vmem:[%s2346_s5 + $0xc10] sm:$0xff] }
  0x72   : > { %1820 = vmatpush1.bf16.xpose.msra.mxu1 %v1819_v18  ;;  %1598 = vmatprep.subr.bf16.mxu0 %v1597_v19  ;;  %v1615_v18 = vpack.c.bf16 %v407_v10, %v400_v9  ;;  %v1839_v19 = vpack.c.bf16 %v631_v12, %v624_v11  ;;  %v1841_v23 = vpack.c.bf16 %v646_v17, %v639_v15  ;;  %v470_v9 = vld [vmem:[%s2346_s5 + $0x690] sm:$0xff]  ;;  %v477_v10 = vld [vmem:[%s2346_s5 + $0x6c8] sm:$0xff]  ;;  %v487_v15 = vld [vmem:[%s2346_s5 + $0x718] sm:$0xff] }
  0x73   : > { %1822 = vmatprep.subr.bf16.mxu1 %v1821_v20  ;;  %v1617_v20 = vpack.c.bf16 %v422_v14, %v415_v13  ;;  %v694_v11 = vld [vmem:[%s2346_s5 + $0xd90] sm:$0xff]  ;;  %v701_v12 = vld [vmem:[%s2346_s5 + $0xdc8] sm:$0xff]  ;;  %v263_v13 = vld [vmem:[%s2346_s5 + $0x18] sm:$0xff] }
  0x74   : > { %v270_v14 = vld [vmem:[%s2346_s5 + $0x50] sm:$0xff] }
  0x75   : > { %v494_v17 = vld [vmem:[%s2346_s5 + $0x750] sm:$0xff] }
  0x79   : > { %1600 = vmatpush1.bf16.xpose.msra.mxu0 %v1599_v32  ;;  %v1619_v32 = vpack.c.bf16 %v421_v25, %v414_v24  ;;  %v1861_v24 = vpack.c.bf16 %v494_v17, %v487_v15  ;;  %v262_v25 = vld [vmem:[%s2346_s5 + $0x10] sm:$0xff]  ;;  %v340_v15 = vld [vmem:[%s2346_s5 + $0x280] sm:$0xff]  ;;  %v557_v17 = vld [vmem:[%s2346_s5 + $0x948] sm:$0xff] }
  0x7a   : > { %1824 = vmatpush1.bf16.xpose.msra.mxu1 %v1823_v33  ;;  %1602 = vmatprep.subr.bf16.mxu0 %v1601_v34  ;;  %v1843_v33 = vpack.c.bf16 %v645_v27, %v638_v26  ;;  %v1621_v34 = vpack.c.bf16 %v436_v29, %v429_v28  ;;  %v269_v26 = vld [vmem:[%s2346_s5 + $0x48] sm:$0xff]  ;;  %v486_v27 = vld [vmem:[%s2346_s5 + $0x710] sm:$0xff] }
  0x7b   : > { %1826 = vmatprep.subr.bf16.mxu1 %v1825_v35  ;;  %v1845_v35 = vpack.c.bf16 %v660_v31, %v653_v30  ;;  %v493_v28 = vld [vmem:[%s2346_s5 + $0x748] sm:$0xff]  ;;  %v284_v30 = vld [vmem:[%s2346_s5 + $0xc0] sm:$0xff] }
  0x7c   : > { %v277_v29 = vld [vmem:[%s2346_s5 + $0x88] sm:$0xff] }
  0x81   : > { %1604 = vmatpush1.bf16.xpose.msra.mxu0 %v1603_v44  ;;  %v1623_v44 = vpack.c.bf16 %v435_v37, %v428_v36 }
  0x82   : > { %1828 = vmatpush1.bf16.xpose.msra.mxu1 %v1827_v45  ;;  %1606 = vmatprep.subr.bf16.mxu0 %v1605_v46  ;;  %v1847_v45 = vpack.c.bf16 %v659_v39, %v652_v38  ;;  %v1625_v46 = vpack.c.bf16 %v450_v41, %v443_v40  ;;  %v276_v38 = vld [vmem:[%s2346_s5 + $0x80] sm:$0xff]  ;;  %v283_v39 = vld [vmem:[%s2346_s5 + $0xb8] sm:$0xff] }
  0x83   : > { %1830 = vmatprep.subr.bf16.mxu1 %v1829_v47  ;;  %v1849_v47 = vpack.c.bf16 %v674_v43, %v667_v42  ;;  %v500_v40 = vld [vmem:[%s2346_s5 + $0x780] sm:$0xff]  ;;  %v507_v41 = vld [vmem:[%s2346_s5 + $0x7b8] sm:$0xff]  ;;  %v298_v43 = vld [vmem:[%s2346_s5 + $0x130] sm:$0xff] }
  0x84   : > { %v291_v42 = vld [vmem:[%s2346_s5 + $0xf8] sm:$0xff] }
  0x89   : > { %1608 = vmatpush1.bf16.xpose.msra.mxu0 %v1607_v56  ;;  %v1627_v56 = vpack.c.bf16 %v449_v49, %v442_v48  ;;  %v290_v49 = vld [vmem:[%s2346_s5 + $0xf0] sm:$0xff] }
  0x8a   : > { %1832 = vmatpush1.bf16.xpose.msra.mxu1 %v1831_v57  ;;  %1610 = vmatprep.subr.bf16.mxu0 %v1609_v58  ;;  %v1851_v57 = vpack.c.bf16 %v673_v51, %v666_v50  ;;  %v1629_v58 = vpack.c.bf16 %v464_v53, %v457_v52  ;;  %v297_v50 = vld [vmem:[%s2346_s5 + $0x128] sm:$0xff]  ;;  %v514_v51 = vld [vmem:[%s2346_s5 + $0x7f0] sm:$0xff] }
  0x8b   : > { %1834 = vmatprep.subr.bf16.mxu1 %v1833_v59  ;;  %v1853_v59 = vpack.c.bf16 %v688_v55, %v681_v54  ;;  %v521_v52 = vld [vmem:[%s2346_s5 + $0x828] sm:$0xff]  ;;  %v312_v54 = vld [vmem:[%s2346_s5 + $0x1a0] sm:$0xff] }
  0x8c   : > { %v305_v53 = vld [vmem:[%s2346_s5 + $0x168] sm:$0xff] }
  0x8d   : > { %v529_v55 = vld [vmem:[%s2346_s5 + $0x868] sm:$0xff] }
  0x91   : > { %1612 = vmatpush1.bf16.xpose.msra.mxu0 %v1611_v4  ;;  %v1631_v4 = vpack.c.bf16 %v463_v61, %v456_v60  ;;  %v304_v61 = vld [vmem:[%s2346_s5 + $0x160] sm:$0xff] }
  0x92   : > { %1836 = vmatpush1.bf16.xpose.msra.mxu1 %v1835_v5  ;;  %1614 = vmatprep.subr.bf16.mxu0 %v1613_v6  ;;  %v1855_v5 = vpack.c.bf16 %v687_v63, %v680_v62  ;;  %v1633_v6 = vpack.c.bf16 %v478_v1, %v471_v0  ;;  %v311_v62 = vld [vmem:[%s2346_s5 + $0x198] sm:$0xff]  ;;  %v528_v63 = vld [vmem:[%s2346_s5 + $0x860] sm:$0xff] }
  0x93   : > { %1838 = vmatprep.subr.bf16.mxu1 %v1837_v8  ;;  %v1857_v8 = vpack.c.bf16 %v702_v3, %v695_v2  ;;  %v535_v0 = vld [vmem:[%s2346_s5 + $0x898] sm:$0xff]  ;;  %v326_v2 = vld [vmem:[%s2346_s5 + $0x210] sm:$0xff] }
  0x94   : > { %v319_v1 = vld [vmem:[%s2346_s5 + $0x1d8] sm:$0xff] }
  0x95   : > { %v543_v3 = vld [vmem:[%s2346_s5 + $0x8d8] sm:$0xff] }
  0x99   : > { %1616 = vmatpush1.bf16.xpose.msra.mxu0 %v1615_v18  ;;  %v1635_v18 = vpack.c.bf16 %v477_v10, %v470_v9  ;;  %v318_v10 = vld [vmem:[%s2346_s5 + $0x1d0] sm:$0xff] }
  0x9a   : > { %1840 = vmatpush1.bf16.xpose.msra.mxu1 %v1839_v19  ;;  %1618 = vmatprep.subr.bf16.mxu0 %v1617_v20  ;;  %v1859_v19 = vpack.c.bf16 %v701_v12, %v694_v11  ;;  %v1637_v20 = vpack.c.bf16 %v270_v14, %v263_v13  ;;  %v325_v11 = vld [vmem:[%s2346_s5 + $0x208] sm:$0xff]  ;;  %v542_v12 = vld [vmem:[%s2346_s5 + $0x8d0] sm:$0xff] }
  0x9b   : > { %1842 = vmatprep.subr.bf16.mxu1 %v1841_v23  ;;  %v710_v23 = vcombine.high %v2430_v21, %v2430_v21  ;;  %v508_v21 = vld [vmem:[%s2346_s5 + $0x7c0] sm:$0xff]  ;;  %v549_v13 = vld [vmem:[%s2346_s5 + $0x908] sm:$0xff] }
  0x9c   : > { %v333_v14 = vld [vmem:[%s2346_s5 + $0x248] sm:$0xff] }
  0x9d   : > { %v2527_v31 = vrot.slane %v710_v23, %v2427_v16  ;;  %v1657_v23 = vpack.c.bf16 %v340_v15, %v333_v14  ;;  %v410_v14 = vld [vmem:[%s2346_s5 + $0x4b0] sm:$0xff]  ;;  %v627_v15 = vld [vmem:[%s2346_s5 + $0xb78] sm:$0xff] }
  0x9f   : > { %v726_v37 = vcombine.high %v2527_v31, %v2527_v31 }
  0xa1   : > { %1620 = vmatpush1.bf16.xpose.msra.mxu0 %v1619_v32  ;;  %v501_v32 = vld [vmem:[%s2346_s5 + $0x788] sm:$0xff] }
  0xa2   : > { %1844 = vmatpush1.bf16.xpose.msra.mxu1 %v1843_v33  ;;  %1622 = vmatprep.subr.bf16.mxu0 %v1621_v34  ;;  %v1639_v33 = vpack.c.bf16 %v269_v26, %v262_v25  ;;  %v1863_v34 = vpack.c.bf16 %v493_v28, %v486_v27  ;;  %v1865_v36 = vpack.c.bf16 %v508_v21, %v501_v32  ;;  %v332_v25 = vld [vmem:[%s2346_s5 + $0x240] sm:$0xff]  ;;  %v339_v26 = vld [vmem:[%s2346_s5 + $0x278] sm:$0xff]  ;;  %v578_v21 = vld [vmem:[%s2346_s5 + $0x9f0] sm:$0xff] }
  0xa3   : > { %1846 = vmatprep.subr.bf16.mxu1 %v1845_v35  ;;  %v1641_v35 = vpack.c.bf16 %v284_v30, %v277_v29  ;;  %v556_v27 = vld [vmem:[%s2346_s5 + $0x940] sm:$0xff]  ;;  %v563_v28 = vld [vmem:[%s2346_s5 + $0x978] sm:$0xff]  ;;  %v354_v30 = vld [vmem:[%s2346_s5 + $0x2f0] sm:$0xff] }
  0xa4   : > { %v347_v29 = vld [vmem:[%s2346_s5 + $0x2b8] sm:$0xff] }
  0xa5   : > { %v571_v32 = vld [vmem:[%s2346_s5 + $0x9b8] sm:$0xff] }
  0xa9   : > { %1624 = vmatpush1.bf16.xpose.msra.mxu0 %v1623_v44  ;;  %v515_v44 = vld [vmem:[%s2346_s5 + $0x7f8] sm:$0xff] }
  0xaa   : > { %1848 = vmatpush1.bf16.xpose.msra.mxu1 %v1847_v45  ;;  %1626 = vmatprep.subr.bf16.mxu0 %v1625_v46  ;;  %v522_v45 = vld [vmem:[%s2346_s5 + $0x830] sm:$0xff]  ;;  %v1867_v46 = vpack.c.bf16 %v507_v41, %v500_v40  ;;  %v577_v40 = vld [vmem:[%s2346_s5 + $0x9e8] sm:$0xff] }
  0xab   : > { %1850 = vmatprep.subr.bf16.mxu1 %v1849_v47  ;;  %v1645_v47 = vpack.c.bf16 %v298_v43, %v291_v42  ;;  %v1869_v48 = vpack.c.bf16 %v522_v45, %v515_v44  ;;  %v361_v41 = vld [vmem:[%s2346_s5 + $0x328] sm:$0xff]  ;;  %v368_v42 = vld [vmem:[%s2346_s5 + $0x360] sm:$0xff] }
  0xac   : > { %v585_v43 = vld [vmem:[%s2346_s5 + $0xa28] sm:$0xff]  ;;  %v592_v44 = vld [vmem:[%s2346_s5 + $0xa60] sm:$0xff] }
  0xb1   : > { %1628 = vmatpush1.bf16.xpose.msra.mxu0 %v1627_v56  ;;  %v536_v56 = vld [vmem:[%s2346_s5 + $0x8a0] sm:$0xff] }
  0xb2   : > { %1852 = vmatpush1.bf16.xpose.msra.mxu1 %v1851_v57  ;;  %1630 = vmatprep.subr.bf16.mxu0 %v1629_v58  ;;  %v1647_v57 = vpack.c.bf16 %v297_v50, %v290_v49  ;;  %v1871_v58 = vpack.c.bf16 %v521_v52, %v514_v51  ;;  %v1873_v60 = vpack.c.bf16 %v536_v56, %v529_v55  ;;  %v367_v49 = vld [vmem:[%s2346_s5 + $0x358] sm:$0xff]  ;;  %v584_v50 = vld [vmem:[%s2346_s5 + $0xa20] sm:$0xff]  ;;  %v606_v55 = vld [vmem:[%s2346_s5 + $0xad0] sm:$0xff] }
  0xb3   : > { %1854 = vmatprep.subr.bf16.mxu1 %v1853_v59  ;;  %v1649_v59 = vpack.c.bf16 %v312_v54, %v305_v53  ;;  %v591_v51 = vld [vmem:[%s2346_s5 + $0xa58] sm:$0xff]  ;;  %v382_v53 = vld [vmem:[%s2346_s5 + $0x3d0] sm:$0xff] }
  0xb4   : > { %v375_v52 = vld [vmem:[%s2346_s5 + $0x398] sm:$0xff] }
  0xb5   : > { %v599_v54 = vld [vmem:[%s2346_s5 + $0xa98] sm:$0xff] }
  0xb9   : > { %1632 = vmatpush1.bf16.xpose.msra.mxu0 %v1631_v4  ;;  %v550_v4 = vld [vmem:[%s2346_s5 + $0x910] sm:$0xff] }
  0xba   : > { %1856 = vmatpush1.bf16.xpose.msra.mxu1 %v1855_v5  ;;  %1634 = vmatprep.subr.bf16.mxu0 %v1633_v6  ;;  %v1651_v5 = vpack.c.bf16 %v311_v62, %v304_v61  ;;  %v1875_v6 = vpack.c.bf16 %v535_v0, %v528_v63  ;;  %v1877_v9 = vpack.c.bf16 %v550_v4, %v543_v3  ;;  %v381_v61 = vld [vmem:[%s2346_s5 + $0x3c8] sm:$0xff]  ;;  %v598_v62 = vld [vmem:[%s2346_s5 + $0xa90] sm:$0xff]  ;;  %v620_v3 = vld [vmem:[%s2346_s5 + $0xb40] sm:$0xff] }
  0xbb   : > { %1858 = vmatprep.subr.bf16.mxu1 %v1857_v8  ;;  %v1653_v8 = vpack.c.bf16 %v326_v2, %v319_v1  ;;  %v605_v63 = vld [vmem:[%s2346_s5 + $0xac8] sm:$0xff]  ;;  %v396_v1 = vld [vmem:[%s2346_s5 + $0x440] sm:$0xff] }
  0xbc   : > { %v389_v0 = vld [vmem:[%s2346_s5 + $0x408] sm:$0xff] }
  0xbd   : > { %v613_v2 = vld [vmem:[%s2346_s5 + $0xb08] sm:$0xff] }
  0xc1   : > { %1636 = vmatpush1.bf16.xpose.msra.mxu0 %v1635_v18  ;;  %v564_v18 = vld [vmem:[%s2346_s5 + $0x980] sm:$0xff] }
  0xc2   : > { %1860 = vmatpush1.bf16.xpose.msra.mxu1 %v1859_v19  ;;  %1638 = vmatprep.subr.bf16.mxu0 %v1637_v20  ;;  %v1655_v19 = vpack.c.bf16 %v325_v11, %v318_v10  ;;  %v1879_v20 = vpack.c.bf16 %v549_v13, %v542_v12  ;;  %v395_v10 = vld [vmem:[%s2346_s5 + $0x438] sm:$0xff]  ;;  %v612_v11 = vld [vmem:[%s2346_s5 + $0xb00] sm:$0xff] }
  0xc3   : > { %1862 = vmatprep.subr.bf16.mxu1 %v1861_v24  ;;  %v1881_v24 = vpack.c.bf16 %v564_v18, %v557_v17  ;;  %v619_v12 = vld [vmem:[%s2346_s5 + $0xb38] sm:$0xff]  ;;  %v634_v17 = vld [vmem:[%s2346_s5 + $0xbb0] sm:$0xff] }
  0xc4   : > { %v403_v13 = vld [vmem:[%s2346_s5 + $0x478] sm:$0xff] }
  0xc8   : > { %815 = vmatmul.mubr.f32.vlgmr.msra.gmra.mrb[0].mxu0 %v2434_v22 }
  0xc9   : > { %1640 = vmatpush1.bf16.xpose.msra.mxu0 %v1639_v33  ;;  %1099 = vmatmul.mubr.f32.vlgmr.msra.gmra.mrb[0].mxu1 %v2434_v22  ;;  %v1643_v22 = vpack.c.bf16 %v283_v39, %v276_v38  ;;  %v1659_v33 = vpack.c.bf16 %v339_v26, %v332_v25  ;;  %v353_v38 = vld [vmem:[%s2346_s5 + $0x2e8] sm:$0xff]  ;;  %v570_v39 = vld [vmem:[%s2346_s5 + $0x9b0] sm:$0xff] }
  0xca   : > { %1864 = vmatpush1.bf16.xpose.msra.mxu1 %v1863_v34  ;;  %1642 = vmatprep.subr.bf16.mxu0 %v1641_v35  ;;  %v1883_v34 = vpack.c.bf16 %v563_v28, %v556_v27  ;;  %v1661_v35 = vpack.c.bf16 %v354_v30, %v347_v29  ;;  %v409_v25 = vld [vmem:[%s2346_s5 + $0x4a8] sm:$0xff]  ;;  %v626_v26 = vld [vmem:[%s2346_s5 + $0xb70] sm:$0xff]  ;;  %v424_v29 = vld [vmem:[%s2346_s5 + $0x520] sm:$0xff] }
  0xcb   : > { %1866 = vmatprep.subr.bf16.mxu1 %v1865_v36  ;;  %885 = vmatprep.mubr.f32.mxu0 %v726_v37  ;;  %v1885_v36 = vpack.c.bf16 %v578_v21, %v571_v32  ;;  %v633_v27 = vld [vmem:[%s2346_s5 + $0xba8] sm:$0xff]  ;;  %v648_v32 = vld [vmem:[%s2346_s5 + $0xc20] sm:$0xff] }
  0xcc   : > { %1169 = vmatprep.mubr.f32.mxu1 %v726_v37  ;;  %v346_v37 = vld [vmem:[%s2346_s5 + $0x2b0] sm:$0xff]  ;;  %v417_v28 = vld [vmem:[%s2346_s5 + $0x4e8] sm:$0xff] }
  0xcd   : > { %v1663_v45 = vpack.c.bf16 %v353_v38, %v346_v37  ;;  %v641_v30 = vld [vmem:[%s2346_s5 + $0xbe8] sm:$0xff]  ;;  %v423_v37 = vld [vmem:[%s2346_s5 + $0x518] sm:$0xff]  ;;  %v640_v38 = vld [vmem:[%s2346_s5 + $0xbe0] sm:$0xff] }
  0xd1   : > { %1644 = vmatpush1.bf16.xpose.msra.mxu0 %v1643_v22  ;;  %v1887_v22 = vpack.c.bf16 %v577_v40, %v570_v39  ;;  %v647_v39 = vld [vmem:[%s2346_s5 + $0xc18] sm:$0xff] }
  0xd2   : > { %1868 = vmatpush1.bf16.xpose.msra.mxu1 %v1867_v46  ;;  %1646 = vmatprep.subr.bf16.mxu0 %v1645_v47  ;;  %v1665_v46 = vpack.c.bf16 %v368_v42, %v361_v41  ;;  %v1889_v47 = vpack.c.bf16 %v592_v44, %v585_v43  ;;  %v431_v40 = vld [vmem:[%s2346_s5 + $0x558] sm:$0xff]  ;;  %v438_v41 = vld [vmem:[%s2346_s5 + $0x590] sm:$0xff] }
  0xd3   : > { %1870 = vmatprep.subr.bf16.mxu1 %v1869_v48  ;;  %v360_v48 = vld [vmem:[%s2346_s5 + $0x320] sm:$0xff]  ;;  %v655_v42 = vld [vmem:[%s2346_s5 + $0xc58] sm:$0xff]  ;;  %v662_v43 = vld [vmem:[%s2346_s5 + $0xc90] sm:$0xff] }
  0xd4   : > { %v1667_v56 = vpack.c.bf16 %v367_v49, %v360_v48  ;;  %v437_v48 = vld [vmem:[%s2346_s5 + $0x588] sm:$0xff]  ;;  %v654_v49 = vld [vmem:[%s2346_s5 + $0xc50] sm:$0xff] }
  0xd9   : > { %1648 = vmatpush1.bf16.xpose.msra.mxu0 %v1647_v57  ;;  %v1891_v57 = vpack.c.bf16 %v591_v51, %v584_v50  ;;  %v661_v50 = vld [vmem:[%s2346_s5 + $0xc88] sm:$0xff] }
  0xda   : > { %1872 = vmatpush1.bf16.xpose.msra.mxu1 %v1871_v58  ;;  %1650 = vmatprep.subr.bf16.mxu0 %v1649_v59  ;;  %v1669_v58 = vpack.c.bf16 %v382_v53, %v375_v52  ;;  %v1893_v59 = vpack.c.bf16 %v606_v55, %v599_v54  ;;  %v445_v51 = vld [vmem:[%s2346_s5 + $0x5c8] sm:$0xff]  ;;  %v452_v52 = vld [vmem:[%s2346_s5 + $0x600] sm:$0xff] }
  0xdb   : > { %1874 = vmatprep.subr.bf16.mxu1 %v1873_v60  ;;  %v374_v60 = vld [vmem:[%s2346_s5 + $0x390] sm:$0xff]  ;;  %v669_v53 = vld [vmem:[%s2346_s5 + $0xcc8] sm:$0xff]  ;;  %v676_v54 = vld [vmem:[%s2346_s5 + $0xd00] sm:$0xff] }
  0xdc   : > { %v1671_v4 = vpack.c.bf16 %v381_v61, %v374_v60  ;;  %v451_v60 = vld [vmem:[%s2346_s5 + $0x5f8] sm:$0xff]  ;;  %v668_v61 = vld [vmem:[%s2346_s5 + $0xcc0] sm:$0xff] }
  0xe1   : > { %1652 = vmatpush1.bf16.xpose.msra.mxu0 %v1651_v5  ;;  %v1895_v5 = vpack.c.bf16 %v605_v63, %v598_v62  ;;  %v675_v62 = vld [vmem:[%s2346_s5 + $0xcf8] sm:$0xff] }
  0xe2   : > { %1876 = vmatpush1.bf16.xpose.msra.mxu1 %v1875_v6  ;;  %1654 = vmatprep.subr.bf16.mxu0 %v1653_v8  ;;  %v1673_v6 = vpack.c.bf16 %v396_v1, %v389_v0  ;;  %v1897_v8 = vpack.c.bf16 %v620_v3, %v613_v2  ;;  %v459_v63 = vld [vmem:[%s2346_s5 + $0x638] sm:$0xff]  ;;  %v466_v0 = vld [vmem:[%s2346_s5 + $0x670] sm:$0xff] }
  0xe3   : > { %1878 = vmatprep.subr.bf16.mxu1 %v1877_v9  ;;  %v388_v9 = vld [vmem:[%s2346_s5 + $0x400] sm:$0xff]  ;;  %v683_v1 = vld [vmem:[%s2346_s5 + $0xd38] sm:$0xff]  ;;  %v690_v2 = vld [vmem:[%s2346_s5 + $0xd70] sm:$0xff] }
  0xe4   : > { %v1675_v18 = vpack.c.bf16 %v395_v10, %v388_v9  ;;  %v465_v9 = vld [vmem:[%s2346_s5 + $0x668] sm:$0xff]  ;;  %v682_v10 = vld [vmem:[%s2346_s5 + $0xd30] sm:$0xff] }
  0xe9   : > { %1656 = vmatpush1.bf16.xpose.msra.mxu0 %v1655_v19  ;;  %v1899_v19 = vpack.c.bf16 %v619_v12, %v612_v11  ;;  %v689_v11 = vld [vmem:[%s2346_s5 + $0xd68] sm:$0xff] }
  0xea   : > { %1880 = vmatpush1.bf16.xpose.msra.mxu1 %v1879_v20  ;;  %1658 = vmatprep.subr.bf16.mxu0 %v1657_v23  ;;  %v1677_v20 = vpack.c.bf16 %v410_v14, %v403_v13  ;;  %v1901_v23 = vpack.c.bf16 %v634_v17, %v627_v15  ;;  %v473_v12 = vld [vmem:[%s2346_s5 + $0x6a8] sm:$0xff]  ;;  %v480_v13 = vld [vmem:[%s2346_s5 + $0x6e0] sm:$0xff] }
  0xeb   : > { %1882 = vmatprep.subr.bf16.mxu1 %v1881_v24  ;;  %v402_v24 = vld [vmem:[%s2346_s5 + $0x470] sm:$0xff]  ;;  %v697_v14 = vld [vmem:[%s2346_s5 + $0xda8] sm:$0xff]  ;;  %v704_v15 = vld [vmem:[%s2346_s5 + $0xde0] sm:$0xff] }
  0xec   : > { %v1679_v21 = vpack.c.bf16 %v409_v25, %v402_v24  ;;  %v479_v24 = vld [vmem:[%s2346_s5 + $0x6d8] sm:$0xff]  ;;  %v696_v25 = vld [vmem:[%s2346_s5 + $0xda0] sm:$0xff] }
  0xf1   : > { %1660 = vmatpush1.bf16.xpose.msra.mxu0 %v1659_v33  ;;  %v1903_v33 = vpack.c.bf16 %v633_v27, %v626_v26  ;;  %v703_v26 = vld [vmem:[%s2346_s5 + $0xdd8] sm:$0xff]  ;;  %v265_v27 = vld [vmem:[%s2346_s5 + $0x28] sm:$0xff] }
  0xf2   : > { %1884 = vmatpush1.bf16.xpose.msra.mxu1 %v1883_v34  ;;  %1662 = vmatprep.subr.bf16.mxu0 %v1661_v35  ;;  %v1681_v34 = vpack.c.bf16 %v424_v29, %v417_v28  ;;  %v1905_v35 = vpack.c.bf16 %v648_v32, %v641_v30  ;;  %v272_v28 = vld [vmem:[%s2346_s5 + $0x60] sm:$0xff]  ;;  %v489_v29 = vld [vmem:[%s2346_s5 + $0x728] sm:$0xff] }
  0xf3   : > { %1886 = vmatprep.subr.bf16.mxu1 %v1885_v36  ;;  %v416_v36 = vld [vmem:[%s2346_s5 + $0x4e0] sm:$0xff] }
  0xf4   : > { %v1683_v44 = vpack.c.bf16 %v423_v37, %v416_v36  ;;  %v496_v30 = vld [vmem:[%s2346_s5 + $0x760] sm:$0xff]  ;;  %v271_v36 = vld [vmem:[%s2346_s5 + $0x58] sm:$0xff] }
  0xf5   : > { %v488_v37 = vld [vmem:[%s2346_s5 + $0x720] sm:$0xff] }
  0xf9   : > { %1664 = vmatpush1.bf16.xpose.msra.mxu0 %v1663_v45  ;;  %v1907_v45 = vpack.c.bf16 %v647_v39, %v640_v38  ;;  %v2659_v38 = vld [vmem:[%s2369_s12 + $0x8] sm:$0x3f]  ;;  %v495_v39 = vld [vmem:[%s2346_s5 + $0x758] sm:$0xff] }
  0xfa   : > { %1888 = vmatpush1.bf16.xpose.msra.mxu1 %v1887_v22  ;;  %1666 = vmatprep.subr.bf16.mxu0 %v1665_v46  ;;  %v1685_v22 = vpack.c.bf16 %v438_v41, %v431_v40  ;;  %v1909_v46 = vpack.c.bf16 %v662_v43, %v655_v42  ;;  %v279_v40 = vld [vmem:[%s2346_s5 + $0x98] sm:$0xff]  ;;  %v286_v41 = vld [vmem:[%s2346_s5 + $0xd0] sm:$0xff]  ;;  %v2666_v42 = vrot.slane %v2659_v38, %v2427_v16 }
  0xfb   : > { %1890 = vmatprep.subr.bf16.mxu1 %v1889_v47  ;;  %v430_v47 = vld [vmem:[%s2346_s5 + $0x550] sm:$0xff]  ;;  %v503_v43 = vld [vmem:[%s2346_s5 + $0x798] sm:$0xff] }
  0xfc   : > { %v1687_v55 = vpack.c.bf16 %v437_v48, %v430_v47  ;;  %v742_v48 = vcombine.high %v2666_v42, %v2666_v42 }
 0x101   : > { %1668 = vmatpush1.bf16.xpose.msra.mxu0 %v1667_v56  ;;  %v1911_v56 = vpack.c.bf16 %v661_v50, %v654_v49  ;;  %v278_v49 = vld [vmem:[%s2346_s5 + $0x90] sm:$0xff]  ;;  %v285_v50 = vld [vmem:[%s2346_s5 + $0xc8] sm:$0xff] }
 0x102   : > { %1892 = vmatpush1.bf16.xpose.msra.mxu1 %v1891_v57  ;;  %1670 = vmatprep.subr.bf16.mxu0 %v1669_v58  ;;  %v1689_v57 = vpack.c.bf16 %v452_v52, %v445_v51  ;;  %v1913_v58 = vpack.c.bf16 %v676_v54, %v669_v53  ;;  %v502_v51 = vld [vmem:[%s2346_s5 + $0x790] sm:$0xff]  ;;  %v509_v52 = vld [vmem:[%s2346_s5 + $0x7c8] sm:$0xff]  ;;  %v300_v54 = vld [vmem:[%s2346_s5 + $0x140] sm:$0xff] }
 0x103   : > { %1894 = vmatprep.subr.bf16.mxu1 %v1893_v59  ;;  %v444_v59 = vld [vmem:[%s2346_s5 + $0x5c0] sm:$0xff]  ;;  %v293_v53 = vld [vmem:[%s2346_s5 + $0x108] sm:$0xff] }
 0x104   : > { %v1691_v3 = vpack.c.bf16 %v451_v60, %v444_v59  ;;  %v292_v60 = vld [vmem:[%s2346_s5 + $0x100] sm:$0xff] }
 0x109   : > { %1672 = vmatpush1.bf16.xpose.msra.mxu0 %v1671_v4  ;;  %v1915_v4 = vpack.c.bf16 %v675_v62, %v668_v61  ;;  %v299_v61 = vld [vmem:[%s2346_s5 + $0x138] sm:$0xff]  ;;  %v516_v62 = vld [vmem:[%s2346_s5 + $0x800] sm:$0xff] }
 0x10a   : > { %1896 = vmatpush1.bf16.xpose.msra.mxu1 %v1895_v5  ;;  %1674 = vmatprep.subr.bf16.mxu0 %v1673_v6  ;;  %v1693_v5 = vpack.c.bf16 %v466_v0, %v459_v63  ;;  %v1917_v6 = vpack.c.bf16 %v690_v2, %v683_v1  ;;  %v523_v63 = vld [vmem:[%s2346_s5 + $0x838] sm:$0xff]  ;;  %v314_v1 = vld [vmem:[%s2346_s5 + $0x1b0] sm:$0xff] }
 0x10b   : > { %1898 = vmatprep.subr.bf16.mxu1 %v1897_v8  ;;  %v458_v8 = vld [vmem:[%s2346_s5 + $0x630] sm:$0xff]  ;;  %v307_v0 = vld [vmem:[%s2346_s5 + $0x178] sm:$0xff] }
 0x10c   : > { %v1695_v17 = vpack.c.bf16 %v465_v9, %v458_v8  ;;  %v531_v2 = vld [vmem:[%s2346_s5 + $0x878] sm:$0xff]  ;;  %v306_v9 = vld [vmem:[%s2346_s5 + $0x170] sm:$0xff] }
 0x111   : > { %1676 = vmatpush1.bf16.xpose.msra.mxu0 %v1675_v18  ;;  %v1919_v18 = vpack.c.bf16 %v689_v11, %v682_v10  ;;  %v313_v10 = vld [vmem:[%s2346_s5 + $0x1a8] sm:$0xff]  ;;  %v530_v11 = vld [vmem:[%s2346_s5 + $0x870] sm:$0xff] }
 0x112   : > { %1900 = vmatpush1.bf16.xpose.msra.mxu1 %v1899_v19  ;;  %1678 = vmatprep.subr.bf16.mxu0 %v1677_v20  ;;  %v1697_v19 = vpack.c.bf16 %v480_v13, %v473_v12  ;;  %v1921_v20 = vpack.c.bf16 %v704_v15, %v697_v14  ;;  %v537_v12 = vld [vmem:[%s2346_s5 + $0x8a8] sm:$0xff]  ;;  %v328_v14 = vld [vmem:[%s2346_s5 + $0x220] sm:$0xff] }
 0x113   : > { %1902 = vmatprep.subr.bf16.mxu1 %v1901_v23  ;;  %v472_v23 = vld [vmem:[%s2346_s5 + $0x6a0] sm:$0xff]  ;;  %v321_v13 = vld [vmem:[%s2346_s5 + $0x1e8] sm:$0xff] }
 0x114   : > { %v1699_v32 = vpack.c.bf16 %v479_v24, %v472_v23  ;;  %v545_v15 = vld [vmem:[%s2346_s5 + $0x8e8] sm:$0xff]  ;;  %v320_v24 = vld [vmem:[%s2346_s5 + $0x1e0] sm:$0xff] }
 0x119   : > { %1680 = vmatpush1.bf16.xpose.msra.mxu0 %v1679_v21  ;;  %v1923_v21 = vpack.c.bf16 %v703_v26, %v696_v25  ;;  %v327_v25 = vld [vmem:[%s2346_s5 + $0x218] sm:$0xff]  ;;  %v544_v26 = vld [vmem:[%s2346_s5 + $0x8e0] sm:$0xff] }
 0x11a   : > { %1904 = vmatpush1.bf16.xpose.msra.mxu1 %v1903_v33  ;;  %1682 = vmatprep.subr.bf16.mxu0 %v1681_v34  ;;  %v1701_v33 = vpack.c.bf16 %v272_v28, %v265_v27  ;;  %v1925_v34 = vpack.c.bf16 %v496_v30, %v489_v29  ;;  %v551_v27 = vld [vmem:[%s2346_s5 + $0x918] sm:$0xff]  ;;  %v342_v29 = vld [vmem:[%s2346_s5 + $0x290] sm:$0xff] }
 0x11b   : > { %1906 = vmatprep.subr.bf16.mxu1 %v1905_v35  ;;  %v264_v35 = vld [vmem:[%s2346_s5 + $0x20] sm:$0xff]  ;;  %v335_v28 = vld [vmem:[%s2346_s5 + $0x258] sm:$0xff] }
 0x11c   : > { %v559_v30 = vld [vmem:[%s2346_s5 + $0x958] sm:$0xff] }
 0x121   : > { %1684 = vmatpush1.bf16.xpose.msra.mxu0 %v1683_v44  ;;  %v510_v44 = vld [vmem:[%s2346_s5 + $0x7d0] sm:$0xff] }
 0x122   : > { %1908 = vmatpush1.bf16.xpose.msra.mxu1 %v1907_v45  ;;  %1686 = vmatprep.subr.bf16.mxu0 %v1685_v22  ;;  %v1703_v45 = vpack.c.bf16 %v271_v36, %v264_v35  ;;  %v1927_v22 = vpack.c.bf16 %v495_v39, %v488_v37  ;;  %v1929_v47 = vpack.c.bf16 %v510_v44, %v503_v43  ;;  %v334_v36 = vld [vmem:[%s2346_s5 + $0x250] sm:$0xff]  ;;  %v341_v37 = vld [vmem:[%s2346_s5 + $0x288] sm:$0xff]  ;;  %v356_v43 = vld [vmem:[%s2346_s5 + $0x300] sm:$0xff] }
 0x123   : > { %1910 = vmatprep.subr.bf16.mxu1 %v1909_v46  ;;  %v1705_v46 = vpack.c.bf16 %v286_v41, %v279_v40  ;;  %v558_v39 = vld [vmem:[%s2346_s5 + $0x950] sm:$0xff]  ;;  %v565_v40 = vld [vmem:[%s2346_s5 + $0x988] sm:$0xff] }
 0x124   : > { %v349_v41 = vld [vmem:[%s2346_s5 + $0x2c8] sm:$0xff] }
 0x125   : > { %v573_v44 = vld [vmem:[%s2346_s5 + $0x9c8] sm:$0xff] }
 0x129   : > { %1688 = vmatpush1.bf16.xpose.msra.mxu0 %v1687_v55  ;;  %v517_v55 = vld [vmem:[%s2346_s5 + $0x808] sm:$0xff] }
 0x12a   : > { %1912 = vmatpush1.bf16.xpose.msra.mxu1 %v1911_v56  ;;  %1690 = vmatprep.subr.bf16.mxu0 %v1689_v57  ;;  %v524_v56 = vld [vmem:[%s2346_s5 + $0x840] sm:$0xff]  ;;  %v1931_v57 = vpack.c.bf16 %v509_v52, %v502_v51  ;;  %v579_v52 = vld [vmem:[%s2346_s5 + $0x9f8] sm:$0xff] }
 0x12b   : > { %1914 = vmatprep.subr.bf16.mxu1 %v1913_v58  ;;  %v1709_v58 = vpack.c.bf16 %v300_v54, %v293_v53  ;;  %v1933_v59 = vpack.c.bf16 %v524_v56, %v517_v55  ;;  %v572_v51 = vld [vmem:[%s2346_s5 + $0x9c0] sm:$0xff]  ;;  %v363_v53 = vld [vmem:[%s2346_s5 + $0x338] sm:$0xff]  ;;  %v370_v54 = vld [vmem:[%s2346_s5 + $0x370] sm:$0xff] }
 0x12c   : > { %v587_v55 = vld [vmem:[%s2346_s5 + $0xa38] sm:$0xff]  ;;  %v594_v56 = vld [vmem:[%s2346_s5 + $0xa70] sm:$0xff] }
 0x131   : > { %1692 = vmatpush1.bf16.xpose.msra.mxu0 %v1691_v3  ;;  %v538_v3 = vld [vmem:[%s2346_s5 + $0x8b0] sm:$0xff] }
 0x132   : > { %1916 = vmatpush1.bf16.xpose.msra.mxu1 %v1915_v4  ;;  %1694 = vmatprep.subr.bf16.mxu0 %v1693_v5  ;;  %v1711_v4 = vpack.c.bf16 %v299_v61, %v292_v60  ;;  %v1935_v5 = vpack.c.bf16 %v523_v63, %v516_v62  ;;  %v1937_v8 = vpack.c.bf16 %v538_v3, %v531_v2  ;;  %v362_v60 = vld [vmem:[%s2346_s5 + $0x330] sm:$0xff]  ;;  %v369_v61 = vld [vmem:[%s2346_s5 + $0x368] sm:$0xff]  ;;  %v608_v3 = vld [vmem:[%s2346_s5 + $0xae0] sm:$0xff] }
 0x133   : > { %1918 = vmatprep.subr.bf16.mxu1 %v1917_v6  ;;  %v1713_v6 = vpack.c.bf16 %v314_v1, %v307_v0  ;;  %v586_v62 = vld [vmem:[%s2346_s5 + $0xa30] sm:$0xff]  ;;  %v593_v63 = vld [vmem:[%s2346_s5 + $0xa68] sm:$0xff]  ;;  %v384_v1 = vld [vmem:[%s2346_s5 + $0x3e0] sm:$0xff] }
 0x134   : > { %v377_v0 = vld [vmem:[%s2346_s5 + $0x3a8] sm:$0xff] }
 0x135   : > { %v601_v2 = vld [vmem:[%s2346_s5 + $0xaa8] sm:$0xff] }
 0x139   : > { %1696 = vmatpush1.bf16.xpose.msra.mxu0 %v1695_v17  ;;  %v552_v17 = vld [vmem:[%s2346_s5 + $0x920] sm:$0xff] }
 0x13a   : > { %1920 = vmatpush1.bf16.xpose.msra.mxu1 %v1919_v18  ;;  %1698 = vmatprep.subr.bf16.mxu0 %v1697_v19  ;;  %v1715_v18 = vpack.c.bf16 %v313_v10, %v306_v9  ;;  %v1939_v19 = vpack.c.bf16 %v537_v12, %v530_v11  ;;  %v1941_v23 = vpack.c.bf16 %v552_v17, %v545_v15  ;;  %v376_v9 = vld [vmem:[%s2346_s5 + $0x3a0] sm:$0xff]  ;;  %v383_v10 = vld [vmem:[%s2346_s5 + $0x3d8] sm:$0xff]  ;;  %v622_v17 = vld [vmem:[%s2346_s5 + $0xb50] sm:$0xff] }
 0x13b   : > { %1922 = vmatprep.subr.bf16.mxu1 %v1921_v20  ;;  %v1717_v20 = vpack.c.bf16 %v328_v14, %v321_v13  ;;  %v600_v11 = vld [vmem:[%s2346_s5 + $0xaa0] sm:$0xff]  ;;  %v607_v12 = vld [vmem:[%s2346_s5 + $0xad8] sm:$0xff]  ;;  %v398_v14 = vld [vmem:[%s2346_s5 + $0x450] sm:$0xff] }
 0x13c   : > { %v391_v13 = vld [vmem:[%s2346_s5 + $0x418] sm:$0xff] }
 0x13d   : > { %v615_v15 = vld [vmem:[%s2346_s5 + $0xb18] sm:$0xff] }
 0x141   : > { %1700 = vmatpush1.bf16.xpose.msra.mxu0 %v1699_v32  ;;  %v566_v32 = vld [vmem:[%s2346_s5 + $0x990] sm:$0xff] }
 0x142   : > { %1924 = vmatpush1.bf16.xpose.msra.mxu1 %v1923_v21  ;;  %1702 = vmatprep.subr.bf16.mxu0 %v1701_v33  ;;  %v1719_v21 = vpack.c.bf16 %v327_v25, %v320_v24  ;;  %v1943_v33 = vpack.c.bf16 %v551_v27, %v544_v26  ;;  %v1945_v35 = vpack.c.bf16 %v566_v32, %v559_v30  ;;  %v390_v24 = vld [vmem:[%s2346_s5 + $0x410] sm:$0xff]  ;;  %v397_v25 = vld [vmem:[%s2346_s5 + $0x448] sm:$0xff]  ;;  %v636_v32 = vld [vmem:[%s2346_s5 + $0xbc0] sm:$0xff] }
 0x143   : > { %1926 = vmatprep.subr.bf16.mxu1 %v1925_v34  ;;  %v1721_v34 = vpack.c.bf16 %v342_v29, %v335_v28  ;;  %v614_v26 = vld [vmem:[%s2346_s5 + $0xb10] sm:$0xff]  ;;  %v621_v27 = vld [vmem:[%s2346_s5 + $0xb48] sm:$0xff]  ;;  %v412_v29 = vld [vmem:[%s2346_s5 + $0x4c0] sm:$0xff] }
 0x144   : > { %v405_v28 = vld [vmem:[%s2346_s5 + $0x488] sm:$0xff] }
 0x145   : > { %v629_v30 = vld [vmem:[%s2346_s5 + $0xb88] sm:$0xff] }
 0x148   : > { %886 = vmatmul.mubr.f32.vlgmr.msra.gmra.mrb[0].mxu0 %v2527_v31 }
 0x149   : > { %1704 = vmatpush1.bf16.xpose.msra.mxu0 %v1703_v45  ;;  %1170 = vmatmul.mubr.f32.vlgmr.msra.gmra.mrb[0].mxu1 %v2527_v31  ;;  %v1707_v31 = vpack.c.bf16 %v285_v50, %v278_v49  ;;  %v580_v45 = vld [vmem:[%s2346_s5 + $0xa00] sm:$0xff]  ;;  %v355_v50 = vld [vmem:[%s2346_s5 + $0x2f8] sm:$0xff] }
 0x14a   : > { %1928 = vmatpush1.bf16.xpose.msra.mxu1 %v1927_v22  ;;  %1706 = vmatprep.subr.bf16.mxu0 %v1705_v46  ;;  %v1723_v22 = vpack.c.bf16 %v341_v37, %v334_v36  ;;  %v1947_v46 = vpack.c.bf16 %v565_v40, %v558_v39  ;;  %v348_v49 = vld [vmem:[%s2346_s5 + $0x2c0] sm:$0xff]  ;;  %v411_v37 = vld [vmem:[%s2346_s5 + $0x4b8] sm:$0xff] }
 0x14b   : > { %1930 = vmatprep.subr.bf16.mxu1 %v1929_v47  ;;  %956 = vmatprep.mubr.f32.mxu0 %v742_v48  ;;  %v1725_v47 = vpack.c.bf16 %v356_v43, %v349_v41  ;;  %v404_v36 = vld [vmem:[%s2346_s5 + $0x480] sm:$0xff]  ;;  %v635_v40 = vld [vmem:[%s2346_s5 + $0xbb8] sm:$0xff]  ;;  %v426_v43 = vld [vmem:[%s2346_s5 + $0x530] sm:$0xff] }
 0x14c   : > { %1240 = vmatprep.mubr.f32.mxu1 %v742_v48  ;;  %v1949_v48 = vpack.c.bf16 %v580_v45, %v573_v44  ;;  %v628_v39 = vld [vmem:[%s2346_s5 + $0xb80] sm:$0xff]  ;;  %v419_v41 = vld [vmem:[%s2346_s5 + $0x4f8] sm:$0xff]  ;;  %v650_v45 = vld [vmem:[%s2346_s5 + $0xc30] sm:$0xff] }
 0x14d   : > { %v643_v44 = vld [vmem:[%s2346_s5 + $0xbf8] sm:$0xff] }
 0x151   : > { %1708 = vmatpush1.bf16.xpose.msra.mxu0 %v1707_v31  ;;  %v1727_v31 = vpack.c.bf16 %v355_v50, %v348_v49  ;;  %v418_v49 = vld [vmem:[%s2346_s5 + $0x4f0] sm:$0xff]  ;;  %v425_v50 = vld [vmem:[%s2346_s5 + $0x528] sm:$0xff] }
 0x152   : > { %1932 = vmatpush1.bf16.xpose.msra.mxu1 %v1931_v57  ;;  %1710 = vmatprep.subr.bf16.mxu0 %v1709_v58  ;;  %v1951_v57 = vpack.c.bf16 %v579_v52, %v572_v51  ;;  %v1729_v58 = vpack.c.bf16 %v370_v54, %v363_v53  ;;  %v642_v51 = vld [vmem:[%s2346_s5 + $0xbf0] sm:$0xff]  ;;  %v649_v52 = vld [vmem:[%s2346_s5 + $0xc28] sm:$0xff]  ;;  %v440_v54 = vld [vmem:[%s2346_s5 + $0x5a0] sm:$0xff] }
 0x153   : > { %1934 = vmatprep.subr.bf16.mxu1 %v1933_v59  ;;  %v1953_v59 = vpack.c.bf16 %v594_v56, %v587_v55  ;;  %v433_v53 = vld [vmem:[%s2346_s5 + $0x568] sm:$0xff]  ;;  %v664_v56 = vld [vmem:[%s2346_s5 + $0xca0] sm:$0xff] }
 0x154   : > { %v657_v55 = vld [vmem:[%s2346_s5 + $0xc68] sm:$0xff] }
 0x159   : > { %1712 = vmatpush1.bf16.xpose.msra.mxu0 %v1711_v4  ;;  %v1731_v4 = vpack.c.bf16 %v369_v61, %v362_v60  ;;  %v432_v60 = vld [vmem:[%s2346_s5 + $0x560] sm:$0xff]  ;;  %v439_v61 = vld [vmem:[%s2346_s5 + $0x598] sm:$0xff] }
 0x15a   : > { %1936 = vmatpush1.bf16.xpose.msra.mxu1 %v1935_v5  ;;  %1714 = vmatprep.subr.bf16.mxu0 %v1713_v6  ;;  %v1955_v5 = vpack.c.bf16 %v593_v63, %v586_v62  ;;  %v1733_v6 = vpack.c.bf16 %v384_v1, %v377_v0  ;;  %v656_v62 = vld [vmem:[%s2346_s5 + $0xc60] sm:$0xff]  ;;  %v663_v63 = vld [vmem:[%s2346_s5 + $0xc98] sm:$0xff]  ;;  %v454_v1 = vld [vmem:[%s2346_s5 + $0x610] sm:$0xff] }
 0x15b   : > { %1938 = vmatprep.subr.bf16.mxu1 %v1937_v8  ;;  %v1957_v8 = vpack.c.bf16 %v608_v3, %v601_v2  ;;  %v447_v0 = vld [vmem:[%s2346_s5 + $0x5d8] sm:$0xff]  ;;  %v678_v3 = vld [vmem:[%s2346_s5 + $0xd10] sm:$0xff] }
 0x15c   : > { %v671_v2 = vld [vmem:[%s2346_s5 + $0xcd8] sm:$0xff] }
 0x161   : > { %1716 = vmatpush1.bf16.xpose.msra.mxu0 %v1715_v18  ;;  %v1735_v18 = vpack.c.bf16 %v383_v10, %v376_v9  ;;  %v446_v9 = vld [vmem:[%s2346_s5 + $0x5d0] sm:$0xff]  ;;  %v453_v10 = vld [vmem:[%s2346_s5 + $0x608] sm:$0xff] }
 0x162   : > { %1940 = vmatpush1.bf16.xpose.msra.mxu1 %v1939_v19  ;;  %1718 = vmatprep.subr.bf16.mxu0 %v1717_v20  ;;  %v1959_v19 = vpack.c.bf16 %v607_v12, %v600_v11  ;;  %v1737_v20 = vpack.c.bf16 %v398_v14, %v391_v13  ;;  %v670_v11 = vld [vmem:[%s2346_s5 + $0xcd0] sm:$0xff]  ;;  %v677_v12 = vld [vmem:[%s2346_s5 + $0xd08] sm:$0xff]  ;;  %v468_v14 = vld [vmem:[%s2346_s5 + $0x680] sm:$0xff] }
 0x163   : > { %1942 = vmatprep.subr.bf16.mxu1 %v1941_v23  ;;  %v1961_v23 = vpack.c.bf16 %v622_v17, %v615_v15  ;;  %v461_v13 = vld [vmem:[%s2346_s5 + $0x648] sm:$0xff]  ;;  %v692_v17 = vld [vmem:[%s2346_s5 + $0xd80] sm:$0xff] }
 0x164   : > { %v685_v15 = vld [vmem:[%s2346_s5 + $0xd48] sm:$0xff] }
 0x169   : > { %1720 = vmatpush1.bf16.xpose.msra.mxu0 %v1719_v21  ;;  %v1739_v21 = vpack.c.bf16 %v397_v25, %v390_v24  ;;  %v460_v24 = vld [vmem:[%s2346_s5 + $0x640] sm:$0xff]  ;;  %v467_v25 = vld [vmem:[%s2346_s5 + $0x678] sm:$0xff] }
 0x16a   : > { %1944 = vmatpush1.bf16.xpose.msra.mxu1 %v1943_v33  ;;  %1722 = vmatprep.subr.bf16.mxu0 %v1721_v34  ;;  %v1963_v33 = vpack.c.bf16 %v621_v27, %v614_v26  ;;  %v1741_v34 = vpack.c.bf16 %v412_v29, %v405_v28  ;;  %v684_v26 = vld [vmem:[%s2346_s5 + $0xd40] sm:$0xff]  ;;  %v691_v27 = vld [vmem:[%s2346_s5 + $0xd78] sm:$0xff]  ;;  %v482_v29 = vld [vmem:[%s2346_s5 + $0x6f0] sm:$0xff] }
 0x16b   : > { %1946 = vmatprep.subr.bf16.mxu1 %v1945_v35  ;;  %v1965_v35 = vpack.c.bf16 %v636_v32, %v629_v30  ;;  %v475_v28 = vld [vmem:[%s2346_s5 + $0x6b8] sm:$0xff]  ;;  %v706_v32 = vld [vmem:[%s2346_s5 + $0xdf0] sm:$0xff] }
 0x16c   : > { %v699_v30 = vld [vmem:[%s2346_s5 + $0xdb8] sm:$0xff] }
 0x171   : > { %1724 = vmatpush1.bf16.xpose.msra.mxu0 %v1723_v22  ;;  %v1743_v22 = vpack.c.bf16 %v411_v37, %v404_v36  ;;  %v474_v36 = vld [vmem:[%s2346_s5 + $0x6b0] sm:$0xff]  ;;  %v481_v37 = vld [vmem:[%s2346_s5 + $0x6e8] sm:$0xff] }
 0x172   : > { %1948 = vmatpush1.bf16.xpose.msra.mxu1 %v1947_v46  ;;  %1726 = vmatprep.subr.bf16.mxu0 %v1725_v47  ;;  %v1967_v46 = vpack.c.bf16 %v635_v40, %v628_v39  ;;  %v1745_v47 = vpack.c.bf16 %v426_v43, %v419_v41  ;;  %v698_v39 = vld [vmem:[%s2346_s5 + $0xdb0] sm:$0xff]  ;;  %v705_v40 = vld [vmem:[%s2346_s5 + $0xde8] sm:$0xff] }
 0x173   : > { %1950 = vmatprep.subr.bf16.mxu1 %v1949_v48  ;;  %v1969_v48 = vpack.c.bf16 %v650_v45, %v643_v44  ;;  %v378_v41 = vld [vmem:[%s2346_s5 + $0x3b0] sm:$0xff]  ;;  %v385_v43 = vld [vmem:[%s2346_s5 + $0x3e8] sm:$0xff] }
 0x174   : > { %v602_v44 = vld [vmem:[%s2346_s5 + $0xab0] sm:$0xff]  ;;  %v609_v45 = vld [vmem:[%s2346_s5 + $0xae8] sm:$0xff] }
 0x179   : > { %1728 = vmatpush1.bf16.xpose.msra.mxu0 %v1727_v31  ;;  %v1747_v31 = vpack.c.bf16 %v425_v50, %v418_v49  ;;  %v266_v49 = vld [vmem:[%s2346_s5 + $0x30] sm:$0xff]  ;;  %v273_v50 = vld [vmem:[%s2346_s5 + $0x68] sm:$0xff] }
 0x17a   : > { %1952 = vmatpush1.bf16.xpose.msra.mxu1 %v1951_v57  ;;  %1730 = vmatprep.subr.bf16.mxu0 %v1729_v58  ;;  %v1971_v57 = vpack.c.bf16 %v649_v52, %v642_v51  ;;  %v1749_v58 = vpack.c.bf16 %v440_v54, %v433_v53  ;;  %v490_v51 = vld [vmem:[%s2346_s5 + $0x730] sm:$0xff]  ;;  %v497_v52 = vld [vmem:[%s2346_s5 + $0x768] sm:$0xff]  ;;  %v392_v53 = vld [vmem:[%s2346_s5 + $0x420] sm:$0xff] }
 0x17b   : > { %1954 = vmatprep.subr.bf16.mxu1 %v1953_v59  ;;  %v1973_v59 = vpack.c.bf16 %v664_v56, %v657_v55  ;;  %v399_v54 = vld [vmem:[%s2346_s5 + $0x458] sm:$0xff]  ;;  %v727_v55 = vcombine.high %v2659_v38, %v2659_v38  ;;  %v616_v56 = vld [vmem:[%s2346_s5 + $0xb20] sm:$0xff] }
 0x17c   : > { %v280_v38 = vld [vmem:[%s2346_s5 + $0xa0] sm:$0xff] }
 0x181   : > { %1732 = vmatpush1.bf16.xpose.msra.mxu0 %v1731_v4  ;;  %v1751_v4 = vpack.c.bf16 %v439_v61, %v432_v60  ;;  %v2805_v61 = vrot.slane %v727_v55, %v2427_v16  ;;  %v686_v55 = vld [vmem:[%s2346_s5 + $0xd50] sm:$0xff] }
 0x182   : > { %1956 = vmatpush1.bf16.xpose.msra.mxu1 %v1955_v5  ;;  %1734 = vmatprep.subr.bf16.mxu0 %v1733_v6  ;;  %v1975_v5 = vpack.c.bf16 %v663_v63, %v656_v62  ;;  %v1753_v6 = vpack.c.bf16 %v454_v1, %v447_v0  ;;  %v287_v62 = vld [vmem:[%s2346_s5 + $0xd8] sm:$0xff]  ;;  %v504_v63 = vld [vmem:[%s2346_s5 + $0x7a0] sm:$0xff]  ;;  %v406_v1 = vld [vmem:[%s2346_s5 + $0x490] sm:$0xff] }
 0x183   : > { %1958 = vmatprep.subr.bf16.mxu1 %v1957_v8  ;;  %v1977_v8 = vpack.c.bf16 %v678_v3, %v671_v2  ;;  %v511_v0 = vld [vmem:[%s2346_s5 + $0x7d8] sm:$0xff]  ;;  %v413_v2 = vld [vmem:[%s2346_s5 + $0x4c8] sm:$0xff]  ;;  %v630_v3 = vld [vmem:[%s2346_s5 + $0xb90] sm:$0xff] }
 0x189   : > { %1736 = vmatpush1.bf16.xpose.msra.mxu0 %v1735_v18  ;;  %v1755_v18 = vpack.c.bf16 %v453_v10, %v446_v9  ;;  %v294_v9 = vld [vmem:[%s2346_s5 + $0x110] sm:$0xff]  ;;  %v301_v10 = vld [vmem:[%s2346_s5 + $0x148] sm:$0xff] }
 0x18a   : > { %1960 = vmatpush1.bf16.xpose.msra.mxu1 %v1959_v19  ;;  %1738 = vmatprep.subr.bf16.mxu0 %v1737_v20  ;;  %v1979_v19 = vpack.c.bf16 %v677_v12, %v670_v11  ;;  %v1757_v20 = vpack.c.bf16 %v468_v14, %v461_v13  ;;  %v518_v11 = vld [vmem:[%s2346_s5 + $0x810] sm:$0xff]  ;;  %v525_v12 = vld [vmem:[%s2346_s5 + $0x848] sm:$0xff]  ;;  %v420_v13 = vld [vmem:[%s2346_s5 + $0x500] sm:$0xff] }
 0x18b   : > { %1962 = vmatprep.subr.bf16.mxu1 %v1961_v23  ;;  %v1981_v23 = vpack.c.bf16 %v692_v17, %v685_v15  ;;  %v427_v14 = vld [vmem:[%s2346_s5 + $0x538] sm:$0xff]  ;;  %v644_v15 = vld [vmem:[%s2346_s5 + $0xc00] sm:$0xff] }
 0x18c   : > { %v651_v17 = vld [vmem:[%s2346_s5 + $0xc38] sm:$0xff] }
 0x191   : > { %1740 = vmatpush1.bf16.xpose.msra.mxu0 %v1739_v21  ;;  %v1759_v21 = vpack.c.bf16 %v467_v25, %v460_v24  ;;  %v308_v24 = vld [vmem:[%s2346_s5 + $0x180] sm:$0xff]  ;;  %v315_v25 = vld [vmem:[%s2346_s5 + $0x1b8] sm:$0xff] }
 0x192   : > { %1964 = vmatpush1.bf16.xpose.msra.mxu1 %v1963_v33  ;;  %1742 = vmatprep.subr.bf16.mxu0 %v1741_v34  ;;  %v1983_v33 = vpack.c.bf16 %v691_v27, %v684_v26  ;;  %v1761_v34 = vpack.c.bf16 %v482_v29, %v475_v28  ;;  %v532_v26 = vld [vmem:[%s2346_s5 + $0x880] sm:$0xff]  ;;  %v539_v27 = vld [vmem:[%s2346_s5 + $0x8b8] sm:$0xff]  ;;  %v434_v28 = vld [vmem:[%s2346_s5 + $0x570] sm:$0xff] }
 0x193   : > { %1966 = vmatprep.subr.bf16.mxu1 %v1965_v35  ;;  %v1985_v35 = vpack.c.bf16 %v706_v32, %v699_v30  ;;  %v441_v29 = vld [vmem:[%s2346_s5 + $0x5a8] sm:$0xff]  ;;  %v658_v30 = vld [vmem:[%s2346_s5 + $0xc70] sm:$0xff] }
 0x194   : > { %v665_v32 = vld [vmem:[%s2346_s5 + $0xca8] sm:$0xff] }
 0x199   : > { %1744 = vmatpush1.bf16.xpose.msra.mxu0 %v1743_v22  ;;  %v1763_v22 = vpack.c.bf16 %v481_v37, %v474_v36  ;;  %v322_v36 = vld [vmem:[%s2346_s5 + $0x1f0] sm:$0xff]  ;;  %v329_v37 = vld [vmem:[%s2346_s5 + $0x228] sm:$0xff] }
 0x19a   : > { %1968 = vmatpush1.bf16.xpose.msra.mxu1 %v1967_v46  ;;  %1746 = vmatprep.subr.bf16.mxu0 %v1745_v47  ;;  %v1987_v46 = vpack.c.bf16 %v705_v40, %v698_v39  ;;  %v1765_v47 = vpack.c.bf16 %v385_v43, %v378_v41  ;;  %v546_v39 = vld [vmem:[%s2346_s5 + $0x8f0] sm:$0xff]  ;;  %v553_v40 = vld [vmem:[%s2346_s5 + $0x928] sm:$0xff]  ;;  %v448_v41 = vld [vmem:[%s2346_s5 + $0x5e0] sm:$0xff] }
 0x19b   : > { %1970 = vmatprep.subr.bf16.mxu1 %v1969_v48  ;;  %v1989_v48 = vpack.c.bf16 %v609_v45, %v602_v44  ;;  %v455_v43 = vld [vmem:[%s2346_s5 + $0x618] sm:$0xff]  ;;  %v672_v44 = vld [vmem:[%s2346_s5 + $0xce0] sm:$0xff] }
 0x19c   : > { %v679_v45 = vld [vmem:[%s2346_s5 + $0xd18] sm:$0xff] }
 0x1a1   : > { %1748 = vmatpush1.bf16.xpose.msra.mxu0 %v1747_v31  ;;  %v623_v31 = vld [vmem:[%s2346_s5 + $0xb58] sm:$0xff] }
 0x1a2   : > { %1972 = vmatpush1.bf16.xpose.msra.mxu1 %v1971_v57  ;;  %1750 = vmatprep.subr.bf16.mxu0 %v1749_v58  ;;  %v1767_v57 = vpack.c.bf16 %v273_v50, %v266_v49  ;;  %v1991_v58 = vpack.c.bf16 %v497_v52, %v490_v51  ;;  %v1993_v60 = vpack.c.bf16 %v623_v31, %v616_v56  ;;  %v336_v49 = vld [vmem:[%s2346_s5 + $0x260] sm:$0xff]  ;;  %v343_v50 = vld [vmem:[%s2346_s5 + $0x298] sm:$0xff]  ;;  %v693_v56 = vld [vmem:[%s2346_s5 + $0xd88] sm:$0xff] }
 0x1a3   : > { %1974 = vmatprep.subr.bf16.mxu1 %v1973_v59  ;;  %v1769_v59 = vpack.c.bf16 %v399_v54, %v392_v53  ;;  %v560_v51 = vld [vmem:[%s2346_s5 + $0x960] sm:$0xff]  ;;  %v567_v52 = vld [vmem:[%s2346_s5 + $0x998] sm:$0xff]  ;;  %v462_v53 = vld [vmem:[%s2346_s5 + $0x650] sm:$0xff]  ;;  %v1787_v31 = vpack.c.bf16 %v343_v50, %v336_v49 }
 0x1a4   : > { %v469_v54 = vld [vmem:[%s2346_s5 + $0x688] sm:$0xff] }
 0x1a9   : > { %1752 = vmatpush1.bf16.xpose.msra.mxu0 %v1751_v4  ;;  %v637_v4 = vld [vmem:[%s2346_s5 + $0xbc8] sm:$0xff] }
 0x1aa   : > { %1976 = vmatpush1.bf16.xpose.msra.mxu1 %v1975_v5  ;;  %1754 = vmatprep.subr.bf16.mxu0 %v1753_v6  ;;  %v1995_v5 = vpack.c.bf16 %v511_v0, %v504_v63  ;;  %v1773_v6 = vpack.c.bf16 %v413_v2, %v406_v1  ;;  %v581_v63 = vld [vmem:[%s2346_s5 + $0xa08] sm:$0xff]  ;;  %v476_v0 = vld [vmem:[%s2346_s5 + $0x6c0] sm:$0xff]  ;;  %v483_v1 = vld [vmem:[%s2346_s5 + $0x6f8] sm:$0xff] }
 0x1ab   : > { %1978 = vmatprep.subr.bf16.mxu1 %v1977_v8  ;;  %v1997_v8 = vpack.c.bf16 %v637_v4, %v630_v3  ;;  %v700_v2 = vld [vmem:[%s2346_s5 + $0xdc0] sm:$0xff]  ;;  %v707_v3 = vld [vmem:[%s2346_s5 + $0xdf8] sm:$0xff] }
 0x1b1   : > { %1756 = vmatpush1.bf16.xpose.msra.mxu0 %v1755_v18  ;;  %v1775_v18 = vpack.c.bf16 %v301_v10, %v294_v9  ;;  %v371_v9 = vld [vmem:[%s2346_s5 + $0x378] sm:$0xff]  ;;  %v588_v10 = vld [vmem:[%s2346_s5 + $0xa40] sm:$0xff] }
 0x1b2   : > { %1980 = vmatpush1.bf16.xpose.msra.mxu1 %v1979_v19  ;;  %1758 = vmatprep.subr.bf16.mxu0 %v1757_v20  ;;  %v1999_v19 = vpack.c.bf16 %v525_v12, %v518_v11  ;;  %v1777_v20 = vpack.c.bf16 %v427_v14, %v420_v13  ;;  %v595_v11 = vld [vmem:[%s2346_s5 + $0xa78] sm:$0xff] }
 0x1b3   : > { %1982 = vmatprep.subr.bf16.mxu1 %v1981_v23  ;;  %v2001_v23 = vpack.c.bf16 %v651_v17, %v644_v15  ;;  %v2019_v13 = vpack.c.bf16 %v595_v11, %v588_v10 }
 0x1b9   : > { %1760 = vmatpush1.bf16.xpose.msra.mxu0 %v1759_v21  ;;  %v1779_v21 = vpack.c.bf16 %v315_v25, %v308_v24  ;;  %v257_v25 = vld [vmem:[#allocation2] sm:$0xff] }
 0x1ba   : > { %1984 = vmatpush1.bf16.xpose.msra.mxu1 %v1983_v33  ;;  %1762 = vmatprep.subr.bf16.mxu0 %v1761_v34  ;;  %v2003_v33 = vpack.c.bf16 %v539_v27, %v532_v26  ;;  %v1781_v34 = vpack.c.bf16 %v441_v29, %v434_v28  ;;  %v1351_v28 = vsub.s32 (!%p1502_p6), 0, %v2416_v7  ;;  %v1355_v29 = vsub.s32 (!%p1502_p6), 1, %v2416_v7 }
 0x1bb   : > { %1986 = vmatprep.subr.bf16.mxu1 %v1985_v35  ;;  %v2005_v35 = vpack.c.bf16 %v665_v32, %v658_v30  ;;  %v1359_v30 = vsub.s32 (!%p1502_p6), 2, %v2416_v7  ;;  %v1363_v32 = vsub.s32 (!%p1502_p6), 3, %v2416_v7 }
 0x1c1   : > { %1764 = vmatpush1.bf16.xpose.msra.mxu0 %v1763_v22  ;;  %v1783_v22 = vpack.c.bf16 %v329_v37, %v322_v36 }
 0x1c2   : > { %1988 = vmatpush1.bf16.xpose.msra.mxu1 %v1987_v46  ;;  %1766 = vmatprep.subr.bf16.mxu0 %v1765_v47  ;;  %v2007_v46 = vpack.c.bf16 %v553_v40, %v546_v39  ;;  %v1785_v47 = vpack.c.bf16 %v455_v43, %v448_v41 }
 0x1c3   : > { %1990 = vmatprep.subr.bf16.mxu1 %v1989_v48  ;;  %v2009_v48 = vpack.c.bf16 %v679_v45, %v672_v44 }
 0x1c8   : > { %957 = vmatmul.mubr.f32.vlgmr.msra.gmra.mrb[0].mxu0 %v2666_v42 }
 0x1c9   : > { %1768 = vmatpush3.bf16.xpose.msra.mxu0 %v1767_v57  ;;  %1241 = vmatmul.mubr.f32.vlgmr.msra.gmra.mrb[0].mxu1 %v2666_v42  ;;  %v1771_v42 = vpack.c.bf16 %v287_v62, %v280_v38  ;;  %v2011_v57 = vpack.c.bf16 %v567_v52, %v560_v51  ;;  %v357_v38 = vld [vmem:[%s2346_s5 + $0x308] sm:$0xff]  ;;  %v574_v62 = vld [vmem:[%s2346_s5 + $0x9d0] sm:$0xff] }
 0x1ca   : > { %1992 = vmatpush3.bf16.xpose.msra.mxu1 %v1991_v58  ;;  %1770 = vmatprep.subr.bf16.mxu0 %v1769_v59  ;;  %v1789_v58 = vpack.c.bf16 %v469_v54, %v462_v53  ;;  %v2013_v59 = vpack.c.bf16 %v693_v56, %v686_v55 }
 0x1cb   : > { %1994 = vmatprep.subr.bf16.mxu1 %v1993_v60  ;;  %1537 = vmatprep.mubr.f32.mxu0 %v2805_v61  ;;  %v350_v60 = vld [vmem:[%s2346_s5 + $0x2d0] sm:$0xff] }
 0x1cc   : > { %1571 = vmatprep.mubr.f32.mxu1 %v2805_v61  ;;  %v1791_v4 = vpack.c.bf16 %v357_v38, %v350_v60 }
 0x1d1   : > { %1772 = vmatpush3.bf16.xpose.msra.mxu0 %v1771_v42  ;;  %v2015_v42 = vpack.c.bf16 %v581_v63, %v574_v62 }
 0x1d2   : > { %1996 = vmatpush3.bf16.xpose.msra.mxu1 %v1995_v5  ;;  %1774 = vmatprep.subr.bf16.mxu0 %v1773_v6  ;;  %v1793_v5 = vpack.c.bf16 %v483_v1, %v476_v0  ;;  %v2017_v6 = vpack.c.bf16 %v707_v3, %v700_v2 }
 0x1d3   : > { %1998 = vmatprep.subr.bf16.mxu1 %v1997_v8  ;;  %v364_v8 = vld [vmem:[%s2346_s5 + $0x340] sm:$0xff] }
 0x1d4   : > { %v1795_v12 = vpack.c.bf16 %v371_v9, %v364_v8 }
 0x1d9   : > { %1776 = vmatpush3.bf16.xpose.msra.mxu0 %v1775_v18 }
 0x1da   : > { %2000 = vmatpush3.bf16.xpose.msra.mxu1 %v1999_v19  ;;  %1778 = vmatprep.subr.bf16.mxu0 %v1777_v20 }
 0x1db   : > { %2002 = vmatprep.subr.bf16.mxu1 %v2001_v23 }
 0x1e1   : > { %1780 = vmatpush3.bf16.xpose.msra.mxu0 %v1779_v21 }
 0x1e2   : > { %2004 = vmatpush3.bf16.xpose.msra.mxu1 %v2003_v33  ;;  %1782 = vmatprep.subr.bf16.mxu0 %v1781_v34 }
 0x1e3   : > { %2006 = vmatprep.subr.bf16.mxu1 %v2005_v35 }
 0x1e9   : > { %1784 = vmatpush3.bf16.xpose.msra.mxu0 %v1783_v22 }
 0x1ea   : > { %2008 = vmatpush3.bf16.xpose.msra.mxu1 %v2007_v46  ;;  %1786 = vmatprep.subr.bf16.mxu0 %v1785_v47 }
 0x1eb   : > { %2010 = vmatprep.subr.bf16.mxu1 %v2009_v48 }
 0x1f1   : > { %1788 = vmatpush3.bf16.xpose.msra.mxu0 %v1787_v31 }
 0x1f2   : > { %2012 = vmatpush3.bf16.xpose.msra.mxu1 %v2011_v57  ;;  %1790 = vmatprep.subr.bf16.mxu0 %v1789_v58 }
 0x1f3   : > { %2014 = vmatprep.subr.bf16.mxu1 %v2013_v59 }
 0x1f9   : > { %1792 = vmatpush3.bf16.xpose.msra.mxu0 %v1791_v4 }
 0x1fa   : > { %2016 = vmatpush3.bf16.xpose.msra.mxu1 %v2015_v42  ;;  %1794 = vmatprep.subr.bf16.mxu0 %v1793_v5 }
 0x1fb   : > { %2018 = vmatprep.subr.bf16.mxu1 %v2017_v6 }
 0x201   : > { %1796 = vmatpush3.bf16.xpose.msra.mxu0 %v1795_v12 }
 0x202   : > { %2020 = vmatpush3.bf16.xpose.msra.mxu1 %v2019_v13 }
 0x208   : > { %1538 = vmatmul.mubr.f32.vlgmr.msra.gmra.mrb[0].mxu0 %v2805_v61 }
 0x209   : > { %1572 = vmatmul.mubr.f32.vlgmr.msra.gmra.mrb[0].mxu1 %v2805_v61  ;;  %v1347_v61 = vld [vmem:[%s244_s6] sm:$0xf] (!%p1502_p6) }
 0x20a   : > { %v1352_v21 = vrot.slane (!%p1502_p6), %v1347_v61, %v1351_v28  ;;  %v1356_v33 = vrot.slane (!%p1502_p6), %v1347_v61, %v1355_v29  ;;  %v1360_v34 = vrot.slane (!%p1502_p6), %v1347_v61, %v1359_v30  ;;  %v1364_v35 = vrot.slane (!%p1502_p6), %v1347_v61, %v1363_v32 }
 0x20c   : > { %v1365_v36 = vcombine.low (!%p1502_p6), %v1352_v21, %v1356_v33  ;;  %v1366_v37 = vcombine.low (!%p1502_p6), %v1360_v34, %v1364_v35 }
 0x20e   : > { %v1373_v39 = vrot.slane (!%p1502_p6), %v1365_v36, %v2427_v16  ;;  %v1380_v40 = vrot.slane (!%p1502_p6), %v1366_v37, %v2427_v16 }
 0x210   : > { %v1381_v43 = vcombine.low (!%p1502_p6), %v1373_v39, %v1380_v40 }
 0x2db   : > { %v1029_v14 = vpop.f32.mrb[0].mxu0 }
 0x2dc   : > { %v1313_v15 = vpop.f32.mrb[0].mxu1  ;;  %v1031_v17 = vpop.f32.mrb[1].mxu0 }
 0x2dd   : > { %v1322_v18 = vcombine.low %v1029_v14, %v1031_v17  ;;  %v1315_v19 = vpop.f32.mrb[1].mxu1 }
 0x2de   : > { %v1323_v20 = vcombine.low %v1313_v15, %v1315_v19 }
 0x2df   : > { %v1330_v23 = vrot.slane %v1322_v18, %v2427_v16 }
 0x2e0   : > { %v1337_v24 = vrot.slane %v1323_v20, %v2427_v16  ;;  %1345 = sbr.rel (%p1502_p6) target bundleno = 755 (0x2f3), region = 44 }
 0x2e2   : > { %v1338_v26 = vcombine.low %v1330_v23, %v1337_v24 }
 0x2e4   : > { %v1340_v27 = vadd.f32 %v1338_v26, %v257_v25 }
 0x2e6   : > { %1341 = vst [vmem:[#allocation2] sm:$0xff] %v1340_v27 }
 0x2ed   : > { %v1346_v41 = vld [vmem:[#allocation2] sm:$0xff] }
 0x2ee   : > { %v1383_v44 = vadd.f32 %v1381_v43, %v1346_v41 }
 0x2f0   : > { %v1384_v45 = vmax.f32 %v1383_v44, 0.0 }
 0x2f2   : > { %1385 = vst [vmem:[%s2364_s10] sm:$0xff] %v1384_v45 }
 0x2f3 PF: > { %s16_s19 = sadd.s32 1, %s2210_s19   ;;  %s2910_s12 = smov %s2186_s13 }
 0x2f4   : > { %p13_p8 = scmp.ge.s32.totalorder %s16_s19, 58   ;;  %s2911_s13 = smov %s2190_s14 }
 0x2f5   : > { %s2912_s14 = smov %s2304_s4  ;;  %s2913_s15 = smov %s2202_s17 }
 0x2f6   : > { %s2914_s16 = smov %s2206_s18  ;;  %s2915_s17 = smov %s2918_s21 }
 0x2f7   : > { %s2916_s18 = smov %s2922_s22  ;;  %15 = sbr.rel (!%p13_p8) target bundleno = 5 (0x5), region = 86 }
 0x2fe   :  { %1408 = vsyncpa [#allocation4], 1 }
 0x2ff   :  { %1410 = vsyncpa [#allocation4 + $0x1], 1 }

// kernel: model_forward.9
= control target key start
LH: loop header
LB: loop body
LE: loop exit
PB: predicated region body
PF: predicated region fallthrough
CT: control target
= control target key end

     0   :  { %v46_v3 = vlaneseq  ;;  %v431_v8 = vmov 1983009808   ;;  %s522_s0 = inlined_call_operand.vmem [shape: f32[2,1024], index: 0, kind: input, shape index: {}]   ;;  %s523_s1 = inlined_call_operand.vmem [shape: f32[10,1024], index: 1, kind: input, shape index: {}]   ;;  %s524_s2 = inlined_call_operand.vmem [shape: f32[1,10], index: 2, kind: input, shape index: {}]   ;;  %s525_s3 = inlined_call_operand.hbm [shape: f32[2,10], index: 3, kind: output, shape index: {}]  }
   0x1   :  { %v18_v0 = vld [vmem:[%s523_s1 + $0x8] sm:$0xff]  ;;  %v17_v2 = vld [vmem:[%s523_s1] sm:$0xff]  ;;  %v44_v9 = vunpack.c.l.s4 %v431_v8  ;;  %v20_v19 = vld [vmem:[%s523_s1 + $0x18] sm:$0xff] }
   0x2   :  { %v26_v1 = vld [vmem:[%s523_s1 + $0x48] sm:$0x3]  ;;  %v25_v5 = vld [vmem:[%s523_s1 + $0x40] sm:$0x3]  ;;  %v47_v15 = vshrl.u32 %v46_v3, 7  ;;  %v24_v24 = vld [vmem:[%s523_s1 + $0x38] sm:$0xff] }
   0x3   :  { %v381_v4 = vpack.c.bf16 %v26_v1, %v18_v0  ;;  %v22_v6 = vld [vmem:[%s523_s1 + $0x28] sm:$0xff]  ;;  %v383_v10 = vpack.c.bf16 %v25_v5, %v17_v2  ;;  %v21_v12 = vld [vmem:[%s523_s1 + $0x20] sm:$0xff]  ;;  %v45_v18 = vunpack.c.0.s8 %v44_v9  ;;  %v28_v20 = vld [vmem:[%s523_s1 + $0x58] sm:$0x3] }
   0x4   :  { %v30_v7 = vld [vmem:[%s523_s1 + $0x68] sm:$0x3]  ;;  %v29_v13 = vld [vmem:[%s523_s1 + $0x60] sm:$0x3]  ;;  %v385_v22 = vpack.c.bf16 %v28_v20, %v20_v19  ;;  %v19_v26 = vld [vmem:[%s523_s1 + $0x10] sm:$0xff] }
   0x5   :  { %v389_v11 = vpack.c.bf16 %v30_v7, %v22_v6  ;;  %v15_v14 = vld [vmem:[%s522_s0] sm:$0xff]  ;;  %382 = vmatprep.subr.bf16.mxu1 %v381_v4  ;;  %v391_v16 = vpack.c.bf16 %v29_v13, %v21_v12  ;;  %v16_v21 = vld [vmem:[%s522_s0 + $0x8] sm:$0xff]  ;;  %v48_v25 = vsub.s32 %v45_v18, %v47_v15  ;;  %v27_v27 = vld [vmem:[%s523_s1 + $0x50] sm:$0x3] }
   0x6   :  { %v42_v17 = vcombine.high %v15_v14, %v15_v14  ;;  %384 = vmatpush1.bf16.xpose.msra.mxu1 %v383_v10  ;;  %v59_v23 = vcombine.high %v16_v21, %v16_v21  ;;  %v32_v28 = vld [vmem:[%s523_s1 + $0x78] sm:$0x3]  ;;  %v23_v30 = vld [vmem:[%s523_s1 + $0x30] sm:$0xff] }
   0x7   :  { %390 = vmatprep.subr.bf16.mxu0 %v389_v11  ;;  %386 = vmatprep.subr.bf16.mxu1 %v385_v22  ;;  %v393_v29 = vpack.c.bf16 %v32_v28, %v24_v24  ;;  %v31_v31 = vld [vmem:[%s523_s1 + $0x70] sm:$0x3] }
   0x8   :  { %392 = vmatpush1.bf16.xpose.msra.mxu0 %v391_v16 }
   0x9   :  { %8 = vsyncpa [#allocation3], 0  ;;  %v49_v32 = vrot.slane %v15_v14, %v48_v25  ;;  %v66_v33 = vrot.slane %v16_v21, %v48_v25  ;;  %v56_v34 = vrot.slane %v42_v17, %v48_v25  ;;  %v73_v35 = vrot.slane %v59_v23, %v48_v25  ;;  %394 = vmatprep.subr.bf16.mxu0 %v393_v29  ;;  %v380_v42 = vld [vmem:[%s524_s2] ss:$0 sm:$0xff]  ;;  %s432_s21 = smov [#allocation2]  }
   0xa   :  { %v387_v38 = vpack.c.bf16 %v27_v27, %v19_v26  ;;  %v395_v39 = vpack.c.bf16 %v31_v31, %v23_v30  ;;  %s372_s22 = sshll.u32 %s432_s21, 4  ;;  %vm364_vm0 = vcmask 74752   ;;  %s373_s22 = int_to_ptr.vmem [resolvable:$true] %s372_s22 }
   0xb   :  { %v57_v36 = vcombine.high %v49_v32, %v49_v32  ;;  %v74_v37 = vcombine.high %v66_v33, %v66_v33  ;;  %v58_v40 = vcombine.high %v56_v34, %v56_v34  ;;  %v75_v41 = vcombine.high %v73_v35, %v73_v35  ;;  %s407_s23 = scalar_lea.vmem %s373_s22, 32  ;;  %p412_p1 = scmp.lt.s32.totalorder %s373_s22, %s373_s22 }
   0xc   :  { %p408_p0 = scmp.ne.s32.totalorder %s373_s22, %s407_s23  ;;  %p413_p2 = scmp.lt.s32.totalorder %s407_s23, %s407_s23 }
   0xd   :  { %148 = vmatprep.mubr.f32.mxu1 %v57_v36  ;;  %288 = vmatprep.mubr.f32.mxu0 %v74_v37 }
   0xe   :  { %149 = vmatmul.mubr.f32.vlgmr.msra.gmra.mrb[0].mxu1 %v49_v32  ;;  %p414_p3 = por %p413_p2, %p412_p1 }
   0xf   :  { %289 = vmatmul.mubr.f32.vlgmr.msra.gmra.mrb[0].mxu0 %v66_v33  ;;  %388 = vmatpush1.bf16.xpose.msra.mxu1 %v387_v38 }
  0x10   :  { %396 = vmatpush1.bf16.xpose.msra.mxu0 %v395_v39  ;;  %218 = vmatprep.mubr.f32.mxu1 %v58_v40  ;;  %p415_p4 = pnand %p414_p3, %p408_p0 }
  0x11   :  { %358 = vmatprep.mubr.f32.mxu0 %v75_v41 }
  0x16   :  { %219 = vmatmul.mubr.f32.vlgmr.msra.gmra.mrb[0].mxu1 %v56_v34 }
  0x17   :  { %359 = vmatmul.mubr.f32.vlgmr.msra.gmra.mrb[0].mxu0 %v73_v35 }
  0xe9   :  { %v220_v43 = vpop.f32.mrb[0].mxu1 }
  0xea   :  { %v360_v44 = vpop.f32.mrb[0].mxu0  ;;  %v397_v45 = vadd.f32 %v380_v42, %v220_v43  ;;  %v222_v46 = vpop.f32.mrb[1].mxu1 }
  0xeb   :  { %v362_v47 = vpop.f32.mrb[1].mxu0 }
  0xec   :  { %v398_v48 = vadd.f32 %v397_v45, %v360_v44 }
  0xee   :  { %365 = vst.msk [vmem:[#allocation2] sm:$0x3] %vm364_vm0, %v398_v48 }
  0xef   :  { %418 = shalt.err (!%p415_p4)
}
  0xf0   :  { %s419_s25 = scalar_lea.hbm %s525_s3, 32 }
  0xf1   :  { %p420_p5 = scmp.ne.s32.totalorder %s525_s3, %s419_s25  ;;  %p423_p6 = scmp.lt.u32.totalorder %s419_s25, %s525_s3 }
  0xf3   :  { %p425_p7 = pnand %p423_p6, %p420_p5 }
  0xf5   :  { %428 = shalt.err (!%p425_p7)
}
  0xf6   :  { %375 = dma.vmem_to_hbm [thread:$0]  %s373_s22, 32, %s525_s3, [#allocation3]  }
  0xf7   :  { %429 = dma.done.wait [#allocation3], 32  }
  0xf8   :  { %430 = vsyncadd [#allocation3], 4294967264 }
  0xf9   :  { %379 = vsyncpa [#allocation3], 1 }

</bundles_post_ra>
